<compile_context>
chip_gen: v5e
topology: v5e:2x2
jax: 0.10.0
libtpu: 0.0.40
codegen_flags: <defaults>
</compile_context>

<pallas_src>
import functools

import numpy as np
import jax
import jax.numpy as jnp
from jax import lax
from jax.experimental import pallas as pl
from jax.experimental.pallas import tpu as pltpu

EPS = 1e-5


def _conv_bn_stats_kernel(x_ref, scale_ref, shift_ref, w_ref, b_ref,
                          y_ref, stats_ref, pad_scr,
                          *, H, W, C, relu_in):
    """One image per grid step.

    x_ref     : (1, H*W, C)   activation, flat, channels-last.
    scale/shift: (1, C)       affine applied before the conv (identity for conv1,
                              BN1 scale/shift for conv2).
    w_ref     : (9*C, C)      conv weights, tap-major (kh, kw, cin) x cout.
    b_ref     : (1, C)        conv bias.
    y_ref     : (1, H*W, C)   pre-BN conv output (HBM spill).
    stats_ref : (1, 2, C)     per-image [sum, sum-of-squares] over H*W.
    pad_scr   : (H*W + 2*W + 16, C)  flat activation buffer, zero halo along H.
    """
    HW = H * W
    PAD = W + 8                       # halo rows before the interior
    cdtype = pad_scr.dtype
    f32 = jnp.float32

    # Input affine (+ optional ReLU) in f32, then cast to the matmul dtype.
    h = x_ref[0].astype(f32) * scale_ref[...] + shift_ref[...]
    if relu_in:
        h = jnp.maximum(h, 0.0)
    h = h.astype(cdtype)

    # Zero the halos every step (safe under core-parallel grids); one aligned
    # interior store (PAD = W + 8 is a multiple of 8 when W is).
    pad_scr[0:PAD, :] = jnp.zeros((PAD, C), cdtype)
    pad_scr[PAD + HW:PAD + HW + W + 8, :] = jnp.zeros((W + 8, C), cdtype)
    pad_scr[PAD:PAD + HW, :] = h

    # The image is not padded along W, so kw==0 / kw==2 taps wrap across rows;
    # mask those columns instead (VPU select, overlaps the MXU).
    col = lax.broadcasted_iota(jnp.int32, (HW, 1), 0) % W
    not_first = col != 0
    not_last = col != (W - 1)
    zeros = jnp.zeros((HW, C), cdtype)

    # im2col: 9 contiguous offset slices of the flat padded buffer -> K = 9*C.
    slabs = []
    for kh in range(3):
        for kw in range(3):
            off = PAD + (kh - 1) * W + (kw - 1)
            slab = pad_scr[off:off + HW, :]
            if kw == 0:
                slab = jnp.where(not_first, slab, zeros)
            elif kw == 2:
                slab = jnp.where(not_last, slab, zeros)
            slabs.append(slab)
    cols = jnp.concatenate(slabs, axis=1)                      # (HW, 9*C)

    y = jnp.dot(cols, w_ref[...], preferred_element_type=f32) + b_ref[...]
    y_ref[0] = y.astype(y_ref.dtype)

    # Fused per-image BN statistics (reduced across N in the wrapper).
    # TODO(synk): E[x^2]-E[x]^2 can cancel for large-mean activations; a centered
    #             second pass (Welford) would be more robust.
    s_row = jnp.sum(y, axis=0, keepdims=True)
    ss_row = jnp.sum(y * y, axis=0, keepdims=True)
    stats_ref[0] = jnp.concatenate([s_row, ss_row], axis=0)


def _bn_add_relu_kernel(y_ref, res_ref, scale_ref, shift_ref, out_ref):
    r = y_ref[0].astype(jnp.float32) * scale_ref[...] + shift_ref[...] + res_ref[0]
    r = jnp.maximum(r, 0.0)
    out_ref[0] = jnp.transpose(r)          # lane-dense (C, H*W) output block


def _vmem_limit_bytes():
    try:
        cap = int(pltpu.get_tpu_info().vmem_capacity_bytes)
    except Exception:
        cap = 64 * 1024 * 1024             # conservative (v7x-sized) fallback
    # leave headroom for compiler-internal scratch / double buffers
    return int(min(cap * 3 // 4, 96 * 1024 * 1024))


def _conv_bn_stats(x, scale, shift, w, b, *, N, H, W, C, relu_in,
                   compute_dtype, vmem_limit):
    HW = H * W
    kernel = functools.partial(_conv_bn_stats_kernel, H=H, W=W, C=C,
                               relu_in=relu_in)
    return pl.pallas_call(
        kernel,
        grid=(N,),
        in_specs=[
            pl.BlockSpec((1, HW, C), lambda n: (n, 0, 0)),     # activation
            pl.BlockSpec((1, C), lambda n: (0, 0)),            # scale
            pl.BlockSpec((1, C), lambda n: (0, 0)),            # shift
            pl.BlockSpec((9 * C, C), lambda n: (0, 0)),        # weights
            pl.BlockSpec((1, C), lambda n: (0, 0)),            # bias
        ],
        out_specs=(
            pl.BlockSpec((1, HW, C), lambda n: (n, 0, 0)),     # pre-BN conv out
            pl.BlockSpec((1, 2, C), lambda n: (n, 0, 0)),      # per-image stats
        ),
        out_shape=(
            jax.ShapeDtypeStruct((N, HW, C), compute_dtype),
            jax.ShapeDtypeStruct((N, 2, C), jnp.float32),
        ),
        scratch_shapes=[pltpu.VMEM((HW + 2 * W + 16, C), compute_dtype)],
        compiler_params=pltpu.CompilerParams(
            dimension_semantics=("parallel",),
            vmem_limit_bytes=vmem_limit),
    )(x, scale, shift, w, b)


def _bn_affine(stats, gamma, beta, count):
    s = jnp.sum(stats[:, 0, :], axis=0)
    ss = jnp.sum(stats[:, 1, :], axis=0)
    mean = s / count
    var = jnp.maximum(ss / count - mean * mean, 0.0)
    scale = gamma.astype(jnp.float32) * lax.rsqrt(var + EPS)
    shift = beta.astype(jnp.float32) - mean * scale
    c = scale.shape[0]
    return scale.reshape(1, c), shift.reshape(1, c)


def block_resnet18(x_nchw, params, *, stride=1, identity_downsample=None,
                   compute_dtype=jnp.float32):
    """Forward pass of Block_Resnet18 (default module args), NCHW in / NCHW out."""
    if stride != 1 or identity_downsample is not None:
        # TODO(synk): stride>1 / identity_downsample (conv1x1 + BN) path not implemented.
        raise NotImplementedError("only stride=1, identity_downsample=None supported")

    w1, b1, g1, be1, w2, b2, g2, be2 = params
    N, C, H, W = x_nchw.shape
    assert w1.shape == (C, C, 3, 3) and w2.shape == (C, C, 3, 3)

    vmem_limit = _vmem_limit_bytes()
    HW = H * W
    x = jnp.transpose(x_nchw, (0, 2, 3, 1)).reshape(N, HW, C).astype(jnp.float32)

    # PyTorch OIHW -> (kh, kw, cin, cout) -> (9*C, C), matching im2col column order.
    to_mat = lambda w: jnp.transpose(w, (2, 3, 1, 0)).reshape(9 * C, C).astype(compute_dtype)
    row = lambda v: v.reshape(1, C).astype(jnp.float32)
    ones = jnp.ones((1, C), jnp.float32)
    zeros = jnp.zeros((1, C), jnp.float32)

    conv = functools.partial(_conv_bn_stats, N=N, H=H, W=W, C=C,
                             compute_dtype=compute_dtype, vmem_limit=vmem_limit)

    # conv1 (+ fused BN1 batch statistics)
    y1, st1 = conv(x, ones, zeros, to_mat(w1), row(b1), relu_in=False)
    scale1, shift1 = _bn_affine(st1, g1, be1, N * HW)

    # relu(BN1) -> conv2 (+ fused BN2 batch statistics)
    y2, st2 = conv(y1, scale1, shift1, to_mat(w2), row(b2), relu_in=True)
    scale2, shift2 = _bn_affine(st2, g2, be2, N * HW)

    # BN2 + residual + ReLU, lane-dense (N, C, H*W) output.
    out = pl.pallas_call(
        _bn_add_relu_kernel,
        grid=(N,),
        in_specs=[
            pl.BlockSpec((1, HW, C), lambda n: (n, 0, 0)),     # y2
            pl.BlockSpec((1, HW, C), lambda n: (n, 0, 0)),     # residual x
            pl.BlockSpec((1, C), lambda n: (0, 0)),            # scale2
            pl.BlockSpec((1, C), lambda n: (0, 0)),            # shift2
        ],
        out_specs=pl.BlockSpec((1, C, HW), lambda n: (n, 0, 0)),
        out_shape=jax.ShapeDtypeStruct((N, C, HW), jnp.float32),
        compiler_params=pltpu.CompilerParams(
            dimension_semantics=("parallel",),
            vmem_limit_bytes=vmem_limit),
    )(y2, x, scale2, shift2)

    return out.reshape(N, C, H, W)


def reference(x_nchw, params):
    """Pure-JAX reference matching PyTorch training-mode forward."""
    w1, b1, g1, be1, w2, b2, g2, be2 = params
    x = jnp.transpose(x_nchw, (0, 2, 3, 1))

    def conv(h, w, b):
        wk = jnp.transpose(w, (2, 3, 1, 0))
        y = lax.conv_general_dilated(h, wk, (1, 1), ((1, 1), (1, 1)),
                                     dimension_numbers=('NHWC', 'HWIO', 'NHWC'))
        return y + b

    def bn(y, g, be):
        m = jnp.mean(y, axis=(0, 1, 2), keepdims=True)
        v = jnp.mean((y - m) ** 2, axis=(0, 1, 2), keepdims=True)
        return (y - m) * lax.rsqrt(v + EPS) * g + be

    h = jnp.maximum(bn(conv(x, w1, b1), g1, be1), 0.0)
    h = bn(conv(h, w2, b2), g2, be2)
    return jnp.transpose(jnp.maximum(h + x, 0.0), (0, 3, 1, 2))


if __name__ == "__main__":
    # Small but ResNet18-like shapes (in_channels == out_channels, stride=1).
    N, C, H, W = 2, 64, 16, 16
    key = jax.random.PRNGKey(0)
    ks = jax.random.split(key, 9)

    w1 = 0.1 * jax.random.normal(ks[0], (C, C, 3, 3), jnp.float32)
    b1 = 0.1 * jax.random.normal(ks[1], (C,), jnp.float32)
    g1 = 1.0 + 0.1 * jax.random.normal(ks[2], (C,), jnp.float32)
    be1 = 0.1 * jax.random.normal(ks[3], (C,), jnp.float32)
    w2 = 0.1 * jax.random.normal(ks[4], (C, C, 3, 3), jnp.float32)
    b2 = 0.1 * jax.random.normal(ks[5], (C,), jnp.float32)
    g2 = 1.0 + 0.1 * jax.random.normal(ks[6], (C,), jnp.float32)
    be2 = 0.1 * jax.random.normal(ks[7], (C,), jnp.float32)
    params = (w1, b1, g1, be1, w2, b2, g2, be2)

    x = jax.random.normal(ks[8], (N, C, H, W), jnp.float32)           # NCHW, like PyTorch

    fwd = jax.jit(lambda xx: block_resnet18(xx, params))
    y = jax.block_until_ready(fwd(x))
    y_ref = jax.block_until_ready(reference(x, params))

    assert y.shape == (N, C, H, W)
    if not np.allclose(np.asarray(y), np.asarray(y_ref), rtol=2e-3, atol=2e-3):
        raise AssertionError("Pallas kernel does not match reference")
    print("KERNEL_OK")
</pallas_src>

<mosaic_0001>
module attributes {stable_mosaic.version = 11 : i64} {
  func.func @_conv_bn_stats_kernel(%arg0: i32, %arg1: memref<1x256x64xf32, #tpu.memory_space<vmem>>, %arg2: memref<1x64xf32, #tpu.memory_space<vmem>>, %arg3: memref<1x64xf32, #tpu.memory_space<vmem>>, %arg4: memref<576x64xf32, #tpu.memory_space<vmem>>, %arg5: memref<1x64xf32, #tpu.memory_space<vmem>>, %arg6: memref<1x256x64xf32, #tpu.memory_space<vmem>>, %arg7: memref<1x2x64xf32, #tpu.memory_space<vmem>>, %arg8: memref<304x64xf32, #tpu.memory_space<vmem>>) attributes {dimension_semantics = [#tpu.dimension_semantics<parallel>], iteration_bounds = array<i64: 2>, scalar_prefetch = 0 : i64, scratch_operands = 1 : i64, tpu.core_type = #tpu.core_type<tc>, window_params = [{transform_indices = @transform_0, window_bounds = array<i64: 1, 256, 64>}, {pipeline_mode = #tpu.pipeline_mode<synchronous>, transform_indices = @transform_1, window_bounds = array<i64: 1, 64>}, {pipeline_mode = #tpu.pipeline_mode<synchronous>, transform_indices = @transform_2, window_bounds = array<i64: 1, 64>}, {pipeline_mode = #tpu.pipeline_mode<synchronous>, transform_indices = @transform_3, window_bounds = array<i64: 576, 64>}, {pipeline_mode = #tpu.pipeline_mode<synchronous>, transform_indices = @transform_4, window_bounds = array<i64: 1, 64>}, {transform_indices = @transform_5, window_bounds = array<i64: 1, 256, 64>}, {transform_indices = @transform_6, window_bounds = array<i64: 1, 2, 64>}]} {
    %c0 = arith.constant 0 : index
    %c0_0 = arith.constant 0 : index
    %c0_1 = arith.constant 0 : index
    %0 = vector.load %arg1[%c0, %c0_0, %c0_1] : memref<1x256x64xf32, #tpu.memory_space<vmem>>, vector<1x256x64xf32>
    %1 = vector.shape_cast %0 : vector<1x256x64xf32> to vector<256x64xf32>
    %c0_2 = arith.constant 0 : index
    %c0_3 = arith.constant 0 : index
    %2 = vector.load %arg2[%c0_2, %c0_3] : memref<1x64xf32, #tpu.memory_space<vmem>>, vector<1x64xf32>
    %3 = vector.broadcast %2 : vector<1x64xf32> to vector<256x64xf32>
    %4 = arith.mulf %1, %3 : vector<256x64xf32>
    %c0_4 = arith.constant 0 : index
    %c0_5 = arith.constant 0 : index
    %5 = vector.load %arg3[%c0_4, %c0_5] : memref<1x64xf32, #tpu.memory_space<vmem>>, vector<1x64xf32>
    %6 = vector.broadcast %5 : vector<1x64xf32> to vector<256x64xf32>
    %7 = arith.addf %4, %6 : vector<256x64xf32>
    %cst = arith.constant 0.000000e+00 : f32
    %8 = vector.broadcast %cst : f32 to vector<24x64xf32>
    %c0_6 = arith.constant 0 : index
    %c0_7 = arith.constant 0 : index
    %9 = vector.load %arg8[%c0_6, %c0_7] : memref<304x64xf32, #tpu.memory_space<vmem>>, vector<24x64xf32>
    tpu.vector_store %arg8[%c0_6, %c0_7], %8 {strides = array<i32>} : memref<304x64xf32, #tpu.memory_space<vmem>>, vector<24x64xf32>,
    %cst_8 = arith.constant 0.000000e+00 : f32
    %10 = vector.broadcast %cst_8 : f32 to vector<24x64xf32>
    %c280 = arith.constant 280 : index
    %c0_9 = arith.constant 0 : index
    %11 = vector.load %arg8[%c280, %c0_9] : memref<304x64xf32, #tpu.memory_space<vmem>>, vector<24x64xf32>
    tpu.vector_store %arg8[%c280, %c0_9], %10 {strides = array<i32>} : memref<304x64xf32, #tpu.memory_space<vmem>>, vector<24x64xf32>,
    %c24 = arith.constant 24 : index
    %c0_10 = arith.constant 0 : index
    %12 = vector.load %arg8[%c24, %c0_10] : memref<304x64xf32, #tpu.memory_space<vmem>>, vector<256x64xf32>
    tpu.vector_store %arg8[%c24, %c0_10], %7 {strides = array<i32>} : memref<304x64xf32, #tpu.memory_space<vmem>>, vector<256x64xf32>,
    %13 = tpu.iota {dimensions = array<i32: 0>} : vector<256x1xi32>
    %c16_i32 = arith.constant 16 : i32
    %c0_i32 = arith.constant 0 : i32
    %14 = arith.cmpi eq, %c16_i32, %c0_i32 : i32
    %c1_i32 = arith.constant 1 : i32
    %15 = arith.select %14, %c1_i32, %c16_i32 : i32
    %16 = vector.broadcast %15 : i32 to vector<256x1xi32>
    %17 = arith.remsi %13, %16 : vector<256x1xi32>
    %c0_i32_11 = arith.constant 0 : i32
    %18 = vector.broadcast %c0_i32_11 : i32 to vector<256x1xi32>
    %19 = arith.cmpi ne, %17, %18 : vector<256x1xi32>
    %c0_i32_12 = arith.constant 0 : i32
    %20 = vector.broadcast %c0_i32_12 : i32 to vector<256x1xi32>
    %21 = arith.cmpi slt, %17, %20 : vector<256x1xi32>
    %c0_i32_13 = arith.constant 0 : i32
    %22 = arith.cmpi slt, %15, %c0_i32_13 : i32
    %23 = vector.broadcast %22 : i1 to vector<256x1xi1>
    %24 = vector.broadcast %23 : vector<256x1xi1> to vector<256x1xi1>
    %25 = arith.xori %21, %24 : vector<256x1xi1>
    %26 = arith.andi %25, %19 : vector<256x1xi1>
    %27 = vector.broadcast %15 : i32 to vector<256x1xi32>
    %28 = arith.addi %17, %27 : vector<256x1xi32>
    %29 = arith.select %26, %28, %17 : vector<256x1xi1>, vector<256x1xi32>
    %c0_i32_14 = arith.constant 0 : i32
    %30 = vector.broadcast %c0_i32_14 : i32 to vector<256x1xi32>
    %31 = arith.cmpi ne, %29, %30 : vector<256x1xi32>
    %c15_i32 = arith.constant 15 : i32
    %32 = vector.broadcast %c15_i32 : i32 to vector<256x1xi32>
    %33 = arith.cmpi ne, %29, %32 : vector<256x1xi32>
    %cst_15 = arith.constant 0.000000e+00 : f32
    %34 = vector.broadcast %cst_15 : f32 to vector<256x64xf32>
    %c7 = arith.constant 7 : index
    %c0_16 = arith.constant 0 : index
    %35 = vector.load %arg8[%c7, %c0_16] : memref<304x64xf32, #tpu.memory_space<vmem>>, vector<256x64xf32>
    %36 = vector.shape_cast %31 : vector<256x1xi1> to vector<256x1xi1>
    %37 = vector.broadcast %36 : vector<256x1xi1> to vector<256x64xi1>
    %38 = arith.select %37, %35, %34 : vector<256x64xi1>, vector<256x64xf32>
    %c8 = arith.constant 8 : index
    %c0_17 = arith.constant 0 : index
    %39 = vector.load %arg8[%c8, %c0_17] : memref<304x64xf32, #tpu.memory_space<vmem>>, vector<256x64xf32>
    %c9 = arith.constant 9 : index
    %c0_18 = arith.constant 0 : index
    %40 = vector.load %arg8[%c9, %c0_18] : memref<304x64xf32, #tpu.memory_space<vmem>>, vector<256x64xf32>
    %41 = vector.shape_cast %33 : vector<256x1xi1> to vector<256x1xi1>
    %42 = vector.broadcast %41 : vector<256x1xi1> to vector<256x64xi1>
    %43 = arith.select %42, %40, %34 : vector<256x64xi1>, vector<256x64xf32>
    %c23 = arith.constant 23 : index
    %c0_19 = arith.constant 0 : index
    %44 = vector.load %arg8[%c23, %c0_19] : memref<304x64xf32, #tpu.memory_space<vmem>>, vector<256x64xf32>
    %45 = vector.shape_cast %31 : vector<256x1xi1> to vector<256x1xi1>
    %46 = vector.broadcast %45 : vector<256x1xi1> to vector<256x64xi1>
    %47 = arith.select %46, %44, %34 : vector<256x64xi1>, vector<256x64xf32>
    %c24_20 = arith.constant 24 : index
    %c0_21 = arith.constant 0 : index
    %48 = vector.load %arg8[%c24_20, %c0_21] : memref<304x64xf32, #tpu.memory_space<vmem>>, vector<256x64xf32>
    %c25 = arith.constant 25 : index
    %c0_22 = arith.constant 0 : index
    %49 = vector.load %arg8[%c25, %c0_22] : memref<304x64xf32, #tpu.memory_space<vmem>>, vector<256x64xf32>
    %50 = vector.shape_cast %33 : vector<256x1xi1> to vector<256x1xi1>
    %51 = vector.broadcast %50 : vector<256x1xi1> to vector<256x64xi1>
    %52 = arith.select %51, %49, %34 : vector<256x64xi1>, vector<256x64xf32>
    %c39 = arith.constant 39 : index
    %c0_23 = arith.constant 0 : index
    %53 = vector.load %arg8[%c39, %c0_23] : memref<304x64xf32, #tpu.memory_space<vmem>>, vector<256x64xf32>
    %54 = vector.shape_cast %31 : vector<256x1xi1> to vector<256x1xi1>
    %55 = vector.broadcast %54 : vector<256x1xi1> to vector<256x64xi1>
    %56 = arith.select %55, %53, %34 : vector<256x64xi1>, vector<256x64xf32>
    %c40 = arith.constant 40 : index
    %c0_24 = arith.constant 0 : index
    %57 = vector.load %arg8[%c40, %c0_24] : memref<304x64xf32, #tpu.memory_space<vmem>>, vector<256x64xf32>
    %c41 = arith.constant 41 : index
    %c0_25 = arith.constant 0 : index
    %58 = vector.load %arg8[%c41, %c0_25] : memref<304x64xf32, #tpu.memory_space<vmem>>, vector<256x64xf32>
    %59 = vector.shape_cast %33 : vector<256x1xi1> to vector<256x1xi1>
    %60 = vector.broadcast %59 : vector<256x1xi1> to vector<256x64xi1>
    %61 = arith.select %60, %58, %34 : vector<256x64xi1>, vector<256x64xf32>
    %62 = tpu.concatenate %38, %39, %43, %47, %48, %52, %56, %57, %61 in 1 : vector<256x64xf32>, vector<256x64xf32>, vector<256x64xf32>, vector<256x64xf32>, vector<256x64xf32>, vector<256x64xf32>, vector<256x64xf32>, vector<256x64xf32>, vector<256x64xf32> -> vector<256x576xf32>
    %c0_26 = arith.constant 0 : index
    %c0_27 = arith.constant 0 : index
    %63 = vector.load %arg4[%c0_26, %c0_27] : memref<576x64xf32, #tpu.memory_space<vmem>>, vector<576x64xf32>
    %cst_28 = arith.constant dense<0.000000e+00> : vector<256x64xf32>
    %64 = tpu.matmul %62, %63, %cst_28 {dimension_numbers = #tpu.dot_dimension_numbers<[1], [0], [0], [1], [0, 0, 1, 1], [], []>} : vector<256x576xf32>, vector<576x64xf32>, vector<256x64xf32> -> vector<256x64xf32>
    %c0_29 = arith.constant 0 : index
    %c0_30 = arith.constant 0 : index
    %65 = vector.load %arg5[%c0_29, %c0_30] : memref<1x64xf32, #tpu.memory_space<vmem>>, vector<1x64xf32>
    %66 = vector.broadcast %65 : vector<1x64xf32> to vector<256x64xf32>
    %67 = arith.addf %64, %66 : vector<256x64xf32>
    %c0_31 = arith.constant 0 : index
    %c0_32 = arith.constant 0 : index
    %c0_33 = arith.constant 0 : index
    %68 = vector.load %arg6[%c0_31, %c0_32, %c0_33] : memref<1x256x64xf32, #tpu.memory_space<vmem>>, vector<1x256x64xf32>
    %69 = vector.shape_cast %68 : vector<1x256x64xf32> to vector<256x64xf32>
    %70 = vector.shape_cast %67 : vector<256x64xf32> to vector<1x256x64xf32>
    tpu.vector_store %arg6[%c0_31, %c0_32, %c0_33], %70 {strides = array<i32>} : memref<1x256x64xf32, #tpu.memory_space<vmem>>, vector<1x256x64xf32>,
    %cst_34 = arith.constant dense<0.000000e+00> : vector<64xf32>
    %71 = vector.multi_reduction <add>, %67, %cst_34 [0] : vector<256x64xf32> to vector<64xf32>
    %72 = vector.shape_cast %71 : vector<64xf32> to vector<1x64xf32>
    %73 = arith.mulf %67, %67 : vector<256x64xf32>
    %cst_35 = arith.constant dense<0.000000e+00> : vector<64xf32>
    %74 = vector.multi_reduction <add>, %73, %cst_35 [0] : vector<256x64xf32> to vector<64xf32>
    %75 = vector.shape_cast %74 : vector<64xf32> to vector<1x64xf32>
    %76 = tpu.concatenate %72, %75 in 0 : vector<1x64xf32>, vector<1x64xf32> -> vector<2x64xf32>
    %c0_36 = arith.constant 0 : index
    %c0_37 = arith.constant 0 : index
    %c0_38 = arith.constant 0 : index
    %77 = vector.load %arg7[%c0_36, %c0_37, %c0_38] : memref<1x2x64xf32, #tpu.memory_space<vmem>>, vector<1x2x64xf32>
    %78 = vector.shape_cast %77 : vector<1x2x64xf32> to vector<2x64xf32>
    %79 = vector.shape_cast %76 : vector<2x64xf32> to vector<1x2x64xf32>
    tpu.vector_store %arg7[%c0_36, %c0_37, %c0_38], %79 {strides = array<i32>} : memref<1x2x64xf32, #tpu.memory_space<vmem>>, vector<1x2x64xf32>,
    return
  }
  func.func @transform_0(%arg0: i32) -> (i32, i32, i32) {
    %c0_i32 = arith.constant 0 : i32
    %c0_i32_0 = arith.constant 0 : i32
    %c0_i32_1 = arith.constant 0 : i32
    return %arg0, %c0_i32, %c0_i32_0 : i32, i32, i32
  }
  func.func @transform_1(%arg0: i32) -> (i32, i32) {
    %c0_i32 = arith.constant 0 : i32
    %c0_i32_0 = arith.constant 0 : i32
    %c0_i32_1 = arith.constant 0 : i32
    return %c0_i32, %c0_i32_0 : i32, i32
  }
  func.func @transform_2(%arg0: i32) -> (i32, i32) {
    %c0_i32 = arith.constant 0 : i32
    %c0_i32_0 = arith.constant 0 : i32
    %c0_i32_1 = arith.constant 0 : i32
    return %c0_i32, %c0_i32_0 : i32, i32
  }
  func.func @transform_3(%arg0: i32) -> (i32, i32) {
    %c0_i32 = arith.constant 0 : i32
    %c0_i32_0 = arith.constant 0 : i32
    %c0_i32_1 = arith.constant 0 : i32
    return %c0_i32, %c0_i32_0 : i32, i32
  }
  func.func @transform_4(%arg0: i32) -> (i32, i32) {
    %c0_i32 = arith.constant 0 : i32
    %c0_i32_0 = arith.constant 0 : i32
    %c0_i32_1 = arith.constant 0 : i32
    return %c0_i32, %c0_i32_0 : i32, i32
  }
  func.func @transform_5(%arg0: i32) -> (i32, i32, i32) {
    %c0_i32 = arith.constant 0 : i32
    %c0_i32_0 = arith.constant 0 : i32
    %c0_i32_1 = arith.constant 0 : i32
    return %arg0, %c0_i32, %c0_i32_0 : i32, i32, i32
  }
  func.func @transform_6(%arg0: i32) -> (i32, i32, i32) {
    %c0_i32 = arith.constant 0 : i32
    %c0_i32_0 = arith.constant 0 : i32
    %c0_i32_1 = arith.constant 0 : i32
    return %arg0, %c0_i32, %c0_i32_0 : i32, i32, i32
  }
}

module attributes {stable_mosaic.version = 11 : i64} {
  func.func @_bn_add_relu_kernel(%arg0: i32, %arg1: memref<1x256x64xf32, #tpu.memory_space<vmem>>, %arg2: memref<1x256x64xf32, #tpu.memory_space<vmem>>, %arg3: memref<1x64xf32, #tpu.memory_space<vmem>>, %arg4: memref<1x64xf32, #tpu.memory_space<vmem>>, %arg5: memref<1x64x256xf32, #tpu.memory_space<vmem>>) attributes {dimension_semantics = [#tpu.dimension_semantics<parallel>], iteration_bounds = array<i64: 2>, scalar_prefetch = 0 : i64, scratch_operands = 0 : i64, tpu.core_type = #tpu.core_type<tc>, window_params = [{transform_indices = @transform_0, window_bounds = array<i64: 1, 256, 64>}, {transform_indices = @transform_1, window_bounds = array<i64: 1, 256, 64>}, {pipeline_mode = #tpu.pipeline_mode<synchronous>, transform_indices = @transform_2, window_bounds = array<i64: 1, 64>}, {pipeline_mode = #tpu.pipeline_mode<synchronous>, transform_indices = @transform_3, window_bounds = array<i64: 1, 64>}, {transform_indices = @transform_4, window_bounds = array<i64: 1, 64, 256>}]} {
    %c0 = arith.constant 0 : index
    %c0_0 = arith.constant 0 : index
    %c0_1 = arith.constant 0 : index
    %0 = vector.load %arg1[%c0, %c0_0, %c0_1] : memref<1x256x64xf32, #tpu.memory_space<vmem>>, vector<1x256x64xf32>
    %1 = vector.shape_cast %0 : vector<1x256x64xf32> to vector<256x64xf32>
    %c0_2 = arith.constant 0 : index
    %c0_3 = arith.constant 0 : index
    %2 = vector.load %arg3[%c0_2, %c0_3] : memref<1x64xf32, #tpu.memory_space<vmem>>, vector<1x64xf32>
    %3 = vector.broadcast %2 : vector<1x64xf32> to vector<256x64xf32>
    %4 = arith.mulf %1, %3 : vector<256x64xf32>
    %c0_4 = arith.constant 0 : index
    %c0_5 = arith.constant 0 : index
    %5 = vector.load %arg4[%c0_4, %c0_5] : memref<1x64xf32, #tpu.memory_space<vmem>>, vector<1x64xf32>
    %6 = vector.broadcast %5 : vector<1x64xf32> to vector<256x64xf32>
    %7 = arith.addf %4, %6 : vector<256x64xf32>
    %c0_6 = arith.constant 0 : index
    %c0_7 = arith.constant 0 : index
    %c0_8 = arith.constant 0 : index
    %8 = vector.load %arg2[%c0_6, %c0_7, %c0_8] : memref<1x256x64xf32, #tpu.memory_space<vmem>>, vector<1x256x64xf32>
    %9 = vector.shape_cast %8 : vector<1x256x64xf32> to vector<256x64xf32>
    %10 = arith.addf %7, %9 : vector<256x64xf32>
    %cst = arith.constant 0.000000e+00 : f32
    %11 = vector.broadcast %cst : f32 to vector<256x64xf32>
    %12 = arith.maximumf %10, %11 : vector<256x64xf32>
    %13 = tpu.transpose %12, [1, 0] : vector<256x64xf32> -> vector<64x256xf32>
    %c0_9 = arith.constant 0 : index
    %c0_10 = arith.constant 0 : index
    %c0_11 = arith.constant 0 : index
    %14 = vector.load %arg5[%c0_9, %c0_10, %c0_11] : memref<1x64x256xf32, #tpu.memory_space<vmem>>, vector<1x64x256xf32>
    %15 = vector.shape_cast %14 : vector<1x64x256xf32> to vector<64x256xf32>
    %16 = vector.shape_cast %13 : vector<64x256xf32> to vector<1x64x256xf32>
    tpu.vector_store %arg5[%c0_9, %c0_10, %c0_11], %16 {strides = array<i32>} : memref<1x64x256xf32, #tpu.memory_space<vmem>>, vector<1x64x256xf32>,
    return
  }
  func.func @transform_0(%arg0: i32) -> (i32, i32, i32) {
    %c0_i32 = arith.constant 0 : i32
    %c0_i32_0 = arith.constant 0 : i32
    %c0_i32_1 = arith.constant 0 : i32
    return %arg0, %c0_i32, %c0_i32_0 : i32, i32, i32
  }
  func.func @transform_1(%arg0: i32) -> (i32, i32, i32) {
    %c0_i32 = arith.constant 0 : i32
    %c0_i32_0 = arith.constant 0 : i32
    %c0_i32_1 = arith.constant 0 : i32
    return %arg0, %c0_i32, %c0_i32_0 : i32, i32, i32
  }
  func.func @transform_2(%arg0: i32) -> (i32, i32) {
    %c0_i32 = arith.constant 0 : i32
    %c0_i32_0 = arith.constant 0 : i32
    %c0_i32_1 = arith.constant 0 : i32
    return %c0_i32, %c0_i32_0 : i32, i32
  }
  func.func @transform_3(%arg0: i32) -> (i32, i32) {
    %c0_i32 = arith.constant 0 : i32
    %c0_i32_0 = arith.constant 0 : i32
    %c0_i32_1 = arith.constant 0 : i32
    return %c0_i32, %c0_i32_0 : i32, i32
  }
  func.func @transform_4(%arg0: i32) -> (i32, i32, i32) {
    %c0_i32 = arith.constant 0 : i32
    %c0_i32_0 = arith.constant 0 : i32
    %c0_i32_1 = arith.constant 0 : i32
    return %arg0, %c0_i32, %c0_i32_0 : i32, i32, i32
  }
}

module attributes {stable_mosaic.version = 11 : i64} {
  func.func @_conv_bn_stats_kernel(%arg0: i32, %arg1: memref<1x256x64xf32, #tpu.memory_space<vmem>>, %arg2: memref<1x64xf32, #tpu.memory_space<vmem>>, %arg3: memref<1x64xf32, #tpu.memory_space<vmem>>, %arg4: memref<576x64xf32, #tpu.memory_space<vmem>>, %arg5: memref<1x64xf32, #tpu.memory_space<vmem>>, %arg6: memref<1x256x64xf32, #tpu.memory_space<vmem>>, %arg7: memref<1x2x64xf32, #tpu.memory_space<vmem>>, %arg8: memref<304x64xf32, #tpu.memory_space<vmem>>) attributes {dimension_semantics = [#tpu.dimension_semantics<parallel>], iteration_bounds = array<i64: 2>, scalar_prefetch = 0 : i64, scratch_operands = 1 : i64, tpu.core_type = #tpu.core_type<tc>, window_params = [{transform_indices = @transform_0, window_bounds = array<i64: 1, 256, 64>}, {pipeline_mode = #tpu.pipeline_mode<synchronous>, transform_indices = @transform_1, window_bounds = array<i64: 1, 64>}, {pipeline_mode = #tpu.pipeline_mode<synchronous>, transform_indices = @transform_2, window_bounds = array<i64: 1, 64>}, {pipeline_mode = #tpu.pipeline_mode<synchronous>, transform_indices = @transform_3, window_bounds = array<i64: 576, 64>}, {pipeline_mode = #tpu.pipeline_mode<synchronous>, transform_indices = @transform_4, window_bounds = array<i64: 1, 64>}, {transform_indices = @transform_5, window_bounds = array<i64: 1, 256, 64>}, {transform_indices = @transform_6, window_bounds = array<i64: 1, 2, 64>}]} {
    %c0 = arith.constant 0 : index
    %c0_0 = arith.constant 0 : index
    %c0_1 = arith.constant 0 : index
    %0 = vector.load %arg1[%c0, %c0_0, %c0_1] : memref<1x256x64xf32, #tpu.memory_space<vmem>>, vector<1x256x64xf32>
    %1 = vector.shape_cast %0 : vector<1x256x64xf32> to vector<256x64xf32>
    %c0_2 = arith.constant 0 : index
    %c0_3 = arith.constant 0 : index
    %2 = vector.load %arg2[%c0_2, %c0_3] : memref<1x64xf32, #tpu.memory_space<vmem>>, vector<1x64xf32>
    %3 = vector.broadcast %2 : vector<1x64xf32> to vector<256x64xf32>
    %4 = arith.mulf %1, %3 : vector<256x64xf32>
    %c0_4 = arith.constant 0 : index
    %c0_5 = arith.constant 0 : index
    %5 = vector.load %arg3[%c0_4, %c0_5] : memref<1x64xf32, #tpu.memory_space<vmem>>, vector<1x64xf32>
    %6 = vector.broadcast %5 : vector<1x64xf32> to vector<256x64xf32>
    %7 = arith.addf %4, %6 : vector<256x64xf32>
    %cst = arith.constant 0.000000e+00 : f32
    %8 = vector.broadcast %cst : f32 to vector<256x64xf32>
    %9 = arith.maximumf %7, %8 : vector<256x64xf32>
    %cst_6 = arith.constant 0.000000e+00 : f32
    %10 = vector.broadcast %cst_6 : f32 to vector<24x64xf32>
    %c0_7 = arith.constant 0 : index
    %c0_8 = arith.constant 0 : index
    %11 = vector.load %arg8[%c0_7, %c0_8] : memref<304x64xf32, #tpu.memory_space<vmem>>, vector<24x64xf32>
    tpu.vector_store %arg8[%c0_7, %c0_8], %10 {strides = array<i32>} : memref<304x64xf32, #tpu.memory_space<vmem>>, vector<24x64xf32>,
    %cst_9 = arith.constant 0.000000e+00 : f32
    %12 = vector.broadcast %cst_9 : f32 to vector<24x64xf32>
    %c280 = arith.constant 280 : index
    %c0_10 = arith.constant 0 : index
    %13 = vector.load %arg8[%c280, %c0_10] : memref<304x64xf32, #tpu.memory_space<vmem>>, vector<24x64xf32>
    tpu.vector_store %arg8[%c280, %c0_10], %12 {strides = array<i32>} : memref<304x64xf32, #tpu.memory_space<vmem>>, vector<24x64xf32>,
    %c24 = arith.constant 24 : index
    %c0_11 = arith.constant 0 : index
    %14 = vector.load %arg8[%c24, %c0_11] : memref<304x64xf32, #tpu.memory_space<vmem>>, vector<256x64xf32>
    tpu.vector_store %arg8[%c24, %c0_11], %9 {strides = array<i32>} : memref<304x64xf32, #tpu.memory_space<vmem>>, vector<256x64xf32>,
    %15 = tpu.iota {dimensions = array<i32: 0>} : vector<256x1xi32>
    %c16_i32 = arith.constant 16 : i32
    %c0_i32 = arith.constant 0 : i32
    %16 = arith.cmpi eq, %c16_i32, %c0_i32 : i32
    %c1_i32 = arith.constant 1 : i32
    %17 = arith.select %16, %c1_i32, %c16_i32 : i32
    %18 = vector.broadcast %17 : i32 to vector<256x1xi32>
    %19 = arith.remsi %15, %18 : vector<256x1xi32>
    %c0_i32_12 = arith.constant 0 : i32
    %20 = vector.broadcast %c0_i32_12 : i32 to vector<256x1xi32>
    %21 = arith.cmpi ne, %19, %20 : vector<256x1xi32>
    %c0_i32_13 = arith.constant 0 : i32
    %22 = vector.broadcast %c0_i32_13 : i32 to vector<256x1xi32>
    %23 = arith.cmpi slt, %19, %22 : vector<256x1xi32>
    %c0_i32_14 = arith.constant 0 : i32
    %24 = arith.cmpi slt, %17, %c0_i32_14 : i32
    %25 = vector.broadcast %24 : i1 to vector<256x1xi1>
    %26 = vector.broadcast %25 : vector<256x1xi1> to vector<256x1xi1>
    %27 = arith.xori %23, %26 : vector<256x1xi1>
    %28 = arith.andi %27, %21 : vector<256x1xi1>
    %29 = vector.broadcast %17 : i32 to vector<256x1xi32>
    %30 = arith.addi %19, %29 : vector<256x1xi32>
    %31 = arith.select %28, %30, %19 : vector<256x1xi1>, vector<256x1xi32>
    %c0_i32_15 = arith.constant 0 : i32
    %32 = vector.broadcast %c0_i32_15 : i32 to vector<256x1xi32>
    %33 = arith.cmpi ne, %31, %32 : vector<256x1xi32>
    %c15_i32 = arith.constant 15 : i32
    %34 = vector.broadcast %c15_i32 : i32 to vector<256x1xi32>
    %35 = arith.cmpi ne, %31, %34 : vector<256x1xi32>
    %cst_16 = arith.constant 0.000000e+00 : f32
    %36 = vector.broadcast %cst_16 : f32 to vector<256x64xf32>
    %c7 = arith.constant 7 : index
    %c0_17 = arith.constant 0 : index
    %37 = vector.load %arg8[%c7, %c0_17] : memref<304x64xf32, #tpu.memory_space<vmem>>, vector<256x64xf32>
    %38 = vector.shape_cast %33 : vector<256x1xi1> to vector<256x1xi1>
    %39 = vector.broadcast %38 : vector<256x1xi1> to vector<256x64xi1>
    %40 = arith.select %39, %37, %36 : vector<256x64xi1>, vector<256x64xf32>
    %c8 = arith.constant 8 : index
    %c0_18 = arith.constant 0 : index
    %41 = vector.load %arg8[%c8, %c0_18] : memref<304x64xf32, #tpu.memory_space<vmem>>, vector<256x64xf32>
    %c9 = arith.constant 9 : index
    %c0_19 = arith.constant 0 : index
    %42 = vector.load %arg8[%c9, %c0_19] : memref<304x64xf32, #tpu.memory_space<vmem>>, vector<256x64xf32>
    %43 = vector.shape_cast %35 : vector<256x1xi1> to vector<256x1xi1>
    %44 = vector.broadcast %43 : vector<256x1xi1> to vector<256x64xi1>
    %45 = arith.select %44, %42, %36 : vector<256x64xi1>, vector<256x64xf32>
    %c23 = arith.constant 23 : index
    %c0_20 = arith.constant 0 : index
    %46 = vector.load %arg8[%c23, %c0_20] : memref<304x64xf32, #tpu.memory_space<vmem>>, vector<256x64xf32>
    %47 = vector.shape_cast %33 : vector<256x1xi1> to vector<256x1xi1>
    %48 = vector.broadcast %47 : vector<256x1xi1> to vector<256x64xi1>
    %49 = arith.select %48, %46, %36 : vector<256x64xi1>, vector<256x64xf32>
    %c24_21 = arith.constant 24 : index
    %c0_22 = arith.constant 0 : index
    %50 = vector.load %arg8[%c24_21, %c0_22] : memref<304x64xf32, #tpu.memory_space<vmem>>, vector<256x64xf32>
    %c25 = arith.constant 25 : index
    %c0_23 = arith.constant 0 : index
    %51 = vector.load %arg8[%c25, %c0_23] : memref<304x64xf32, #tpu.memory_space<vmem>>, vector<256x64xf32>
    %52 = vector.shape_cast %35 : vector<256x1xi1> to vector<256x1xi1>
    %53 = vector.broadcast %52 : vector<256x1xi1> to vector<256x64xi1>
    %54 = arith.select %53, %51, %36 : vector<256x64xi1>, vector<256x64xf32>
    %c39 = arith.constant 39 : index
    %c0_24 = arith.constant 0 : index
    %55 = vector.load %arg8[%c39, %c0_24] : memref<304x64xf32, #tpu.memory_space<vmem>>, vector<256x64xf32>
    %56 = vector.shape_cast %33 : vector<256x1xi1> to vector<256x1xi1>
    %57 = vector.broadcast %56 : vector<256x1xi1> to vector<256x64xi1>
    %58 = arith.select %57, %55, %36 : vector<256x64xi1>, vector<256x64xf32>
    %c40 = arith.constant 40 : index
    %c0_25 = arith.constant 0 : index
    %59 = vector.load %arg8[%c40, %c0_25] : memref<304x64xf32, #tpu.memory_space<vmem>>, vector<256x64xf32>
    %c41 = arith.constant 41 : index
    %c0_26 = arith.constant 0 : index
    %60 = vector.load %arg8[%c41, %c0_26] : memref<304x64xf32, #tpu.memory_space<vmem>>, vector<256x64xf32>
    %61 = vector.shape_cast %35 : vector<256x1xi1> to vector<256x1xi1>
    %62 = vector.broadcast %61 : vector<256x1xi1> to vector<256x64xi1>
    %63 = arith.select %62, %60, %36 : vector<256x64xi1>, vector<256x64xf32>
    %64 = tpu.concatenate %40, %41, %45, %49, %50, %54, %58, %59, %63 in 1 : vector<256x64xf32>, vector<256x64xf32>, vector<256x64xf32>, vector<256x64xf32>, vector<256x64xf32>, vector<256x64xf32>, vector<256x64xf32>, vector<256x64xf32>, vector<256x64xf32> -> vector<256x576xf32>
    %c0_27 = arith.constant 0 : index
    %c0_28 = arith.constant 0 : index
    %65 = vector.load %arg4[%c0_27, %c0_28] : memref<576x64xf32, #tpu.memory_space<vmem>>, vector<576x64xf32>
    %cst_29 = arith.constant dense<0.000000e+00> : vector<256x64xf32>
    %66 = tpu.matmul %64, %65, %cst_29 {dimension_numbers = #tpu.dot_dimension_numbers<[1], [0], [0], [1], [0, 0, 1, 1], [], []>} : vector<256x576xf32>, vector<576x64xf32>, vector<256x64xf32> -> vector<256x64xf32>
    %c0_30 = arith.constant 0 : index
    %c0_31 = arith.constant 0 : index
    %67 = vector.load %arg5[%c0_30, %c0_31] : memref<1x64xf32, #tpu.memory_space<vmem>>, vector<1x64xf32>
    %68 = vector.broadcast %67 : vector<1x64xf32> to vector<256x64xf32>
    %69 = arith.addf %66, %68 : vector<256x64xf32>
    %c0_32 = arith.constant 0 : index
    %c0_33 = arith.constant 0 : index
    %c0_34 = arith.constant 0 : index
    %70 = vector.load %arg6[%c0_32, %c0_33, %c0_34] : memref<1x256x64xf32, #tpu.memory_space<vmem>>, vector<1x256x64xf32>
    %71 = vector.shape_cast %70 : vector<1x256x64xf32> to vector<256x64xf32>
    %72 = vector.shape_cast %69 : vector<256x64xf32> to vector<1x256x64xf32>
    tpu.vector_store %arg6[%c0_32, %c0_33, %c0_34], %72 {strides = array<i32>} : memref<1x256x64xf32, #tpu.memory_space<vmem>>, vector<1x256x64xf32>,
    %cst_35 = arith.constant dense<0.000000e+00> : vector<64xf32>
    %73 = vector.multi_reduction <add>, %69, %cst_35 [0] : vector<256x64xf32> to vector<64xf32>
    %74 = vector.shape_cast %73 : vector<64xf32> to vector<1x64xf32>
    %75 = arith.mulf %69, %69 : vector<256x64xf32>
    %cst_36 = arith.constant dense<0.000000e+00> : vector<64xf32>
    %76 = vector.multi_reduction <add>, %75, %cst_36 [0] : vector<256x64xf32> to vector<64xf32>
    %77 = vector.shape_cast %76 : vector<64xf32> to vector<1x64xf32>
    %78 = tpu.concatenate %74, %77 in 0 : vector<1x64xf32>, vector<1x64xf32> -> vector<2x64xf32>
    %c0_37 = arith.constant 0 : index
    %c0_38 = arith.constant 0 : index
    %c0_39 = arith.constant 0 : index
    %79 = vector.load %arg7[%c0_37, %c0_38, %c0_39] : memref<1x2x64xf32, #tpu.memory_space<vmem>>, vector<1x2x64xf32>
    %80 = vector.shape_cast %79 : vector<1x2x64xf32> to vector<2x64xf32>
    %81 = vector.shape_cast %78 : vector<2x64xf32> to vector<1x2x64xf32>
    tpu.vector_store %arg7[%c0_37, %c0_38, %c0_39], %81 {strides = array<i32>} : memref<1x2x64xf32, #tpu.memory_space<vmem>>, vector<1x2x64xf32>,
    return
  }
  func.func @transform_0(%arg0: i32) -> (i32, i32, i32) {
    %c0_i32 = arith.constant 0 : i32
    %c0_i32_0 = arith.constant 0 : i32
    %c0_i32_1 = arith.constant 0 : i32
    return %arg0, %c0_i32, %c0_i32_0 : i32, i32, i32
  }
  func.func @transform_1(%arg0: i32) -> (i32, i32) {
    %c0_i32 = arith.constant 0 : i32
    %c0_i32_0 = arith.constant 0 : i32
    %c0_i32_1 = arith.constant 0 : i32
    return %c0_i32, %c0_i32_0 : i32, i32
  }
  func.func @transform_2(%arg0: i32) -> (i32, i32) {
    %c0_i32 = arith.constant 0 : i32
    %c0_i32_0 = arith.constant 0 : i32
    %c0_i32_1 = arith.constant 0 : i32
    return %c0_i32, %c0_i32_0 : i32, i32
  }
  func.func @transform_3(%arg0: i32) -> (i32, i32) {
    %c0_i32 = arith.constant 0 : i32
    %c0_i32_0 = arith.constant 0 : i32
    %c0_i32_1 = arith.constant 0 : i32
    return %c0_i32, %c0_i32_0 : i32, i32
  }
  func.func @transform_4(%arg0: i32) -> (i32, i32) {
    %c0_i32 = arith.constant 0 : i32
    %c0_i32_0 = arith.constant 0 : i32
    %c0_i32_1 = arith.constant 0 : i32
    return %c0_i32, %c0_i32_0 : i32, i32
  }
  func.func @transform_5(%arg0: i32) -> (i32, i32, i32) {
    %c0_i32 = arith.constant 0 : i32
    %c0_i32_0 = arith.constant 0 : i32
    %c0_i32_1 = arith.constant 0 : i32
    return %arg0, %c0_i32, %c0_i32_0 : i32, i32, i32
  }
  func.func @transform_6(%arg0: i32) -> (i32, i32, i32) {
    %c0_i32 = arith.constant 0 : i32
    %c0_i32_0 = arith.constant 0 : i32
    %c0_i32_1 = arith.constant 0 : i32
    return %arg0, %c0_i32, %c0_i32_0 : i32, i32, i32
  }
}

</mosaic_0001>

<bundles_post_ra>
// kernel: _lambda_.5
= control target key start
LH: loop header
LB: loop body
LE: loop exit
PB: predicated region body
PF: predicated region fallthrough
CT: control target
= control target key end

     0   :  { %9 = vsyncpa [#allocation3], 0  ;;  %s1011_s0 = inlined_call_operand.vmem [shape: f32[2,256,64], index: 0, kind: input, shape index: {}]   ;;  %s1012_s1 = inlined_call_operand.hbm [shape: f32[2,256,64], index: 1, kind: input, shape index: {}]   ;;  %s1013_s2 = inlined_call_operand.vmem [shape: f32[1,64], index: 2, kind: input, shape index: {}]   ;;  %s1014_s3 = inlined_call_operand.vmem [shape: f32[1,64], index: 3, kind: input, shape index: {}]   ;;  %s1015_s4 = inlined_call_operand.vmem [shape: f32[2,64,256], index: 4, kind: output, shape index: {}]  }
   0x1   :  { %11 = vsyncpa [#allocation3 + $0x1], 0  ;;  %s752_s15 = smov 0   ;;  %s754_s16 = smov 0  }
   0x2   :  { %s756_s17 = smov 0   ;;  %s758_s18 = smov 0  }
   0x3 LB: > { %s771_s19 = sadd.s32 4294967295, %s723_s18   ;;  %s774_s20 = sadd.s32 1, %s723_s18   ;;  %s723_s18 = sphi %s758_s18, %s1022_s18   ;;  %s719_s17 = sphi %s756_s17, %s1021_s17   ;;  %s715_s16 = sphi %s754_s16, %s1020_s16   ;;  %s711_s15 = sphi %s752_s15, %s1019_s15  }
   0x4   : > { %s47_s21 = ssub.s32 %s723_s18, %s774_s20  ;;  %s50_s22 = sadd.s32 1, %s719_s17 }
   0x5   : > { %p48_p0 = scmp.eq.s32.totalorder %s47_s21, 0  ;;  %p57_p1 = scmp.ne.s32.totalorder %s719_s17, %s715_s16 }
   0x6   : > { %p58_p2 = scmp.eq.s32.totalorder %s723_s18, 0  ;;  %p63_p3 = scmp.ne.s32.totalorder %s715_s16, %s711_s15 }
   0x7   : > { %s784_s23 = scalar_select %p48_p0, %s719_s17, %s50_s22  }
   0x8   : > { %p786_p4 = por %p58_p2, %p57_p1  ;;  %p64_p5 = scmp.eq.s32.totalorder %s771_s19, 0 }
   0x9   : > { %p622_p6 = scmp.lt.s32.totalorder %s723_s18, 2  ;;  %s169_s26 = sand.u32 1, %s719_s17  }
   0xa   : > { %p792_p7 = por %p64_p5, %p63_p3  ;;  %s602_s27 = sshll.u32 %s169_s26, 8 }
   0xb   : > { %s613_s28 = sshll.u32 %s723_s18, 8  ;;  %s173_s6 = scalar_lea.vmem [#allocation2], %s602_s27 }
   0xc   : > { %s178_s5 = scalar_lea.hbm %s1012_s1, %s613_s28  ;;  %s181_s7 = sshll.u32 %s173_s6, 4  ;;  %s182_s7 = int_to_ptr.vmem [resolvable:$true] %s181_s7 }
   0xd   : > { %s179_s8 = sshll.u32 %s178_s5, 4  ;;  %p803_p8 = pnand %p622_p6, %p786_p4  ;;  %s180_s8 = int_to_ptr.hbm [resolvable:$true] %s179_s8 }
   0xe   : > { %p605_p9 = scmp.ge.s32.totalorder %s723_s18, 1  ;;  %s170_s10 = scalar_lea.sflag [#allocation3], %s169_s26 }
   0xf   : > { %s659_s11 = sshra.s32 %s180_s8, 4  ;;  %p663_p11 = pneg %p803_p8  ;;  %s660_s11 = int_to_ptr.hbm [resolvable:$true] %s659_s11 }
  0x10   : > { %s661_s12 = scalar_lea.hbm %s660_s11, 256  ;;  %s666_s15 = scalar_lea.hbm %s1012_s1, 512 }
  0x11   : > { %p662_p10 = scmp.ne.s32.totalorder %s660_s11, %s661_s12  ;;  %p667_p0 = scmp.lt.s32.totalorder %s660_s11, %s1012_s1 }
  0x12   : > { %p668_p1 = scmp.lt.s32.totalorder %s666_s15, %s661_s12 }
  0x13   : > { %p664_p12 = pnand %p663_p11, %p662_p10 }
  0x14   : > { %p669_p2 = por %p668_p1, %p667_p0 }
  0x15   : > { %p665_p13 = pneg %p664_p12 }
  0x17   : > { %p670_p3 = pnand %p669_p2, %p665_p13 }
  0x19   : > { %673 = shalt.err (!%p670_p3)
}
  0x1a   : > { %s725_s24 = smov 128   ;;  %s726_s26 = smov 8  }
  0x1b   : > { %621 = dma.hbm_to_vmem [thread:$0]  (!%p803_p8), %s180_s8, 4096, %s182_s7, %s170_s10, %s725_s24, %s725_s24, %s726_s26  }
  0x1c   : > { %p189_p4 = scmp.lt.s32.totalorder %s723_s18, 3 }
  0x1e   : > { %p190_p5 = pnand %p605_p9, %p189_p4 }
  0x1f   : > { %s195_s27 = sand.u32 (!%p190_p5), 1, %s715_s16  }
  0x20   : > { %193 = sbr.rel (%p190_p5) target bundleno = 275 (0x113), region = 36  ;;  %s606_s28 = sshll.u32 (!%p190_p5), %s195_s27, 8 }
  0x21   : > { %s196_s29 = scalar_lea.sflag (!%p190_p5), [#allocation3], %s195_s27  ;;  %s822_s30 = scalar_lea.vmem (!%p190_p5), [#allocation2], %s606_s28 }
  0x25   : > { %706 = dma.done.wait (%p792_p7), %s196_s29, 4096  }
  0x26   : > { %708 = vsyncadd (%p792_p7), %s196_s29, 4294963200  ;;  %p230_p6 = scmp.lt.s32.totalorder %s771_s19, 1  ;;  %v842_v1 = vld [vmem:[%s1013_s2] ss:$0 sm:$0xff]  ;;  %v361_v17 = vld [vmem:[%s822_s30 + $0x88] sm:$0xff] }
  0x27   : > { %v847_v2 = vld [vmem:[%s1014_s3] ss:$0 sm:$0xff]  ;;  %v345_v21 = vld [vmem:[%s822_s30 + $0x8] sm:$0xff]  ;;  %v362_v31 = vld [vmem:[%s822_s30 + $0x90] sm:$0xff] }
  0x28   : > { %s1024_s19 = smov (!%p230_p6, %s771_s19), 1  ;;  %v360_v6 = vld [vmem:[%s822_s30 + $0x80] sm:$0xff]  ;;  %v346_v34 = vld [vmem:[%s822_s30 + $0x10] sm:$0xff]  ;;  %v363_v43 = vld [vmem:[%s822_s30 + $0x98] sm:$0xff] }
  0x29   : > { %s614_s18 = sshll.u32 %s1024_s19, 8  ;;  %v344_v11 = vld [vmem:[%s822_s30] sm:$0xff]  ;;  %v347_v46 = vld [vmem:[%s822_s30 + $0x18] sm:$0xff]  ;;  %s615_s11 = sshll.u32 %s1024_s19, 7 }
  0x2a   : > { %s836_s7 = scalar_lea.vmem %s1011_s0, %s614_s18  ;;  %v364_v55 = vld [vmem:[%s822_s30 + $0xa0] sm:$0xff]  ;;  %s980_s14 = scalar_lea.vmem %s1015_s4, %s615_s11 }
  0x2b   : > { %v256_v0 = vld [vmem:[%s836_s7 + $0x80] sm:$0xff]  ;;  %v257_v5 = vld [vmem:[%s836_s7 + $0x88] sm:$0xff]  ;;  %v258_v19 = vld [vmem:[%s836_s7 + $0x90] sm:$0xff] }
  0x2c   : > { %v292_v3 = vmul.f32 %v842_v1, %v256_v0  ;;  %v240_v4 = vld [vmem:[%s836_s7] sm:$0xff]  ;;  %v293_v8 = vmul.f32 %v842_v1, %v257_v5  ;;  %v241_v9 = vld [vmem:[%s836_s7 + $0x8] sm:$0xff]  ;;  %v242_v22 = vld [vmem:[%s836_s7 + $0x10] sm:$0xff]  ;;  %v294_v25 = vmul.f32 %v842_v1, %v258_v19 }
  0x2d   : > { %v276_v7 = vmul.f32 %v842_v1, %v240_v4  ;;  %v277_v12 = vmul.f32 %v842_v1, %v241_v9  ;;  %v278_v27 = vmul.f32 %v842_v1, %v242_v22  ;;  %v259_v33 = vld [vmem:[%s836_s7 + $0x98] sm:$0xff]  ;;  %v260_v45 = vld [vmem:[%s836_s7 + $0xa0] sm:$0xff]  ;;  %v261_v57 = vld [vmem:[%s836_s7 + $0xa8] sm:$0xff] }
  0x2e   : > { %v328_v10 = vadd.f32 %v847_v2, %v292_v3  ;;  %v329_v15 = vadd.f32 %v847_v2, %v293_v8  ;;  %v330_v29 = vadd.f32 %v847_v2, %v294_v25  ;;  %v243_v35 = vld [vmem:[%s836_s7 + $0x18] sm:$0xff]  ;;  %v295_v37 = vmul.f32 %v842_v1, %v259_v33  ;;  %v244_v47 = vld [vmem:[%s836_s7 + $0x20] sm:$0xff]  ;;  %v245_v59 = vld [vmem:[%s836_s7 + $0x28] sm:$0xff] }
  0x2f   : > { %v312_v13 = vadd.f32 %v847_v2, %v276_v7  ;;  %v313_v18 = vadd.f32 %v847_v2, %v277_v12  ;;  %v314_v32 = vadd.f32 %v847_v2, %v278_v27  ;;  %v279_v39 = vmul.f32 %v842_v1, %v243_v35  ;;  %v348_v58 = vld [vmem:[%s822_s30 + $0x20] sm:$0xff]  ;;  %v365_v5 = vld [vmem:[%s822_s30 + $0xa8] sm:$0xff]  ;;  %v262_v7 = vld [vmem:[%s836_s7 + $0xb0] sm:$0xff] }
  0x30   : > { %v392_v14 = vadd.f32 %v360_v6, %v328_v10  ;;  %v393_v24 = vadd.f32 %v361_v17, %v329_v15  ;;  %v394_v36 = vadd.f32 %v362_v31, %v330_v29  ;;  %v331_v41 = vadd.f32 %v847_v2, %v295_v37  ;;  %v349_v8 = vld [vmem:[%s822_s30 + $0x28] sm:$0xff]  ;;  %v246_v9 = vld [vmem:[%s836_s7 + $0x30] sm:$0xff]  ;;  %v263_v19 = vld [vmem:[%s836_s7 + $0xb8] sm:$0xff] }
  0x31   : > { %v376_v16 = vadd.f32 %v344_v11, %v312_v13  ;;  %v377_v26 = vadd.f32 %v345_v21, %v313_v18  ;;  %v378_v38 = vadd.f32 %v346_v34, %v314_v32  ;;  %v315_v44 = vadd.f32 %v847_v2, %v279_v39  ;;  %v366_v17 = vld [vmem:[%s822_s30 + $0xb0] sm:$0xff]  ;;  %v247_v21 = vld [vmem:[%s836_s7 + $0x38] sm:$0xff]  ;;  %v264_v31 = vld [vmem:[%s836_s7 + $0xc0] sm:$0xff] }
  0x32   : > { %v424_v20 = vmax.f32 %v392_v14, 0.0  ;;  %v425_v28 = vmax.f32 %v393_v24, 0.0  ;;  %v426_v40 = vmax.f32 %v394_v36, 0.0  ;;  %v395_v48 = vadd.f32 %v363_v43, %v331_v41  ;;  %v367_v29 = vld [vmem:[%s822_s30 + $0xb8] sm:$0xff]  ;;  %v248_v33 = vld [vmem:[%s836_s7 + $0x40] sm:$0xff]  ;;  %v265_v43 = vld [vmem:[%s836_s7 + $0xc8] sm:$0xff] }
  0x33   : > { %v408_v23 = vmax.f32 %v376_v16, 0.0  ;;  %v409_v30 = vmax.f32 %v377_v26, 0.0  ;;  %v410_v42 = vmax.f32 %v378_v38, 0.0  ;;  %v296_v49 = vmul.f32 %v842_v1, %v260_v45  ;;  %v351_v32 = vld [vmem:[%s822_s30 + $0x38] sm:$0xff]  ;;  %v368_v41 = vld [vmem:[%s822_s30 + $0xc0] sm:$0xff]  ;;  %v249_v45 = vld [vmem:[%s836_s7 + $0x48] sm:$0xff] }
  0x34   : > { %472 = vxpose.xlu1.b32.start [1/16] (narrow) %v424_v20, 64  ;;  %v379_v50 = vadd.f32 %v347_v46, %v315_v44  ;;  %v280_v51 = vmul.f32 %v842_v1, %v244_v47  ;;  %v427_v52 = vmax.f32 %v395_v48, 0.0  ;;  %v297_v61 = vmul.f32 %v842_v1, %v261_v57  ;;  %v350_v20 = vld [vmem:[%s822_s30 + $0x30] sm:$0xff]  ;;  %v352_v44 = vld [vmem:[%s822_s30 + $0x40] sm:$0xff] }
  0x35   : > { %440 = vxpose.xlu0.b32.start [1/16] (narrow) %v408_v23, 64  ;;  %v332_v53 = vadd.f32 %v847_v2, %v296_v49  ;;  %v281_v63 = vmul.f32 %v842_v1, %v245_v59  ;;  %v298_v11 = vmul.f32 %v842_v1, %v262_v7  ;;  %v282_v13 = vmul.f32 %v842_v1, %v246_v9  ;;  %v250_v57 = vld [vmem:[%s836_s7 + $0x50] sm:$0xff]  ;;  %v251_v7 = vld [vmem:[%s836_s7 + $0x58] sm:$0xff] }
  0x36   : > { %v411_v54 = vmax.f32 %v379_v50, 0.0  ;;  %v316_v56 = vadd.f32 %v847_v2, %v280_v51  ;;  %v333_v3 = vadd.f32 %v847_v2, %v297_v61  ;;  %v299_v23 = vmul.f32 %v842_v1, %v263_v19  ;;  %v252_v19 = vld [vmem:[%s836_s7 + $0x60] sm:$0xff] }
  0x37   : > { %v396_v60 = vadd.f32 %v364_v55, %v332_v53  ;;  %v317_v6 = vadd.f32 %v847_v2, %v281_v63  ;;  %v334_v15 = vadd.f32 %v847_v2, %v298_v11  ;;  %v318_v18 = vadd.f32 %v847_v2, %v282_v13  ;;  %v369_v53 = vld [vmem:[%s822_s30 + $0xc8] sm:$0xff]  ;;  %v266_v55 = vld [vmem:[%s836_s7 + $0xd0] sm:$0xff] }
  0x38   : > { %v380_v62 = vadd.f32 %v348_v58, %v316_v56  ;;  %v397_v10 = vadd.f32 %v365_v5, %v333_v3  ;;  %v283_v25 = vmul.f32 %v842_v1, %v247_v21  ;;  %v335_v27 = vadd.f32 %v847_v2, %v299_v23  ;;  %v353_v56 = vld [vmem:[%s822_s30 + $0x48] sm:$0xff]  ;;  %v370_v3 = vld [vmem:[%s822_s30 + $0xd0] sm:$0xff]  ;;  %v267_v5 = vld [vmem:[%s836_s7 + $0xd8] sm:$0xff] }
  0x39   : > { %v428_v0 = vmax.f32 %v396_v60, 0.0  ;;  %v381_v12 = vadd.f32 %v349_v8, %v317_v6  ;;  %v398_v22 = vadd.f32 %v366_v17, %v334_v15  ;;  %v382_v24 = vadd.f32 %v350_v20, %v318_v18  ;;  %v354_v6 = vld [vmem:[%s822_s30 + $0x50] sm:$0xff]  ;;  %v371_v15 = vld [vmem:[%s822_s30 + $0xd8] sm:$0xff]  ;;  %v268_v17 = vld [vmem:[%s836_s7 + $0xe0] sm:$0xff] }
  0x3a   : > { %v412_v4 = vmax.f32 %v380_v62, 0.0  ;;  %v429_v14 = vmax.f32 %v397_v10, 0.0  ;;  %v399_v34 = vadd.f32 %v367_v29, %v335_v27  ;;  %v300_v35 = vmul.f32 %v842_v1, %v264_v31  ;;  %v355_v18 = vld [vmem:[%s822_s30 + $0x58] sm:$0xff]  ;;  %v372_v27 = vld [vmem:[%s822_s30 + $0xe0] sm:$0xff]  ;;  %v269_v29 = vld [vmem:[%s836_s7 + $0xe8] sm:$0xff] }
  0x3b   : > { %v413_v16 = vmax.f32 %v381_v12, 0.0  ;;  %v430_v26 = vmax.f32 %v398_v22, 0.0  ;;  %v284_v37 = vmul.f32 %v842_v1, %v248_v33  ;;  %v301_v47 = vmul.f32 %v842_v1, %v265_v43  ;;  %v253_v31 = vld [vmem:[%s836_s7 + $0x68] sm:$0xff]  ;;  %v254_v43 = vld [vmem:[%s836_s7 + $0x70] sm:$0xff] }
  0x3c   : > { %473 = vxpose.xlu1.b32.cont [2/16] (narrow) %v425_v28, 64  ;;  %v414_v28 = vmax.f32 %v382_v24, 0.0  ;;  %v431_v38 = vmax.f32 %v399_v34, 0.0  ;;  %v336_v39 = vadd.f32 %v847_v2, %v300_v35  ;;  %v285_v49 = vmul.f32 %v842_v1, %v249_v45 }
  0x3d   : > { %441 = vxpose.xlu0.b32.cont [2/16] (narrow) %v409_v30, 64  ;;  %v319_v30 = vadd.f32 %v847_v2, %v283_v25  ;;  %v337_v51 = vadd.f32 %v847_v2, %v301_v47  ;;  %v302_v59 = vmul.f32 %v842_v1, %v266_v55  ;;  %v286_v61 = vmul.f32 %v842_v1, %v250_v57  ;;  %v255_v55 = vld [vmem:[%s836_s7 + $0x78] sm:$0xff] }
  0x3e   : > { %v400_v46 = vadd.f32 %v368_v41, %v336_v39  ;;  %v303_v9 = vmul.f32 %v842_v1, %v267_v5  ;;  %v287_v11 = vmul.f32 %v842_v1, %v251_v7  ;;  %v304_v21 = vmul.f32 %v842_v1, %v268_v17  ;;  %v373_v39 = vld [vmem:[%s822_s30 + $0xe8] sm:$0xff]  ;;  %v270_v41 = vld [vmem:[%s836_s7 + $0xf0] sm:$0xff] }
  0x3f   : > { %v383_v36 = vadd.f32 %v351_v32, %v319_v30  ;;  %v401_v58 = vadd.f32 %v369_v53, %v337_v51  ;;  %v338_v63 = vadd.f32 %v847_v2, %v302_v59  ;;  %v288_v23 = vmul.f32 %v842_v1, %v252_v19  ;;  %v356_v30 = vld [vmem:[%s822_s30 + $0x60] sm:$0xff]  ;;  %v374_v51 = vld [vmem:[%s822_s30 + $0xf0] sm:$0xff]  ;;  %v271_v53 = vld [vmem:[%s836_s7 + $0xf8] sm:$0xff] }
  0x40   : > { %v432_v50 = vmax.f32 %v400_v46, 0.0  ;;  %v339_v13 = vadd.f32 %v847_v2, %v303_v9  ;;  %v340_v25 = vadd.f32 %v847_v2, %v304_v21  ;;  %v305_v33 = vmul.f32 %v842_v1, %v269_v29 }
  0x41   : > { %v433_v62 = vmax.f32 %v401_v58, 0.0  ;;  %v402_v8 = vadd.f32 %v370_v3, %v338_v63  ;;  %v289_v35 = vmul.f32 %v842_v1, %v253_v31  ;;  %v306_v45 = vmul.f32 %v842_v1, %v270_v41  ;;  %v375_v63 = vld [vmem:[%s822_s30 + $0xf8] sm:$0xff] }
  0x42   : > { %v403_v20 = vadd.f32 %v371_v15, %v339_v13  ;;  %v404_v32 = vadd.f32 %v372_v27, %v340_v25  ;;  %v290_v47 = vmul.f32 %v842_v1, %v254_v43  ;;  %v307_v57 = vmul.f32 %v842_v1, %v271_v53  ;;  %v359_v3 = vld [vmem:[%s822_s30 + $0x78] sm:$0xff] }
  0x43   : > { %v434_v12 = vmax.f32 %v402_v8, 0.0  ;;  %v291_v59 = vmul.f32 %v842_v1, %v255_v55 }
  0x44   : > { %474 = vxpose.xlu1.b32.cont [3/16] (narrow) %v426_v40, 64  ;;  %v415_v40 = vmax.f32 %v383_v36, 0.0  ;;  %v435_v24 = vmax.f32 %v403_v20, 0.0  ;;  %v436_v36 = vmax.f32 %v404_v32, 0.0 }
  0x45   : > { %442 = vxpose.xlu0.b32.cont [3/16] (narrow) %v410_v42, 64  ;;  %v320_v42 = vadd.f32 %v847_v2, %v284_v37  ;;  %v341_v37 = vadd.f32 %v847_v2, %v305_v33 }
  0x47   : > { %v384_v48 = vadd.f32 %v352_v44, %v320_v42  ;;  %v357_v42 = vld [vmem:[%s822_s30 + $0x68] sm:$0xff]  ;;  %v405_v44 = vadd.f32 %v373_v39, %v341_v37 }
  0x4c   : > { %475 = vxpose.xlu1.b32.cont [4/16] (narrow) %v427_v52, 64  ;;  %v416_v52 = vmax.f32 %v384_v48, 0.0  ;;  %v437_v48 = vmax.f32 %v405_v44, 0.0 }
  0x4d   : > { %443 = vxpose.xlu0.b32.cont [4/16] (narrow) %v411_v54, 64  ;;  %v321_v54 = vadd.f32 %v847_v2, %v285_v49  ;;  %v342_v49 = vadd.f32 %v847_v2, %v306_v45 }
  0x4f   : > { %v385_v60 = vadd.f32 %v353_v56, %v321_v54  ;;  %v358_v54 = vld [vmem:[%s822_s30 + $0x70] sm:$0xff]  ;;  %v406_v56 = vadd.f32 %v374_v51, %v342_v49 }
  0x54   : > { %476 = vxpose.xlu1.b32.cont [5/16] (narrow) %v428_v0, 64  ;;  %v417_v0 = vmax.f32 %v385_v60, 0.0  ;;  %v438_v60 = vmax.f32 %v406_v56, 0.0 }
  0x55   : > { %444 = vxpose.xlu0.b32.cont [5/16] (narrow) %v412_v4, 64  ;;  %v322_v4 = vadd.f32 %v847_v2, %v286_v61  ;;  %v343_v61 = vadd.f32 %v847_v2, %v307_v57 }
  0x57   : > { %v386_v10 = vadd.f32 %v354_v6, %v322_v4  ;;  %v407_v4 = vadd.f32 %v375_v63, %v343_v61 }
  0x59   : > { %v439_v6 = vmax.f32 %v407_v4, 0.0 }
  0x5c   : > { %477 = vxpose.xlu1.b32.cont [6/16] (narrow) %v429_v14, 64  ;;  %v418_v14 = vmax.f32 %v386_v10, 0.0 }
  0x5d   : > { %445 = vxpose.xlu0.b32.cont [6/16] (narrow) %v413_v16, 64  ;;  %v323_v16 = vadd.f32 %v847_v2, %v287_v11 }
  0x5f   : > { %v387_v22 = vadd.f32 %v355_v18, %v323_v16 }
  0x64   : > { %478 = vxpose.xlu1.b32.cont [7/16] (narrow) %v430_v26, 64  ;;  %v419_v26 = vmax.f32 %v387_v22, 0.0 }
  0x65   : > { %446 = vxpose.xlu0.b32.cont [7/16] (narrow) %v414_v28, 64  ;;  %v324_v28 = vadd.f32 %v847_v2, %v288_v23 }
  0x67   : > { %v388_v34 = vadd.f32 %v356_v30, %v324_v28 }
  0x6c   : > { %479 = vxpose.xlu1.b32.cont [8/16] (narrow) %v431_v38, 64  ;;  %v420_v38 = vmax.f32 %v388_v34, 0.0 }
  0x6d   : > { %447 = vxpose.xlu0.b32.cont [8/16] (narrow) %v415_v40, 64  ;;  %v325_v40 = vadd.f32 %v847_v2, %v289_v35 }
  0x6f   : > { %v389_v46 = vadd.f32 %v357_v42, %v325_v40 }
  0x74   : > { %480 = vxpose.xlu1.b32.cont [9/16] (narrow) %v432_v50, 64  ;;  %v421_v50 = vmax.f32 %v389_v46, 0.0 }
  0x75   : > { %448 = vxpose.xlu0.b32.cont [9/16] (narrow) %v416_v52, 64  ;;  %v326_v52 = vadd.f32 %v847_v2, %v290_v47 }
  0x77   : > { %v390_v58 = vadd.f32 %v358_v54, %v326_v52 }
  0x7c   : > { %481 = vxpose.xlu1.b32.cont [10/16] (narrow) %v433_v62, 64  ;;  %v422_v62 = vmax.f32 %v390_v58, 0.0 }
  0x7d   : > { %449 = vxpose.xlu0.b32.cont [10/16] (narrow) %v417_v0, 64  ;;  %v327_v0 = vadd.f32 %v847_v2, %v291_v59 }
  0x7f   : > { %v391_v5 = vadd.f32 %v359_v3, %v327_v0 }
  0x81   : > { %v423_v7 = vmax.f32 %v391_v5, 0.0 }
  0x84   : > { %482 = vxpose.xlu1.b32.cont [11/16] (narrow) %v434_v12, 64 }
  0x85   : > { %450 = vxpose.xlu0.b32.cont [11/16] (narrow) %v418_v14, 64 }
  0x8c   : > { %483 = vxpose.xlu1.b32.cont [12/16] (narrow) %v435_v24, 64 }
  0x8d   : > { %451 = vxpose.xlu0.b32.cont [12/16] (narrow) %v419_v26, 64 }
  0x94   : > { %484 = vxpose.xlu1.b32.cont [13/16] (narrow) %v436_v36, 64 }
  0x95   : > { %452 = vxpose.xlu0.b32.cont [13/16] (narrow) %v420_v38, 64 }
  0x9c   : > { %485 = vxpose.xlu1.b32.cont [14/16] (narrow) %v437_v48, 64 }
  0x9d   : > { %453 = vxpose.xlu0.b32.cont [14/16] (narrow) %v421_v50, 64 }
  0xa4   : > { %486 = vxpose.xlu1.b32.cont [15/16] (narrow) %v438_v60, 64 }
  0xa5   : > { %454 = vxpose.xlu0.b32.cont [15/16] (narrow) %v422_v62, 64 }
  0xac   : > { %487 = vxpose.xlu1.b32.end [16/16] (narrow) %v439_v6, 64 }
  0xad   : > { %455 = vxpose.xlu0.b32.end [16/16] (narrow) %v423_v7, 64 }
  0xd8   : > { %v488_v1 = vpop.trf.xlu1 }
  0xd9   : > { %505 = vst [vmem:[%s980_s14 + $0x8] sm:$0xff] %v488_v1  ;;  %v456_v2 = vpop.trf.xlu0 }
  0xda   : > { %504 = vst [vmem:[%s980_s14] sm:$0xff] %v456_v2 }
  0xe0   : > { %v489_v8 = vpop.trf.xlu1 }
  0xe1   : > { %507 = vst [vmem:[%s980_s14 + $0x18] sm:$0xff] %v489_v8  ;;  %v457_v9 = vpop.trf.xlu0 }
  0xe2   : > { %506 = vst [vmem:[%s980_s14 + $0x10] sm:$0xff] %v457_v9 }
  0xe8   : > { %v490_v10 = vpop.trf.xlu1 }
  0xe9   : > { %509 = vst [vmem:[%s980_s14 + $0x28] sm:$0xff] %v490_v10  ;;  %v458_v11 = vpop.trf.xlu0 }
  0xea   : > { %508 = vst [vmem:[%s980_s14 + $0x20] sm:$0xff] %v458_v11 }
  0xf0   : > { %v491_v12 = vpop.trf.xlu1 }
  0xf1   : > { %511 = vst [vmem:[%s980_s14 + $0x38] sm:$0xff] %v491_v12  ;;  %v459_v13 = vpop.trf.xlu0 }
  0xf2   : > { %510 = vst [vmem:[%s980_s14 + $0x30] sm:$0xff] %v459_v13 }
  0xf8   : > { %v492_v14 = vpop.trf.xlu1 }
  0xf9   : > { %513 = vst [vmem:[%s980_s14 + $0x48] sm:$0xff] %v492_v14  ;;  %v460_v15 = vpop.trf.xlu0 }
  0xfa   : > { %512 = vst [vmem:[%s980_s14 + $0x40] sm:$0xff] %v460_v15 }
 0x100   : > { %v493_v16 = vpop.trf.xlu1 }
 0x101   : > { %515 = vst [vmem:[%s980_s14 + $0x58] sm:$0xff] %v493_v16  ;;  %v461_v17 = vpop.trf.xlu0 }
 0x102   : > { %514 = vst [vmem:[%s980_s14 + $0x50] sm:$0xff] %v461_v17 }
 0x108   : > { %v494_v18 = vpop.trf.xlu1 }
 0x109   : > { %517 = vst [vmem:[%s980_s14 + $0x68] sm:$0xff] %v494_v18  ;;  %v462_v19 = vpop.trf.xlu0 }
 0x10a   : > { %516 = vst [vmem:[%s980_s14 + $0x60] sm:$0xff] %v462_v19 }
 0x110   : > { %v495_v20 = vpop.trf.xlu1 }
 0x111   : > { %519 = vst [vmem:[%s980_s14 + $0x78] sm:$0xff] %v495_v20  ;;  %v463_v21 = vpop.trf.xlu0 }
 0x112   : > { %518 = vst [vmem:[%s980_s14 + $0x70] sm:$0xff] %v463_v21 }
 0x113 PF: > { %p14_p7 = scmp.ge.s32.totalorder %s774_s20, 4   ;;  %s1019_s15 = smov %s715_s16 }
 0x114   : > { %s1020_s16 = smov %s719_s17  ;;  %s1021_s17 = smov %s784_s23 }
 0x115   : > { %s1022_s18 = smov %s774_s20  ;;  %16 = sbr.rel (!%p14_p7) target bundleno = 3 (0x3), region = 79 }
 0x11a   :  { %541 = vsyncpa [#allocation3], 1 }
 0x11b   :  { %543 = vsyncpa [#allocation3 + $0x1], 1 }

// kernel: _lambda_.3
= control target key start
LH: loop header
LB: loop body
LE: loop exit
PB: predicated region body
PF: predicated region fallthrough
CT: control target
= control target key end

     0   :  { %12 = vsyncpa [#allocation4], 0  ;;  %s4974_s0 = inlined_call_operand.hbm [shape: f32[2,256,64], index: 0, kind: input, shape index: {}]   ;;  %s4975_s1 = inlined_call_operand.vmem [shape: f32[1,64], index: 1, kind: input, shape index: {}]   ;;  %s4976_s2 = inlined_call_operand.vmem [shape: f32[1,64], index: 2, kind: input, shape index: {}]   ;;  %s4977_s3 = inlined_call_operand.hbm [shape: f32[576,64], index: 3, kind: input, shape index: {}]   ;;  %s4978_s4 = inlined_call_operand.vmem [shape: f32[1,64], index: 4, kind: input, shape index: {}]   ;;  %s4979_s5 = inlined_call_operand.vmem [shape: f32[2,256,64], index: 5, kind: output, shape index: {0}]   ;;  %s4980_s6 = inlined_call_operand.vmem [shape: f32[2,2,64], index: 6, kind: output, shape index: {1}]  }
   0x1   :  { %14 = vsyncpa [#allocation4 + $0x1], 0 }
   0x2   :  { %15 = vsyncpa [#allocation6], 0  ;;  %s3398_s21 = smov 0   ;;  %s3400_s22 = smov 0  }
   0x3   :  { %s3402_s23 = smov 0   ;;  %s3404_s24 = smov 0  }
   0x4 LB: > { %s3417_s25 = sadd.s32 4294967295, %s3356_s24   ;;  %p41_p0 = scmp.ne.s32.totalorder %s3348_s22, %s3344_s21  ;;  %s3356_s24 = sphi %s3404_s24, %s5462_s24   ;;  %s3352_s23 = sphi %s3402_s23, %s5461_s23   ;;  %s3348_s22 = sphi %s3400_s22, %s5460_s22   ;;  %s3344_s21 = sphi %s3398_s21, %s5459_s21  }
   0x5   : > { %p42_p1 = scmp.eq.s32.totalorder %s3417_s25, 0  ;;  %p2934_p2 = scmp.ge.s32.totalorder %s3356_s24, 1 }
   0x6   : > { %p188_p3 = scmp.lt.s32.totalorder %s3356_s24, 3  ;;  %s205_s29 = sshll.u32 %s4977_s3, 4  ;;  %s206_s29 = int_to_ptr.hbm [resolvable:$true] %s205_s29 }
   0x7   : > { %p3425_p4 = por %p42_p1, %p41_p0  ;;  %s3358_s7 = smov [#allocation5]  }
   0x8   : > { %p3432_p5 = pnand %p2934_p2, %p188_p3  ;;  %s207_s8 = sshll.u32 %s3358_s7, 4  ;;  %s208_s8 = int_to_ptr.vmem [resolvable:$true] %s207_s8 }
   0x9   : > { %s3441_s9 = sadd.s32 1, %s3356_s24   ;;  %s3359_s10 = smov 128  }
   0xa   : > { %p3036_p6 = pneg %p3432_p5  ;;  %s3360_s11 = smov 8  }
   0xb   : > { %s25_s12 = ssub.s32 %s3356_s24, %s3441_s9  ;;  %s28_s13 = sadd.s32 1, %s3352_s23 }
   0xc   : > { %p3037_p7 = pnand %p3036_p6, %p42_p1  ;;  %p26_p8 = scmp.eq.s32.totalorder %s25_s12, 0 }
   0xd   : > { %p35_p9 = scmp.ne.s32.totalorder %s3352_s23, %s3348_s22  ;;  %p36_p10 = scmp.eq.s32.totalorder %s3356_s24, 0 }
   0xe   : > { %3039 = dma.hbm_to_vmem [thread:$0]  (!%p3037_p7), %s206_s29, 9216, %s208_s8, [#allocation6], %s3359_s10, %s3359_s10, %s3360_s11  }
   0xf   : > { %p3045_p11 = scmp.lt.s32.totalorder %s3356_s24, 2  ;;  %p37_p12 = por %p36_p10, %p35_p9 }
  0x10   : > { %s3454_s14 = scalar_select %p26_p8, %s3352_s23, %s28_s13  }
  0x11   : > { %s224_s15 = sand.u32 1, %s3352_s23   ;;  %s2980_s17 = sshll.u32 %s3356_s24, 8 }
  0x12   : > { %s2937_s16 = sshll.u32 %s224_s15, 8  ;;  %s233_s20 = scalar_lea.hbm %s4974_s0, %s2980_s17 }
  0x13   : > { %s228_s21 = scalar_lea.vmem [#allocation3], %s2937_s16  ;;  %s234_s28 = sshll.u32 %s233_s20, 4  ;;  %s235_s28 = int_to_ptr.hbm [resolvable:$true] %s234_s28 }
  0x14   : > { %s236_s27 = sshll.u32 %s228_s21, 4  ;;  %p3461_p13 = pnand %p3045_p11, %p37_p12  ;;  %s237_s27 = int_to_ptr.vmem [resolvable:$true] %s236_s27 }
  0x15   : > { %s225_s7 = scalar_lea.sflag [#allocation4], %s224_s15  ;;  %s3288_s8 = sshra.s32 %s235_s28, 4  ;;  %s3289_s8 = int_to_ptr.hbm [resolvable:$true] %s3288_s8 }
  0x16   : > { %s3290_s12 = scalar_lea.hbm %s3289_s8, 256  ;;  %p3292_p2 = pneg %p3461_p13 }
  0x17   : > { %p3291_p0 = scmp.ne.s32.totalorder %s3289_s8, %s3290_s12  ;;  %s3295_s16 = scalar_lea.hbm %s4974_s0, 512 }
  0x18   : > { %p3296_p7 = scmp.lt.s32.totalorder %s3289_s8, %s4974_s0  ;;  %p3297_p8 = scmp.lt.s32.totalorder %s3295_s16, %s3290_s12 }
  0x19   : > { %p3293_p3 = pnand %p3292_p2, %p3291_p0 }
  0x1a   : > { %p3298_p9 = por %p3297_p8, %p3296_p7 }
  0x1b   : > { %p3294_p6 = pneg %p3293_p3 }
  0x1d   : > { %p3299_p10 = pnand %p3298_p9, %p3294_p6 }
  0x1f   : > { %3302 = shalt.err (!%p3299_p10)
}
  0x20   : > { %3043 = dma.hbm_to_vmem [thread:$0]  (!%p3461_p13), %s235_s28, 4096, %s237_s27, %s225_s7, %s3359_s10, %s3359_s10, %s3360_s11  }
  0x21   : > { %248 = sbr.rel (%p3432_p5) target bundleno = 653 (0x28d), region = 40 }
  0x26   : > { %s250_s15 = sand.u32 1, %s3348_s22  }
  0x27   : > { %s2941_s19 = sshll.u32 %s250_s15, 8  ;;  %s251_s20 = scalar_lea.sflag [#allocation4], %s250_s15 }
  0x28   : > { %s3481_s21 = scalar_lea.vmem [#allocation3], %s2941_s19 }
  0x29   : > { %3335 = dma.done.wait (%p3425_p4), %s251_s20, 4096  }
  0x2a   : > { %3337 = vsyncadd (%p3425_p4), %s251_s20, 4294963200 }
  0x2b   : > { %3339 = dma.done.wait (%p42_p1), [#allocation6], 9216  }
  0x2c   : > { %3341 = vsyncadd (%p42_p1), [#allocation6], 4294958080  ;;  %vm5020_vm0 = vcmask 523264   ;;  %v3361_v0 = vmov 0.0   ;;  %v316_v1 = vld [vmem:[%s3481_s21 + $0x70] sm:$0xff]  ;;  %v325_v5 = vld [vmem:[%s3481_s21 + $0xb8] sm:$0xff] }
  0x2d   : > { %408 = vst.msk [vmem:[#allocation2 + $0x8] sm:$0xff] %vm5020_vm0, %v3361_v0  ;;  %v324_v2 = vld [vmem:[%s3481_s21 + $0xb0] sm:$0xff]  ;;  %v317_v10 = vld [vmem:[%s3481_s21 + $0x78] sm:$0xff]  ;;  %v318_v13 = vld [vmem:[%s3481_s21 + $0x80] sm:$0xff]  ;;  %s3362_s27 = smov 64   ;;  %p293_p1 = scmp.lt.s32.totalorder %s3417_s25, 1 }
  0x2e   : > { %407 = vst.msk [vmem:[#allocation2] sm:$0xff] %vm5020_vm0, %v3361_v0  ;;  %v3502_v3 = vld [vmem:[%s4975_s1] ss:$0 sm:$0xff]  ;;  %v309_v12 = vld [vmem:[%s3481_s21 + $0x38] sm:$0xff]  ;;  %v302_v16 = vld [vmem:[%s3481_s21] sm:$0xff] }
  0x2f   : > { %409 = vst.msk [vmem:[#allocation2 + $0x10] sm:$0xff] %vm5020_vm0, %v3361_v0  ;;  %v3507_v4 = vld [vmem:[%s4976_s2] ss:$0 sm:$0xff]  ;;  %v352_v7 = vmul.f32 %v3502_v3, %v316_v1  ;;  %v360_v8 = vmul.f32 %v3502_v3, %v324_v2  ;;  %v361_v9 = vmul.f32 %v3502_v3, %v325_v5  ;;  %v353_v14 = vmul.f32 %v3502_v3, %v317_v10  ;;  %v327_v17 = vld [vmem:[%s3481_s21 + $0xc8] sm:$0xff]  ;;  %v326_v28 = vld [vmem:[%s3481_s21 + $0xc0] sm:$0xff]  ;;  %s5464_s25 = smov (!%p293_p1, %s3417_s25), 1 }
  0x30   : > { %410 = vst.msk [vmem:[#allocation2 + $0x118] sm:$0xff] %vm5020_vm0, %v3361_v0  ;;  %v308_v6 = vld [vmem:[%s3481_s21 + $0x30] sm:$0xff]  ;;  %v345_v15 = vmul.f32 %v3502_v3, %v309_v12  ;;  %v354_v21 = vmul.f32 %v3502_v3, %v318_v13  ;;  %v311_v22 = vld [vmem:[%s3481_s21 + $0x48] sm:$0xff]  ;;  %v338_v24 = vmul.f32 %v3502_v3, %v302_v16  ;;  %v363_v27 = vmul.f32 %v3502_v3, %v327_v17  ;;  %v329_v34 = vld [vmem:[%s3481_s21 + $0xd8] sm:$0xff]  ;;  %s2981_s13 = sshll.u32 %s5464_s25, 8  ;;  %s2945_s20 = sshll.u32 %s5464_s25, 1 }
  0x31   : > { %411 = vst.msk [vmem:[#allocation2 + $0x120] sm:$0xff] %vm5020_vm0, %v3361_v0  ;;  %v344_v11 = vmul.f32 %v3502_v3, %v308_v6  ;;  %v388_v18 = vadd.f32 %v3507_v4, %v352_v7  ;;  %v396_v19 = vadd.f32 %v3507_v4, %v360_v8  ;;  %v397_v20 = vadd.f32 %v3507_v4, %v361_v9  ;;  %v320_v25 = vld [vmem:[%s3481_s21 + $0x90] sm:$0xff]  ;;  %v321_v40 = vld [vmem:[%s3481_s21 + $0x98] sm:$0xff]  ;;  %v310_v43 = vld [vmem:[%s3481_s21 + $0x40] sm:$0xff]  ;;  %s4638_s18 = scalar_lea.vmem %s4979_s5, %s2981_s13  ;;  %s301_s30 = scalar_lea.vmem %s4980_s6, %s2945_s20 }
  0x32   : > { %412 = vst.msk [vmem:[#allocation2 + $0x128] sm:$0xff] %vm5020_vm0, %v3361_v0  ;;  %v389_v26 = vadd.f32 %v3507_v4, %v353_v14  ;;  %v381_v29 = vadd.f32 %v3507_v4, %v345_v15  ;;  %v347_v30 = vmul.f32 %v3502_v3, %v311_v22  ;;  %v304_v31 = vld [vmem:[%s3481_s21 + $0x10] sm:$0xff]  ;;  %v390_v32 = vadd.f32 %v3507_v4, %v354_v21  ;;  %v319_v46 = vld [vmem:[%s3481_s21 + $0x88] sm:$0xff]  ;;  %v305_v51 = vld [vmem:[%s3481_s21 + $0x18] sm:$0xff] }
  0x33   : > { %v380_v23 = vadd.f32 %v3507_v4, %v344_v11  ;;  %427 = vst.msk [vmem:[#allocation2 + $0x88] sm:$0xff] %vm5020_vm0, %v388_v18  ;;  %v356_v33 = vmul.f32 %v3502_v3, %v320_v25  ;;  %v374_v35 = vadd.f32 %v3507_v4, %v338_v24  ;;  %v362_v36 = vmul.f32 %v3502_v3, %v326_v28  ;;  %v312_v39 = vld [vmem:[%s3481_s21 + $0x50] sm:$0xff]  ;;  %v330_v55 = vld [vmem:[%s3481_s21 + $0xe0] sm:$0xff]  ;;  %v323_v5 = vld [vmem:[%s3481_s21 + $0xa8] sm:$0xff] }
  0x34   : > { %435 = vst.msk [vmem:[#allocation2 + $0xc8] sm:$0xff] %vm5020_vm0, %v396_v19  ;;  %v399_v37 = vadd.f32 %v3507_v4, %v363_v27  ;;  %v340_v38 = vmul.f32 %v3502_v3, %v304_v31  ;;  %v383_v41 = vadd.f32 %v3507_v4, %v347_v30  ;;  %v365_v42 = vmul.f32 %v3502_v3, %v329_v34  ;;  %v1054_v48 = vld [vmem:[#allocation2 + $0x8] sm:$0xff]  ;;  %v314_v2 = vld [vmem:[%s3481_s21 + $0x60] sm:$0xff]  ;;  %v303_v9 = vld [vmem:[%s3481_s21 + $0x8] sm:$0xff] }
  0x35   : > { %436 = vst.msk [vmem:[#allocation2 + $0xd0] sm:$0xff] %vm5020_vm0, %v397_v20  ;;  %v392_v44 = vadd.f32 %v3507_v4, %v356_v33  ;;  %v348_v45 = vmul.f32 %v3502_v3, %v312_v39  ;;  %v398_v49 = vadd.f32 %v3507_v4, %v362_v36  ;;  %v357_v50 = vmul.f32 %v3502_v3, %v321_v40  ;;  %v328_v10 = vld [vmem:[%s3481_s21 + $0xd0] sm:$0xff]  ;;  %v315_v15 = vld [vmem:[%s3481_s21 + $0x68] sm:$0xff]  ;;  %v313_v36 = vld [vmem:[%s3481_s21 + $0x58] sm:$0xff] }
  0x36   : > { %419 = vst.msk [vmem:[#allocation2 + $0x48] sm:$0xff] %vm5020_vm0, %v380_v23  ;;  %v376_v53 = vadd.f32 %v3507_v4, %v340_v38  ;;  %v346_v54 = vmul.f32 %v3502_v3, %v310_v43  ;;  %v401_v58 = vadd.f32 %v3507_v4, %v365_v42  ;;  %v355_v59 = vmul.f32 %v3502_v3, %v319_v46  ;;  %v1055_v22 = vld [vmem:[#allocation2 + $0x10] sm:$0xff]  ;;  %v331_v42 = vld [vmem:[%s3481_s21 + $0xe8] sm:$0xff] }
  0x37   : > { %428 = vst.msk [vmem:[#allocation2 + $0x90] sm:$0xff] %vm5020_vm0, %v389_v26  ;;  %v384_v61 = vadd.f32 %v3507_v4, %v348_v45  ;;  %v341_v62 = vmul.f32 %v3502_v3, %v305_v51  ;;  %v393_v0 = vadd.f32 %v3507_v4, %v357_v50  ;;  %v366_v1 = vmul.f32 %v3502_v3, %v330_v55 }
  0x38   : > { %420 = vst.msk [vmem:[#allocation2 + $0x50] sm:$0xff] %vm5020_vm0, %v381_v29  ;;  %v382_v7 = vadd.f32 %v3507_v4, %v346_v54  ;;  %v350_v8 = vmul.f32 %v3502_v3, %v314_v2  ;;  %v391_v13 = vadd.f32 %v3507_v4, %v355_v59  ;;  %v359_v14 = vmul.f32 %v3502_v3, %v323_v5  ;;  %v1895_v2 = vld [vmem:[#allocation5 + $0x68] sm:$0xff] }
  0x39   : > { %429 = vst.msk [vmem:[#allocation2 + $0x98] sm:$0xff] %vm5020_vm0, %v390_v32  ;;  %v377_v16 = vadd.f32 %v3507_v4, %v341_v62  ;;  %v339_v17 = vmul.f32 %v3502_v3, %v303_v9  ;;  %v402_v19 = vadd.f32 %v3507_v4, %v366_v1  ;;  %v364_v20 = vmul.f32 %v3502_v3, %v328_v10  ;;  %v307_v32 = vld [vmem:[%s3481_s21 + $0x28] sm:$0xff]  ;;  %v1893_v10 = vld [vmem:[#allocation5 + $0x58] sm:$0xff] }
  0x3a   : > { %v1070_v47 = vld [vmem:[#allocation2 + $0x88] sm:$0xff]  ;;  %413 = vst.msk [vmem:[#allocation2 + $0x18] sm:$0xff] %vm5020_vm0, %v374_v35  ;;  %v386_v23 = vadd.f32 %v3507_v4, %v350_v8  ;;  %v351_v24 = vmul.f32 %v3502_v3, %v315_v15  ;;  %v395_v25 = vadd.f32 %v3507_v4, %v359_v14  ;;  %v343_v35 = vmul.f32 %v3502_v3, %v307_v32  ;;  %v1892_v15 = vld [vmem:[#allocation5 + $0x50] sm:$0xff] }
  0x3b   : > { %v1078_v52 = vld [vmem:[#allocation2 + $0xc8] sm:$0xff]  ;;  %438 = vst.msk [vmem:[#allocation2 + $0xe0] sm:$0xff] %vm5020_vm0, %v399_v37  ;;  %v375_v27 = vadd.f32 %v3507_v4, %v339_v17  ;;  %v400_v31 = vadd.f32 %v3507_v4, %v364_v20  ;;  %v322_v37 = vld [vmem:[%s3481_s21 + $0xa0] sm:$0xff]  ;;  %v349_v39 = vmul.f32 %v3502_v3, %v313_v36  ;;  %v367_v45 = vmul.f32 %v3502_v3, %v331_v42  ;;  %v1884_v42 = vld [vmem:[#allocation5 + $0x10] sm:$0xff] }
  0x3c   : > { %v3084_v56 = vpack.i.bf16 %v1078_v52, %v1070_v47  ;;  %v1079_v57 = vld [vmem:[#allocation2 + $0xd0] sm:$0xff]  ;;  %422 = vst.msk [vmem:[#allocation2 + $0x60] sm:$0xff] %vm5020_vm0, %v383_v41  ;;  %v387_v34 = vadd.f32 %v3507_v4, %v351_v24  ;;  %v358_v40 = vmul.f32 %v3502_v3, %v322_v37  ;;  %v379_v43 = vadd.f32 %v3507_v4, %v343_v35 }
  0x3d   : > { %v3094_v60 = vpack.i.bf16 %v1079_v57, %v1054_v48  ;;  %431 = vst.msk [vmem:[#allocation2 + $0xa8] sm:$0xff] %vm5020_vm0, %v392_v44  ;;  %v1062_v63 = vld [vmem:[#allocation2 + $0x48] sm:$0xff]  ;;  %v306_v41 = vld [vmem:[%s3481_s21 + $0x20] sm:$0xff]  ;;  %v385_v48 = vadd.f32 %v3507_v4, %v349_v39  ;;  %v403_v54 = vadd.f32 %v3507_v4, %v367_v45  ;;  %v1896_v57 = vld [vmem:[#allocation5 + $0x70] sm:$0xff] }
  0x3e   : > { %3085 = vrot.lane.b32.xlu0 %v3084_v56, %s3362_s27  ;;  %437 = vst.msk [vmem:[#allocation2 + $0xd8] sm:$0xff] %vm5020_vm0, %v398_v49  ;;  %v1071_v6 = vld [vmem:[#allocation2 + $0x90] sm:$0xff]  ;;  %v342_v44 = vmul.f32 %v3502_v3, %v306_v41  ;;  %v394_v49 = vadd.f32 %v3507_v4, %v358_v40  ;;  %v1897_v56 = vld [vmem:[#allocation5 + $0x78] sm:$0xff] }
  0x3f   : > { %3095 = vrot.lane.b32.xlu1 %v3094_v60, %s3362_s27  ;;  %415 = vst.msk [vmem:[#allocation2 + $0x28] sm:$0xff] %vm5020_vm0, %v376_v53  ;;  %v1063_v11 = vld [vmem:[#allocation2 + $0x50] sm:$0xff]  ;;  %v3089_v18 = vpack.i.bf16 %v1071_v6, %v1062_v63  ;;  %2983 = vmatpush.msra.mxu2 %v1897_v56 }
  0x40   : > { %v1072_v12 = vld [vmem:[#allocation2 + $0x98] sm:$0xff]  ;;  %440 = vst.msk [vmem:[#allocation2 + $0xf0] sm:$0xff] %vm5020_vm0, %v401_v58  ;;  %v378_v52 = vadd.f32 %v3507_v4, %v342_v44  ;;  %2984 = vmatpush.msra.mxu3 %v1897_v56  ;;  %2054 = vmatpush.msra.mxu0 %v1897_v56  ;;  %v1886_v36 = vld [vmem:[#allocation5 + $0x20] sm:$0xff] }
  0x41   : > { %423 = vst.msk [vmem:[#allocation2 + $0x68] sm:$0xff] %vm5020_vm0, %v384_v61  ;;  %v3099_v21 = vpack.i.bf16 %v1072_v12, %v1063_v11  ;;  %v1056_v28 = vld [vmem:[#allocation2 + $0x18] sm:$0xff]  ;;  %v445_v61 = vlaneseq  ;;  %2986 = vmatpush.msra.mxu2 %v1896_v57  ;;  %2982 = vmatpush.msra.mxu1 %v1897_v56 }
  0x42   : > { %432 = vst.msk [vmem:[#allocation2 + $0xb0] sm:$0xff] %vm5020_vm0, %v393_v0  ;;  %v1081_v29 = vld [vmem:[#allocation2 + $0xe0] sm:$0xff]  ;;  %2987 = vmatpush.msra.mxu3 %v1896_v57  ;;  %2055 = vmatpush.msra.mxu0 %v1896_v57  ;;  %v3645_v20 = vld [vmem:[#allocation2 + $0x17] sm:$0xff] }
  0x43   : > { %421 = vst.msk [vmem:[#allocation2 + $0x58] sm:$0xff] %vm5020_vm0, %v382_v7  ;;  %v1065_v33 = vld [vmem:[#allocation2 + $0x60] sm:$0xff]  ;;  %v3114_v46 = vpack.i.bf16 %v1081_v29, %v1056_v28  ;;  %2985 = vmatpush.msra.mxu1 %v1896_v57  ;;  %v3635_v1 = vshrl.u32 %v445_v61, 7  ;;  %2989 = vmatpush.msra.mxu2 %v1895_v2  ;;  %v1894_v7 = vld [vmem:[#allocation5 + $0x60] sm:$0xff] }
  0x44   : > { %430 = vst.msk [vmem:[#allocation2 + $0xa0] sm:$0xff] %vm5020_vm0, %v391_v13  ;;  %v1074_v38 = vld [vmem:[#allocation2 + $0xa8] sm:$0xff]  ;;  %2990 = vmatpush.msra.mxu3 %v1895_v2  ;;  %2056 = vmatpush.msra.mxu0 %v1895_v2 }
  0x45   : > { %v1080_v26 = vld [vmem:[#allocation2 + $0xd8] sm:$0xff]  ;;  %416 = vst.msk [vmem:[#allocation2 + $0x30] sm:$0xff] %vm5020_vm0, %v377_v16  ;;  %v3119_v50 = vpack.i.bf16 %v1074_v38, %v1065_v33  ;;  %v482_v11 = vand.u32 15, %v3635_v1  ;;  %2992 = vmatpush.msra.mxu2 %v1894_v7  ;;  %2988 = vmatpush.msra.mxu1 %v1895_v2  ;;  %v449_v37 = vadd.s32 24, %v3635_v1  ;;  %v1885_v38 = vld [vmem:[#allocation5 + $0x18] sm:$0xff]  ;;  %v1882_v2 = vld [vmem:[#allocation5] sm:$0xff] }
  0x46   : > { %3090 = vrot.lane.b32.xlu0 %v3089_v18, %s3362_s27  ;;  %v3104_v30 = vpack.i.bf16 %v1080_v26, %v1055_v22  ;;  %441 = vst.msk [vmem:[#allocation2 + $0xf8] sm:$0xff] %vm5020_vm0, %v402_v19  ;;  %v1058_v58 = vld [vmem:[#allocation2 + $0x28] sm:$0xff]  ;;  %2993 = vmatpush.msra.mxu3 %v1894_v7  ;;  %v1891_v18 = vld [vmem:[#allocation5 + $0x48] sm:$0xff] }
  0x47   : > { %3100 = vrot.lane.b32.xlu1 %v3099_v21, %s3362_s27  ;;  %425 = vst.msk [vmem:[#allocation2 + $0x78] sm:$0xff] %vm5020_vm0, %v386_v23  ;;  %v1083_v59 = vld [vmem:[#allocation2 + $0xf0] sm:$0xff]  ;;  %2995 = vmatpush.msra.mxu2 %v1893_v10  ;;  %vm3641_vm1 = vcmp.ne.s32.totalorder %v482_v11, 0  ;;  %v1889_v26 = vld [vmem:[#allocation5 + $0x38] sm:$0xff]  ;;  %v503_v44 = vand.u32 15, %v449_v37  ;;  %v1952_v37 = vld [vmem:[#allocation5 + $0x230] sm:$0xff] }
  0x48   : > { %3105 = vrot.lane.b32.xlu2 %v3104_v30, %s3362_s27  ;;  %434 = vst.msk [vmem:[#allocation2 + $0xc0] sm:$0xff] %vm5020_vm0, %v395_v25  ;;  %v1066_v3 = vld [vmem:[#allocation2 + $0x68] sm:$0xff]  ;;  %v3134_v63 = vpack.i.bf16 %v1083_v59, %v1058_v58  ;;  %2057 = vmatpush.msra.mxu0 %v1894_v7  ;;  %v1890_v21 = vld [vmem:[#allocation5 + $0x40] sm:$0xff]  ;;  %v1216_v25 = vsel %vm3641_vm1, %v3645_v20, 0.0  ;;  %v447_v30 = vadd.s32 8, %v3635_v1  ;;  %v448_v59 = vadd.s32 16, %v3635_v1 }
  0x49   : > { %414 = vst.msk [vmem:[#allocation2 + $0x20] sm:$0xff] %vm5020_vm0, %v375_v27  ;;  %v1075_v55 = vld [vmem:[#allocation2 + $0xb0] sm:$0xff]  ;;  %2996 = vmatpush.msra.mxu3 %v1893_v10  ;;  %2991 = vmatpush.msra.mxu1 %v1894_v7  ;;  %vm3675_vm3 = vcmp.ne.s32.totalorder %v503_v44, 15  ;;  %v5072_v44 = vmov 0 }
  0x4a   : > { %v1064_v47 = vld [vmem:[#allocation2 + $0x58] sm:$0xff]  ;;  %439 = vst.msk [vmem:[#allocation2 + $0xe8] sm:$0xff] %vm5020_vm0, %v400_v31  ;;  %v3129_v62 = vpack.i.bf16 %v1075_v55, %v1066_v3  ;;  %2998 = vmatpush.msra.mxu2 %v1892_v15  ;;  %2058 = vmatpush.msra.mxu0 %v1893_v10  ;;  %v1888_v31 = vld [vmem:[#allocation5 + $0x30] sm:$0xff]  ;;  %v489_v35 = vand.u32 15, %v447_v30  ;;  %v1942_v30 = vld [vmem:[#allocation5 + $0x1e0] sm:$0xff] }
  0x4b   : > { %v1073_v51 = vld [vmem:[#allocation2 + $0xa0] sm:$0xff]  ;;  %426 = vst.msk [vmem:[#allocation2 + $0x80] sm:$0xff] %vm5020_vm0, %v387_v34  ;;  %2999 = vmatpush.msra.mxu3 %v1892_v15  ;;  %2994 = vmatpush.msra.mxu1 %v1893_v10  ;;  %v1887_v34 = vld [vmem:[#allocation5 + $0x28] sm:$0xff] }
  0x4c   : > { %v3109_v53 = vpack.i.bf16 %v1073_v51, %v1064_v47  ;;  %418 = vst.msk [vmem:[#allocation2 + $0x40] sm:$0xff] %vm5020_vm0, %v379_v43  ;;  %v1059_v5 = vld [vmem:[#allocation2 + $0x30] sm:$0xff]  ;;  %3001 = vmatpush.msra.mxu2 %v1891_v18  ;;  %2059 = vmatpush.msra.mxu0 %v1892_v15  ;;  %vm3658_vm2 = vcmp.ne.s32.totalorder %v489_v35, 15  ;;  %v3759_v35 = vld [vmem:[#allocation2 + $0x61] sm:$0xff] }
  0x4d   : > { %424 = vst.msk [vmem:[#allocation2 + $0x70] sm:$0xff] %vm5020_vm0, %v385_v48  ;;  %v1084_v6 = vld [vmem:[#allocation2 + $0xf8] sm:$0xff]  ;;  %3002 = vmatpush.msra.mxu3 %v1891_v18  ;;  %2997 = vmatpush.msra.mxu1 %v1892_v15  ;;  %v3666_v43 = vld [vmem:[#allocation2 + $0x29] sm:$0xff]  ;;  %v450_v48 = vadd.s32 32, %v3635_v1  ;;  %v1944_v15 = vld [vmem:[#allocation5 + $0x1f0] sm:$0xff] }
  0x4e   : > { %3115 = vrot.lane.b32.xlu0 %v3114_v46, %s3362_s27  ;;  %433 = vst.msk [vmem:[#allocation2 + $0xb8] sm:$0xff] %vm5020_vm0, %v394_v49  ;;  %v1068_v8 = vld [vmem:[#allocation2 + $0x78] sm:$0xff]  ;;  %v3144_v14 = vpack.i.bf16 %v1084_v6, %v1059_v5  ;;  %3004 = vmatpush.msra.mxu2 %v1890_v21  ;;  %v451_v49 = vadd.s32 40, %v3635_v1  ;;  %v3687_v51 = vld [vmem:[#allocation2 + $0x2f] sm:$0xff]  ;;  %v452_v5 = vadd.s32 48, %v3635_v1 }
  0x4f   : > { %3120 = vrot.lane.b32.xlu1 %v3119_v50, %s3362_s27  ;;  %417 = vst.msk [vmem:[#allocation2 + $0x38] sm:$0xff] %vm5020_vm0, %v378_v52  ;;  %v1077_v9 = vld [vmem:[#allocation2 + $0xc0] sm:$0xff]  ;;  %3005 = vmatpush.msra.mxu3 %v1890_v21  ;;  %v510_v52 = vand.u32 15, %v450_v48  ;;  %v1929_v6 = vld [vmem:[#allocation5 + $0x178] sm:$0xff] }
  0x50   : > { %3110 = vrot.lane.b32.xlu2 %v3109_v53, %s3362_s27  ;;  %442 = vst.msk [vmem:[#allocation2 + $0x100] sm:$0xff] %vm5020_vm0, %v403_v54  ;;  %v1057_v4 = vld [vmem:[#allocation2 + $0x20] sm:$0xff]  ;;  %v3149_v16 = vpack.i.bf16 %v1077_v9, %v1068_v8  ;;  %3007 = vmatpush.msra.mxu2 %v1889_v26  ;;  %v517_v53 = vand.u32 15, %v451_v49  ;;  %v524_v7 = vand.u32 15, %v452_v5  ;;  %v454_v5 = vadd.s32 64, %v3635_v1  ;;  %v1930_v54 = vld [vmem:[#allocation5 + $0x180] sm:$0xff] }
  0x51   : > { %v1082_v60 = vld [vmem:[#allocation2 + $0xe8] sm:$0xff]  ;;  %v1088_v23 = vld [vmem:[#allocation2 + $0x19] sm:$0xff]  ;;  %3008 = vmatpush.msra.mxu3 %v1889_v26  ;;  %2060 = vmatpush.msra.mxu0 %v1891_v18  ;;  %vm3692_vm4 = vcmp.ne.s32.totalorder %v510_v52, 0 }
  0x52   : > { %v3124_v0 = vpack.i.bf16 %v1082_v60, %v1057_v4  ;;  %v1069_v22 = vld [vmem:[#allocation2 + $0x80] sm:$0xff]  ;;  %3010 = vmatpush.msra.mxu2 %v1888_v31  ;;  %3000 = vmatpush.msra.mxu1 %v1891_v18  ;;  %vm3698_vm5 = vcmp.ne.s32.totalorder %v517_v53, 15  ;;  %v496_v4 = vand.u32 15, %v448_v59  ;;  %vm3728_vm7 = vcmp.ne.s32.totalorder %v524_v7, 0  ;;  %v3742_v18 = vld [vmem:[#allocation2 + $0x4f] sm:$0xff] }
  0x53   : > { %v1061_v24 = vld [vmem:[#allocation2 + $0x40] sm:$0xff]  ;;  %v3159_v29 = vpack.i.bf16 %v1088_v23, %v1069_v22  ;;  %3011 = vmatpush.msra.mxu3 %v1888_v31  ;;  %2061 = vmatpush.msra.mxu0 %v1890_v21  ;;  %v1943_v22 = vld [vmem:[#allocation5 + $0x1e8] sm:$0xff]  ;;  %v1953_v23 = vld [vmem:[#allocation5 + $0x238] sm:$0xff]  ;;  %v453_v53 = vadd.s32 56, %v3635_v1  ;;  %v5075_v59 = vmov 0 }
  0x54   : > { %v1067_v12 = vld [vmem:[#allocation2 + $0x70] sm:$0xff]  ;;  %v3164_v32 = vpack.i.bf16 %v1216_v25, %v1061_v24  ;;  %3013 = vmatpush.msra.mxu2 %v1887_v34  ;;  %3003 = vmatpush.msra.mxu1 %v1890_v21  ;;  %v3662_v40 = vld [vmem:[#allocation2 + $0x21] sm:$0xff]  ;;  %vm3713_vm6 = vcmp.ne.s32.totalorder %v496_v4, 0  ;;  %v3746_v21 = vld [vmem:[#allocation2 + $0x59] sm:$0xff]  ;;  %v462_v25 = vadd.s32 128, %v3635_v1 }
  0x55   : > { %v1076_v13 = vld [vmem:[#allocation2 + $0xb8] sm:$0xff]  ;;  %3014 = vmatpush.msra.mxu3 %v1887_v34  ;;  %2062 = vmatpush.msra.mxu0 %v1889_v26  ;;  %v1253_v45 = vsel %vm3658_vm2, %v3662_v40, 0.0  ;;  %v3702_v56 = vld [vmem:[#allocation2 + $0x41] sm:$0xff] }
  0x56   : > { %3130 = vrot.lane.b32.xlu0 %v3129_v62, %s3362_s27  ;;  %v3139_v17 = vpack.i.bf16 %v1076_v13, %v1067_v12  ;;  %v1060_v27 = vld [vmem:[#allocation2 + $0x38] sm:$0xff]  ;;  %3016 = vmatpush.msra.mxu2 %v1886_v36  ;;  %v1257_v58 = vsel %vm3698_vm5, %v3702_v56, 0.0  ;;  %v3717_v61 = vld [vmem:[#allocation2 + $0x27] sm:$0xff] }
  0x57   : > { %3135 = vrot.lane.b32.xlu1 %v3134_v63, %s3362_s27  ;;  %v1085_v28 = vld [vmem:[#allocation2 + $0x100] sm:$0xff]  ;;  %3017 = vmatpush.msra.mxu3 %v1886_v36  ;;  %v3679_v47 = vld [vmem:[#allocation2 + $0x31] sm:$0xff]  ;;  %v1218_v62 = vsel %vm3713_vm6, %v3717_v61, 0.0  ;;  %v3722_v63 = vld [vmem:[#allocation2 + $0x49] sm:$0xff] }
  0x58   : > { %3125 = vrot.lane.b32.xlu2 %v3124_v0, %s3362_s27  ;;  %v3154_v33 = vpack.i.bf16 %v1085_v28, %v1060_v27  ;;  %v3664_v41 = vld [vmem:[#allocation2 + $0x1f] sm:$0xff]  ;;  %3006 = vmatpush.msra.mxu1 %v1889_v26  ;;  %v1255_v50 = vsel %vm3675_vm3, %v3679_v47, 0.0  ;;  %v3696_v3 = vld [vmem:[#allocation2 + $0x37] sm:$0xff]  ;;  %v3732_v9 = vld [vmem:[#allocation2 + $0x47] sm:$0xff]  ;;  %v455_v26 = vadd.s32 72, %v3635_v1  ;;  %v470_v27 = vadd.s32 192, %v3635_v1 }
  0x59   : > { %3019 = vmatpush.msra.mxu2 %v1885_v38  ;;  %3020 = vmatpush.msra.mxu3 %v1885_v38  ;;  %v1220_v57 = vsel %vm3692_vm4, %v3696_v3, 0.0  ;;  %v1883_v0 = vld [vmem:[#allocation5 + $0x8] sm:$0xff]  ;;  %v1222_v11 = vsel %vm3728_vm7, %v3732_v9, 0.0  ;;  %v1945_v12 = vld [vmem:[#allocation5 + $0x1f8] sm:$0xff]  ;;  %v1924_v7 = vld [vmem:[#allocation5 + $0x150] sm:$0xff] }
  0x5a   : > { %2063 = vmatpush.msra.mxu0 %v1888_v31  ;;  %3009 = vmatpush.msra.mxu1 %v1888_v31  ;;  %v3734_v10 = vld [vmem:[#allocation2 + $0x39] sm:$0xff]  ;;  %v1913_v13 = vld [vmem:[#allocation5 + $0xf8] sm:$0xff]  ;;  %v1910_v31 = vld [vmem:[#allocation5 + $0xe0] sm:$0xff]  ;;  %v650_v48 = vand.u32 15, %v470_v27 }
  0x5b   : > { %3022 = vmatpush.msra.mxu2 %v1884_v42  ;;  %3023 = vmatpush.msra.mxu3 %v1884_v42  ;;  %v1911_v28 = vld [vmem:[#allocation5 + $0xe8] sm:$0xff]  ;;  %v3783_v4 = vld [vmem:[#allocation2 + $0x87] sm:$0xff] }
  0x5c   : > { %2064 = vmatpush.msra.mxu0 %v1887_v34  ;;  %3012 = vmatpush.msra.mxu1 %v1887_v34  ;;  %v545_v34 = vand.u32 15, %v455_v26  ;;  %vm3787_vm10 = vcmp.ne.s32.totalorder %v650_v48, 0  ;;  %v1951_v26 = vld [vmem:[#allocation5 + $0x228] sm:$0xff]  ;;  %v464_v48 = vadd.s32 144, %v3635_v1 }
  0x5d   : > { %3025 = vmatpush.msra.mxu2 %v1883_v0  ;;  %3026 = vmatpush.msra.mxu3 %v1883_v0 }
  0x5e   : > { %3145 = vrot.lane.b32.xlu0 %v3144_v14, %s3362_s27  ;;  %2065 = vmatpush.msra.mxu0 %v1886_v36  ;;  %v1928_v14 = vld [vmem:[#allocation5 + $0x170] sm:$0xff]  ;;  %vm3762_vm8 = vcmp.ne.s32.totalorder %v545_v34, 15 }
  0x5f   : > { %3150 = vrot.lane.b32.xlu1 %v3149_v16, %s3362_s27  ;;  %3015 = vmatpush.msra.mxu1 %v1886_v36  ;;  %v1912_v16 = vld [vmem:[#allocation5 + $0xf0] sm:$0xff]  ;;  %v1941_v36 = vld [vmem:[#allocation5 + $0x1d8] sm:$0xff]  ;;  %v5073_v44 = vsel %vm3762_vm8, 4294967295, %v5072_v44  ;;  %v1261_v49 = vsel %vm3762_vm8, %v3759_v35, 0.0 }
  0x60   : > { %3140 = vrot.lane.b32.xlu2 %v3139_v17, %s3362_s27  ;;  %2066 = vmatpush.msra.mxu0 %v1885_v38  ;;  %v1927_v17 = vld [vmem:[#allocation5 + $0x168] sm:$0xff]  ;;  %5074 = vst [vmem:[#allocation10_spill] sm:$0xff] %v5073_v44 }
  0x61   : > { %3018 = vmatpush.msra.mxu1 %v1885_v38  ;;  %3028 = vmatpush.msra.mxu2 %v1882_v2  ;;  %v458_v38 = vadd.s32 96, %v3635_v1 }
  0x62   : > { %2067 = vmatpush.msra.mxu0 %v1884_v42  ;;  %3029 = vmatpush.msra.mxu3 %v1882_v2 }
  0x63   : > { %3021 = vmatpush.msra.mxu1 %v1884_v42  ;;  %2280 = vmatpush.msrb.mxu2 %v1929_v6  ;;  %v594_v42 = vand.u32 15, %v462_v25  ;;  %v1909_v6 = vld [vmem:[#allocation5 + $0xd8] sm:$0xff]  ;;  %v1939_v25 = vld [vmem:[#allocation5 + $0x1c8] sm:$0xff] }
  0x64   : > { %2068 = vmatpush.msra.mxu0 %v1883_v0  ;;  %2393 = vmatpush.msrb.mxu3 %v1945_v12  ;;  %v531_v12 = vand.u32 15, %v453_v53 }
  0x65   : > { %3024 = vmatpush.msra.mxu1 %v1883_v0  ;;  %2281 = vmatpush.msrb.mxu2 %v1928_v14  ;;  %vm3779_vm9 = vcmp.ne.s32.totalorder %v594_v42, 0  ;;  %v926_v0 = vld [vmem:[#allocation2 + $0x7] sm:$0xff] }
  0x66   : > { %3160 = vrot.lane.b32.xlu0 %v3159_v29, %s3362_s27  ;;  %2069 = vmatpush.msra.mxu0 %v1882_v2  ;;  %v1926_v29 = vld [vmem:[#allocation5 + $0x160] sm:$0xff]  ;;  %v5076_v59 = vsel %vm3779_vm9, 4294967295, %v5075_v59  ;;  %v1908_v14 = vld [vmem:[#allocation5 + $0xd0] sm:$0xff]  ;;  %vm3800_vm11 = vcmp.ne.s32.totalorder %v531_v12, 15  ;;  %v1907_v12 = vld [vmem:[#allocation5 + $0xc8] sm:$0xff] }
  0x67   : > { %3165 = vrot.lane.b32.xlu1 %v3164_v32, %s3362_s27  ;;  %3027 = vmatpush.msra.mxu1 %v1882_v2  ;;  %v1925_v32 = vld [vmem:[#allocation5 + $0x158] sm:$0xff] }
  0x68   : > { %3155 = vrot.lane.b32.xlu2 %v3154_v33, %s3362_s27  ;;  %2394 = vmatpush.msrb.mxu3 %v1944_v15  ;;  %v3755_v33 = vld [vmem:[#allocation2 + $0x3f] sm:$0xff] }
  0x69   : > { %2167 = vmatpush.msrb.mxu1 %v1913_v13  ;;  %2282 = vmatpush.msrb.mxu2 %v1927_v17  ;;  %v456_v13 = vadd.s32 80, %v3635_v1  ;;  %v1923_v15 = vld [vmem:[#allocation5 + $0x148] sm:$0xff] }
  0x6a   : > { %2395 = vmatpush.msrb.mxu3 %v1943_v22  ;;  %2514 = vmatpush.msrb.mxu0 %v1953_v23  ;;  %v3804_v23 = vld [vmem:[#allocation2 + $0x5f] sm:$0xff] }
  0x6b   : > { %2168 = vmatpush.msrb.mxu1 %v1912_v16  ;;  %2283 = vmatpush.msrb.mxu2 %v1926_v29  ;;  %v3793_v16 = vld [vmem:[#allocation2 + $0x51] sm:$0xff]  ;;  %v1038_v29 = vsel %vm3779_vm9, %v3783_v4, 0.0  ;;  %v4388_v22 = vld [vmem:[%s4978_s4] ss:$0 sm:$0xff] }
  0x6c   : > { %2396 = vmatpush.msrb.mxu3 %v1942_v30  ;;  %2515 = vmatpush.msrb.mxu0 %v1952_v37  ;;  %v1022_v37 = vsel %vm3641_vm1, %v926_v0, 0.0 }
  0x6d   : > { %2169 = vmatpush.msrb.mxu1 %v1911_v28  ;;  %2284 = vmatpush.msrb.mxu2 %v1925_v32 }
  0x6e   : > { %1516 = vrot.lane.b32.xlu0 %v3664_v41, %s3362_s27  ;;  %2397 = vmatpush.msrb.mxu3 %v1941_v36 }
  0x6f   : > { %1646 = vrot.lane.b32.xlu1 %v3666_v43, %s3362_s27  ;;  %2170 = vmatpush.msrb.mxu1 %v1910_v31  ;;  %v1259_v31 = vsel %vm3800_vm11, %v3793_v16, 0.0 }
  0x70   : > { %1644 = vrot.lane.b32.xlu2 %v1253_v45, %s3362_s27  ;;  %v3766_v45 = vld [vmem:[#allocation2 + $0x57] sm:$0xff]  ;;  %2285 = vmatpush.msrb.mxu2 %v1924_v7  ;;  %v3842_v7 = vld [vmem:[#allocation2 + $0xcf] sm:$0xff] }
  0x71   : > { %2171 = vmatpush.msrb.mxu1 %v1909_v6  ;;  %2516 = vmatpush.msrb.mxu0 %v1951_v26  ;;  %5086 = vst [vmem:[#allocation12_spill] sm:$0xff] %v3842_v7  ;;  %v1915_v6 = vld [vmem:[#allocation5 + $0x108] sm:$0xff] }
  0x72   : > { %2286 = vmatpush.msrb.mxu2 %v1923_v15  ;;  %v457_v15 = vadd.s32 88, %v3635_v1 }
  0x73   : > { %2172 = vmatpush.msrb.mxu1 %v1908_v14  ;;  %v1938_v14 = vld [vmem:[#allocation5 + $0x1c0] sm:$0xff] }
  0x75   : > { %2173 = vmatpush.msrb.mxu1 %v1907_v12 }
  0x76   : > { %1648 = vrot.lane.b32.xlu0 %v1255_v50, %s3362_s27 }
  0x77   : > { %1520 = vrot.lane.b32.xlu1 %v3687_v51, %s3362_s27 }
  0x78   : > { %1518 = vrot.lane.b32.xlu2 %v1218_v62, %s3362_s27  ;;  %v3785_v62 = vld [vmem:[#allocation2 + $0xc7] sm:$0xff] }
  0x79   : > { %v1046_v30 = vsel %vm3787_vm10, %v3785_v62, 0.0 }
  0x7e   : > { %1522 = vrot.lane.b32.xlu0 %v1220_v57, %s3362_s27  ;;  %v566_v57 = vand.u32 15, %v458_v38  ;;  %v538_v38 = vand.u32 15, %v454_v5  ;;  %v472_v5 = vadd.s32 208, %v3635_v1 }
  0x7f   : > { %1652 = vrot.lane.b32.xlu1 %v1257_v58, %s3362_s27  ;;  %v1292_v58 = vsel %vm3728_vm7, %v3766_v45, 0.0 }
  0x80   : > { %1650 = vrot.lane.b32.xlu2 %v3734_v10, %s3362_s27  ;;  %vm3806_vm12 = vcmp.ne.s32.totalorder %v566_v57, 0  ;;  %vm3838_vm13 = vcmp.ne.s32.totalorder %v538_v38, 0  ;;  %v1921_v38 = vld [vmem:[#allocation5 + $0x138] sm:$0xff]  ;;  %v664_v12 = vand.u32 15, %v472_v5 }
  0x81   : > { %v1298_v53 = vsel %vm3806_vm12, %v3783_v4, 0.0 }
  0x86   : > { %1654 = vrot.lane.b32.xlu0 %v3722_v63, %s3362_s27 }
  0x87   : > { %1526 = vrot.lane.b32.xlu1 %v1222_v11, %s3362_s27  ;;  %v1940_v11 = vld [vmem:[#allocation5 + $0x1d0] sm:$0xff] }
  0x88   : > { %1524 = vrot.lane.b32.xlu2 %v3755_v33, %s3362_s27  ;;  %2398 = vmatpush.msrb.mxu3 %v1940_v11  ;;  %v927_v11 = vld [vmem:[#allocation2 + $0xf] sm:$0xff] }
  0x8a   : > { %2399 = vmatpush.msrb.mxu3 %v1939_v25 }
  0x8c   : > { %2400 = vmatpush.msrb.mxu3 %v1938_v14 }
  0x8e   : > { %1528 = vrot.lane.b32.xlu0 %v3742_v18, %s3362_s27 }
  0x8f   : > { %1658 = vrot.lane.b32.xlu1 %v3746_v21, %s3362_s27 }
  0x90   : > { %1656 = vrot.lane.b32.xlu2 %v1259_v31, %s3362_s27 }
  0x96   : > { %1660 = vrot.lane.b32.xlu0 %v1261_v49, %s3362_s27  ;;  %v552_v49 = vand.u32 15, %v456_v13  ;;  %v1922_v13 = vld [vmem:[#allocation5 + $0x140] sm:$0xff] }
  0x97   : > { %1532 = vrot.lane.b32.xlu1 %v3804_v23, %s3362_s27  ;;  %2287 = vmatpush.msrb.mxu2 %v1922_v13  ;;  %v1290_v13 = vsel %vm3692_vm4, %v3732_v9, 0.0 }
  0x98   : > { %vm3849_vm14 = vcmp.ne.s32.totalorder %v552_v49, 0 }
  0x99   : > { %2288 = vmatpush.msrb.mxu2 %v1921_v38 }
  0xa2   : > { %v3750_v24 = vpop.permute.xlu2 %3105 }
  0xa3   : > { %5071 = vst [vmem:[#allocation9_spill] sm:$0xff] %v3750_v24 }
  0xaa   : > { %v3771_v50 = vpop.permute.xlu2 %3110 }
  0xab   : > { %v4982_v52 = vunpack.i.l.bf16 %v3771_v50 }
  0xad   : > { %v3798_v17 = vsel %vm5020_vm0, %v1292_v58, %v4982_v52  ;;  %v5092_v52 = vmov 0 }
  0xb0   : > { %v3810_v28 = vpop.permute.xlu0 %3085 }
  0xb1   : > { %5083 = vst [vmem:[#allocation11_spill] sm:$0xff] %v3810_v28  ;;  %v4981_v32 = vunpack.i.h.bf16 %v3810_v28  ;;  %v3087_v34 = vunpack.i.l.bf16 %v3810_v28  ;;  %v3096_v36 = vpop.permute.xlu1 %3095  ;;  %v1949_v28 = vld [vmem:[#allocation5 + $0x218] sm:$0xff] }
  0xb2   : > { %v3097_v42 = vunpack.i.l.bf16 %v3096_v36  ;;  %v3098_v26 = vunpack.i.h.bf16 %v3096_v36  ;;  %v3858_v36 = vld [vmem:[#allocation2 + $0x71] sm:$0xff] }
  0xb3   : > { %v1770_v57 = vsel %vm5020_vm0, %v1038_v29, %v3087_v34  ;;  %v1778_v58 = vsel %vm5020_vm0, %v1046_v30, %v4981_v32  ;;  %v3846_v25 = vsel %vm5020_vm0, %v1298_v53, %v3087_v34  ;;  %v3107_v29 = vunpack.i.l.bf16 %v3750_v24  ;;  %5090 = vst [vmem:[#allocation14_spill] sm:$0xff] %v3858_v36 }
  0xb4   : > { %2118 = vmatmul.f32.vlgmr.msra.gmra.mxu2 %v1770_v57  ;;  %2142 = vmatmul.f32.vlgmr.msra.gmra.mxu3 %v1778_v58  ;;  %v1754_v0 = vsel %vm5020_vm0, %v1022_v37, %v3097_v42  ;;  %5087 = vst [vmem:[#allocation13_spill] sm:$0xff] %v3846_v25  ;;  %v608_v30 = vand.u32 15, %v464_v48  ;;  %v1906_v37 = vld [vmem:[#allocation5 + $0xc0] sm:$0xff]  ;;  %v3853_v42 = vld [vmem:[#allocation2 + $0x67] sm:$0xff]  ;;  %v559_v53 = vand.u32 15, %v457_v15  ;;  %v1030_v58 = vsel %vm3838_vm13, %v3732_v9, 0.0 }
  0xb5   : > { %2070 = vmatmul.f32.vlgmr.msra.gmra.mxu0 %v1754_v0  ;;  %v1226_v34 = vsel %vm3849_vm14, %v3853_v42, 0.0  ;;  %v1937_v57 = vld [vmem:[#allocation5 + $0x1b8] sm:$0xff]  ;;  %v1950_v48 = vld [vmem:[#allocation5 + $0x220] sm:$0xff]  ;;  %2174 = vmatpush.msrb.mxu1 %v1906_v37  ;;  %v3877_v5 = vsel %vm5020_vm0, %v3842_v7, %v3098_v26  ;;  %v1755_v37 = vsel %vm5020_vm0, %v927_v11, %v3107_v29  ;;  %v5099_v29 = vmov 0  ;;  %v1919_v26 = vld [vmem:[#allocation5 + $0x128] sm:$0xff] }
  0xb6   : > { %v3863_v0 = vld [vmem:[#allocation2 + $0x8f] sm:$0xff]  ;;  %1534 = vrot.lane.b32.xlu0 %v1226_v34, %s3362_s27  ;;  %vm3871_vm15 = vcmp.ne.s32.totalorder %v559_v53, 15  ;;  %2401 = vmatpush.msrb.mxu3 %v1937_v57  ;;  %5095 = vst [vmem:[#allocation17_spill] sm:$0xff] %v3877_v5  ;;  %vm3880_vm8 = vcmp.ne.s32.totalorder %v608_v30, 0  ;;  %v3892_v57 = vld [vmem:[#allocation2 + $0x97] sm:$0xff] }
  0xb7   : > { %v5093_v52 = vsel %vm3871_vm15, 4294967295, %v5092_v52  ;;  %v1263_v9 = vsel %vm3871_vm15, %v3858_v36, 0.0  ;;  %2517 = vmatpush.msrb.mxu0 %v1950_v48  ;;  %vm3902_vm15 = vcmp.ne.s32.totalorder %v664_v12, 0  ;;  %v3906_v30 = vld [vmem:[#allocation2 + $0xd7] sm:$0xff] }
  0xb8   : > { %v3091_v49 = vpop.permute.xlu0 %3090  ;;  %5094 = vst [vmem:[#allocation16_spill] sm:$0xff] %v5093_v52  ;;  %1664 = vrot.lane.b32.xlu1 %v1263_v9, %s3362_s27  ;;  %v5100_v29 = vsel %vm3902_vm15, 4294967295, %v5099_v29  ;;  %v1040_v9 = vsel %vm3880_vm8, %v3892_v57, 0.0  ;;  %v3918_v48 = vld [vmem:[#allocation2 + $0x79] sm:$0xff] }
  0xb9   : > { %v3093_v14 = vunpack.i.h.bf16 %v3091_v49  ;;  %v3092_v15 = vunpack.i.l.bf16 %v3091_v49  ;;  %v3868_v32 = vpop.permute.xlu1 %3100  ;;  %5101 = vst [vmem:[#allocation19_spill] sm:$0xff] %v5100_v29  ;;  %2518 = vmatpush.msrb.mxu0 %v1949_v28  ;;  %v1903_v28 = vld [vmem:[#allocation5 + $0xa8] sm:$0xff] }
  0xba   : > { %5091 = vst [vmem:[#allocation15_spill] sm:$0xff] %v3868_v32  ;;  %v3102_v49 = vunpack.i.l.bf16 %v3868_v32 }
  0xbb   : > { %v1762_v34 = vsel %vm5020_vm0, %v1030_v58, %v3092_v15  ;;  %v3890_v53 = vsel %vm5020_vm0, %v3863_v0, %v3093_v14  ;;  %v3896_v11 = vsel %vm5020_vm0, %v1290_v13, %v3092_v15  ;;  %v1905_v58 = vld [vmem:[#allocation5 + $0xb8] sm:$0xff]  ;;  %v1920_v13 = vld [vmem:[#allocation5 + $0x130] sm:$0xff]  ;;  %v1224_v15 = vsel %vm3838_vm13, %v3766_v45, 0.0  ;;  %5102 = vst [vmem:[#allocation20_spill] sm:$0xff] %v3918_v48 }
  0xbc   : > { %5098 = vst [vmem:[#allocation18_spill] sm:$0xff] %v3890_v53  ;;  %2094 = vmatmul.f32.vlgmr.msra.gmra.mxu1 %v1762_v34  ;;  %2121 = vmatmul.f32.gmra.mxu2 %v3890_v53  ;;  %v1936_v14 = vld [vmem:[#allocation5 + $0x1b0] sm:$0xff]  ;;  %v1024_v53 = vsel %vm3713_vm6, %v3645_v20, 0.0 }
  0xbd   : > { %2145 = vmatmul.f32.gmra.mxu3 %v3877_v5  ;;  %2073 = vmatmul.f32.gmra.mxu0 %v1755_v37  ;;  %v1904_v34 = vld [vmem:[#allocation5 + $0xb0] sm:$0xff]  ;;  %v1048_v37 = vsel %vm3902_vm15, %v3906_v30, 0.0  ;;  %v1935_v5 = vld [vmem:[#allocation5 + $0x1a8] sm:$0xff] }
  0xbe   : > { %2175 = vmatpush.msrb.mxu1 %v1905_v58  ;;  %2289 = vmatpush.msrb.mxu2 %v1920_v13  ;;  %v3929_v58 = vsel %vm5020_vm0, %v3742_v18, %v3102_v49  ;;  %v5103_v13 = vunpack.i.h.bf16 %v3868_v32  ;;  %v3943_v18 = vld [vmem:[#allocation2 + $0x9f] sm:$0xff]  ;;  %v474_v49 = vadd.s32 224, %v3635_v1  ;;  %v3956_v32 = vld [vmem:[#allocation2 + $0x69] sm:$0xff] }
  0xbf   : > { %2402 = vmatpush.msrb.mxu3 %v1936_v14  ;;  %1530 = vrot.lane.b32.xlu2 %v1224_v15, %s3362_s27  ;;  %v5105_v15 = vunpack.i.h.bf16 %v3750_v24  ;;  %v1917_v24 = vld [vmem:[#allocation5 + $0x118] sm:$0xff]  ;;  %5107 = vst [vmem:[#allocation23_spill] sm:$0xff] %v3956_v32 }
  0xc0   : > { %v3116_v12 = vpop.permute.xlu0 %3115  ;;  %2176 = vmatpush.msrb.mxu1 %v1904_v34  ;;  %2290 = vmatpush.msrb.mxu2 %v1919_v26  ;;  %v1772_v25 = vsel %vm5020_vm0, %v1040_v9, %v5103_v13  ;;  %v3113_v9 = vunpack.i.h.bf16 %v3771_v50  ;;  %v3947_v34 = vld [vmem:[#allocation2 + $0xdf] sm:$0xff]  ;;  %v1918_v13 = vld [vmem:[#allocation5 + $0x120] sm:$0xff]  ;;  %v678_v44 = vand.u32 15, %v474_v49 }
  0xc1   : > { %v3117_v14 = vunpack.i.l.bf16 %v3116_v12  ;;  %v3934_v52 = vpop.permute.xlu1 %3120  ;;  %1666 = vrot.lane.b32.xlu0 %v3918_v48, %s3362_s27  ;;  %2403 = vmatpush.msrb.mxu3 %v1935_v5  ;;  %v1780_v20 = vsel %vm5020_vm0, %v1048_v37, %v5105_v15  ;;  %v3949_v5 = vpop.permute.xlu2 %3125  ;;  %v466_v37 = vadd.s32 160, %v3635_v1  ;;  %v1933_v48 = vld [vmem:[#allocation5 + $0x198] sm:$0xff] }
  0xc2   : > { %5104 = vst [vmem:[#allocation21_spill] sm:$0xff] %v3934_v52  ;;  %v3127_v15 = vunpack.i.l.bf16 %v3949_v5  ;;  %2177 = vmatpush.msrb.mxu1 %v1903_v28  ;;  %2291 = vmatpush.msrb.mxu2 %v1918_v13  ;;  %v5108_v28 = vunpack.i.l.bf16 %v3771_v50  ;;  %vm3999_vm15 = vcmp.ne.s32.totalorder %v678_v44, 0  ;;  %v4016_v44 = vld [vmem:[%s4975_s1] ss:$0 sm:$0xff]  ;;  %v5121_v29 = vunpack.i.h.bf16 %v3934_v52 }
  0xc3   : > { %v1756_v26 = vsel %vm5020_vm0, %v1024_v53, %v3117_v14  ;;  %5106 = vst [vmem:[#allocation22_spill] sm:$0xff] %v3949_v5  ;;  %v1934_v53 = vld [vmem:[#allocation5 + $0x1a0] sm:$0xff]  ;;  %v3118_v14 = vunpack.i.h.bf16 %v3116_v12  ;;  %v1948_v12 = vld [vmem:[#allocation5 + $0x210] sm:$0xff] }
  0xc4   : > { %2097 = vmatmul.f32.gmra.mxu1 %v3929_v58  ;;  %2124 = vmatmul.f32.gmra.mxu2 %v1772_v25  ;;  %v1032_v25 = vsel %vm3849_vm14, %v3766_v45, 0.0  ;;  %v1757_v50 = vsel %vm5020_vm0, %v3664_v41, %v3127_v15  ;;  %v5113_v41 = vmov 0  ;;  %v333_v15 = vld [vmem:[%s3481_s21 + $0xf8] sm:$0xff]  ;;  %5118 = vst [vmem:[#allocation28_spill] sm:$0xff] %v4016_v44 }
  0xc5   : > { %2148 = vmatmul.f32.gmra.mxu3 %v1780_v20  ;;  %2076 = vmatmul.f32.gmra.mxu0 %v1756_v26  ;;  %v1902_v20 = vld [vmem:[#allocation5 + $0xa0] sm:$0xff]  ;;  %v1764_v13 = vsel %vm5020_vm0, %v1032_v25, %v5108_v28  ;;  %v3984_v25 = vld [vmem:[#allocation2 + $0xa7] sm:$0xff]  ;;  %v5114_v41 = vsel %vm3999_vm15, 4294967295, %v5113_v41  ;;  %v369_v31 = vmul.f32 %v4016_v44, %v333_v15 }
  0xc6   : > { %2404 = vmatpush.msrb.mxu3 %v1934_v53  ;;  %v3960_v26 = vld [vmem:[#allocation2 + $0x77] sm:$0xff]  ;;  %2178 = vmatpush.msrb.mxu1 %v1902_v20  ;;  %v3972_v53 = vsel %vm5020_vm0, %v3943_v18, %v3113_v9  ;;  %v5111_v9 = vsel %vm3838_vm13, %v3853_v42, 0.0  ;;  %5115 = vst [vmem:[#allocation27_spill] sm:$0xff] %v5114_v41  ;;  %v3122_v20 = vunpack.i.l.bf16 %v3934_v52  ;;  %v1916_v28 = vld [vmem:[#allocation5 + $0x110] sm:$0xff] }
  0xc7   : > { %1662 = vrot.lane.b32.xlu2 %v3956_v32, %s3362_s27  ;;  %2292 = vmatpush.msrb.mxu2 %v1917_v24  ;;  %v1228_v45 = vsel %vm3806_vm12, %v3960_v26, 0.0  ;;  %5109 = vst [vmem:[#allocation24_spill] sm:$0xff] %v3972_v53  ;;  %v622_v32 = vand.u32 15, %v466_v37  ;;  %v3980_v24 = vsel %vm5020_vm0, %v3947_v34, %v3118_v14  ;;  %v4003_v14 = vld [vmem:[#allocation2 + $0xe7] sm:$0xff]  ;;  %v1947_v41 = vld [vmem:[#allocation5 + $0x208] sm:$0xff] }
  0xc8   : > { %v3962_v36 = vpop.permute.xlu0 %3130  ;;  %1538 = vrot.lane.b32.xlu1 %v1228_v45, %s3362_s27  ;;  %2405 = vmatpush.msrb.mxu3 %v1933_v48  ;;  %5110 = vst [vmem:[#allocation25_spill] sm:$0xff] %v3980_v24  ;;  %v1296_v48 = vsel %vm3849_vm14, %v3960_v26, 0.0  ;;  %v1901_v45 = vld [vmem:[#allocation5 + $0x98] sm:$0xff]  ;;  %v1050_v15 = vsel %vm3999_vm15, %v4003_v14, 0.0  ;;  %v4044_v44 = vsel %vm5020_vm0, %v3804_v23, %v3122_v20 }
  0xc9   : > { %v3974_v7 = vpop.permute.xlu1 %3135  ;;  %v5005_v49 = vunpack.i.l.bf16 %v3962_v36  ;;  %2519 = vmatpush.msrb.mxu0 %v1948_v12  ;;  %vm4009_vm13 = vcmp.ne.s32.totalorder %v622_v32, 0  ;;  %2179 = vmatpush.msrb.mxu1 %v1901_v45  ;;  %v4060_v20 = vld [vmem:[#allocation2 + $0x6f] sm:$0xff]  ;;  %v5130_v27 = vunpack.i.l.bf16 %v3962_v36 }
  0xca   : > { %v1042_v32 = vsel %vm4009_vm13, %v3984_v25, 0.0  ;;  %2293 = vmatpush.msrb.mxu2 %v1916_v28  ;;  %v4040_v28 = vld [vmem:[#allocation2 + $0x89] sm:$0xff]  ;;  %v3138_v52 = vunpack.i.h.bf16 %v3974_v7 }
  0xcb   : > { %v3993_v37 = vsel %vm5020_vm0, %v5111_v9, %v5005_v49  ;;  %v1026_v9 = vsel %vm3692_vm4, %v3717_v61, 0.0  ;;  %5120 = vst [vmem:[#allocation30_spill] sm:$0xff] %v4040_v28  ;;  %v1931_v49 = vld [vmem:[#allocation5 + $0x188] sm:$0xff]  ;;  %2520 = vmatpush.msrb.mxu0 %v1947_v41 }
  0xcc   : > { %5112 = vst [vmem:[#allocation26_spill] sm:$0xff] %v3993_v37  ;;  %2100 = vmatmul.f32.gmra.mxu1 %v1764_v13  ;;  %2127 = vmatmul.f32.gmra.mxu2 %v3972_v53  ;;  %v1932_v13 = vld [vmem:[#allocation5 + $0x190] sm:$0xff]  ;;  %v1914_v37 = vld [vmem:[#allocation5 + $0x100] sm:$0xff] }
  0xcd   : > { %2151 = vmatmul.f32.gmra.mxu3 %v3980_v24  ;;  %2079 = vmatmul.f32.gmra.mxu0 %v1757_v50  ;;  %v1900_v50 = vld [vmem:[#allocation5 + $0x90] sm:$0xff] }
  0xce   : > { %v4024_v24 = vld [vmem:[#allocation2 + $0x7f] sm:$0xff]  ;;  %2406 = vmatpush.msrb.mxu3 %v1932_v13  ;;  %2180 = vmatpush.msrb.mxu1 %v1900_v50 }
  0xcf   : > { %v4035_v53 = vld [vmem:[%s4976_s2] ss:$0 sm:$0xff]  ;;  %1540 = vrot.lane.b32.xlu0 %v4024_v24, %s3362_s27  ;;  %2294 = vmatpush.msrb.mxu2 %v1915_v6  ;;  %v5122_v6 = vunpack.i.h.bf16 %v3949_v5  ;;  %v4079_v5 = vld [vmem:[#allocation2 + $0x91] sm:$0xff] }
  0xd0   : > { %5119 = vst [vmem:[#allocation29_spill] sm:$0xff] %v4035_v53  ;;  %v405_v45 = vadd.f32 %v4035_v53, %v369_v31  ;;  %v1774_v31 = vsel %vm5020_vm0, %v1042_v32, %v5121_v29  ;;  %1670 = vrot.lane.b32.xlu1 %v4040_v28, %s3362_s27  ;;  %2407 = vmatpush.msrb.mxu3 %v1931_v49  ;;  %v5123_v53 = vunpack.i.l.bf16 %v3974_v7  ;;  %v4063_v32 = vpop.permute.xlu2 %3140  ;;  %v461_v49 = vadd.s32 120, %v3635_v1  ;;  %v4076_v41 = vpop.permute.xlu0 %3145 }
  0xd1   : > { %v4049_v13 = vpop.permute.xlu1 %3150  ;;  %v1782_v50 = vsel %vm5020_vm0, %v1050_v15, %v5122_v6  ;;  %2295 = vmatpush.msrb.mxu2 %v1914_v37  ;;  %1536 = vrot.lane.b32.xlu2 %v4060_v20, %s3362_s27  ;;  %v476_v15 = vadd.s32 240, %v3635_v1  ;;  %v3133_v37 = vunpack.i.h.bf16 %v3962_v36  ;;  %5125 = vst [vmem:[#allocation32_spill] sm:$0xff] %v4079_v5  ;;  %v5127_v28 = vmov 0  ;;  %v4115_v36 = vld [vmem:[#allocation2 + $0xb7] sm:$0xff] }
  0xd2   : > { %444 = vst.msk [vmem:[#allocation2 + $0x110] sm:$0xff] %vm5020_vm0, %v405_v45  ;;  %v1758_v23 = vsel %vm5020_vm0, %v1026_v9, %v5123_v53  ;;  %v5016_v29 = vunpack.i.l.bf16 %v4049_v13  ;;  %2408 = vmatpush.msrb.mxu3 %v1930_v54  ;;  %v1899_v53 = vld [vmem:[#allocation5 + $0x88] sm:$0xff]  ;;  %v468_v45 = vadd.s32 176, %v3635_v1  ;;  %v1898_v54 = vld [vmem:[#allocation5 + $0x80] sm:$0xff]  ;;  %v587_v6 = vand.u32 15, %v461_v49 }
  0xd3   : > { %2181 = vmatpush.msrb.mxu1 %v1899_v53  ;;  %v692_v49 = vand.u32 15, %v476_v15  ;;  %v5145_v8 = vunpack.i.h.bf16 %v4076_v41 }
  0xd4   : > { %2103 = vmatmul.f32.gmra.mxu1 %v4044_v44  ;;  %2130 = vmatmul.f32.gmra.mxu2 %v1774_v31  ;;  %v4073_v9 = vsel %vm5020_vm0, %v1296_v48, %v5016_v29  ;;  %v1946_v31 = vld [vmem:[#allocation5 + $0x200] sm:$0xff]  ;;  %v1034_v48 = vsel %vm3806_vm12, %v3853_v42, 0.0  ;;  %vm4090_vm4 = vcmp.ne.s32.totalorder %v587_v6, 15  ;;  %v459_v6 = vadd.s32 104, %v3635_v1 }
  0xd5   : > { %5124 = vst [vmem:[#allocation31_spill] sm:$0xff] %v4073_v9  ;;  %2154 = vmatmul.f32.gmra.mxu3 %v1782_v50  ;;  %2082 = vmatmul.f32.gmra.mxu0 %v1758_v23  ;;  %v4085_v29 = vld [vmem:[#allocation2 + $0xaf] sm:$0xff]  ;;  %v3147_v50 = vunpack.i.l.bf16 %v4076_v41  ;;  %v5128_v28 = vsel %vm4090_vm4, 4294967295, %v5127_v28  ;;  %v1267_v9 = vsel %vm4090_vm4, %v4079_v5, 0.0  ;;  %v1766_v42 = vsel %vm5020_vm0, %v1034_v48, %v5130_v27 }
  0xd6   : > { %2521 = vmatpush.msrb.mxu0 %v1946_v31  ;;  %v4088_v23 = vld [vmem:[#allocation2 + $0xef] sm:$0xff]  ;;  %5129 = vst [vmem:[#allocation34_spill] sm:$0xff] %v5128_v28  ;;  %2182 = vmatpush.msrb.mxu1 %v1898_v54  ;;  %v4102_v53 = vsel %vm5020_vm0, %v4085_v29, %v3133_v37  ;;  %v636_v31 = vand.u32 15, %v468_v45  ;;  %vm4119_vm12 = vcmp.ne.s32.totalorder %v692_v49, 0  ;;  %v3142_v37 = vunpack.i.l.bf16 %v4063_v32  ;;  %v4136_v49 = vld [vmem:[#allocation2 + $0x81] sm:$0xff] }
  0xd7   : > { %5126 = vst [vmem:[#allocation33_spill] sm:$0xff] %v4088_v23  ;;  %1672 = vrot.lane.b32.xlu0 %v1267_v9, %s3362_s27  ;;  %v4109_v15 = vsel %vm5020_vm0, %v4088_v23, %v3138_v52  ;;  %v4113_v54 = vsel %vm5020_vm0, %v3687_v51, %v3147_v50  ;;  %v5133_v9 = vmov 0  ;;  %v460_v52 = vadd.s32 112, %v3635_v1 }
  0xd8   : > { %5131 = vst [vmem:[#allocation35_spill] sm:$0xff] %v4102_v53  ;;  %1544 = vrot.lane.b32.xlu1 %v3863_v0, %s3362_s27  ;;  %v5134_v9 = vsel %vm4119_vm12, 4294967295, %v5133_v9  ;;  %v4123_v0 = vld [vmem:[#allocation2 + $0xf7] sm:$0xff]  ;;  %vm4129_vm14 = vcmp.ne.s32.totalorder %v636_v31, 0  ;;  %v4133_v48 = vpop.permute.xlu2 %3155  ;;  %v573_v50 = vand.u32 15, %v459_v6  ;;  %v5139_v6 = vmov 0 }
  0xd9   : > { %5132 = vst [vmem:[#allocation36_spill] sm:$0xff] %v4109_v15  ;;  %v1052_v31 = vsel %vm4119_vm12, %v4123_v0, 0.0  ;;  %vm5142_vm4 = vcmask 523264   ;;  %v5143_v51 = vunpack.i.h.bf16 %v4063_v32  ;;  %v580_v5 = vand.u32 15, %v460_v52 }
  0xda   : > { %5135 = vst [vmem:[#allocation37_spill] sm:$0xff] %v5134_v9  ;;  %vm4149_vm0 = vcmp.ne.s32.totalorder %v573_v50, 15  ;;  %vm5144_vm15 = vmmov %vm5142_vm4  ;;  %v5147_v9 = vunpack.i.l.bf16 %v4133_v48  ;;  %v463_v23 = vadd.s32 136, %v3635_v1  ;;  %v5165_v39 = vunpack.i.l.bf16 %v4133_v48 }
  0xdb   : > { %5138 = vst [vmem:[#allocation38_spill] sm:$0xff] %v4136_v49  ;;  %v5140_v6 = vsel %vm4149_vm0, 4294967295, %v5139_v6  ;;  %v1265_v27 = vsel %vm4149_vm0, %v4136_v49, 0.0  ;;  %vm5148_vm12 = vmmov %vm5142_vm4  ;;  %v3166_v49 = vpop.permute.xlu1 %3165 }
  0xdc   : > { %2106 = vmatmul.f32.gmra.mxu1 %v1766_v42  ;;  %2133 = vmatmul.f32.gmra.mxu2 %v4102_v53  ;;  %v1044_v42 = vsel %vm4129_vm14, %v4115_v36, 0.0  ;;  %5141 = vst [vmem:[#allocation39_spill] sm:$0xff] %v5140_v6  ;;  %v4158_v53 = vsel %vm5142_vm4, %v4060_v20, %v3142_v37  ;;  %v3153_v20 = vunpack.i.h.bf16 %v4049_v13  ;;  %v601_v37 = vand.u32 15, %v463_v23 }
  0xdd   : > { %2157 = vmatmul.f32.gmra.mxu3 %v4109_v15  ;;  %2085 = vmatmul.f32.gmra.mxu0 %v4113_v54  ;;  %v1028_v15 = vsel %vm3728_vm7, %v3696_v3, 0.0  ;;  %v1776_v28 = vsel %vm5144_vm15, %v1044_v42, %v5143_v51  ;;  %vm5146_vm7 = vmmov %vm5142_vm4  ;;  %vm4173_vm15 = vcmp.ne.s32.totalorder %v580_v5, 0  ;;  %v1232_v51 = vsel %vm3779_vm9, %v3892_v57, 0.0  ;;  %v4189_v42 = vld [vmem:[#allocation2 + $0xff] sm:$0xff] }
  0xde   : > { %1668 = vrot.lane.b32.xlu2 %v1265_v27, %s3362_s27  ;;  %v1784_v50 = vsel %vm5146_vm7, %v1052_v31, %v5145_v8  ;;  %v1760_v6 = vsel %vm5148_vm12, %v1028_v15, %v5147_v9  ;;  %v4180_v15 = vld [vmem:[#allocation2 + $0xa1] sm:$0xff]  ;;  %v3158_v9 = vunpack.i.h.bf16 %v4133_v48  ;;  %v3167_v5 = vunpack.i.l.bf16 %v3166_v49  ;;  %vm5154_vm12 = vmmov %vm5146_vm7  ;;  %v3217_v48 = vld [vmem:[#allocation2 + $0x19] sm:$0xff] }
  0xdf   : > { %v4186_v27 = vld [vmem:[#allocation2 + $0xbf] sm:$0xff]  ;;  %1546 = vrot.lane.b32.xlu0 %v1232_v51, %s3362_s27  ;;  %vm4191_vm4 = vcmp.ne.s32.totalorder %v601_v37, 15  ;;  %vm5155_vm9 = vmmov %vm5146_vm7  ;;  %v3161_v51 = vpop.permute.xlu0 %3160  ;;  %v3168_v19 = vunpack.i.h.bf16 %v3166_v49  ;;  %v1304_v31 = vsel %vm3880_vm8, %v4115_v36, 0.0 }
  0xe0   : > { %v1269_v23 = vsel %vm4191_vm4, %v4180_v15, 0.0  ;;  %vm5156_vm0 = vmmov %vm5146_vm7  ;;  %v4256_v49 = vld [vmem:[#allocation2 + $0xb9] sm:$0xff] }
  0xe1   : > { %1676 = vrot.lane.b32.xlu1 %v1269_v23, %s3362_s27  ;;  %v4212_v37 = vsel %vm5156_vm0, %v3755_v33, %v3167_v5  ;;  %v3214_v5 = vld [vmem:[#allocation2 + $0x18] sm:$0xff] }
  0xe4   : > { %2109 = vmatmul.f32.gmra.mxu1 %v4158_v53  ;;  %2136 = vmatmul.f32.gmra.mxu2 %v1776_v28  ;;  %v1036_v28 = vsel %vm4173_vm15, %v3960_v26, 0.0  ;;  %v4203_v26 = vsel %vm5146_vm7, %v4186_v27, %v3153_v20  ;;  %v1230_v20 = vsel %vm4173_vm15, %v3783_v4, 0.0  ;;  %v5158_v4 = vunpack.i.l.bf16 %v3974_v7  ;;  %vm5160_vm7 = vmmov %vm5156_vm0  ;;  %v3215_v7 = vld [vmem:[#allocation2 + $0x20] sm:$0xff] }
  0xe5   : > { %2160 = vmatmul.f32.gmra.mxu3 %v1784_v50  ;;  %2088 = vmatmul.f32.gmra.mxu0 %v1760_v6  ;;  %v5153_v6 = vunpack.i.l.bf16 %v4049_v13  ;;  %v4208_v50 = vsel %vm5155_vm9, %v4189_v42, %v3158_v9  ;;  %v3163_v13 = vunpack.i.h.bf16 %v3161_v51  ;;  %v4220_v9 = vld [vmem:[#allocation2 + $0xa9] sm:$0xff]  ;;  %vm5157_vm9 = vmmov %vm5156_vm0 }
  0xe6   : > { %1542 = vrot.lane.b32.xlu2 %v1230_v20, %s3362_s27 }
  0xe7   : > { %v1768_v8 = vsel %vm5154_vm12, %v1036_v28, %v5153_v6  ;;  %v3162_v28 = vunpack.i.l.bf16 %v3161_v51  ;;  %1678 = vrot.lane.b32.xlu0 %v4220_v9, %s3362_s27  ;;  %v1818_v23 = vsel %vm5157_vm9, %v3214_v5, %v3163_v13  ;;  %v1286_v6 = vsel %vm3641_vm1, %v3717_v61, 0.0  ;;  %vm5159_vm12 = vmmov %vm5156_vm0  ;;  %v1645_v13 = vpop.permute.xlu2 %1644  ;;  %v1086_v61 = vld [vmem:[#allocation2 + $0x9] sm:$0xff]  ;;  %v1087_v5 = vld [vmem:[#allocation2 + $0x11] sm:$0xff] }
  0xe8   : > { %v1234_v51 = vsel %vm3880_vm8, %v3984_v25, 0.0  ;;  %vm5161_vm1 = vmmov %vm5156_vm0  ;;  %v1786_v20 = vsel %vm5156_vm0, %v1086_v61, %v3168_v19  ;;  %v4275_v61 = vld [vmem:[#allocation2 + $0xc1] sm:$0xff] }
  0xe9   : > { %v4227_v33 = vsel %vm5156_vm0, %v4024_v24, %v3162_v28  ;;  %v4239_v24 = vld [vmem:[#allocation2 + $0x99] sm:$0xff]  ;;  %1550 = vrot.lane.b32.xlu1 %v1234_v51, %s3362_s27  ;;  %v1323_v28 = vsel %vm3658_vm2, %v3679_v47, 0.0  ;;  %vm5162_vm9 = vmmov %vm5156_vm0  ;;  %v467_v51 = vadd.s32 168, %v3635_v1 }
  0xec   : > { %2112 = vmatmul.f32.gmra.mxu1 %v1768_v8  ;;  %2139 = vmatmul.f32.gmra.mxu2 %v4203_v26  ;;  %v1850_v8 = vsel %vm5159_vm12, %v1286_v6, %v5158_v4  ;;  %v1183_v6 = vsel %vm3658_vm2, %v1087_v5, 0.0  ;;  %vm5163_vm12 = vmmov %vm5156_vm0  ;;  %v3216_v4 = vld [vmem:[#allocation2 + $0x28] sm:$0xff]  ;;  %v465_v5 = vadd.s32 152, %v3635_v1 }
  0xed   : > { %2163 = vmatmul.f32.gmra.mxu3 %v4208_v50  ;;  %2091 = vmatmul.f32.gmra.mxu0 %v4212_v37  ;;  %vm5166_vm2 = vmmov %vm5156_vm0 }
  0xee   : > { %1674 = vrot.lane.b32.xlu2 %v4239_v24, %s3362_s27 }
  0xef   : > { %1552 = vrot.lane.b32.xlu0 %v4085_v29, %s3362_s27  ;;  %v1647_v29 = vpop.permute.xlu1 %1646  ;;  %v1519_v19 = vpop.permute.xlu2 %1518 }
  0xf1   : > { %1682 = vrot.lane.b32.xlu1 %v4256_v49, %s3362_s27 }
  0xf4   : > { %2115 = vmatmul.f32.gmra.mxu1 %v4227_v33  ;;  %2296 = vmatmul.f32.vlgmr.msrb.gmra.mxu2 %v1818_v23  ;;  %v1517_v23 = vpop.permute.xlu0 %1516 }
  0xf5   : > { %2409 = vmatmul.f32.vlgmr.msrb.gmra.mxu3 %v1850_v8  ;;  %2946 = vmatmul.msk.f32.vlgmr.msrb.gmra.mxu0 %vm5160_vm7, %v3666_v43  ;;  %v1819_v43 = vsel %vm5161_vm1, %v3215_v7, %v1645_v13  ;;  %v1787_v47 = vsel %vm5163_vm12, %v1183_v6, %v1517_v23  ;;  %vm5164_vm7 = vmmov %vm5156_vm0  ;;  %v4295_v6 = vld [vmem:[#allocation2 + $0xb1] sm:$0xff] }
  0xf6   : > { %1548 = vrot.lane.b32.xlu2 %v3943_v18, %s3362_s27  ;;  %v1820_v8 = vsel %vm5164_vm7, %v3216_v4, %v1647_v29  ;;  %vm5167_vm1 = vmmov %vm5156_vm0  ;;  %v629_v18 = vand.u32 15, %v467_v51  ;;  %v615_v29 = vand.u32 15, %v465_v5  ;;  %v1185_v4 = vsel %vm3675_vm3, %v3662_v40, 0.0 }
  0xf7   : > { %v1521_v23 = vpop.permute.xlu1 %1520  ;;  %vm5171_vm12 = vmmov %vm5156_vm0 }
  0xf8   : > { %vm4300_vm7 = vcmp.ne.s32.totalorder %v615_v29, 15  ;;  %v4340_v29 = vld [vmem:[#allocation2 + $0xd9] sm:$0xff] }
  0xf9   : > { %1556 = vrot.lane.b32.xlu1 %v4186_v27, %s3362_s27  ;;  %v1325_v27 = vsel %vm3675_vm3, %v3702_v56, 0.0  ;;  %v1271_v56 = vsel %vm4300_vm7, %v4295_v6, 0.0  ;;  %vm5176_vm3 = vmmov %vm5156_vm0 }
  0xfc   : > { %2183 = vmatmul.f32.vlgmr.msrb.gmra.mxu1 %v1786_v20  ;;  %2299 = vmatmul.f32.gmra.mxu2 %v1819_v43  ;;  %v1649_v7 = vpop.permute.xlu0 %1648  ;;  %v1788_v43 = vsel %vm5156_vm0, %v3217_v48, %v1519_v19 }
  0xfd   : > { %2412 = vmatmul.f32.gmra.mxu3 %v4113_v54  ;;  %2947 = vmatmul.msk.f32.gmra.mxu0 %vm5162_vm9, %v1323_v28  ;;  %v1288_v54 = vsel %vm3713_vm6, %v3696_v3, 0.0  ;;  %vm4279_vm6 = vcmp.ne.s32.totalorder %v629_v18, 15  ;;  %v3218_v28 = vld [vmem:[#allocation2 + $0x30] sm:$0xff]  ;;  %vm5170_vm9 = vmmov %vm5156_vm0 }
  0xfe   : > { %v1852_v13 = vsel %vm5166_vm2, %v1288_v54, %v5165_v39  ;;  %v1273_v60 = vsel %vm4279_vm6, %v4275_v61, 0.0  ;;  %v1821_v20 = vsel %vm5170_vm9, %v3218_v28, %v1649_v7  ;;  %vm5174_vm2 = vmmov %vm5156_vm0  ;;  %v3219_v54 = vld [vmem:[#allocation2 + $0x38] sm:$0xff]  ;;  %1680 = vrot.lane.b32.xlu2 %v1271_v56, %s3362_s27  ;;  %v469_v39 = vadd.s32 184, %v3635_v1 }
  0xff   : > { %1684 = vrot.lane.b32.xlu0 %v1273_v60, %s3362_s27  ;;  %v4318_v18 = vld [vmem:[#allocation2 + $0xd1] sm:$0xff]  ;;  %v1238_v7 = vsel %vm4129_vm14, %v3785_v62, 0.0  ;;  %v1327_v28 = vsel %vm3698_vm5, %v3793_v16, 0.0 }
 0x100   : > { %v643_v46 = vand.u32 15, %v469_v39  ;;  %v3224_v39 = vld [vmem:[#allocation2 + $0x50] sm:$0xff] }
 0x104   : > { %2186 = vmatmul.f32.gmra.mxu1 %v1787_v47  ;;  %2302 = vmatmul.f32.gmra.mxu2 %v1820_v8  ;;  %v1651_v47 = vpop.permute.xlu2 %1650  ;;  %v1523_v40 = vpop.permute.xlu0 %1522 }
 0x105   : > { %2415 = vmatmul.f32.gmra.mxu3 %v1852_v13  ;;  %2948 = vmatmul.msk.f32.gmra.mxu0 %vm5167_vm1, %v3734_v10  ;;  %vm5175_vm1 = vmmov %vm5156_vm0  ;;  %v1653_v13 = vpop.permute.xlu1 %1652  ;;  %vm4314_vm0 = vcmp.ne.s32.totalorder %v643_v46, 15 }
 0x106   : > { %v1822_v51 = vsel %vm5175_vm1, %v3219_v54, %v1651_v47  ;;  %v1275_v60 = vsel %vm4314_vm0, %v4318_v18, 0.0  ;;  %vm5179_vm9 = vmmov %vm5175_vm1  ;;  %v4354_v54 = vld [vmem:[#allocation2 + $0xc9] sm:$0xff] }
 0x107   : > { %1558 = vrot.lane.b32.xlu0 %v1238_v7, %s3362_s27  ;;  %1688 = vrot.lane.b32.xlu1 %v1275_v60, %s3362_s27  ;;  %v3225_v7 = vld [vmem:[#allocation2 + $0x41] sm:$0xff] }
 0x10c   : > { %2189 = vmatmul.f32.gmra.mxu1 %v1788_v43  ;;  %2305 = vmatmul.f32.gmra.mxu2 %v1821_v20  ;;  %v1525_v62 = vpop.permute.xlu2 %1524  ;;  %v1655_v20 = vpop.permute.xlu0 %1654 }
 0x10d   : > { %2418 = vmatmul.f32.gmra.mxu3 %v4212_v37  ;;  %2949 = vmatmul.msk.f32.gmra.mxu0 %vm5171_vm12, %v1325_v27  ;;  %v1789_v37 = vsel %vm5174_vm2, %v1185_v4, %v1521_v23  ;;  %vm5180_vm12 = vmmov %vm5175_vm1  ;;  %v3222_v27 = vld [vmem:[#allocation2 + $0x31] sm:$0xff]  ;;  %v1236_v23 = vsel %vm4009_vm13, %v4115_v36, 0.0  ;;  %v3223_v4 = vld [vmem:[#allocation2 + $0x48] sm:$0xff]  ;;  %v1527_v55 = vpop.permute.xlu1 %1526 }
 0x10e   : > { %vm5181_vm2 = vmmov %vm5175_vm1  ;;  %v1187_v5 = vsel %vm3698_vm5, %v3222_v27, 0.0  ;;  %1554 = vrot.lane.b32.xlu2 %v1236_v23, %s3362_s27  ;;  %v5194_v23 = vld [vmem:[#allocation23_spill] sm:$0xff] }
 0x10f   : > { %v1791_v47 = vsel %vm5175_vm1, %v1187_v5, %v1525_v62  ;;  %1690 = vrot.lane.b32.xlu0 %v4340_v29, %s3362_s27  ;;  %vm5183_vm5 = vmmov %vm5175_vm1  ;;  %v5193_v5 = vld [vmem:[#allocation26_spill] sm:$0xff] }
 0x114   : > { %2192 = vmatmul.f32.gmra.mxu1 %v1789_v37  ;;  %2308 = vmatmul.f32.gmra.mxu2 %v1822_v51  ;;  %v1657_v37 = vpop.permute.xlu2 %1656 }
 0x115   : > { %2421 = vmatmul.f32.gmra.mxu3 %v3896_v11  ;;  %2950 = vmatmul.msk.f32.gmra.mxu0 %vm5176_vm3, %v3722_v63  ;;  %v3220_v11 = vld [vmem:[#allocation2 + $0x29] sm:$0xff]  ;;  %v3221_v63 = vld [vmem:[#allocation2 + $0x40] sm:$0xff]  ;;  %vm5182_vm3 = vmmov %vm5175_vm1 }
 0x116   : > { %v1790_v48 = vsel %vm5179_vm9, %v3220_v11, %v1523_v40  ;;  %v1823_v43 = vsel %vm5180_vm12, %v3221_v63, %v1653_v13  ;;  %v1824_v56 = vsel %vm5182_vm3, %v3223_v4, %v1655_v20  ;;  %vm5184_vm9 = vmmov %vm5175_vm1  ;;  %1686 = vrot.lane.b32.xlu2 %v4354_v54, %s3362_s27  ;;  %v1659_v13 = vpop.permute.xlu1 %1658  ;;  %v3226_v11 = vld [vmem:[#allocation2 + $0x58] sm:$0xff]  ;;  %v5192_v20 = vld [vmem:[#allocation29_spill] sm:$0xff] }
 0x117   : > { %v1792_v51 = vsel %vm5184_vm9, %v3734_v10, %v1527_v55  ;;  %vm5185_vm12 = vmmov %vm5175_vm1  ;;  %1564 = vrot.lane.b32.xlu0 %v3947_v34, %s3362_s27  ;;  %v5186_v10 = vld [vmem:[#allocation19_spill] sm:$0xff]  ;;  %v473_v55 = vadd.s32 216, %v3635_v1 }
 0x118   : > { %v1825_v40 = vsel %vm5185_vm12, %v3224_v39, %v1657_v37  ;;  %vm5188_vm3 = vmmov %vm5175_vm1  ;;  %v3227_v39 = vld [vmem:[#allocation2 + $0x49] sm:$0xff] }
 0x119   : > { %vm5196_vm9 = vmmov %vm5175_vm1 }
 0x11a   : > { %vm5199_vm12 = vmmov %vm5175_vm1 }
 0x11c   : > { %2195 = vmatmul.f32.gmra.mxu1 %v1790_v48  ;;  %2311 = vmatmul.f32.gmra.mxu2 %v1823_v43  ;;  %v5191_v43 = vld [vmem:[#allocation28_spill] sm:$0xff]  ;;  %v1531_v62 = vpop.permute.xlu2 %1530 }
 0x11d   : > { %2424 = vmatmul.f32.gmra.mxu3 %v3929_v58  ;;  %2951 = vmatmul.msk.f32.gmra.mxu0 %vm5181_vm2, %v1327_v28  ;;  %v1240_v58 = vsel %vm3787_vm10, %v3906_v30, 0.0  ;;  %v4366_v30 = vld [vmem:[#allocation2 + $0xe9] sm:$0xff]  ;;  %vm5187_vm2 = vnez %v5186_v10 }
 0x11e   : > { %1562 = vrot.lane.b32.xlu1 %v1240_v58, %s3362_s27  ;;  %v1242_v46 = vsel %vm5187_vm2, %v4003_v14, 0.0  ;;  %v5190_v14 = vld [vmem:[#allocation12_spill] sm:$0xff] }
 0x11f   : > { %v3169_v34 = vpack.i.bf16 %v1242_v46, %v4366_v30  ;;  %1560 = vrot.lane.b32.xlu2 %v5190_v14, %s3362_s27 }
 0x124   : > { %2198 = vmatmul.f32.gmra.mxu1 %v1791_v47  ;;  %2314 = vmatmul.f32.gmra.mxu2 %v1824_v56 }
 0x125   : > { %2427 = vmatmul.f32.gmra.mxu3 %v3798_v17  ;;  %2952 = vmatmul.msk.f32.gmra.mxu0 %vm5183_vm5, %v3746_v21  ;;  %v1329_v21 = vsel %vm3800_vm11, %v3759_v35, 0.0  ;;  %v1529_v17 = vpop.permute.xlu0 %1528  ;;  %v1189_v35 = vsel %vm3800_vm11, %v3225_v7, 0.0  ;;  %vm5189_vm5 = vmmov %vm5175_vm1 }
 0x126   : > { %3170 = vrot.lane.b32.xlu1 %v3169_v34, %s3362_s27  ;;  %v1793_v60 = vsel %vm5188_vm3, %v1189_v35, %v1529_v17  ;;  %v1826_v48 = vsel %vm5189_vm5, %v3226_v11, %v1659_v13  ;;  %vm5195_vm11 = vmmov %vm5175_vm1  ;;  %v5200_v34 = vld [vmem:[#allocation14_spill] sm:$0xff]  ;;  %v671_v35 = vand.u32 15, %v473_v55  ;;  %v471_v11 = vadd.s32 200, %v3635_v1 }
 0x127   : > { %v5201_v13 = vld [vmem:[#allocation10_spill] sm:$0xff]  ;;  %vm5203_vm5 = vmmov %vm5175_vm1 }
 0x128   : > { %vm5202_vm3 = vnez %v5201_v13 }
 0x129   : > { %v1331_v7 = vsel %vm5202_vm3, %v5200_v34, 0.0 }
 0x12c   : > { %2201 = vmatmul.f32.gmra.mxu1 %v1792_v51  ;;  %2317 = vmatmul.f32.gmra.mxu2 %v1825_v40  ;;  %v1794_v40 = vsel %vm5199_vm12, %v3227_v39, %v1531_v62  ;;  %v657_v62 = vand.u32 15, %v471_v11  ;;  %vm5211_vm12 = vmmov %vm5175_vm1 }
 0x12d   : > { %2430 = vmatmul.f32.gmra.mxu3 %v4044_v44  ;;  %2953 = vmatmul.msk.f32.gmra.mxu0 %vm5175_vm1, %v1329_v21  ;;  %v332_v44 = vld [vmem:[%s3481_s21 + $0xf0] sm:$0xff]  ;;  %v1661_v47 = vpop.permute.xlu0 %1660 }
 0x12e   : > { %v368_v28 = vmul.f32 %v5191_v43, %v332_v44  ;;  %v3228_v21 = vld [vmem:[#allocation2 + $0x60] sm:$0xff]  ;;  %v1663_v44 = vpop.permute.xlu2 %1662  ;;  %v1191_v43 = vsel %vm5202_vm3, %v3793_v16, 0.0 }
 0x12f   : > { %v1827_v17 = vsel %vm5175_vm1, %v3228_v21, %v1661_v47  ;;  %v4437_v16 = vld [vmem:[#allocation2 + $0xe1] sm:$0xff] }
 0x130   : > { %v404_v27 = vadd.f32 %v5192_v20, %v368_v28  ;;  %v3229_v21 = vld [vmem:[#allocation2 + $0x68] sm:$0xff] }
 0x132   : > { %v4382_v63 = vpop.f32.mrf.mxu0  ;;  %443 = vst.msk [vmem:[#allocation2 + $0x108] sm:$0xff] %vm5196_vm9, %v404_v27  ;;  %vm4433_vm9 = vcmp.ne.s32.totalorder %v657_v62, 15  ;;  %v5216_v62 = vld [vmem:[#allocation20_spill] sm:$0xff] }
 0x133   : > { %v1277_v13 = vsel %vm4433_vm9, %v4437_v16, 0.0 }
 0x134   : > { %2204 = vmatmul.f32.gmra.mxu1 %v1793_v60  ;;  %2320 = vmatmul.f32.gmra.mxu2 %v1826_v48  ;;  %v1533_v60 = vpop.permute.xlu1 %1532  ;;  %v4414_v48 = vld [vmem:[#allocation2 + $0xf9] sm:$0xff] }
 0x135   : > { %2433 = vmatmul.f32.gmra.mxu3 %v5193_v5  ;;  %2954 = vmatmul.msk.f32.gmra.mxu0 %vm5195_vm11, %v5194_v23  ;;  %vm4423_vm11 = vcmp.ne.s32.totalorder %v671_v35, 15 }
 0x136   : > { %1692 = vrot.lane.b32.xlu2 %v1277_v13, %s3362_s27 }
 0x137   : > { %v2119_v4 = vpop.f32.mrf.mxu2  ;;  %v2143_v56 = vpop.f32.mrf.mxu3 }
 0x138   : > { %v4397_v58 = vadd.f32 %v4388_v22, %v2119_v4  ;;  %v4400_v37 = vadd.f32 %v4388_v22, %v2143_v56  ;;  %v475_v56 = vadd.s32 232, %v3635_v1 }
 0x139   : > { %v4402_v51 = vpop.f32.mrf.mxu1  ;;  %v4416_v14 = vld [vmem:[#allocation2 + $0x108] sm:$0xff] }
 0x13a   : > { %5197 = vst [vmem:[#allocation19_spill] sm:$0xff] %v4397_v58  ;;  %v4406_v46 = vpop.f32.mrf.mxu0  ;;  %v3179_v28 = vpack.i.bf16 %v4416_v14, %v4414_v48  ;;  %v685_v35 = vand.u32 15, %v475_v56 }
 0x13b   : > { %5198 = vst [vmem:[#allocation12_spill] sm:$0xff] %v4400_v37 }
 0x13c   : > { %2207 = vmatmul.f32.gmra.mxu1 %v1794_v40  ;;  %2323 = vmatmul.f32.gmra.mxu2 %v1827_v17  ;;  %5204 = vst [vmem:[#allocation28_spill] sm:$0xff] %v4416_v14  ;;  %v1795_v40 = vsel %vm5211_vm12, %v1191_v43, %v1533_v60  ;;  %v1828_v17 = vsel %vm5175_vm1, %v3229_v21, %v1663_v44  ;;  %vm4456_vm3 = vcmp.ne.s32.totalorder %v685_v35, 15  ;;  %v5212_v60 = vmov 0  ;;  %v4460_v44 = vld [vmem:[#allocation2 + $0x101] sm:$0xff]  ;;  %v3231_v14 = vld [vmem:[#allocation2 + $0x70] sm:$0xff] }
 0x13d   : > { %2436 = vmatmul.f32.gmra.mxu3 %v4158_v53  ;;  %2955 = vmatmul.msk.f32.gmra.mxu0 %vm5203_vm5, %v1331_v7  ;;  %v4427_v53 = vld [vmem:[#allocation2 + $0xf1] sm:$0xff]  ;;  %v5213_v60 = vsel %vm4456_vm3, 4294967295, %v5212_v60  ;;  %v5215_v43 = vld [vmem:[#allocation31_spill] sm:$0xff]  ;;  %vm5217_vm5 = vmmov %vm5175_vm1  ;;  %v1281_v56 = vsel %vm4456_vm3, %v4460_v44, 0.0 }
 0x13e   : > { %3180 = vrot.lane.b32.xlu0 %v3179_v28, %s3362_s27  ;;  %v1279_v11 = vsel %vm4423_vm11, %v4427_v53, 0.0  ;;  %v1535_v28 = vpop.permute.xlu0 %1534  ;;  %5214 = vst [vmem:[#allocation23_spill] sm:$0xff] %v5213_v60 }
 0x13f   : > { %v2122_v20 = vpop.f32.mrf.mxu2 }
 0x140   : > { %v4430_v5 = vadd.f32 %v4388_v22, %v2122_v20  ;;  %v2146_v47 = vpop.f32.mrf.mxu3  ;;  %v5218_v20 = vld [vmem:[#allocation27_spill] sm:$0xff] }
 0x141   : > { %v4441_v55 = vadd.f32 %v4388_v22, %v2146_v47  ;;  %v4443_v39 = vpop.f32.mrf.mxu1  ;;  %vm5219_vm12 = vnez %v5218_v20 }
 0x142   : > { %5207 = vst [vmem:[#allocation29_spill] sm:$0xff] %v4430_v5  ;;  %v4450_v7 = vpop.f32.mrf.mxu0  ;;  %v1244_v47 = vsel %vm5219_vm12, %v4123_v0, 0.0  ;;  %v3230_v0 = vld [vmem:[#allocation2 + $0x59] sm:$0xff]  ;;  %vm5228_vm12 = vmmov %vm5175_vm1 }
 0x143   : > { %5210 = vst [vmem:[#allocation26_spill] sm:$0xff] %v4441_v55  ;;  %v3184_v13 = vpack.i.bf16 %v1281_v56, %v1244_v47  ;;  %v1796_v58 = vsel %vm5175_vm1, %v3230_v0, %v1535_v28  ;;  %v5224_v47 = vld [vmem:[#allocation38_spill] sm:$0xff]  ;;  %v5225_v56 = vld [vmem:[#allocation16_spill] sm:$0xff] }
 0x144   : > { %2210 = vmatmul.f32.gmra.mxu1 %v1795_v40  ;;  %2326 = vmatmul.f32.gmra.mxu2 %v1828_v17  ;;  %v5220_v40 = vld [vmem:[#allocation33_spill] sm:$0xff]  ;;  %v1665_v17 = vpop.permute.xlu1 %1664  ;;  %vm5226_vm3 = vnez %v5225_v56  ;;  %v3233_v56 = vld [vmem:[#allocation2 + $0x78] sm:$0xff] }
 0x145   : > { %2439 = vmatmul.f32.gmra.mxu3 %v5215_v43  ;;  %2956 = vmatmul.msk.f32.gmra.mxu0 %vm5217_vm5, %v5216_v62  ;;  %v3174_v21 = vpack.i.bf16 %v5220_v40, %v1279_v11  ;;  %vm5223_vm5 = vmmov %vm5175_vm1  ;;  %v4493_v28 = vld [vmem:[#allocation2 + $0x109] sm:$0xff] }
 0x146   : > { %3185 = vrot.lane.b32.xlu1 %v3184_v13, %s3362_s27  ;;  %v1829_v11 = vsel %vm5223_vm5, %v3231_v14, %v1665_v17  ;;  %v4489_v13 = vld [vmem:[#allocation2 + $0x110] sm:$0xff]  ;;  %5229 = vst [vmem:[#allocation20_spill] sm:$0xff] %v4493_v28  ;;  %v1318_v14 = vld [vmem:[#allocation2 + $0x118] sm:$0xff]  ;;  %v1667_v0 = vpop.permute.xlu0 %1666 }
 0x147   : > { %v2125_v35 = vpop.f32.mrf.mxu2  ;;  %3175 = vrot.lane.b32.xlu2 %v3174_v21, %s3362_s27  ;;  %5227 = vst [vmem:[#allocation31_spill] sm:$0xff] %v4489_v13  ;;  %v3189_v17 = vpack.i.bf16 %v4189_v42, %v4489_v13 }
 0x148   : > { %v4473_v55 = vadd.f32 %v4388_v22, %v2125_v35  ;;  %v2149_v43 = vpop.f32.mrf.mxu3  ;;  %v1333_v35 = vsel %vm5226_vm3, %v5224_v47, 0.0 }
 0x149   : > { %v4477_v37 = vadd.f32 %v4388_v22, %v2149_v43  ;;  %v4479_v5 = vpop.f32.mrf.mxu1  ;;  %v1537_v43 = vpop.permute.xlu2 %1536 }
 0x14a   : > { %5221 = vst [vmem:[#allocation14_spill] sm:$0xff] %v4473_v55  ;;  %v4483_v40 = vpop.f32.mrf.mxu0  ;;  %v3194_v55 = vpack.i.bf16 %v1318_v14, %v4493_v28 }
 0x14b   : > { %5222 = vst [vmem:[#allocation10_spill] sm:$0xff] %v4477_v37  ;;  %v3232_v37 = vld [vmem:[#allocation2 + $0x61] sm:$0xff] }
 0x14c   : > { %2213 = vmatmul.f32.gmra.mxu1 %v1796_v58  ;;  %2329 = vmatmul.f32.gmra.mxu2 %v1829_v11  ;;  %v1193_v21 = vsel %vm5226_vm3, %v3232_v37, 0.0  ;;  %vm5234_vm3 = vmmov %vm5175_vm1 }
 0x14d   : > { %2442 = vmatmul.f32.gmra.mxu3 %v4227_v33  ;;  %2957 = vmatmul.msk.f32.gmra.mxu0 %vm5228_vm12, %v1333_v35  ;;  %v477_v35 = vadd.s32 248, %v3635_v1  ;;  %vm5233_vm12 = vmmov %vm5175_vm1  ;;  %v1830_v37 = vsel %vm5234_vm3, %v3233_v56, %v1667_v0  ;;  %v5235_v1 = vmov 0  ;;  %v5242_v0 = vld [vmem:[#allocation37_spill] sm:$0xff] }
 0x14e   : > { %3195 = vrot.lane.b32.xlu0 %v3194_v55, %s3362_s27  ;;  %v1797_v13 = vsel %vm5233_vm12, %v1193_v21, %v1537_v43  ;;  %v1539_v55 = vpop.permute.xlu1 %1538  ;;  %v5239_v43 = vld [vmem:[#allocation13_spill] sm:$0xff]  ;;  %v5240_v21 = vld [vmem:[#allocation30_spill] sm:$0xff]  ;;  %vm5241_vm5 = vmmov %vm5234_vm3  ;;  %vm5243_vm12 = vnez %v5242_v0 }
 0x14f   : > { %v2128_v58 = vpop.f32.mrf.mxu2  ;;  %v699_v28 = vand.u32 15, %v477_v35  ;;  %3190 = vrot.lane.b32.xlu2 %v3189_v17, %s3362_s27  ;;  %v1798_v0 = vsel %vm5234_vm3, %v5194_v23, %v1539_v55 }
 0x150   : > { %v4501_v11 = vadd.f32 %v4388_v22, %v2128_v58  ;;  %v2152_v33 = vpop.f32.mrf.mxu3  ;;  %v4519_v58 = vld [vmem:[#allocation2 + $0x107] sm:$0xff] }
 0x151   : > { %v4506_v60 = vadd.f32 %v4388_v22, %v2152_v33  ;;  %v4508_v42 = vpop.f32.mrf.mxu1  ;;  %vm4515_vm1 = vcmp.ne.s32.totalorder %v699_v28, 15  ;;  %v4521_v33 = vld [vmem:[#allocation2 + $0x111] sm:$0xff]  ;;  %v1246_v17 = vsel %vm5243_vm12, %v4519_v58, 0.0  ;;  %v1669_v28 = vpop.permute.xlu2 %1668  ;;  %vm5251_vm12 = vmmov %vm5234_vm3 }
 0x152   : > { %5230 = vst [vmem:[#allocation27_spill] sm:$0xff] %v4501_v11  ;;  %v4512_v14 = vpop.f32.mrf.mxu0  ;;  %v5236_v1 = vsel %vm4515_vm1, 4294967295, %v5235_v1 }
 0x153   : > { %5231 = vst [vmem:[#allocation33_spill] sm:$0xff] %v4506_v60 }
 0x154   : > { %5232 = vst [vmem:[#allocation38_spill] sm:$0xff] %v4508_v42  ;;  %2216 = vmatmul.f32.gmra.mxu1 %v1797_v13  ;;  %2332 = vmatmul.f32.gmra.mxu2 %v1830_v37  ;;  %v1283_v13 = vsel %vm4515_vm1, %v4521_v33, 0.0  ;;  %v3234_v42 = vld [vmem:[#allocation2 + $0x80] sm:$0xff] }
 0x155   : > { %5237 = vst [vmem:[#allocation16_spill] sm:$0xff] %v5236_v1  ;;  %2445 = vmatmul.f32.gmra.mxu3 %v5239_v43  ;;  %2958 = vmatmul.msk.f32.gmra.mxu0 %vm5241_vm5, %v5240_v21  ;;  %v3199_v35 = vpack.i.bf16 %v1283_v13, %v1246_v17  ;;  %vm5246_vm5 = vmmov %vm5234_vm3  ;;  %v5247_v17 = vld [vmem:[#allocation32_spill] sm:$0xff]  ;;  %v5248_v13 = vld [vmem:[#allocation39_spill] sm:$0xff] }
 0x156   : > { %5238 = vst [vmem:[#allocation40_spill] sm:$0xff] %v4521_v33  ;;  %v1831_v1 = vsel %vm5246_vm5, %v3234_v42, %v1669_v28  ;;  %vm5249_vm1 = vnez %v5248_v13  ;;  %vm5255_vm5 = vmmov %vm5234_vm3  ;;  %v1300_v13 = vsel %vm4173_vm15, %v3892_v57, 0.0 }
 0x157   : > { %v2131_v56 = vpop.f32.mrf.mxu2  ;;  %3200 = vrot.lane.b32.xlu1 %v3199_v35, %s3362_s27  ;;  %v1541_v35 = vpop.permute.xlu0 %1540  ;;  %v1195_v23 = vsel %vm5249_vm1, %v5200_v34, 0.0 }
 0x158   : > { %v4533_v37 = vadd.f32 %v4388_v22, %v2131_v56  ;;  %v2155_v60 = vpop.f32.mrf.mxu3  ;;  %v1335_v56 = vsel %vm5249_vm1, %v5247_v17, 0.0  ;;  %vm5258_vm1 = vmmov %vm5234_vm3 }
 0x159   : > { %v4537_v43 = vadd.f32 %v4388_v22, %v2155_v60  ;;  %v4539_v11 = vpop.f32.mrf.mxu1  ;;  %v1671_v60 = vpop.permute.xlu1 %1670  ;;  %vm5263_vm15 = vmmov %vm5258_vm1 }
 0x15a   : > { %5244 = vst [vmem:[#allocation13_spill] sm:$0xff] %v4533_v37  ;;  %v4544_v33 = vpop.f32.mrf.mxu0  ;;  %v5250_v37 = vld [vmem:[#allocation18_spill] sm:$0xff]  ;;  %vm5286_vm8 = vmmov %vm5258_vm1 }
 0x15b   : > { %5245 = vst [vmem:[#allocation30_spill] sm:$0xff] %v4537_v43 }
 0x15c   : > { %2219 = vmatmul.f32.gmra.mxu1 %v1798_v0  ;;  %2335 = vmatmul.f32.gmra.mxu2 %v1831_v1  ;;  %v1799_v1 = vsel %vm5234_vm3, %v1195_v23, %v1541_v35  ;;  %vm5264_vm3 = vmmov %vm5258_vm1 }
 0x15d   : > { %2448 = vmatmul.f32.gmra.mxu3 %v5250_v37  ;;  %2959 = vmatmul.msk.f32.gmra.mxu0 %vm5251_vm12, %v1335_v56  ;;  %v3235_v37 = vld [vmem:[#allocation2 + $0x88] sm:$0xff]  ;;  %vm5259_vm12 = vmmov %vm5258_vm1 }
 0x15e   : > { %v1832_v56 = vsel %vm5255_vm5, %v3235_v37, %v1671_v60 }
 0x15f   : > { %v2134_v55 = vpop.f32.mrf.mxu2  ;;  %v1673_v35 = vpop.permute.xlu0 %1672 }
 0x160   : > { %v4555_v42 = vadd.f32 %v4388_v22, %v2134_v55  ;;  %v2158_v28 = vpop.f32.mrf.mxu3  ;;  %v5256_v55 = vld [vmem:[#allocation15_spill] sm:$0xff] }
 0x161   : > { %v4558_v43 = vadd.f32 %v4388_v22, %v2158_v28  ;;  %v4560_v0 = vpop.f32.mrf.mxu1 }
 0x162   : > { %5252 = vst [vmem:[#allocation32_spill] sm:$0xff] %v4555_v42  ;;  %v4567_v34 = vpop.f32.mrf.mxu0  ;;  %v5257_v42 = vunpack.i.h.bf16 %v5256_v55  ;;  %v5265_v55 = vld [vmem:[#allocation34_spill] sm:$0xff] }
 0x163   : > { %5253 = vst [vmem:[#allocation39_spill] sm:$0xff] %v4558_v43  ;;  %v1543_v43 = vpop.permute.xlu2 %1542  ;;  %vm5266_vm5 = vnez %v5265_v55 }
 0x164   : > { %5254 = vst [vmem:[#allocation18_spill] sm:$0xff] %v4560_v0  ;;  %2222 = vmatmul.f32.gmra.mxu1 %v1799_v1  ;;  %2338 = vmatmul.f32.gmra.mxu2 %v1832_v56  ;;  %v1864_v28 = vsel %vm5258_vm1, %v1300_v13, %v5257_v42  ;;  %v1800_v37 = vsel %vm5263_vm15, %v5216_v62, %v1543_v43  ;;  %v3236_v42 = vld [vmem:[#allocation2 + $0x90] sm:$0xff]  ;;  %v1197_v62 = vsel %vm5266_vm5, %v5224_v47, 0.0  ;;  %vm5272_vm15 = vmmov %vm5258_vm1 }
 0x165   : > { %2451 = vmatmul.f32.gmra.mxu3 %v1864_v28  ;;  %2960 = vmatmul.msk.f32.gmra.mxu0 %vm5259_vm12, %v4239_v24  ;;  %v1833_v56 = vsel %vm5264_vm3, %v3236_v42, %v1673_v35  ;;  %v1337_v28 = vsel %vm5266_vm5, %v4180_v15, 0.0  ;;  %vm5271_vm12 = vmmov %vm5258_vm1  ;;  %vm5273_vm3 = vnez %v5076_v59 }
 0x166   : > { %v1302_v47 = vsel %vm5273_vm3, %v3984_v25, 0.0  ;;  %vm5276_vm5 = vmmov %vm5258_vm1 }
 0x167   : > { %v2137_v23 = vpop.f32.mrf.mxu2  ;;  %vm5280_vm3 = vmmov %vm5258_vm1 }
 0x168   : > { %v4575_v60 = vadd.f32 %v4388_v22, %v2137_v23  ;;  %v2161_v52 = vpop.f32.mrf.mxu3  ;;  %v1545_v23 = vpop.permute.xlu1 %1544 }
 0x169   : > { %v4578_v57 = vadd.f32 %v4388_v22, %v2161_v52  ;;  %v4580_v1 = vpop.f32.mrf.mxu1 }
 0x16a   : > { %5260 = vst [vmem:[#allocation15_spill] sm:$0xff] %v4575_v60  ;;  %v4585_v13 = vpop.f32.mrf.mxu0  ;;  %v5267_v60 = vld [vmem:[#allocation24_spill] sm:$0xff] }
 0x16b   : > { %5261 = vst [vmem:[#allocation41_spill] sm:$0xff] %v4578_v57  ;;  %v1675_v52 = vpop.permute.xlu2 %1674 }
 0x16c   : > { %5262 = vst [vmem:[#allocation42_spill] sm:$0xff] %v4580_v1  ;;  %2225 = vmatmul.f32.gmra.mxu1 %v1800_v37  ;;  %2341 = vmatmul.f32.gmra.mxu2 %v1833_v56  ;;  %v3237_v56 = vld [vmem:[#allocation2 + $0x98] sm:$0xff]  ;;  %v4608_v1 = vld [vmem:[#allocation2 + $0x10f] sm:$0xff] }
 0x16d   : > { %2454 = vmatmul.f32.gmra.mxu3 %v5267_v60  ;;  %2961 = vmatmul.msk.f32.gmra.mxu0 %vm5258_vm1, %v1337_v28  ;;  %v1801_v60 = vsel %vm5271_vm12, %v1197_v62, %v1545_v23  ;;  %v1834_v28 = vsel %vm5272_vm15, %v3237_v56, %v1675_v52  ;;  %v2072_v52 = vadd.f32 %v4388_v22, %v4382_v63  ;;  %vm5277_vm12 = vmmov %vm5258_vm1  ;;  %v3238_v56 = vld [vmem:[#allocation2 + $0xa0] sm:$0xff] }
 0x16e   : > { %vm5278_vm15 = vmmov %vm5258_vm1 }
 0x16f   : > { %v2140_v43 = vpop.f32.mrf.mxu2 }
 0x170   : > { %v4596_v35 = vadd.f32 %v4388_v22, %v2140_v43  ;;  %v2164_v42 = vpop.f32.mrf.mxu3  ;;  %v1319_v43 = vld [vmem:[#allocation2 + $0x120] sm:$0xff]  ;;  %v1677_v59 = vpop.permute.xlu1 %1676 }
 0x171   : > { %v4599_v57 = vadd.f32 %v4388_v22, %v2164_v42  ;;  %v4601_v37 = vpop.f32.mrf.mxu1  ;;  %v5274_v42 = vld [vmem:[#allocation21_spill] sm:$0xff]  ;;  %v3204_v23 = vpack.i.bf16 %v4608_v1, %v1319_v43  ;;  %v1339_v43 = vsel %vm4191_vm4, %v4295_v6, 0.0 }
 0x172   : > { %5268 = vst [vmem:[#allocation34_spill] sm:$0xff] %v4596_v35  ;;  %v2523_v55 = vpop.f32.mrf.mxu0 }
 0x173   : > { %5269 = vst [vmem:[#allocation24_spill] sm:$0xff] %v4599_v57  ;;  %v5275_v57 = vunpack.i.h.bf16 %v5274_v42  ;;  %3205 = vrot.lane.b32.xlu2 %v3204_v23, %s3362_s27  ;;  %v1549_v63 = vpop.permute.xlu2 %1548  ;;  %v5279_v23 = vld [vmem:[#allocation35_spill] sm:$0xff] }
 0x174   : > { %5270 = vst [vmem:[#allocation43_spill] sm:$0xff] %v4601_v37  ;;  %2228 = vmatmul.f32.gmra.mxu1 %v1801_v60  ;;  %2344 = vmatmul.f32.gmra.mxu2 %v1834_v28  ;;  %v1547_v37 = vpop.permute.xlu0 %1546 }
 0x175   : > { %v1866_v35 = vsel %vm5276_vm5, %v1302_v47, %v5275_v57  ;;  %2962 = vmatmul.msk.f32.gmra.mxu0 %vm5258_vm1, %v4220_v9  ;;  %v1802_v60 = vsel %vm5277_vm12, %v5240_v21, %v1547_v37  ;;  %v1199_v37 = vsel %vm4191_vm4, %v5247_v17, 0.0  ;;  %vm5281_vm5 = vmmov %vm5258_vm1 }
 0x176   : > { %2457 = vmatmul.f32.gmra.mxu3 %v1866_v35  ;;  %v1835_v35 = vsel %vm5278_vm15, %v3238_v56, %v1677_v59  ;;  %v3239_v56 = vld [vmem:[#allocation2 + $0xa8] sm:$0xff]  ;;  %vm5282_vm4 = vmmov %vm5258_vm1 }
 0x177   : > { %v2297_v25 = vpop.f32.mrf.mxu2  ;;  %vm5284_vm12 = vmmov %vm5258_vm1 }
 0x178   : > { %v2410_v62 = vpop.f32.mrf.mxu3  ;;  %vm5285_vm15 = vmmov %vm5258_vm1 }
 0x179   : > { %v2184_v57 = vpop.f32.mrf.mxu1 }
 0x17a   : > { %v2185_v28 = vadd.f32 %v2184_v57, %v2072_v52  ;;  %v2526_v47 = vpop.f32.mrf.mxu0 }
 0x17b   : > { %v1681_v38 = vpop.permute.xlu2 %1680 }
 0x17c   : > { %v2298_v42 = vadd.f32 %v2297_v25, %v2185_v28  ;;  %2231 = vmatmul.f32.gmra.mxu1 %v1802_v60  ;;  %2347 = vmatmul.f32.gmra.mxu2 %v1835_v35  ;;  %v1679_v21 = vpop.permute.xlu0 %1678  ;;  %v2075_v25 = vadd.f32 %v4388_v22, %v4406_v46  ;;  %v5283_v46 = vunpack.i.h.bf16 %v4063_v32 }
 0x17d   : > { %2963 = vmatmul.msk.f32.gmra.mxu0 %vm5280_vm3, %v1339_v43  ;;  %v1836_v35 = vsel %vm5258_vm1, %v3239_v56, %v1679_v21  ;;  %vm5287_vm3 = vmmov %vm5258_vm1 }
 0x17e   : > { %2460 = vmatmul.f32.gmra.mxu3 %v5279_v23  ;;  %v2411_v0 = vadd.f32 %v2410_v62, %v2298_v42  ;;  %v1803_v62 = vsel %vm5281_vm5, %v1199_v37, %v1549_v63  ;;  %v2078_v63 = vadd.f32 %v4388_v22, %v4450_v7  ;;  %vm5288_vm5 = vmmov %vm5258_vm1 }
 0x17f   : > { %v2300_v59 = vpop.f32.mrf.mxu2 }
 0x180   : > { %v2413_v52 = vpop.f32.mrf.mxu3  ;;  %v2524_v57 = vadd.f32 %v2523_v55, %v2411_v0  ;;  %v1868_v0 = vsel %vm5284_vm12, %v1304_v31, %v5283_v46  ;;  %v1551_v55 = vpop.permute.xlu1 %1550  ;;  %vm5290_vm12 = vmmov %vm5258_vm1 }
 0x181   : > { %v2187_v60 = vpop.f32.mrf.mxu1  ;;  %v1804_v32 = vsel %vm5286_vm8, %v4239_v24, %v1551_v55  ;;  %vm5292_vm8 = vmmov %vm5258_vm1 }
 0x182   : > { %2619 = vst.msk [vmem:[%s4638_s18] sm:$0xff] %vm5282_vm4, %v2524_v57  ;;  %v2188_v17 = vadd.f32 %v2187_v60, %v2075_v25  ;;  %v2529_v28 = vpop.f32.mrf.mxu0  ;;  %v2720_v23 = vmul.f32 %v2524_v57, %v2524_v57  ;;  %v3240_v25 = vld [vmem:[#allocation2 + $0xb0] sm:$0xff]  ;;  %vm5289_vm4 = vmmov %vm5258_vm1 }
 0x183   : > { %v1837_v60 = vsel %vm5287_vm3, %v3240_v25, %v1681_v38  ;;  %vm5293_vm3 = vmmov %vm5258_vm1  ;;  %v3242_v25 = vld [vmem:[#allocation2 + $0xc7] sm:$0xff]  ;;  %v1555_v12 = vpop.permute.xlu2 %1554 }
 0x184   : > { %v2301_v43 = vadd.f32 %v2300_v59, %v2188_v17  ;;  %2234 = vmatmul.f32.gmra.mxu1 %v1803_v62  ;;  %2350 = vmatmul.f32.gmra.mxu2 %v1836_v35  ;;  %v1341_v62 = vsel %vm4300_vm7, %v4275_v61, 0.0  ;;  %v2752_v17 = vsel %vm5290_vm12, %v2720_v23, 0.0  ;;  %v1553_v46 = vpop.permute.xlu0 %1552  ;;  %vm5299_vm12 = vmmov %vm5258_vm1 }
 0x185   : > { %2964 = vmatmul.msk.f32.gmra.mxu0 %vm5285_vm15, %v4256_v49  ;;  %vm5291_vm15 = vmmov %vm5258_vm1 }
 0x186   : > { %2463 = vmatmul.f32.gmra.mxu3 %v1868_v0  ;;  %v2414_v42 = vadd.f32 %v2413_v52, %v2301_v43  ;;  %v2651_v52 = vsel %vm5288_vm5, %v2524_v57, 0.0  ;;  %vm5294_vm5 = vmmov %vm5258_vm1 }
 0x187   : > { %v2303_v36 = vpop.f32.mrf.mxu2 }
 0x188   : > { %v2416_v21 = vpop.f32.mrf.mxu3  ;;  %v2527_v37 = vadd.f32 %v2526_v47, %v2414_v42  ;;  %v1683_v55 = vpop.permute.xlu1 %1682  ;;  %v1201_v42 = vsel %vm4300_vm7, %v4180_v15, 0.0  ;;  %vm5296_vm7 = vmmov %vm5258_vm1 }
 0x189   : > { %v2190_v59 = vpop.f32.mrf.mxu1 }
 0x18a   : > { %2620 = vst.msk [vmem:[%s4638_s18 + $0x8] sm:$0xff] %vm5258_vm1, %v2527_v37  ;;  %v2652_v7 = vsel %vm5289_vm4, %v2527_v37, 0.0  ;;  %v2721_v56 = vmul.f32 %v2527_v37, %v2527_v37  ;;  %v2191_v35 = vadd.f32 %v2190_v59, %v2078_v63  ;;  %v2532_v47 = vpop.f32.mrf.mxu0  ;;  %v2081_v63 = vadd.f32 %v4388_v22, %v4483_v40  ;;  %vm5295_vm4 = vmmov %vm5258_vm1 }
 0x18b   : > { %v2653_v31 = vadd.f32 %v2652_v7, %v2651_v52  ;;  %v1805_v59 = vsel %vm5293_vm3, %v1201_v42, %v1553_v46  ;;  %v5297_v7 = vld [vmem:[#allocation11_spill] sm:$0xff]  ;;  %vm5303_vm3 = vmmov %vm5258_vm1 }
 0x18c   : > { %v2753_v24 = vsel %vm5291_vm15, %v2721_v56, 0.0  ;;  %v2304_v43 = vadd.f32 %v2303_v36, %v2191_v35  ;;  %2237 = vmatmul.f32.gmra.mxu1 %v1804_v32  ;;  %2353 = vmatmul.f32.gmra.mxu2 %v1837_v60  ;;  %v3241_v32 = vld [vmem:[#allocation2 + $0xb8] sm:$0xff]  ;;  %v5298_v56 = vunpack.i.h.bf16 %v5297_v7  ;;  %vm5301_vm15 = vmmov %vm5258_vm1 }
 0x18d   : > { %v2754_v0 = vadd.f32 %v2753_v24, %v2752_v17  ;;  %2965 = vmatmul.msk.f32.gmra.mxu0 %vm5292_vm8, %v1341_v62  ;;  %vm5302_vm8 = vmmov %vm5258_vm1 }
 0x18e   : > { %2466 = vmatmul.f32.gmra.mxu3 %v4203_v26  ;;  %v2417_v57 = vadd.f32 %v2416_v21, %v2304_v43  ;;  %v1838_v26 = vsel %vm5294_vm5, %v3241_v32, %v1683_v55  ;;  %v1306_v21 = vsel %vm4009_vm13, %v3242_v25, 0.0  ;;  %vm5300_vm13 = vmmov %vm5258_vm1  ;;  %v1685_v43 = vpop.permute.xlu0 %1684 }
 0x18f   : > { %v2306_v38 = vpop.f32.mrf.mxu2  ;;  %v1870_v35 = vsel %vm5299_vm12, %v1306_v21, %v5298_v56  ;;  %vm5304_vm5 = vmmov %vm5258_vm1  ;;  %v5305_v21 = vld [vmem:[#allocation17_spill] sm:$0xff] }
 0x190   : > { %v2419_v36 = vpop.f32.mrf.mxu3  ;;  %v2530_v23 = vadd.f32 %v2529_v28, %v2417_v57  ;;  %vm5308_vm12 = vmmov %vm5258_vm1 }
 0x191   : > { %v2193_v37 = vpop.f32.mrf.mxu1 }
 0x192   : > { %2621 = vst.msk [vmem:[%s4638_s18 + $0x10] sm:$0xff] %vm5258_vm1, %v2530_v23  ;;  %v2654_v15 = vsel %vm5295_vm4, %v2530_v23, 0.0  ;;  %v2722_v8 = vmul.f32 %v2530_v23, %v2530_v23  ;;  %v2194_v60 = vadd.f32 %v2193_v37, %v2081_v63  ;;  %v2535_v62 = vpop.f32.mrf.mxu0  ;;  %v3243_v63 = vld [vmem:[#allocation2 + $0xc0] sm:$0xff]  ;;  %vm5306_vm4 = vmmov %vm5258_vm1 }
 0x193   : > { %v2655_v40 = vadd.f32 %v2654_v15, %v2653_v31  ;;  %v2084_v31 = vadd.f32 %v4388_v22, %v4512_v14  ;;  %v1839_v23 = vsel %vm5302_vm8, %v3243_v63, %v1685_v43  ;;  %v1343_v14 = vsel %vm4279_vm6, %v4318_v18, 0.0  ;;  %vm5314_vm8 = vmmov %vm5258_vm1 }
 0x194   : > { %v2755_v28 = vsel %vm5296_vm7, %v2722_v8, 0.0  ;;  %v2307_v52 = vadd.f32 %v2306_v38, %v2194_v60  ;;  %2240 = vmatmul.f32.gmra.mxu1 %v1805_v59  ;;  %2356 = vmatmul.f32.gmra.mxu2 %v1838_v26  ;;  %v1806_v38 = vsel %vm5301_vm15, %v4220_v9, %v1555_v12  ;;  %v1557_v9 = vpop.permute.xlu1 %1556  ;;  %v1687_v8 = vpop.permute.xlu2 %1686  ;;  %v1203_v60 = vsel %vm4279_vm6, %v4295_v6, 0.0  ;;  %vm5307_vm7 = vmmov %vm5258_vm1  ;;  %v3244_v12 = vld [vmem:[#allocation2 + $0xc8] sm:$0xff] }
 0x195   : > { %v2756_v17 = vadd.f32 %v2755_v28, %v2754_v0  ;;  %2966 = vmatmul.msk.f32.gmra.mxu0 %vm5300_vm13, %v4354_v54  ;;  %vm5309_vm13 = vmmov %vm5258_vm1 }
 0x196   : > { %2469 = vmatmul.f32.gmra.mxu3 %v1870_v35  ;;  %v2420_v24 = vadd.f32 %v2419_v36, %v2307_v52  ;;  %v1807_v35 = vsel %vm5307_vm7, %v1203_v60, %v1557_v9  ;;  %vm5310_vm15 = vmmov %vm5258_vm1  ;;  %v1559_v45 = vpop.permute.xlu0 %1558  ;;  %v3246_v9 = vld [vmem:[#allocation2 + $0xd0] sm:$0xff] }
 0x197   : > { %v2309_v46 = vpop.f32.mrf.mxu2  ;;  %vm5311_vm6 = vmmov %vm5258_vm1 }
 0x198   : > { %v2422_v57 = vpop.f32.mrf.mxu3  ;;  %v2533_v55 = vadd.f32 %v2532_v47, %v2420_v24  ;;  %v3245_v24 = vld [vmem:[#allocation2 + $0xd7] sm:$0xff]  ;;  %vm5319_vm7 = vmmov %vm5258_vm1 }
 0x199   : > { %v2196_v42 = vpop.f32.mrf.mxu1  ;;  %v1308_v43 = vsel %vm4129_vm14, %v3245_v24, 0.0  ;;  %vm5315_vm14 = vmmov %vm5258_vm1  ;;  %v2093_v24 = vadd.f32 %v4388_v22, %v4585_v13 }
 0x19a   : > { %2622 = vst.msk [vmem:[%s4638_s18 + $0x18] sm:$0xff] %vm5303_vm3, %v2533_v55  ;;  %v2656_v0 = vsel %vm5304_vm5, %v2533_v55, 0.0  ;;  %v2723_v37 = vmul.f32 %v2533_v55, %v2533_v55  ;;  %v2197_v36 = vadd.f32 %v2196_v42, %v2084_v31  ;;  %v2538_v59 = vpop.f32.mrf.mxu0  ;;  %v5312_v55 = vld [vmem:[#allocation9_spill] sm:$0xff]  ;;  %vm5316_vm3 = vmmov %vm5258_vm1 }
 0x19b   : > { %v2657_v32 = vadd.f32 %v2656_v0, %v2655_v40  ;;  %v2087_v40 = vadd.f32 %v4388_v22, %v4544_v33  ;;  %v5313_v42 = vunpack.i.h.bf16 %v5312_v55  ;;  %vm5317_vm5 = vmmov %vm5258_vm1  ;;  %v3248_v55 = vld [vmem:[#allocation2 + $0xe7] sm:$0xff] }
 0x19c   : > { %v2757_v47 = vsel %vm5258_vm1, %v2723_v37, 0.0  ;;  %v2310_v26 = vadd.f32 %v2309_v46, %v2197_v36  ;;  %2243 = vmatmul.f32.gmra.mxu1 %v1806_v38  ;;  %2359 = vmatmul.f32.gmra.mxu2 %v1839_v23  ;;  %v1689_v0 = vpop.permute.xlu1 %1688  ;;  %v2090_v36 = vadd.f32 %v4388_v22, %v4567_v34  ;;  %v1345_v34 = vsel %vm4314_vm0, %v4437_v16, 0.0 }
 0x19d   : > { %v2758_v25 = vadd.f32 %v2757_v47, %v2756_v17  ;;  %2967 = vmatmul.msk.f32.gmra.mxu0 %vm5306_vm4, %v1343_v14  ;;  %v1840_v17 = vsel %vm5308_vm12, %v3244_v12, %v1687_v8  ;;  %v1872_v38 = vsel %vm5314_vm8, %v1308_v43, %v5313_v42  ;;  %vm5318_vm4 = vmmov %vm5258_vm1  ;;  %v1205_v12 = vsel %vm4314_vm0, %v4275_v61, 0.0 }
 0x19e   : > { %2472 = vmatmul.f32.gmra.mxu3 %v5305_v21  ;;  %v2423_v15 = vadd.f32 %v2422_v57, %v2310_v26  ;;  %v1808_v26 = vsel %vm5316_vm3, %v4256_v49, %v1559_v45  ;;  %v1841_v21 = vsel %vm5317_vm5, %v3246_v9, %v1689_v0  ;;  %v1561_v49 = vpop.permute.xlu2 %1560  ;;  %vm5321_vm12 = vmmov %vm5258_vm1  ;;  %v1310_v42 = vsel %vm3787_vm10, %v3248_v55, 0.0 }
 0x19f   : > { %v2312_v28 = vpop.f32.mrf.mxu2  ;;  %vm5325_vm0 = vmmov %vm5258_vm1 }
 0x1a0   : > { %v2425_v52 = vpop.f32.mrf.mxu3  ;;  %v2536_v7 = vadd.f32 %v2535_v62, %v2423_v15  ;;  %vm5326_vm8 = vmmov %vm5325_vm0 }
 0x1a1   : > { %v2199_v56 = vpop.f32.mrf.mxu1  ;;  %vm5330_vm10 = vmmov %vm5325_vm0 }
 0x1a2   : > { %2623 = vst.msk [vmem:[%s4638_s18 + $0x20] sm:$0xff] %vm5309_vm13, %v2536_v7  ;;  %v2658_v3 = vsel %vm5310_vm15, %v2536_v7, 0.0  ;;  %v2724_v6 = vmul.f32 %v2536_v7, %v2536_v7  ;;  %v2200_v46 = vadd.f32 %v2199_v56, %v2087_v40  ;;  %v2541_v31 = vpop.f32.mrf.mxu0  ;;  %v5320_v7 = vld [vmem:[#allocation25_spill] sm:$0xff]  ;;  %vm5322_vm13 = vmmov %vm5258_vm1 }
 0x1a3   : > { %v2659_v33 = vadd.f32 %v2658_v3, %v2657_v32  ;;  %vm5323_vm15 = vmmov %vm5258_vm1 }
 0x1a4   : > { %v2759_v62 = vsel %vm5311_vm6, %v2724_v6, 0.0  ;;  %v2313_v57 = vadd.f32 %v2312_v28, %v2200_v46  ;;  %2246 = vmatmul.f32.gmra.mxu1 %v1807_v35  ;;  %2362 = vmatmul.f32.gmra.mxu2 %v1840_v17  ;;  %v1691_v35 = vpop.permute.xlu0 %1690  ;;  %v1563_v6 = vpop.permute.xlu1 %1562  ;;  %vm5324_vm6 = vmmov %vm5258_vm1 }
 0x1a5   : > { %v2760_v63 = vadd.f32 %v2759_v62, %v2758_v25  ;;  %2968 = vmatmul.msk.f32.gmra.mxu0 %vm5315_vm14, %v4340_v29  ;;  %v3247_v62 = vld [vmem:[#allocation2 + $0xd8] sm:$0xff]  ;;  %vm5329_vm14 = vmmov %vm5325_vm0 }
 0x1a6   : > { %2475 = vmatmul.f32.gmra.mxu3 %v1872_v38  ;;  %v2426_v23 = vadd.f32 %v2425_v52, %v2313_v57  ;;  %v1842_v57 = vsel %vm5323_vm15, %v3247_v62, %v1691_v35  ;;  %vm5331_vm3 = vmmov %vm5325_vm0 }
 0x1a7   : > { %v2315_v37 = vpop.f32.mrf.mxu2  ;;  %vm5332_vm5 = vmmov %vm5325_vm0 }
 0x1a8   : > { %v2428_v14 = vpop.f32.mrf.mxu3  ;;  %v2539_v32 = vadd.f32 %v2538_v59, %v2426_v23  ;;  %v5327_v23 = vld [vmem:[#allocation22_spill] sm:$0xff]  ;;  %vm5339_vm15 = vmmov %vm5325_vm0 }
 0x1a9   : > { %v2202_v47 = vpop.f32.mrf.mxu1  ;;  %v5328_v0 = vunpack.i.h.bf16 %v5327_v23 }
 0x1aa   : > { %2624 = vst.msk [vmem:[%s4638_s18 + $0x28] sm:$0xff] %vm5258_vm1, %v2539_v32  ;;  %v2660_v25 = vsel %vm5318_vm4, %v2539_v32, 0.0  ;;  %v2725_v15 = vmul.f32 %v2539_v32, %v2539_v32  ;;  %v2203_v8 = vadd.f32 %v2202_v47, %v2090_v36  ;;  %v2544_v60 = vpop.f32.mrf.mxu0  ;;  %v2096_v47 = vadd.f32 %v4388_v22, %v4402_v51  ;;  %vm5333_vm1 = vmmov %vm5325_vm0 }
 0x1ab   : > { %v2661_v28 = vadd.f32 %v2660_v25, %v2659_v33  ;;  %v1809_v33 = vsel %vm5322_vm13, %v1205_v12, %v1561_v49  ;;  %v1810_v25 = vsel %vm5331_vm3, %v4354_v54, %v1563_v6  ;;  %vm5334_vm4 = vmmov %vm5325_vm0  ;;  %v1347_v51 = vsel %vm4433_vm9, %v4427_v53, 0.0 }
 0x1ac   : > { %v2761_v59 = vsel %vm5319_vm7, %v2725_v15, 0.0  ;;  %v2316_v40 = vadd.f32 %v2315_v37, %v2203_v8  ;;  %2249 = vmatmul.f32.gmra.mxu1 %v1808_v26  ;;  %2365 = vmatmul.f32.gmra.mxu2 %v1841_v21  ;;  %v1874_v37 = vsel %vm5329_vm14, %v1310_v42, %v5328_v0  ;;  %v3249_v15 = vld [vmem:[#allocation2 + $0xe0] sm:$0xff]  ;;  %vm5335_vm7 = vmmov %vm5325_vm0  ;;  %v3251_v42 = vld [vmem:[#allocation2 + $0xf7] sm:$0xff] }
 0x1ad   : > { %v2762_v52 = vadd.f32 %v2761_v59, %v2760_v63  ;;  %2969 = vmatmul.msk.f32.gmra.mxu0 %vm5321_vm12, %v1345_v34  ;;  %vm5337_vm12 = vmmov %vm5325_vm0 }
 0x1ae   : > { %2478 = vmatmul.f32.gmra.mxu3 %v5320_v7  ;;  %v2429_v56 = vadd.f32 %v2428_v14, %v2316_v40  ;;  %v1693_v14 = vpop.permute.xlu2 %1692  ;;  %v3171_v40 = vpop.permute.xlu1 %3170  ;;  %vm5338_vm13 = vmmov %vm5325_vm0 }
 0x1af   : > { %v2318_v17 = vpop.f32.mrf.mxu2  ;;  %v1843_v8 = vsel %vm5332_vm5, %v3249_v15, %v1693_v14  ;;  %v3172_v35 = vunpack.i.l.bf16 %v3171_v40  ;;  %v2102_v14 = vadd.f32 %v4388_v22, %v4479_v5  ;;  %vm5345_vm14 = vmmov %vm5325_vm0 }
 0x1b0   : > { %v2431_v43 = vpop.f32.mrf.mxu3  ;;  %v2542_v3 = vadd.f32 %v2541_v31, %v2429_v56  ;;  %v5336_v56 = vld [vmem:[#allocation36_spill] sm:$0xff]  ;;  %vm5347_vm3 = vmmov %vm5325_vm0 }
 0x1b1   : > { %v2205_v46 = vpop.f32.mrf.mxu1  ;;  %vm5348_vm5 = vmmov %vm5325_vm0 }
 0x1b2   : > { %2625 = vst.msk [vmem:[%s4638_s18 + $0x30] sm:$0xff] %vm5324_vm6, %v2542_v3  ;;  %v2662_v61 = vsel %vm5325_vm0, %v2542_v3, 0.0  ;;  %v2726_v19 = vmul.f32 %v2542_v3, %v2542_v3  ;;  %v2206_v38 = vadd.f32 %v2205_v46, %v2093_v24  ;;  %v2547_v13 = vpop.f32.mrf.mxu0  ;;  %v1207_v24 = vsel %vm4433_vm9, %v4318_v18, 0.0  ;;  %vm5340_vm6 = vmmov %vm5325_vm0 }
 0x1b3   : > { %v2663_v45 = vadd.f32 %v2662_v61, %v2661_v28  ;;  %v2099_v3 = vadd.f32 %v4388_v22, %v4443_v39  ;;  %v1312_v61 = vsel %vm5187_vm2, %v3251_v42, 0.0  ;;  %vm5341_vm9 = vmmov %vm5325_vm0 }
 0x1b4   : > { %v2763_v31 = vsel %vm5326_vm8, %v2726_v19, 0.0  ;;  %v2319_v63 = vadd.f32 %v2318_v17, %v2206_v38  ;;  %2252 = vmatmul.f32.gmra.mxu1 %v1809_v33  ;;  %2368 = vmatmul.f32.gmra.mxu2 %v1842_v57  ;;  %v1565_v17 = vpop.permute.xlu0 %1564  ;;  %v3250_v57 = vld [vmem:[#allocation2 + $0xe8] sm:$0xff]  ;;  %vm5343_vm8 = vmmov %vm5325_vm0 }
 0x1b5   : > { %v2764_v2 = vadd.f32 %v2763_v31, %v2762_v52  ;;  %2970 = vmatmul.msk.f32.gmra.mxu0 %vm5330_vm10, %v4366_v30  ;;  %v1811_v62 = vsel %vm5338_vm13, %v1207_v24, %v1565_v17  ;;  %v1844_v55 = vsel %vm5339_vm15, %v3250_v57, %v3172_v35  ;;  %vm5344_vm2 = vmmov %vm5325_vm0  ;;  %v3253_v24 = vld [vmem:[#allocation2 + $0xf8] sm:$0xff] }
 0x1b6   : > { %2481 = vmatmul.f32.gmra.mxu3 %v1874_v37  ;;  %v2432_v36 = vadd.f32 %v2431_v43, %v2319_v63  ;;  %v3176_v38 = vpop.permute.xlu2 %3175  ;;  %v5342_v63 = vunpack.i.h.bf16 %v4076_v41  ;;  %vm5346_vm10 = vmmov %vm5325_vm0 }
 0x1b7   : > { %v2321_v32 = vpop.f32.mrf.mxu2  ;;  %v3177_v0 = vunpack.i.l.bf16 %v3176_v38  ;;  %vm5354_vm13 = vmmov %vm5325_vm0 }
 0x1b8   : > { %v2434_v26 = vpop.f32.mrf.mxu3  ;;  %v2545_v9 = vadd.f32 %v2544_v60, %v2432_v36  ;;  %v1876_v10 = vsel %vm5343_vm8, %v1312_v61, %v5342_v63  ;;  %vm5355_vm15 = vmmov %vm5325_vm0 }
 0x1b9   : > { %v2208_v21 = vpop.f32.mrf.mxu1  ;;  %vm5360_vm8 = vmmov %vm5325_vm0 }
 0x1ba   : > { %2626 = vst.msk [vmem:[%s4638_s18 + $0x38] sm:$0xff] %vm5333_vm1, %v2545_v9  ;;  %v2664_v34 = vsel %vm5334_vm4, %v2545_v9, 0.0  ;;  %v2727_v28 = vmul.f32 %v2545_v9, %v2545_v9  ;;  %v2209_v59 = vadd.f32 %v2208_v21, %v2096_v47  ;;  %v2550_v49 = vpop.f32.mrf.mxu0  ;;  %v3252_v9 = vld [vmem:[#allocation2 + $0xf0] sm:$0xff]  ;;  %vm5349_vm1 = vmmov %vm5325_vm0 }
 0x1bb   : > { %v2665_v60 = vadd.f32 %v2664_v34, %v2663_v45  ;;  %v1845_v41 = vsel %vm5345_vm14, %v3252_v9, %v3177_v0  ;;  %v1349_v34 = vsel %vm4423_vm11, %v4460_v44, 0.0  ;;  %vm5350_vm4 = vmmov %vm5325_vm0 }
 0x1bc   : > { %v2765_v52 = vsel %vm5335_vm7, %v2727_v28, 0.0  ;;  %v2322_v7 = vadd.f32 %v2321_v32, %v2209_v59  ;;  %2255 = vmatmul.f32.gmra.mxu1 %v1810_v25  ;;  %2371 = vmatmul.f32.gmra.mxu2 %v1843_v8  ;;  %v3181_v8 = vpop.permute.xlu0 %3180  ;;  %vm5351_vm7 = vnez %v5218_v20  ;;  %vm5362_vm14 = vmmov %vm5325_vm0 }
 0x1bd   : > { %v2766_v54 = vadd.f32 %v2765_v52, %v2764_v2  ;;  %2971 = vmatmul.msk.f32.gmra.mxu0 %vm5337_vm12, %v1347_v51  ;;  %v3173_v2 = vunpack.i.h.bf16 %v3171_v40  ;;  %v3182_v51 = vunpack.i.l.bf16 %v3181_v8  ;;  %v3183_v52 = vunpack.i.h.bf16 %v3181_v8  ;;  %vm5353_vm12 = vmmov %vm5325_vm0 }
 0x1be   : > { %2484 = vmatmul.f32.gmra.mxu3 %v5336_v56  ;;  %v2435_v12 = vadd.f32 %v2434_v26, %v2322_v7  ;;  %v3178_v7 = vunpack.i.h.bf16 %v3176_v38 }
 0x1bf   : > { %v2324_v43 = vpop.f32.mrf.mxu2  ;;  %v1812_v5 = vsel %vm5348_vm5, %v4340_v29, %v3173_v2  ;;  %v1314_v29 = vsel %vm5351_vm7, %v4519_v58, 0.0 }
 0x1c0   : > { %v2437_v6 = vpop.f32.mrf.mxu3  ;;  %v2548_v46 = vadd.f32 %v2547_v13, %v2435_v12 }
 0x1c1   : > { %v2211_v33 = vpop.f32.mrf.mxu1 }
 0x1c2   : > { %2627 = vst.msk [vmem:[%s4638_s18 + $0x40] sm:$0xff] %vm5340_vm6, %v2548_v46  ;;  %v2666_v18 = vsel %vm5325_vm0, %v2548_v46, 0.0  ;;  %v2728_v4 = vmul.f32 %v2548_v46, %v2548_v46  ;;  %v2212_v19 = vadd.f32 %v2211_v33, %v2099_v3  ;;  %v2553_v39 = vpop.f32.mrf.mxu0  ;;  %v3186_v3 = vpop.permute.xlu1 %3185  ;;  %vm5356_vm6 = vmmov %vm5325_vm0 }
 0x1c3   : > { %v2667_v45 = vadd.f32 %v2666_v18, %v2665_v60  ;;  %v1878_v46 = vsel %vm5356_vm6, %v1314_v29, %v3183_v52  ;;  %v4811_v33 = vpop.permute.xlu2 %3190  ;;  %v3188_v61 = vunpack.i.h.bf16 %v3186_v3  ;;  %v3187_v18 = vunpack.i.l.bf16 %v3186_v3  ;;  %vm5377_vm6 = vmmov %vm5325_vm0 }
 0x1c4   : > { %v2767_v13 = vsel %vm5341_vm9, %v2728_v4, 0.0  ;;  %v2325_v31 = vadd.f32 %v2324_v43, %v2212_v19  ;;  %2258 = vmatmul.f32.gmra.mxu1 %v1811_v62  ;;  %2374 = vmatmul.f32.gmra.mxu2 %v1844_v55  ;;  %v1846_v43 = vsel %vm5353_vm12, %v3253_v24, %v3182_v51  ;;  %v3192_v4 = vunpack.i.l.bf16 %v4811_v33  ;;  %v5358_v19 = vld [vmem:[#allocation20_spill] sm:$0xff]  ;;  %vm5359_vm9 = vmmov %vm5325_vm0  ;;  %v1320_v24 = vld [vmem:[#allocation2 + $0x119] sm:$0xff] }
 0x1c5   : > { %v2768_v23 = vadd.f32 %v2767_v13, %v2766_v54  ;;  %2972 = vmatmul.msk.f32.gmra.mxu0 %vm5344_vm2, %v4414_v48  ;;  %v5352_v54 = vld [vmem:[#allocation38_spill] sm:$0xff]  ;;  %vm5361_vm2 = vmmov %vm5325_vm0 }
 0x1c6   : > { %2487 = vmatmul.f32.gmra.mxu3 %v1876_v10  ;;  %v2438_v37 = vadd.f32 %v2437_v6, %v2325_v31  ;;  %v2105_v56 = vadd.f32 %v4388_v22, %v5352_v54  ;;  %v1814_v10 = vsel %vm5360_vm8, %v4366_v30, %v3187_v18  ;;  %vm5374_vm12 = vmmov %vm5325_vm0 }
 0x1c7   : > { %v2327_v36 = vpop.f32.mrf.mxu2  ;;  %vm5381_vm8 = vmmov %vm5325_vm0 }
 0x1c8   : > { %v2440_v32 = vpop.f32.mrf.mxu3  ;;  %v2551_v47 = vadd.f32 %v2550_v49, %v2438_v37  ;;  %v1879_v37 = vsel %vm5362_vm14, %v4608_v1, %v3192_v4  ;;  %vm5384_vm14 = vmmov %vm5325_vm0 }
 0x1c9   : > { %v2214_v26 = vpop.f32.mrf.mxu1 }
 0x1ca   : > { %2628 = vst.msk [vmem:[%s4638_s18 + $0x48] sm:$0xff] %vm5346_vm10, %v2551_v47  ;;  %v2668_v21 = vsel %vm5347_vm3, %v2551_v47, 0.0  ;;  %v2729_v25 = vmul.f32 %v2551_v47, %v2551_v47  ;;  %v2215_v15 = vadd.f32 %v2214_v26, %v2102_v14  ;;  %v2556_v48 = vpop.f32.mrf.mxu0  ;;  %vm5363_vm10 = vmmov %vm5325_vm0  ;;  %v5365_v47 = vld [vmem:[#allocation40_spill] sm:$0xff]  ;;  %v5366_v26 = vld [vmem:[#allocation23_spill] sm:$0xff]  ;;  %v3201_v54 = vpop.permute.xlu1 %3200 }
 0x1cb   : > { %v2669_v28 = vadd.f32 %v2668_v21, %v2667_v45  ;;  %v2108_v45 = vadd.f32 %v4388_v22, %v4539_v11  ;;  %vm5364_vm3 = vmmov %vm5325_vm0  ;;  %vm5367_vm5 = vnez %v5366_v26 }
 0x1cc   : > { %v2769_v59 = vsel %vm5349_vm1, %v2729_v25, 0.0  ;;  %v2328_v40 = vadd.f32 %v2327_v36, %v2215_v15  ;;  %2261 = vmatmul.f32.gmra.mxu1 %v1812_v5  ;;  %2377 = vmatmul.f32.gmra.mxu2 %v1845_v41  ;;  %v1351_v9 = vsel %vm5367_vm5, %v5365_v47, 0.0  ;;  %vm5368_vm1 = vmmov %vm5325_vm0  ;;  %v1284_v25 = vld [vmem:[#allocation2 + $0x117] sm:$0xff]  ;;  %v1211_v52 = vsel %vm5367_vm5, %v4427_v53, 0.0 }
 0x1cd   : > { %v2770_v49 = vadd.f32 %v2769_v59, %v2768_v23  ;;  %2973 = vmatmul.msk.f32.gmra.mxu0 %vm5350_vm4, %v1349_v34  ;;  %v3254_v23 = vld [vmem:[#allocation2 + $0x100] sm:$0xff]  ;;  %vm5369_vm4 = vmmov %vm5325_vm0  ;;  %v3193_v34 = vunpack.i.h.bf16 %v4811_v33  ;;  %v5370_v5 = vld [vmem:[#allocation37_spill] sm:$0xff] }
 0x1ce   : > { %2490 = vmatmul.f32.gmra.mxu3 %v4208_v50  ;;  %v2441_v60 = vadd.f32 %v2440_v32, %v2328_v40  ;;  %v1209_v50 = vsel %vm4423_vm11, %v4437_v16, 0.0  ;;  %vm5357_vm11 = vmmov %vm5325_vm0  ;;  %v1847_v0 = vsel %vm5361_vm2, %v3254_v23, %v3188_v61  ;;  %v3196_v32 = vpop.permute.xlu0 %3195  ;;  %vm5371_vm7 = vnez %v5370_v5  ;;  %v5372_v40 = vld [vmem:[#allocation18_spill] sm:$0xff] }
 0x1cf   : > { %v2330_v44 = vpop.f32.mrf.mxu2  ;;  %v1813_v27 = vsel %vm5325_vm0, %v1209_v50, %v3178_v7  ;;  %v3197_v15 = vunpack.i.l.bf16 %v3196_v32  ;;  %v1316_v59 = vsel %vm5371_vm7, %v1284_v25, 0.0  ;;  %v1815_v3 = vsel %vm5325_vm0, %v1211_v52, %v3193_v34  ;;  %vm5383_vm2 = vmmov %vm5325_vm0 }
 0x1d0   : > { %v2443_v35 = vpop.f32.mrf.mxu3  ;;  %v2554_v12 = vadd.f32 %v2553_v39, %v2441_v60  ;;  %vm5392_vm7 = vmmov %vm5325_vm0 }
 0x1d1   : > { %v2217_v17 = vpop.f32.mrf.mxu1 }
 0x1d2   : > { %2629 = vst.msk [vmem:[%s4638_s18 + $0x50] sm:$0xff] %vm5354_vm13, %v2554_v12  ;;  %v2670_v6 = vsel %vm5355_vm15, %v2554_v12, 0.0  ;;  %v2730_v20 = vmul.f32 %v2554_v12, %v2554_v12  ;;  %v2218_v58 = vadd.f32 %v2217_v17, %v2105_v56  ;;  %v2559_v62 = vpop.f32.mrf.mxu0  ;;  %vm5375_vm13 = vmmov %vm5325_vm0 }
 0x1d3   : > { %v2671_v57 = vadd.f32 %v2670_v6, %v2669_v28  ;;  %vm5376_vm15 = vmmov %vm5325_vm0 }
 0x1d4   : > { %v2771_v16 = vsel %vm5357_vm11, %v2730_v20, 0.0  ;;  %v2331_v55 = vadd.f32 %v2330_v44, %v2218_v58  ;;  %2264 = vmatmul.f32.gmra.mxu1 %v1813_v27  ;;  %2380 = vmatmul.f32.gmra.mxu2 %v1846_v43  ;;  %v5373_v44 = vld [vmem:[#allocation28_spill] sm:$0xff]  ;;  %vm5378_vm11 = vmmov %vm5325_vm0  ;;  %v3203_v58 = vunpack.i.h.bf16 %v3201_v54 }
 0x1d5   : > { %v2772_v42 = vadd.f32 %v2771_v16, %v2770_v49  ;;  %2974 = vmatmul.msk.f32.gmra.mxu0 %vm5359_vm9, %v5358_v19  ;;  %v2111_v49 = vadd.f32 %v4388_v22, %v5372_v40  ;;  %v1848_v29 = vsel %vm5374_vm12, %v5373_v44, %v3197_v15  ;;  %v3206_v22 = vpop.permute.xlu2 %3205  ;;  %vm5379_vm9 = vmmov %vm5325_vm0  ;;  %v1321_v16 = vld [vmem:[#allocation2 + $0x121] sm:$0xff] }
 0x1d6   : > { %2493 = vmatmul.f32.gmra.mxu3 %v1878_v46  ;;  %v2444_v38 = vadd.f32 %v2443_v35, %v2331_v55  ;;  %v3202_v46 = vunpack.i.l.bf16 %v3201_v54  ;;  %v3207_v33 = vunpack.i.l.bf16 %v3206_v22  ;;  %v3255_v55 = vld [vmem:[%s4978_s4] ss:$0 sm:$0xff]  ;;  %v3208_v26 = vunpack.i.h.bf16 %v3206_v22  ;;  %vm5393_vm12 = vmmov %vm5325_vm0 }
 0x1d7   : > { %v2333_v39 = vpop.f32.mrf.mxu2 }
 0x1d8   : > { %v2446_v13 = vpop.f32.mrf.mxu3  ;;  %v2557_v31 = vadd.f32 %v2556_v48, %v2444_v38  ;;  %v3198_v48 = vunpack.i.h.bf16 %v3196_v32  ;;  %v3256_v38 = vld [vmem:[#allocation2 + $0xf9] sm:$0xff] }
 0x1d9   : > { %v2220_v63 = vpop.f32.mrf.mxu1 }
 0x1da   : > { %2630 = vst.msk [vmem:[%s4638_s18 + $0x58] sm:$0xff] %vm5363_vm10, %v2557_v31  ;;  %v2672_v2 = vsel %vm5364_vm3, %v2557_v31, 0.0  ;;  %v2731_v36 = vmul.f32 %v2557_v31, %v2557_v31  ;;  %v2221_v14 = vadd.f32 %v2220_v63, %v2108_v45  ;;  %v2562_v11 = vpop.f32.mrf.mxu0  ;;  %v1880_v50 = vsel %vm5377_vm6, %v1316_v59, %v3198_v48  ;;  %v5382_v45 = vld [vmem:[#allocation31_spill] sm:$0xff]  ;;  %vm5385_vm10 = vmmov %vm5325_vm0 }
 0x1db   : > { %v2673_v41 = vadd.f32 %v2672_v2, %v2671_v57  ;;  %v1285_v57 = vld [vmem:[#allocation2 + $0x11f] sm:$0xff]  ;;  %vm5386_vm3 = vmmov %vm5325_vm0 }
 0x1dc   : > { %v2773_v30 = vsel %vm5368_vm1, %v2731_v36, 0.0  ;;  %v2334_v21 = vadd.f32 %v2333_v39, %v2221_v14  ;;  %2267 = vmatmul.f32.gmra.mxu1 %v1814_v10  ;;  %2383 = vmatmul.f32.gmra.mxu2 %v1847_v0  ;;  %v1816_v39 = vsel %vm5381_vm8, %v3256_v38, %v3202_v46  ;;  %v1881_v31 = vsel %vm5384_vm14, %v1285_v57, %v3207_v33  ;;  %vm5389_vm1 = vmmov %vm5325_vm0  ;;  %v5401_v57 = vld [vmem:[#allocation29_spill] sm:$0xff] }
 0x1dd   : > { %v2774_v1 = vadd.f32 %v2773_v30, %v2772_v42  ;;  %2975 = vmatmul.msk.f32.gmra.mxu0 %vm5369_vm4, %v1351_v9  ;;  %v5380_v42 = vld [vmem:[#allocation42_spill] sm:$0xff]  ;;  %vm5390_vm4 = vmmov %vm5325_vm0 }
 0x1de   : > { %2496 = vmatmul.f32.gmra.mxu3 %v1879_v37  ;;  %v2447_v8 = vadd.f32 %v2446_v13, %v2334_v21  ;;  %v2114_v61 = vadd.f32 %v3255_v55, %v5380_v42  ;;  %v1849_v13 = vsel %vm5383_vm2, %v5382_v45, %v3203_v58  ;;  %v5387_v37 = vld [vmem:[#allocation16_spill] sm:$0xff]  ;;  %vm5396_vm6 = vmmov %vm5325_vm0 }
 0x1df   : > { %v2336_v28 = vpop.f32.mrf.mxu2  ;;  %vm5388_vm5 = vnez %v5387_v37  ;;  %vm5400_vm8 = vmmov %vm5325_vm0 }
 0x1e0   : > { %v2449_v51 = vpop.f32.mrf.mxu3  ;;  %v2560_v60 = vadd.f32 %v2559_v62, %v2447_v8  ;;  %v1353_v2 = vsel %vm5388_vm5, %v1321_v16, 0.0  ;;  %vm5402_vm2 = vmmov %vm5325_vm0 }
 0x1e1   : > { %v2223_v7 = vpop.f32.mrf.mxu1  ;;  %vm5403_vm14 = vmmov %vm5325_vm0 }
 0x1e2   : > { %2631 = vst.msk [vmem:[%s4638_s18 + $0x60] sm:$0xff] %vm5375_vm13, %v2560_v60  ;;  %v2674_v56 = vsel %vm5376_vm15, %v2560_v60, 0.0  ;;  %v2732_v35 = vmul.f32 %v2560_v60, %v2560_v60  ;;  %v2224_v12 = vadd.f32 %v2223_v7, %v2111_v49  ;;  %v2565_v17 = vpop.f32.mrf.mxu0  ;;  %vm5394_vm13 = vmmov %vm5325_vm0 }
 0x1e3   : > { %v2675_v43 = vadd.f32 %v2674_v56, %v2673_v41  ;;  %v5391_v41 = vld [vmem:[#allocation43_spill] sm:$0xff]  ;;  %vm5395_vm15 = vmmov %vm5325_vm0 }
 0x1e4   : > { %v2775_v53 = vsel %vm5378_vm11, %v2732_v35, 0.0  ;;  %v2337_v6 = vadd.f32 %v2336_v28, %v2224_v12  ;;  %2270 = vmatmul.f32.gmra.mxu1 %v1815_v3  ;;  %2386 = vmatmul.f32.gmra.mxu2 %v1848_v29  ;;  %v2117_v30 = vadd.f32 %v3255_v55, %v5391_v41  ;;  %v5397_v12 = vld [vmem:[#allocation19_spill] sm:$0xff]  ;;  %vm5398_vm11 = vmmov %vm5325_vm0 }
 0x1e5   : > { %v2776_v20 = vadd.f32 %v2775_v53, %v2774_v1  ;;  %2976 = vmatmul.msk.f32.gmra.mxu0 %vm5379_vm9, %v1320_v24  ;;  %v3257_v1 = vld [vmem:[#allocation2 + $0x101] sm:$0xff]  ;;  %vm5399_vm9 = vmmov %vm5325_vm0 }
 0x1e6   : > { %2499 = vmatmul.f32.gmra.mxu3 %v1880_v50  ;;  %v2450_v62 = vadd.f32 %v2449_v51, %v2337_v6  ;;  %v1213_v15 = vsel %vm5388_vm5, %v3257_v1, 0.0  ;;  %vm5407_vm5 = vmmov %vm5325_vm0 }
 0x1e7   : > { %v2339_v27 = vpop.f32.mrf.mxu2  ;;  %v1817_v40 = vsel %vm5394_vm13, %v1213_v15, %v3208_v26  ;;  %vm5414_vm13 = vmmov %vm5325_vm0 }
 0x1e8   : > { %v2452_v18 = vpop.f32.mrf.mxu3  ;;  %v2563_v4 = vadd.f32 %v2562_v11, %v2450_v62 }
 0x1e9   : > { %v2226_v19 = vpop.f32.mrf.mxu1 }
 0x1ea   : > { %2632 = vst.msk [vmem:[%s4638_s18 + $0x68] sm:$0xff] %vm5385_vm10, %v2563_v4  ;;  %v2676_v63 = vsel %vm5386_vm3, %v2563_v4, 0.0  ;;  %v2733_v10 = vmul.f32 %v2563_v4, %v2563_v4  ;;  %v2227_v23 = vadd.f32 %v2226_v19, %v2114_v61  ;;  %v2568_v0 = vpop.f32.mrf.mxu0  ;;  %vm5404_vm10 = vmmov %vm5325_vm0 }
 0x1eb   : > { %v2677_v36 = vadd.f32 %v2676_v63, %v2675_v43  ;;  %v5405_v63 = vld [vmem:[#allocation14_spill] sm:$0xff]  ;;  %vm5406_vm3 = vmmov %vm5325_vm0 }
 0x1ec   : > { %v2777_v14 = vsel %vm5389_vm1, %v2733_v10, 0.0  ;;  %v2340_v32 = vadd.f32 %v2339_v27, %v2227_v23  ;;  %2273 = vmatmul.f32.gmra.mxu1 %v1816_v39  ;;  %2389 = vmatmul.f32.gmra.mxu2 %v1849_v13  ;;  %vm5408_vm1 = vmmov %vm5325_vm0 }
 0x1ed   : > { %v2778_v11 = vadd.f32 %v2777_v14, %v2776_v20  ;;  %2977 = vmatmul.msk.f32.gmra.mxu0 %vm5390_vm4, %v1353_v2  ;;  %vm5410_vm4 = vmmov %vm5325_vm0 }
 0x1ee   : > { %2502 = vmatmul.f32.gmra.mxu3 %v1881_v31  ;;  %v2453_v47 = vadd.f32 %v2452_v18, %v2340_v32 }
 0x1ef   : > { %v2342_v9 = vpop.f32.mrf.mxu2 }
 0x1f0   : > { %v2455_v21 = vpop.f32.mrf.mxu3  ;;  %v2566_v25 = vadd.f32 %v2565_v17, %v2453_v47 }
 0x1f1   : > { %v2229_v8 = vpop.f32.mrf.mxu1 }
 0x1f2   : > { %2633 = vst.msk [vmem:[%s4638_s18 + $0x70] sm:$0xff] %vm5392_vm7, %v2566_v25  ;;  %v2678_v48 = vsel %vm5393_vm12, %v2566_v25, 0.0  ;;  %v2734_v34 = vmul.f32 %v2566_v25, %v2566_v25  ;;  %v2230_v28 = vadd.f32 %v2229_v8, %v2117_v30  ;;  %v2571_v5 = vpop.f32.mrf.mxu0  ;;  %v5409_v30 = vld [vmem:[#allocation27_spill] sm:$0xff]  ;;  %vm5411_vm7 = vmmov %vm5325_vm0 }
 0x1f3   : > { %v2679_v59 = vadd.f32 %v2678_v48, %v2677_v36  ;;  %vm5412_vm12 = vmmov %vm5325_vm0 }
 0x1f4   : > { %v2779_v49 = vsel %vm5395_vm15, %v2734_v34, 0.0  ;;  %v2343_v51 = vadd.f32 %v2342_v9, %v2230_v28  ;;  %2276 = vmatmul.f32.gmra.mxu1 %v1817_v40  ;;  %vm5415_vm15 = vmmov %vm5325_vm0 }
 0x1f5   : > { %v2780_v60 = vadd.f32 %v2779_v49, %v2778_v11 }
 0x1f6   : > { %v2456_v52 = vadd.f32 %v2455_v21, %v2343_v51 }
 0x1f7   : > { %v2345_v7 = vpop.f32.mrf.mxu2 }
 0x1f8   : > { %v2569_v29 = vadd.f32 %v2568_v0, %v2456_v52 }
 0x1f9   : > { %v2458_v44 = vpop.f32.mrf.mxu3  ;;  %v2232_v54 = vpop.f32.mrf.mxu1 }
 0x1fa   : > { %2634 = vst.msk [vmem:[%s4638_s18 + $0x78] sm:$0xff] %vm5396_vm6, %v2569_v29  ;;  %v2680_v56 = vsel %vm5325_vm0, %v2569_v29, 0.0  ;;  %v2735_v35 = vmul.f32 %v2569_v29, %v2569_v29  ;;  %v2233_v50 = vadd.f32 %v2232_v54, %v5397_v12  ;;  %v2574_v22 = vpop.f32.mrf.mxu0  ;;  %vm5416_vm6 = vmmov %vm5325_vm0 }
 0x1fb   : > { %v2681_v17 = vadd.f32 %v2680_v56, %v2679_v59 }
 0x1fc   : > { %v2781_v24 = vsel %vm5398_vm11, %v2735_v35, 0.0  ;;  %v2346_v43 = vadd.f32 %v2345_v7, %v2233_v50  ;;  %vm5418_vm11 = vmmov %vm5325_vm0 }
 0x1fd   : > { %v2782_v3 = vadd.f32 %v2781_v24, %v2780_v60  ;;  %v5413_v60 = vld [vmem:[#allocation13_spill] sm:$0xff] }
 0x1fe   : > { %v2459_v53 = vadd.f32 %v2458_v44, %v2346_v43 }
 0x1ff   : > { %v2348_v6 = vpop.f32.mrf.mxu2 }
 0x200   : > { %v2572_v58 = vadd.f32 %v2571_v5, %v2459_v53 }
 0x201   : > { %v2461_v20 = vpop.f32.mrf.mxu3  ;;  %v2235_v46 = vpop.f32.mrf.mxu1 }
 0x202   : > { %2635 = vst.msk [vmem:[%s4638_s18 + $0x80] sm:$0xff] %vm5399_vm9, %v2572_v58  ;;  %v2682_v33 = vsel %vm5400_vm8, %v2572_v58, 0.0  ;;  %v2736_v62 = vmul.f32 %v2572_v58, %v2572_v58  ;;  %v2236_v27 = vadd.f32 %v2235_v46, %v5401_v57  ;;  %v2577_v16 = vpop.f32.mrf.mxu0  ;;  %vm5419_vm9 = vmmov %vm5325_vm0 }
 0x203   : > { %v2683_v55 = vadd.f32 %v2682_v33, %v2681_v17  ;;  %vm5421_vm8 = vmmov %vm5325_vm0 }
 0x204   : > { %v2783_v42 = vsel %vm5402_vm2, %v2736_v62, 0.0  ;;  %v2349_v61 = vadd.f32 %v2348_v6, %v2236_v27  ;;  %vm5422_vm2 = vmmov %vm5325_vm0 }
 0x205   : > { %v2784_v18 = vadd.f32 %v2783_v42, %v2782_v3  ;;  %v5417_v3 = vld [vmem:[#allocation32_spill] sm:$0xff] }
 0x206   : > { %v2462_v4 = vadd.f32 %v2461_v20, %v2349_v61 }
 0x207   : > { %v2351_v19 = vpop.f32.mrf.mxu2 }
 0x208   : > { %v2575_v39 = vadd.f32 %v2574_v22, %v2462_v4 }
 0x209   : > { %v2464_v38 = vpop.f32.mrf.mxu3  ;;  %v2238_v45 = vpop.f32.mrf.mxu1 }
 0x20a   : > { %2636 = vst.msk [vmem:[%s4638_s18 + $0x88] sm:$0xff] %vm5403_vm14, %v2575_v39  ;;  %v2684_v13 = vsel %vm5404_vm10, %v2575_v39, 0.0  ;;  %v2737_v31 = vmul.f32 %v2575_v39, %v2575_v39  ;;  %v2239_v10 = vadd.f32 %v2238_v45, %v5405_v63  ;;  %v2580_v23 = vpop.f32.mrf.mxu0  ;;  %vm5423_vm14 = vmmov %vm5325_vm0 }
 0x20b   : > { %v2685_v0 = vadd.f32 %v2684_v13, %v2683_v55  ;;  %vm5425_vm10 = vmmov %vm5325_vm0 }
 0x20c   : > { %v2785_v37 = vsel %vm5406_vm3, %v2737_v31, 0.0  ;;  %v2352_v2 = vadd.f32 %v2351_v19, %v2239_v10  ;;  %vm5426_vm3 = vmmov %vm5325_vm0 }
 0x20d   : > { %v2786_v36 = vadd.f32 %v2785_v37, %v2784_v18  ;;  %v5420_v18 = vld [vmem:[#allocation15_spill] sm:$0xff] }
 0x20e   : > { %v2465_v14 = vadd.f32 %v2464_v38, %v2352_v2 }
 0x20f   : > { %v2354_v32 = vpop.f32.mrf.mxu2 }
 0x210   : > { %v2578_v47 = vadd.f32 %v2577_v16, %v2465_v14 }
 0x211   : > { %v2467_v11 = vpop.f32.mrf.mxu3  ;;  %v2241_v26 = vpop.f32.mrf.mxu1 }
 0x212   : > { %2637 = vst.msk [vmem:[%s4638_s18 + $0x90] sm:$0xff] %vm5407_vm5, %v2578_v47  ;;  %v2686_v9 = vsel %vm5408_vm1, %v2578_v47, 0.0  ;;  %v2738_v41 = vmul.f32 %v2578_v47, %v2578_v47  ;;  %v2242_v21 = vadd.f32 %v2241_v26, %v5409_v30  ;;  %v2583_v25 = vpop.f32.mrf.mxu0  ;;  %vm5427_vm5 = vmmov %vm5325_vm0 }
 0x213   : > { %v2687_v1 = vadd.f32 %v2686_v9, %v2685_v0  ;;  %vm5429_vm1 = vmmov %vm5325_vm0 }
 0x214   : > { %v2787_v15 = vsel %vm5410_vm4, %v2738_v41, 0.0  ;;  %v2355_v8 = vadd.f32 %v2354_v32, %v2242_v21  ;;  %vm5430_vm4 = vmmov %vm5325_vm0 }
 0x215   : > { %v2788_v48 = vadd.f32 %v2787_v15, %v2786_v36  ;;  %v5424_v36 = vld [vmem:[#allocation34_spill] sm:$0xff] }
 0x216   : > { %v2468_v34 = vadd.f32 %v2467_v11, %v2355_v8 }
 0x217   : > { %v2357_v28 = vpop.f32.mrf.mxu2 }
 0x218   : > { %v2581_v59 = vadd.f32 %v2580_v23, %v2468_v34 }
 0x219   : > { %v2470_v5 = vpop.f32.mrf.mxu3  ;;  %v2244_v40 = vpop.f32.mrf.mxu1 }
 0x21a   : > { %2638 = vst.msk [vmem:[%s4638_s18 + $0x98] sm:$0xff] %vm5411_vm7, %v2581_v59  ;;  %v2688_v49 = vsel %vm5412_vm12, %v2581_v59, 0.0  ;;  %v2739_v51 = vmul.f32 %v2581_v59, %v2581_v59  ;;  %v2245_v52 = vadd.f32 %v2244_v40, %v5413_v60  ;;  %v2586_v7 = vpop.f32.mrf.mxu0  ;;  %vm5431_vm7 = vmmov %vm5325_vm0 }
 0x21b   : > { %v2689_v44 = vadd.f32 %v2688_v49, %v2687_v1  ;;  %vm5433_vm12 = vmmov %vm5325_vm0 }
 0x21c   : > { %v2789_v29 = vsel %vm5414_vm13, %v2739_v51, 0.0  ;;  %v2358_v54 = vadd.f32 %v2357_v28, %v2245_v52  ;;  %vm5434_vm13 = vmmov %vm5325_vm0 }
 0x21d   : > { %v2790_v56 = vadd.f32 %v2789_v29, %v2788_v48  ;;  %v5428_v48 = vld [vmem:[#allocation12_spill] sm:$0xff] }
 0x21e   : > { %v2471_v35 = vadd.f32 %v2470_v5, %v2358_v54 }
 0x21f   : > { %v2360_v12 = vpop.f32.mrf.mxu2 }
 0x220   : > { %v2584_v22 = vadd.f32 %v2583_v25, %v2471_v35 }
 0x221   : > { %v2473_v50 = vpop.f32.mrf.mxu3  ;;  %v2247_v17 = vpop.f32.mrf.mxu1 }
 0x222   : > { %2639 = vst.msk [vmem:[%s4638_s18 + $0xa0] sm:$0xff] %vm5415_vm15, %v2584_v22  ;;  %v2690_v24 = vsel %vm5416_vm6, %v2584_v22, 0.0  ;;  %v2740_v43 = vmul.f32 %v2584_v22, %v2584_v22  ;;  %v2248_v53 = vadd.f32 %v2247_v17, %v5417_v3  ;;  %v2589_v6 = vpop.f32.mrf.mxu0  ;;  %vm5435_vm15 = vmmov %vm5325_vm0 }
 0x223   : > { %v2691_v20 = vadd.f32 %v2690_v24, %v2689_v44  ;;  %vm5437_vm6 = vmmov %vm5325_vm0 }
 0x224   : > { %v2791_v58 = vsel %vm5325_vm0, %v2740_v43, 0.0  ;;  %v2361_v46 = vadd.f32 %v2360_v12, %v2248_v53 }
 0x225   : > { %v2792_v33 = vadd.f32 %v2791_v58, %v2790_v56  ;;  %v5432_v56 = vld [vmem:[#allocation26_spill] sm:$0xff] }
 0x226   : > { %v2474_v62 = vadd.f32 %v2473_v50, %v2361_v46 }
 0x227   : > { %v2363_v57 = vpop.f32.mrf.mxu2 }
 0x228   : > { %v2587_v16 = vadd.f32 %v2586_v7, %v2474_v62 }
 0x229   : > { %v2476_v27 = vpop.f32.mrf.mxu3  ;;  %v2250_v55 = vpop.f32.mrf.mxu1 }
 0x22a   : > { %2640 = vst.msk [vmem:[%s4638_s18 + $0xa8] sm:$0xff] %vm5418_vm11, %v2587_v16  ;;  %v2692_v42 = vsel %vm5419_vm9, %v2587_v16, 0.0  ;;  %v2741_v61 = vmul.f32 %v2587_v16, %v2587_v16  ;;  %v2251_v4 = vadd.f32 %v2250_v55, %v5420_v18  ;;  %v2592_v19 = vpop.f32.mrf.mxu0  ;;  %vm5438_vm11 = vmmov %vm5325_vm0 }
 0x22b   : > { %v2693_v38 = vadd.f32 %v2692_v42, %v2691_v20  ;;  %vm5440_vm9 = vmmov %vm5325_vm0 }
 0x22c   : > { %v2793_v39 = vsel %vm5421_vm8, %v2741_v61, 0.0  ;;  %v2364_v45 = vadd.f32 %v2363_v57, %v2251_v4  ;;  %vm5441_vm8 = vmmov %vm5325_vm0 }
 0x22d   : > { %v2794_v13 = vadd.f32 %v2793_v39, %v2792_v33  ;;  %v5436_v33 = vld [vmem:[#allocation10_spill] sm:$0xff] }
 0x22e   : > { %v2477_v31 = vadd.f32 %v2476_v27, %v2364_v45 }
 0x22f   : > { %v2366_v63 = vpop.f32.mrf.mxu2 }
 0x230   : > { %v2590_v23 = vadd.f32 %v2589_v6, %v2477_v31 }
 0x231   : > { %v2479_v10 = vpop.f32.mrf.mxu3  ;;  %v2253_v0 = vpop.f32.mrf.mxu1 }
 0x232   : > { %2641 = vst.msk [vmem:[%s4638_s18 + $0xb0] sm:$0xff] %vm5422_vm2, %v2590_v23  ;;  %v2694_v37 = vsel %vm5423_vm14, %v2590_v23, 0.0  ;;  %v2742_v2 = vmul.f32 %v2590_v23, %v2590_v23  ;;  %v2254_v14 = vadd.f32 %v2253_v0, %v5424_v36  ;;  %v2595_v32 = vpop.f32.mrf.mxu0  ;;  %vm5442_vm2 = vmmov %vm5325_vm0 }
 0x233   : > { %v2695_v11 = vadd.f32 %v2694_v37, %v2693_v38  ;;  %vm5444_vm14 = vmmov %vm5325_vm0 }
 0x234   : > { %v2795_v47 = vsel %vm5425_vm10, %v2742_v2, 0.0  ;;  %v2367_v26 = vadd.f32 %v2366_v63, %v2254_v14  ;;  %vm5445_vm10 = vmmov %vm5325_vm0 }
 0x235   : > { %v2796_v9 = vadd.f32 %v2795_v47, %v2794_v13  ;;  %v5439_v13 = vld [vmem:[#allocation33_spill] sm:$0xff] }
 0x236   : > { %v2480_v41 = vadd.f32 %v2479_v10, %v2367_v26 }
 0x237   : > { %v2369_v30 = vpop.f32.mrf.mxu2 }
 0x238   : > { %v2593_v25 = vadd.f32 %v2592_v19, %v2480_v41 }
 0x239   : > { %v2482_v21 = vpop.f32.mrf.mxu3  ;;  %v2256_v1 = vpop.f32.mrf.mxu1 }
 0x23a   : > { %2642 = vst.msk [vmem:[%s4638_s18 + $0xb8] sm:$0xff] %vm5426_vm3, %v2593_v25  ;;  %v2696_v15 = vsel %vm5427_vm5, %v2593_v25, 0.0  ;;  %v2743_v8 = vmul.f32 %v2593_v25, %v2593_v25  ;;  %v2257_v34 = vadd.f32 %v2256_v1, %v5428_v48  ;;  %v2598_v28 = vpop.f32.mrf.mxu0  ;;  %vm5446_vm3 = vmmov %vm5325_vm0 }
 0x23b   : > { %v2697_v5 = vadd.f32 %v2696_v15, %v2695_v11  ;;  %vm5448_vm5 = vmmov %vm5325_vm0 }
 0x23c   : > { %v2797_v59 = vsel %vm5429_vm1, %v2743_v8, 0.0  ;;  %v2370_v40 = vadd.f32 %v2369_v30, %v2257_v34  ;;  %vm5449_vm1 = vmmov %vm5325_vm0 }
 0x23d   : > { %v2798_v49 = vadd.f32 %v2797_v59, %v2796_v9  ;;  %v5443_v9 = vld [vmem:[#allocation30_spill] sm:$0xff] }
 0x23e   : > { %v2483_v51 = vadd.f32 %v2482_v21, %v2370_v40 }
 0x23f   : > { %v2372_v60 = vpop.f32.mrf.mxu2 }
 0x240   : > { %v2596_v7 = vadd.f32 %v2595_v32, %v2483_v51 }
 0x241   : > { %v2485_v52 = vpop.f32.mrf.mxu3  ;;  %v2259_v44 = vpop.f32.mrf.mxu1 }
 0x242   : > { %2643 = vst.msk [vmem:[%s4638_s18 + $0xc0] sm:$0xff] %vm5430_vm4, %v2596_v7  ;;  %v2698_v29 = vsel %vm5431_vm7, %v2596_v7, 0.0  ;;  %v2744_v54 = vmul.f32 %v2596_v7, %v2596_v7  ;;  %v2260_v35 = vadd.f32 %v2259_v44, %v5432_v56  ;;  %v2601_v12 = vpop.f32.mrf.mxu0  ;;  %vm5450_vm4 = vmmov %vm5325_vm0 }
 0x243   : > { %v2699_v50 = vadd.f32 %v2698_v29, %v2697_v5  ;;  %vm5452_vm7 = vmmov %vm5325_vm0 }
 0x244   : > { %v2799_v22 = vsel %vm5433_vm12, %v2744_v54, 0.0  ;;  %v2373_v17 = vadd.f32 %v2372_v60, %v2260_v35  ;;  %vm5453_vm12 = vmmov %vm5325_vm0 }
 0x245   : > { %v2800_v24 = vadd.f32 %v2799_v22, %v2798_v49  ;;  %v5447_v49 = vld [vmem:[#allocation39_spill] sm:$0xff]  ;;  %v5451_v22 = vld [vmem:[#allocation41_spill] sm:$0xff] }
 0x246   : > { %v2486_v43 = vadd.f32 %v2485_v52, %v2373_v17 }
 0x247   : > { %v2375_v3 = vpop.f32.mrf.mxu2 }
 0x248   : > { %v2599_v6 = vadd.f32 %v2598_v28, %v2486_v43 }
 0x249   : > { %v2488_v53 = vpop.f32.mrf.mxu3  ;;  %v2262_v20 = vpop.f32.mrf.mxu1 }
 0x24a   : > { %2644 = vst.msk [vmem:[%s4638_s18 + $0xc8] sm:$0xff] %vm5434_vm13, %v2599_v6  ;;  %v2700_v58 = vsel %vm5435_vm15, %v2599_v6, 0.0  ;;  %v2745_v46 = vmul.f32 %v2599_v6, %v2599_v6  ;;  %v2263_v62 = vadd.f32 %v2262_v20, %v5436_v33  ;;  %v2604_v55 = vpop.f32.mrf.mxu0  ;;  %vm5454_vm13 = vmmov %vm5325_vm0 }
 0x24b   : > { %v2701_v57 = vadd.f32 %v2700_v58, %v2699_v50  ;;  %vm5456_vm15 = vmmov %vm5325_vm0 }
 0x24c   : > { %v2801_v27 = vsel %vm5437_vm6, %v2745_v46, 0.0  ;;  %v2376_v16 = vadd.f32 %v2375_v3, %v2263_v62  ;;  %vm5457_vm6 = vmmov %vm5325_vm0 }
 0x24d   : > { %v2802_v42 = vadd.f32 %v2801_v27, %v2800_v24  ;;  %v5455_v27 = vld [vmem:[#allocation24_spill] sm:$0xff] }
 0x24e   : > { %v2489_v61 = vadd.f32 %v2488_v53, %v2376_v16 }
 0x24f   : > { %v2378_v18 = vpop.f32.mrf.mxu2 }
 0x250   : > { %v2602_v19 = vadd.f32 %v2601_v12, %v2489_v61 }
 0x251   : > { %v2491_v4 = vpop.f32.mrf.mxu3  ;;  %v2265_v38 = vpop.f32.mrf.mxu1 }
 0x252   : > { %2645 = vst.msk [vmem:[%s4638_s18 + $0xd0] sm:$0xff] %vm5325_vm0, %v2602_v19  ;;  %v2702_v39 = vsel %vm5438_vm11, %v2602_v19, 0.0  ;;  %v2746_v45 = vmul.f32 %v2602_v19, %v2602_v19  ;;  %v2266_v31 = vadd.f32 %v2265_v38, %v5439_v13  ;;  %v2607_v2 = vpop.f32.mrf.mxu0  ;;  %vm5458_vm11 = vmmov %vm5325_vm0 }
 0x253   : > { %v2703_v63 = vadd.f32 %v2702_v39, %v2701_v57 }
 0x254   : > { %v2803_v10 = vsel %vm5440_vm9, %v2746_v45, 0.0  ;;  %v2379_v23 = vadd.f32 %v2378_v18, %v2266_v31  ;;  %vm2821_vm9 = vcmask 1040384  }
 0x255   : > { %v2804_v0 = vadd.f32 %v2803_v10, %v2802_v42 }
 0x256   : > { %v2492_v37 = vadd.f32 %v2491_v4, %v2379_v23 }
 0x257   : > { %v2381_v36 = vpop.f32.mrf.mxu2 }
 0x258   : > { %v2605_v14 = vadd.f32 %v2604_v55, %v2492_v37 }
 0x259   : > { %v2494_v32 = vpop.f32.mrf.mxu3  ;;  %v2268_v11 = vpop.f32.mrf.mxu1 }
 0x25a   : > { %2646 = vst.msk [vmem:[%s4638_s18 + $0xd8] sm:$0xff] %vm5441_vm8, %v2605_v14  ;;  %v2704_v47 = vsel %vm5442_vm2, %v2605_v14, 0.0  ;;  %v2747_v26 = vmul.f32 %v2605_v14, %v2605_v14  ;;  %v2269_v41 = vadd.f32 %v2268_v11, %v5443_v9  ;;  %v2610_v34 = vpop.f32.mrf.mxu0  ;;  %vm2823_vm8 = vcmask 517120  }
 0x25b   : > { %v2705_v30 = vadd.f32 %v2704_v47, %v2703_v63 }
 0x25c   : > { %v2805_v21 = vsel %vm5444_vm14, %v2747_v26, 0.0  ;;  %v2382_v25 = vadd.f32 %v2381_v36, %v2269_v41 }
 0x25d   : > { %v2806_v1 = vadd.f32 %v2805_v21, %v2804_v0 }
 0x25e   : > { %v2495_v15 = vadd.f32 %v2494_v32, %v2382_v25 }
 0x25f   : > { %v2384_v8 = vpop.f32.mrf.mxu2 }
 0x260   : > { %v2608_v48 = vadd.f32 %v2607_v2, %v2495_v15 }
 0x261   : > { %v2271_v28 = vpop.f32.mrf.mxu1  ;;  %v2497_v5 = vpop.f32.mrf.mxu3 }
 0x262   : > { %2647 = vst.msk [vmem:[%s4638_s18 + $0xe0] sm:$0xff] %vm5445_vm10, %v2608_v48  ;;  %v2706_v59 = vsel %vm5446_vm3, %v2608_v48, 0.0  ;;  %v2748_v40 = vmul.f32 %v2608_v48, %v2608_v48  ;;  %v2272_v51 = vadd.f32 %v2271_v28, %v5447_v49  ;;  %v2613_v3 = vpop.f32.mrf.mxu0 }
 0x263   : > { %v2707_v60 = vadd.f32 %v2706_v59, %v2705_v30 }
 0x264   : > { %v2807_v52 = vsel %vm5448_vm5, %v2748_v40, 0.0  ;;  %v2385_v7 = vadd.f32 %v2384_v8, %v2272_v51 }
 0x265   : > { %v2808_v44 = vadd.f32 %v2807_v52, %v2806_v1 }
 0x266   : > { %v2498_v29 = vadd.f32 %v2497_v5, %v2385_v7 }
 0x267   : > { %v2387_v56 = vpop.f32.mrf.mxu2 }
 0x268   : > { %v2611_v54 = vadd.f32 %v2610_v34, %v2498_v29 }
 0x269   : > { %v2274_v35 = vpop.f32.mrf.mxu1  ;;  %v2500_v43 = vpop.f32.mrf.mxu3 }
 0x26a   : > { %2648 = vst.msk [vmem:[%s4638_s18 + $0xe8] sm:$0xff] %vm5449_vm1, %v2611_v54  ;;  %v2708_v12 = vsel %vm5450_vm4, %v2611_v54, 0.0  ;;  %v2749_v50 = vmul.f32 %v2611_v54, %v2611_v54  ;;  %v2275_v17 = vadd.f32 %v2274_v35, %v5451_v22  ;;  %v2616_v38 = vpop.f32.mrf.mxu0 }
 0x26b   : > { %v2709_v24 = vadd.f32 %v2708_v12, %v2707_v60 }
 0x26c   : > { %v2809_v53 = vsel %vm5452_vm7, %v2749_v50, 0.0  ;;  %v2388_v6 = vadd.f32 %v2387_v56, %v2275_v17 }
 0x26d   : > { %v2810_v20 = vadd.f32 %v2809_v53, %v2808_v44 }
 0x26e   : > { %v2501_v58 = vadd.f32 %v2500_v43, %v2388_v6 }
 0x26f   : > { %v2390_v55 = vpop.f32.mrf.mxu2 }
 0x270   : > { %v2614_v46 = vadd.f32 %v2613_v3, %v2501_v58 }
 0x271   : > { %v2277_v33 = vpop.f32.mrf.mxu1  ;;  %v2503_v61 = vpop.f32.mrf.mxu3 }
 0x272   : > { %2649 = vst.msk [vmem:[%s4638_s18 + $0xf0] sm:$0xff] %vm5453_vm12, %v2614_v46  ;;  %v2710_v62 = vsel %vm5454_vm13, %v2614_v46, 0.0  ;;  %v2750_v57 = vmul.f32 %v2614_v46, %v2614_v46  ;;  %v2278_v16 = vadd.f32 %v2277_v33, %v5455_v27 }
 0x273   : > { %v2711_v42 = vadd.f32 %v2710_v62, %v2709_v24 }
 0x274   : > { %v2811_v18 = vsel %vm5456_vm15, %v2750_v57, 0.0  ;;  %v2391_v4 = vadd.f32 %v2390_v55, %v2278_v16 }
 0x275   : > { %v2812_v19 = vadd.f32 %v2811_v18, %v2810_v20 }
 0x276   : > { %v2504_v39 = vadd.f32 %v2503_v61, %v2391_v4 }
 0x278   : > { %v2617_v45 = vadd.f32 %v2616_v38, %v2504_v39 }
 0x27a   : > { %2650 = vst.msk [vmem:[%s4638_s18 + $0xf8] sm:$0xff] %vm5457_vm6, %v2617_v45  ;;  %v2712_v13 = vsel %vm5325_vm0, %v2617_v45, 0.0  ;;  %v2751_v31 = vmul.f32 %v2617_v45, %v2617_v45 }
 0x27b   : > { %v2713_v63 = vadd.f32 %v2712_v13, %v2711_v42 }
 0x27c   : > { %v2813_v10 = vsel %vm5458_vm11, %v2751_v31, 0.0 }
 0x27d   : > { %v2714_v23 = vrot.slane %v2713_v63, 4  ;;  %v2814_v0 = vadd.f32 %v2813_v10, %v2812_v19 }
 0x27f   : > { %v2715_v37 = vadd.f32 %v2714_v23, %v2713_v63  ;;  %v2815_v2 = vrot.slane %v2814_v0, 4 }
 0x281   : > { %v2716_v36 = vrot.slane %v2715_v37, 2  ;;  %v2816_v14 = vadd.f32 %v2815_v2, %v2814_v0 }
 0x283   : > { %v2717_v32 = vadd.f32 %v2716_v36, %v2715_v37  ;;  %v2817_v11 = vrot.slane %v2816_v14, 2 }
 0x285   : > { %v2718_v47 = vrot.slane %v2717_v32, 1  ;;  %v2818_v26 = vadd.f32 %v2817_v11, %v2816_v14 }
 0x287   : > { %v2819_v9 = vrot.slane %v2818_v26, 1  ;;  %v2719_v41 = vadd.f32 %v2718_v47, %v2717_v32 }
 0x289   : > { %v2820_v30 = vadd.f32 %v2819_v9, %v2818_v26 }
 0x28b   : > { %v2822_v21 = vsel %vm2821_vm9, %v2719_v41, %v2820_v30 }
 0x28c   : > { %2824 = vst.msk [vmem:[%s301_s30] sm:$0x3] %vm2823_vm8, %v2822_v21 }
 0x28d PF: > { %p18_p4 = scmp.ge.s32.totalorder %s3441_s9, 4   ;;  %s5459_s21 = smov %s3348_s22 }
 0x28e   : > { %s5460_s22 = smov %s3352_s23  ;;  %s5461_s23 = smov %s3454_s14 }
 0x28f   : > { %s5462_s24 = smov %s3441_s9  ;;  %20 = sbr.rel (!%p18_p4) target bundleno = 4 (0x4), region = 96 }
 0x294   :  { %2860 = vsyncpa [#allocation4], 1 }
 0x295   :  { %2862 = vsyncpa [#allocation4 + $0x1], 1 }
 0x296   :  { %2863 = vsyncpa [#allocation6], 1 }

// kernel: _lambda_.4
= control target key start
LH: loop header
LB: loop body
LE: loop exit
PB: predicated region body
PF: predicated region fallthrough
CT: control target
= control target key end

     0   :  { %12 = vsyncpa [#allocation4], 0  ;;  %s3307_s21 = smov 0   ;;  %s4799_s0 = inlined_call_operand.vmem [shape: f32[2,256,64], index: 0, kind: input, shape index: {}]   ;;  %s4800_s1 = inlined_call_operand.vmem [shape: f32[1,64], index: 1, kind: input, shape index: {}]   ;;  %s4801_s2 = inlined_call_operand.vmem [shape: f32[1,64], index: 2, kind: input, shape index: {}]   ;;  %s4802_s3 = inlined_call_operand.hbm [shape: f32[576,64], index: 3, kind: input, shape index: {}]   ;;  %s4803_s4 = inlined_call_operand.vmem [shape: f32[1,64], index: 4, kind: input, shape index: {}]   ;;  %s4804_s5 = inlined_call_operand.vmem [shape: f32[2,256,64], index: 5, kind: output, shape index: {0}]   ;;  %s4805_s6 = inlined_call_operand.vmem [shape: f32[2,2,64], index: 6, kind: output, shape index: {1}]  }
   0x1 LB: > { %s202_s24 = sshll.u32 %s4802_s3, 4  ;;  %s2933_s25 = sadd.s32 4294967295, %s3265_s21   ;;  %s3265_s21 = sphi %s3307_s21, %s18_s21   ;;  %s203_s24 = int_to_ptr.hbm [resolvable:$true] %s202_s24 }
   0x2   : > { %p2935_p0 = scmp.ge.s32.totalorder %s3265_s21, 1  ;;  %p185_p1 = scmp.lt.s32.totalorder %s3265_s21, 3 }
   0x3   : > { %p3037_p2 = scmp.eq.s32.totalorder %s2933_s25, 0  ;;  %s3267_s26 = smov [#allocation3]  }
   0x4   : > { %p186_p3 = pnand %p2935_p0, %p185_p1  ;;  %s204_s27 = sshll.u32 %s3267_s26, 4  ;;  %s205_s27 = int_to_ptr.vmem [resolvable:$true] %s204_s27 }
   0x5   : > { %s3268_s28 = smov 128   ;;  %s3269_s29 = smov 8  }
   0x6   : > { %p3033_p4 = pneg %p186_p3  ;;  %231 = sbr.rel (%p186_p3) target bundleno = 626 (0x272), region = 40 }
   0x8   : > { %p3034_p5 = pnand %p3037_p2, %p3033_p4 }
   0xa   : > { %3036 = dma.hbm_to_vmem [thread:$0]  (!%p3034_p5), %s203_s24, 9216, %s205_s27, [#allocation4], %s3268_s28, %s3268_s28, %s3269_s29  }
   0xb   : > { %3260 = dma.done.wait (%p3037_p2), [#allocation4], 9216  }
   0xc   : > { %3262 = vsyncadd (%p3037_p2), [#allocation4], 4294958080  ;;  %p266_p6 = scmp.lt.s32.totalorder %s2933_s25, 1  ;;  %vm4846_vm0 = vcmask 523264   ;;  %v3270_v0 = vmov 0.0   ;;  %s3271_s14 = smov 64  }
   0xd   : > { %418 = vst.msk [vmem:[#allocation2 + $0x8] sm:$0xff] %vm4846_vm0, %v3270_v0  ;;  %v3339_v3 = vld [vmem:[%s4800_s1] ss:$0 sm:$0xff] }
   0xe   : > { %s5283_s25 = smov (!%p266_p6, %s2933_s25), 1  ;;  %417 = vst.msk [vmem:[#allocation2] sm:$0xff] %vm4846_vm0, %v3270_v0  ;;  %v3344_v4 = vld [vmem:[%s4801_s2] ss:$0 sm:$0xff] }
   0xf   : > { %419 = vst.msk [vmem:[#allocation2 + $0x10] sm:$0xff] %vm4846_vm0, %v3270_v0  ;;  %s2979_s30 = sshll.u32 %s5283_s25, 8  ;;  %s2944_s28 = sshll.u32 %s5283_s25, 1 }
  0x10   : > { %420 = vst.msk [vmem:[#allocation2 + $0x118] sm:$0xff] %vm4846_vm0, %v3270_v0  ;;  %s3330_s9 = scalar_lea.vmem %s4799_s0, %s2979_s30  ;;  %s4472_s24 = scalar_lea.vmem %s4804_s5, %s2979_s30 }
  0x11   : > { %421 = vst.msk [vmem:[#allocation2 + $0x120] sm:$0xff] %vm4846_vm0, %v3270_v0  ;;  %v294_v1 = vld [vmem:[%s3330_s9 + $0x70] sm:$0xff]  ;;  %v303_v5 = vld [vmem:[%s3330_s9 + $0xb8] sm:$0xff]  ;;  %v296_v13 = vld [vmem:[%s3330_s9 + $0x80] sm:$0xff]  ;;  %s279_s7 = scalar_lea.vmem %s4805_s6, %s2944_s28 }
  0x12   : > { %422 = vst.msk [vmem:[#allocation2 + $0x128] sm:$0xff] %vm4846_vm0, %v3270_v0  ;;  %v302_v2 = vld [vmem:[%s3330_s9 + $0xb0] sm:$0xff]  ;;  %v330_v7 = vmul.f32 %v3339_v3, %v294_v1  ;;  %v339_v9 = vmul.f32 %v3339_v3, %v303_v5  ;;  %v295_v10 = vld [vmem:[%s3330_s9 + $0x78] sm:$0xff]  ;;  %v332_v16 = vmul.f32 %v3339_v3, %v296_v13  ;;  %v280_v17 = vld [vmem:[%s3330_s9] sm:$0xff] }
  0x13   : > { %v286_v6 = vld [vmem:[%s3330_s9 + $0x30] sm:$0xff]  ;;  %v338_v8 = vmul.f32 %v3339_v3, %v302_v2  ;;  %v287_v12 = vld [vmem:[%s3330_s9 + $0x38] sm:$0xff]  ;;  %v331_v14 = vmul.f32 %v3339_v3, %v295_v10  ;;  %v305_v22 = vld [vmem:[%s3330_s9 + $0xc8] sm:$0xff]  ;;  %v316_v26 = vmul.f32 %v3339_v3, %v280_v17 }
  0x14   : > { %v322_v11 = vmul.f32 %v3339_v3, %v286_v6  ;;  %v323_v15 = vmul.f32 %v3339_v3, %v287_v12  ;;  %v366_v18 = vadd.f32 %v3344_v4, %v330_v7  ;;  %v375_v20 = vadd.f32 %v3344_v4, %v339_v9  ;;  %v289_v23 = vld [vmem:[%s3330_s9 + $0x48] sm:$0xff]  ;;  %v298_v27 = vld [vmem:[%s3330_s9 + $0x90] sm:$0xff]  ;;  %v304_v28 = vld [vmem:[%s3330_s9 + $0xc0] sm:$0xff] }
  0x15   : > { %v374_v19 = vadd.f32 %v3344_v4, %v338_v8  ;;  %v367_v24 = vadd.f32 %v3344_v4, %v331_v14  ;;  %v368_v32 = vadd.f32 %v3344_v4, %v332_v16  ;;  %v282_v33 = vld [vmem:[%s3330_s9 + $0x10] sm:$0xff]  ;;  %v307_v34 = vld [vmem:[%s3330_s9 + $0xd8] sm:$0xff]  ;;  %v341_v37 = vmul.f32 %v3339_v3, %v305_v22  ;;  %v288_v57 = vld [vmem:[%s3330_s9 + $0x40] sm:$0xff] }
  0x16   : > { %v358_v21 = vadd.f32 %v3344_v4, %v322_v11  ;;  %v359_v25 = vadd.f32 %v3344_v4, %v323_v15  ;;  %v398_v29 = vmax.f32 %v366_v18, 0.0  ;;  %v407_v31 = vmax.f32 %v375_v20, 0.0  ;;  %v290_v49 = vld [vmem:[%s3330_s9 + $0x50] sm:$0xff]  ;;  %v299_v50 = vld [vmem:[%s3330_s9 + $0x98] sm:$0xff]  ;;  %v297_v58 = vld [vmem:[%s3330_s9 + $0x88] sm:$0xff] }
  0x17   : > { %v406_v30 = vmax.f32 %v374_v19, 0.0  ;;  %v399_v36 = vmax.f32 %v367_v24, 0.0  ;;  %v352_v38 = vadd.f32 %v3344_v4, %v316_v26  ;;  %v325_v39 = vmul.f32 %v3339_v3, %v289_v23  ;;  %v283_v62 = vld [vmem:[%s3330_s9 + $0x18] sm:$0xff]  ;;  %v308_v63 = vld [vmem:[%s3330_s9 + $0xe0] sm:$0xff]  ;;  %v1064_v7 = vld [vmem:[#allocation2 + $0x8] sm:$0xff] }
  0x18   : > { %v390_v35 = vmax.f32 %v358_v21, 0.0  ;;  %437 = vst.msk [vmem:[#allocation2 + $0x88] sm:$0xff] %vm4846_vm0, %v398_v29  ;;  %v334_v40 = vmul.f32 %v3339_v3, %v298_v27  ;;  %v340_v41 = vmul.f32 %v3339_v3, %v304_v28  ;;  %v391_v42 = vmax.f32 %v359_v25, 0.0  ;;  %v292_v24 = vld [vmem:[%s3330_s9 + $0x60] sm:$0xff]  ;;  %v301_v25 = vld [vmem:[%s3330_s9 + $0xa8] sm:$0xff] }
  0x19   : > { %445 = vst.msk [vmem:[#allocation2 + $0xc8] sm:$0xff] %vm4846_vm0, %v406_v30  ;;  %v377_v43 = vadd.f32 %v3344_v4, %v341_v37  ;;  %v318_v44 = vmul.f32 %v3339_v3, %v282_v33  ;;  %v343_v45 = vmul.f32 %v3339_v3, %v307_v34  ;;  %v400_v46 = vmax.f32 %v368_v32, 0.0  ;;  %v281_v30 = vld [vmem:[%s3330_s9 + $0x8] sm:$0xff] }
  0x1a   : > { %446 = vst.msk [vmem:[#allocation2 + $0xd0] sm:$0xff] %vm4846_vm0, %v407_v31  ;;  %v361_v47 = vadd.f32 %v3344_v4, %v325_v39  ;;  %v370_v48 = vadd.f32 %v3344_v4, %v334_v40  ;;  %v384_v51 = vmax.f32 %v352_v38, 0.0  ;;  %v376_v52 = vadd.f32 %v3344_v4, %v340_v41  ;;  %v306_v31 = vld [vmem:[%s3330_s9 + $0xd0] sm:$0xff]  ;;  %v293_v37 = vld [vmem:[%s3330_s9 + $0x68] sm:$0xff] }
  0x1b   : > { %429 = vst.msk [vmem:[#allocation2 + $0x48] sm:$0xff] %vm4846_vm0, %v390_v35  ;;  %v326_v53 = vmul.f32 %v3339_v3, %v290_v49  ;;  %v409_v54 = vmax.f32 %v377_v43, 0.0  ;;  %v354_v55 = vadd.f32 %v3344_v4, %v318_v44  ;;  %v335_v56 = vmul.f32 %v3339_v3, %v299_v50 }
  0x1c   : > { %438 = vst.msk [vmem:[#allocation2 + $0x90] sm:$0xff] %vm4846_vm0, %v399_v36  ;;  %v393_v59 = vmax.f32 %v361_v47, 0.0  ;;  %v379_v60 = vadd.f32 %v3344_v4, %v343_v45  ;;  %v324_v61 = vmul.f32 %v3339_v3, %v288_v57  ;;  %v402_v0 = vmax.f32 %v370_v48, 0.0  ;;  %v1065_v47 = vld [vmem:[#allocation2 + $0x10] sm:$0xff]  ;;  %v285_v57 = vld [vmem:[%s3330_s9 + $0x28] sm:$0xff] }
  0x1d   : > { %430 = vst.msk [vmem:[#allocation2 + $0x50] sm:$0xff] %vm4846_vm0, %v391_v42  ;;  %v362_v1 = vadd.f32 %v3344_v4, %v326_v53  ;;  %v333_v2 = vmul.f32 %v3339_v3, %v297_v58  ;;  %v319_v5 = vmul.f32 %v3339_v3, %v283_v62  ;;  %v408_v8 = vmax.f32 %v376_v52, 0.0  ;;  %v300_v62 = vld [vmem:[%s3330_s9 + $0xa0] sm:$0xff] }
  0x1e   : > { %439 = vst.msk [vmem:[#allocation2 + $0x98] sm:$0xff] %vm4846_vm0, %v400_v46  ;;  %v371_v9 = vadd.f32 %v3344_v4, %v335_v56  ;;  %v344_v10 = vmul.f32 %v3339_v3, %v308_v63  ;;  %v386_v12 = vmax.f32 %v354_v55, 0.0  ;;  %v360_v13 = vadd.f32 %v3344_v4, %v324_v61  ;;  %v291_v61 = vld [vmem:[%s3330_s9 + $0x58] sm:$0xff] }
  0x1f   : > { %v1080_v6 = vld [vmem:[#allocation2 + $0x88] sm:$0xff]  ;;  %423 = vst.msk [vmem:[#allocation2 + $0x18] sm:$0xff] %vm4846_vm0, %v384_v51  ;;  %v411_v16 = vmax.f32 %v379_v60, 0.0  ;;  %v369_v17 = vadd.f32 %v3344_v4, %v333_v2  ;;  %v394_v19 = vmax.f32 %v362_v1, 0.0  ;;  %v355_v20 = vadd.f32 %v3344_v4, %v319_v5  ;;  %v284_v2 = vld [vmem:[%s3330_s9 + $0x20] sm:$0xff] }
  0x20   : > { %v1088_v11 = vld [vmem:[#allocation2 + $0xc8] sm:$0xff]  ;;  %448 = vst.msk [vmem:[#allocation2 + $0xe0] sm:$0xff] %vm4846_vm0, %v409_v54  ;;  %v403_v22 = vmax.f32 %v371_v9, 0.0  ;;  %v380_v23 = vadd.f32 %v3344_v4, %v344_v10  ;;  %v392_v27 = vmax.f32 %v360_v13, 0.0  ;;  %v328_v28 = vmul.f32 %v3339_v3, %v292_v24 }
  0x21   : > { %v3052_v14 = vpack.i.bf16 %v1088_v11, %v1080_v6  ;;  %v1089_v15 = vld [vmem:[#allocation2 + $0xd0] sm:$0xff]  ;;  %432 = vst.msk [vmem:[#allocation2 + $0x60] sm:$0xff] %vm4846_vm0, %v393_v59  ;;  %v337_v29 = vmul.f32 %v3339_v3, %v301_v25  ;;  %v401_v34 = vmax.f32 %v369_v17, 0.0  ;;  %v317_v35 = vmul.f32 %v3339_v3, %v281_v30  ;;  %v309_v5 = vld [vmem:[%s3330_s9 + $0xe8] sm:$0xff]  ;;  %v1906_v25 = vld [vmem:[#allocation3 + $0x70] sm:$0xff] }
  0x22   : > { %v3062_v18 = vpack.i.bf16 %v1089_v15, %v1064_v7  ;;  %441 = vst.msk [vmem:[#allocation2 + $0xa8] sm:$0xff] %vm4846_vm0, %v402_v0  ;;  %v1072_v21 = vld [vmem:[#allocation2 + $0x48] sm:$0xff]  ;;  %v342_v36 = vmul.f32 %v3339_v3, %v306_v31  ;;  %v387_v38 = vmax.f32 %v355_v20, 0.0  ;;  %v364_v39 = vadd.f32 %v3344_v4, %v328_v28 }
  0x23   : > { %3053 = vrot.lane.b32.xlu0 %v3052_v14, %s3271_s14  ;;  %447 = vst.msk [vmem:[#allocation2 + $0xd8] sm:$0xff] %vm4846_vm0, %v408_v8  ;;  %v1081_v26 = vld [vmem:[#allocation2 + $0x90] sm:$0xff]  ;;  %v373_v40 = vadd.f32 %v3344_v4, %v337_v29  ;;  %v329_v41 = vmul.f32 %v3339_v3, %v293_v37  ;;  %v412_v43 = vmax.f32 %v380_v23, 0.0  ;;  %v353_v44 = vadd.f32 %v3344_v4, %v317_v35  ;;  %v1907_v24 = vld [vmem:[#allocation3 + $0x78] sm:$0xff] }
  0x24   : > { %3063 = vrot.lane.b32.xlu1 %v3062_v18, %s3271_s14  ;;  %425 = vst.msk [vmem:[#allocation2 + $0x28] sm:$0xff] %vm4846_vm0, %v386_v12  ;;  %v1073_v32 = vld [vmem:[#allocation2 + $0x50] sm:$0xff]  ;;  %v3057_v42 = vpack.i.bf16 %v1081_v26, %v1072_v21  ;;  %v378_v45 = vadd.f32 %v3344_v4, %v342_v36  ;;  %v396_v48 = vmax.f32 %v364_v39, 0.0  ;;  %v321_v60 = vmul.f32 %v3339_v3, %v285_v57 }
  0x25   : > { %v1082_v33 = vld [vmem:[#allocation2 + $0x98] sm:$0xff]  ;;  %450 = vst.msk [vmem:[#allocation2 + $0xf0] sm:$0xff] %vm4846_vm0, %v411_v16  ;;  %v365_v49 = vadd.f32 %v3344_v4, %v329_v41  ;;  %v405_v50 = vmax.f32 %v373_v40, 0.0  ;;  %v385_v52 = vmax.f32 %v353_v44, 0.0  ;;  %v327_v0 = vmul.f32 %v3339_v3, %v291_v61  ;;  %2982 = vmatpush.msra.mxu2 %v1907_v24  ;;  %2983 = vmatpush.msra.mxu3 %v1907_v24  ;;  %v1904_v35 = vld [vmem:[#allocation3 + $0x60] sm:$0xff]  ;;  %v1903_v40 = vld [vmem:[#allocation3 + $0x58] sm:$0xff] }
  0x26   : > { %433 = vst.msk [vmem:[#allocation2 + $0x68] sm:$0xff] %vm4846_vm0, %v394_v19  ;;  %v3067_v46 = vpack.i.bf16 %v1082_v33, %v1073_v32  ;;  %v1066_v53 = vld [vmem:[#allocation2 + $0x18] sm:$0xff]  ;;  %v410_v56 = vmax.f32 %v378_v45, 0.0  ;;  %v336_v1 = vmul.f32 %v3339_v3, %v300_v62  ;;  %v357_v6 = vadd.f32 %v3344_v4, %v321_v60  ;;  %2064 = vmatpush.msra.mxu0 %v1907_v24  ;;  %v1902_v45 = vld [vmem:[#allocation3 + $0x50] sm:$0xff] }
  0x27   : > { %442 = vst.msk [vmem:[#allocation2 + $0xb0] sm:$0xff] %vm4846_vm0, %v403_v22  ;;  %v1091_v54 = vld [vmem:[#allocation2 + $0xe0] sm:$0xff]  ;;  %v397_v59 = vmax.f32 %v365_v49, 0.0  ;;  %v320_v7 = vmul.f32 %v3339_v3, %v284_v2  ;;  %v345_v8 = vmul.f32 %v3339_v3, %v309_v5  ;;  %v363_v11 = vadd.f32 %v3344_v4, %v327_v0  ;;  %2985 = vmatpush.msra.mxu2 %v1906_v25  ;;  %v1897_v0 = vld [vmem:[#allocation3 + $0x28] sm:$0xff]  ;;  %v1896_v2 = vld [vmem:[#allocation3 + $0x20] sm:$0xff] }
  0x28   : > { %431 = vst.msk [vmem:[#allocation2 + $0x58] sm:$0xff] %vm4846_vm0, %v392_v27  ;;  %v1075_v58 = vld [vmem:[#allocation2 + $0x60] sm:$0xff]  ;;  %v3082_v9 = vpack.i.bf16 %v1091_v54, %v1066_v53  ;;  %v372_v12 = vadd.f32 %v3344_v4, %v336_v1  ;;  %v389_v15 = vmax.f32 %v357_v6, 0.0  ;;  %v455_v29 = vlaneseq  ;;  %2981 = vmatpush.msra.mxu1 %v1907_v24  ;;  %2986 = vmatpush.msra.mxu3 %v1906_v25  ;;  %v1895_v6 = vld [vmem:[#allocation3 + $0x18] sm:$0xff] }
  0x29   : > { %440 = vst.msk [vmem:[#allocation2 + $0xa0] sm:$0xff] %vm4846_vm0, %v401_v34  ;;  %v1084_v63 = vld [vmem:[#allocation2 + $0xa8] sm:$0xff]  ;;  %v356_v16 = vadd.f32 %v3344_v4, %v320_v7  ;;  %v381_v17 = vadd.f32 %v3344_v4, %v345_v8  ;;  %v395_v19 = vmax.f32 %v363_v11, 0.0  ;;  %2065 = vmatpush.msra.mxu0 %v1906_v25  ;;  %v1905_v34 = vld [vmem:[#allocation3 + $0x68] sm:$0xff]  ;;  %v1898_v61 = vld [vmem:[#allocation3 + $0x30] sm:$0xff] }
  0x2a   : > { %v1090_v51 = vld [vmem:[#allocation2 + $0xd8] sm:$0xff]  ;;  %426 = vst.msk [vmem:[#allocation2 + $0x30] sm:$0xff] %vm4846_vm0, %v387_v38  ;;  %v3087_v13 = vpack.i.bf16 %v1084_v63, %v1075_v58  ;;  %v404_v3 = vmax.f32 %v372_v12, 0.0  ;;  %2984 = vmatpush.msra.mxu1 %v1906_v25  ;;  %v3472_v33 = vshrl.u32 %v455_v29, 7  ;;  %2988 = vmatpush.msra.mxu2 %v1905_v34 }
  0x2b   : > { %3058 = vrot.lane.b32.xlu0 %v3057_v42, %s3271_s14  ;;  %v3072_v55 = vpack.i.bf16 %v1090_v51, %v1065_v47  ;;  %451 = vst.msk [vmem:[#allocation2 + $0xf8] sm:$0xff] %vm4846_vm0, %v412_v43  ;;  %v388_v20 = vmax.f32 %v356_v16, 0.0  ;;  %v413_v21 = vmax.f32 %v381_v17, 0.0  ;;  %v1068_v4 = vld [vmem:[#allocation2 + $0x28] sm:$0xff]  ;;  %2989 = vmatpush.msra.mxu3 %v1905_v34  ;;  %v1900_v51 = vld [vmem:[#allocation3 + $0x40] sm:$0xff] }
  0x2c   : > { %3068 = vrot.lane.b32.xlu1 %v3067_v46, %s3271_s14  ;;  %435 = vst.msk [vmem:[#allocation2 + $0x78] sm:$0xff] %vm4846_vm0, %v396_v48  ;;  %v1093_v26 = vld [vmem:[#allocation2 + $0xf0] sm:$0xff]  ;;  %v492_v41 = vand.u32 15, %v3472_v33  ;;  %2991 = vmatpush.msra.mxu2 %v1904_v35  ;;  %v1901_v48 = vld [vmem:[#allocation3 + $0x48] sm:$0xff]  ;;  %v457_v60 = vadd.s32 8, %v3472_v33  ;;  %v459_v5 = vadd.s32 24, %v3472_v33 }
  0x2d   : > { %3073 = vrot.lane.b32.xlu2 %v3072_v55, %s3271_s14  ;;  %444 = vst.msk [vmem:[#allocation2 + $0xc0] sm:$0xff] %vm4846_vm0, %v405_v50  ;;  %v1076_v22 = vld [vmem:[#allocation2 + $0x68] sm:$0xff]  ;;  %v3102_v31 = vpack.i.bf16 %v1093_v26, %v1068_v4  ;;  %2066 = vmatpush.msra.mxu0 %v1905_v34  ;;  %v3482_v50 = vld [vmem:[#allocation2 + $0x17] sm:$0xff]  ;;  %v460_v16 = vadd.s32 32, %v3472_v33  ;;  %v461_v17 = vadd.s32 40, %v3472_v33  ;;  %v458_v26 = vadd.s32 16, %v3472_v33 }
  0x2e   : > { %424 = vst.msk [vmem:[#allocation2 + $0x20] sm:$0xff] %vm4846_vm0, %v385_v52  ;;  %v1085_v23 = vld [vmem:[#allocation2 + $0xb0] sm:$0xff]  ;;  %2992 = vmatpush.msra.mxu3 %v1904_v35  ;;  %2987 = vmatpush.msra.mxu1 %v1905_v34  ;;  %vm3478_vm1 = vcmp.ne.s32.totalorder %v492_v41, 0  ;;  %v499_v1 = vand.u32 15, %v457_v60  ;;  %v513_v12 = vand.u32 15, %v459_v5  ;;  %v1962_v5 = vld [vmem:[#allocation3 + $0x230] sm:$0xff] }
  0x2f   : > { %v1074_v10 = vld [vmem:[#allocation2 + $0x58] sm:$0xff]  ;;  %449 = vst.msk [vmem:[#allocation2 + $0xe8] sm:$0xff] %vm4846_vm0, %v410_v56  ;;  %v3097_v30 = vpack.i.bf16 %v1085_v23, %v1076_v22  ;;  %2994 = vmatpush.msra.mxu2 %v1903_v40  ;;  %2067 = vmatpush.msra.mxu0 %v1904_v35  ;;  %v1226_v55 = vsel %vm3478_vm1, %v3482_v50, 0.0  ;;  %v1899_v56 = vld [vmem:[#allocation3 + $0x38] sm:$0xff]  ;;  %v1892_v34 = vld [vmem:[#allocation3] sm:$0xff] }
  0x30   : > { %v1083_v14 = vld [vmem:[#allocation2 + $0xa0] sm:$0xff]  ;;  %436 = vst.msk [vmem:[#allocation2 + $0x80] sm:$0xff] %vm4846_vm0, %v397_v59  ;;  %2995 = vmatpush.msra.mxu3 %v1903_v40  ;;  %2990 = vmatpush.msra.mxu1 %v1904_v35  ;;  %vm3495_vm2 = vcmp.ne.s32.totalorder %v499_v1, 15  ;;  %vm3512_vm3 = vcmp.ne.s32.totalorder %v513_v12, 15  ;;  %v462_v35 = vadd.s32 48, %v3472_v33  ;;  %v1952_v60 = vld [vmem:[#allocation3 + $0x1e0] sm:$0xff] }
  0x31   : > { %v3077_v18 = vpack.i.bf16 %v1083_v14, %v1074_v10  ;;  %428 = vst.msk [vmem:[#allocation2 + $0x40] sm:$0xff] %vm4846_vm0, %v389_v15  ;;  %v1069_v36 = vld [vmem:[#allocation2 + $0x30] sm:$0xff]  ;;  %2997 = vmatpush.msra.mxu2 %v1902_v45  ;;  %2068 = vmatpush.msra.mxu0 %v1903_v40  ;;  %v1894_v10 = vld [vmem:[#allocation3 + $0x10] sm:$0xff]  ;;  %v4895_v12 = vmov 0 }
  0x32   : > { %434 = vst.msk [vmem:[#allocation2 + $0x70] sm:$0xff] %vm4846_vm0, %v395_v19  ;;  %v1094_v37 = vld [vmem:[#allocation2 + $0xf8] sm:$0xff]  ;;  %2998 = vmatpush.msra.mxu3 %v1902_v45  ;;  %2993 = vmatpush.msra.mxu1 %v1903_v40  ;;  %v3503_v11 = vld [vmem:[#allocation2 + $0x29] sm:$0xff]  ;;  %v3596_v1 = vld [vmem:[#allocation2 + $0x61] sm:$0xff] }
  0x33   : > { %3083 = vrot.lane.b32.xlu0 %v3082_v9, %s3271_s14  ;;  %443 = vst.msk [vmem:[#allocation2 + $0xb8] sm:$0xff] %vm4846_vm0, %v404_v3  ;;  %v1078_v38 = vld [vmem:[#allocation2 + $0x78] sm:$0xff]  ;;  %v3112_v44 = vpack.i.bf16 %v1094_v37, %v1069_v36  ;;  %3000 = vmatpush.msra.mxu2 %v1901_v48  ;;  %v3524_v19 = vld [vmem:[#allocation2 + $0x2f] sm:$0xff]  ;;  %v520_v3 = vand.u32 15, %v460_v16  ;;  %v534_v37 = vand.u32 15, %v462_v35  ;;  %v464_v35 = vadd.s32 64, %v3472_v33 }
  0x34   : > { %3088 = vrot.lane.b32.xlu1 %v3087_v13, %s3271_s14  ;;  %427 = vst.msk [vmem:[#allocation2 + $0x38] sm:$0xff] %vm4846_vm0, %v388_v20  ;;  %v1087_v39 = vld [vmem:[#allocation2 + $0xc0] sm:$0xff]  ;;  %3001 = vmatpush.msra.mxu3 %v1901_v48  ;;  %v527_v20 = vand.u32 15, %v461_v17  ;;  %v1939_v36 = vld [vmem:[#allocation3 + $0x178] sm:$0xff] }
  0x35   : > { %3078 = vrot.lane.b32.xlu2 %v3077_v18, %s3271_s14  ;;  %v1067_v27 = vld [vmem:[#allocation2 + $0x20] sm:$0xff]  ;;  %452 = vst.msk [vmem:[#allocation2 + $0x100] sm:$0xff] %vm4846_vm0, %v413_v21  ;;  %v3117_v46 = vpack.i.bf16 %v1087_v39, %v1078_v38  ;;  %3003 = vmatpush.msra.mxu2 %v1900_v51  ;;  %vm3529_vm4 = vcmp.ne.s32.totalorder %v520_v3, 0  ;;  %vm3565_vm7 = vcmp.ne.s32.totalorder %v534_v37, 0  ;;  %v1940_v21 = vld [vmem:[#allocation3 + $0x180] sm:$0xff] }
  0x36   : > { %v1092_v28 = vld [vmem:[#allocation2 + $0xe8] sm:$0xff]  ;;  %v1098_v53 = vld [vmem:[#allocation2 + $0x19] sm:$0xff]  ;;  %3004 = vmatpush.msra.mxu3 %v1900_v51  ;;  %2069 = vmatpush.msra.mxu0 %v1902_v45  ;;  %vm3535_vm5 = vcmp.ne.s32.totalorder %v527_v20, 15  ;;  %v463_v20 = vadd.s32 56, %v3472_v33 }
  0x37   : > { %v3092_v32 = vpack.i.bf16 %v1092_v28, %v1067_v27  ;;  %v1079_v52 = vld [vmem:[#allocation2 + $0x80] sm:$0xff]  ;;  %3006 = vmatpush.msra.mxu2 %v1899_v56  ;;  %2996 = vmatpush.msra.mxu1 %v1902_v45  ;;  %v506_v27 = vand.u32 15, %v458_v26  ;;  %v4898_v26 = vmov 0 }
  0x38   : > { %v1071_v54 = vld [vmem:[#allocation2 + $0x40] sm:$0xff]  ;;  %v3127_v59 = vpack.i.bf16 %v1098_v53, %v1079_v52  ;;  %3007 = vmatpush.msra.mxu3 %v1899_v56  ;;  %2070 = vmatpush.msra.mxu0 %v1901_v48  ;;  %v1953_v52 = vld [vmem:[#allocation3 + $0x1e8] sm:$0xff]  ;;  %v1963_v53 = vld [vmem:[#allocation3 + $0x238] sm:$0xff] }
  0x39   : > { %v1077_v42 = vld [vmem:[#allocation2 + $0x70] sm:$0xff]  ;;  %v3132_v62 = vpack.i.bf16 %v1226_v55, %v1071_v54  ;;  %3009 = vmatpush.msra.mxu2 %v1898_v61  ;;  %2999 = vmatpush.msra.mxu1 %v1901_v48  ;;  %v3499_v8 = vld [vmem:[#allocation2 + $0x21] sm:$0xff]  ;;  %vm3550_vm6 = vcmp.ne.s32.totalorder %v506_v27, 0  ;;  %v472_v55 = vadd.s32 128, %v3472_v33 }
  0x3a   : > { %v1086_v43 = vld [vmem:[#allocation2 + $0xb8] sm:$0xff]  ;;  %3010 = vmatpush.msra.mxu3 %v1898_v61  ;;  %2071 = vmatpush.msra.mxu0 %v1900_v51  ;;  %v1263_v13 = vsel %vm3495_vm2, %v3499_v8, 0.0  ;;  %v3539_v24 = vld [vmem:[#allocation2 + $0x41] sm:$0xff]  ;;  %v3579_v48 = vld [vmem:[#allocation2 + $0x4f] sm:$0xff] }
  0x3b   : > { %3098 = vrot.lane.b32.xlu0 %v3097_v30, %s3271_s14  ;;  %v3107_v47 = vpack.i.bf16 %v1086_v43, %v1077_v42  ;;  %v1070_v57 = vld [vmem:[#allocation2 + $0x38] sm:$0xff]  ;;  %3012 = vmatpush.msra.mxu2 %v1897_v0  ;;  %v1267_v4 = vsel %vm3535_vm5, %v3539_v24, 0.0  ;;  %v3554_v29 = vld [vmem:[#allocation2 + $0x27] sm:$0xff] }
  0x3c   : > { %3103 = vrot.lane.b32.xlu1 %v3102_v31, %s3271_s14  ;;  %v1095_v58 = vld [vmem:[#allocation2 + $0x100] sm:$0xff]  ;;  %3013 = vmatpush.msra.mxu3 %v1897_v0  ;;  %v3516_v15 = vld [vmem:[#allocation2 + $0x31] sm:$0xff]  ;;  %v1228_v30 = vsel %vm3550_vm6, %v3554_v29, 0.0  ;;  %v3559_v31 = vld [vmem:[#allocation2 + $0x49] sm:$0xff] }
  0x3d   : > { %3093 = vrot.lane.b32.xlu2 %v3092_v32, %s3271_s14  ;;  %v3122_v63 = vpack.i.bf16 %v1095_v58, %v1070_v57  ;;  %3002 = vmatpush.msra.mxu1 %v1900_v51  ;;  %v3501_v9 = vld [vmem:[#allocation2 + $0x1f] sm:$0xff]  ;;  %v1265_v18 = vsel %vm3512_vm3, %v3516_v15, 0.0  ;;  %v3533_v22 = vld [vmem:[#allocation2 + $0x37] sm:$0xff]  ;;  %v3569_v39 = vld [vmem:[#allocation2 + $0x47] sm:$0xff]  ;;  %v480_v57 = vadd.s32 192, %v3472_v33 }
  0x3e   : > { %3015 = vmatpush.msra.mxu2 %v1896_v2  ;;  %3016 = vmatpush.msra.mxu3 %v1896_v2  ;;  %v1230_v25 = vsel %vm3529_vm4, %v3533_v22, 0.0  ;;  %v1893_v32 = vld [vmem:[#allocation3 + $0x8] sm:$0xff]  ;;  %v1232_v41 = vsel %vm3565_vm7, %v3569_v39, 0.0  ;;  %v1955_v42 = vld [vmem:[#allocation3 + $0x1f8] sm:$0xff]  ;;  %v1954_v45 = vld [vmem:[#allocation3 + $0x1f0] sm:$0xff] }
  0x3f   : > { %2072 = vmatpush.msra.mxu0 %v1899_v56  ;;  %3005 = vmatpush.msra.mxu1 %v1899_v56  ;;  %v3571_v40 = vld [vmem:[#allocation2 + $0x39] sm:$0xff]  ;;  %v1923_v43 = vld [vmem:[#allocation3 + $0xf8] sm:$0xff]  ;;  %v465_v56 = vadd.s32 72, %v3472_v33  ;;  %v660_v16 = vand.u32 15, %v480_v57 }
  0x40   : > { %3018 = vmatpush.msra.mxu2 %v1895_v6  ;;  %3019 = vmatpush.msra.mxu3 %v1895_v6  ;;  %v3583_v51 = vld [vmem:[#allocation2 + $0x59] sm:$0xff]  ;;  %v3620_v27 = vld [vmem:[#allocation2 + $0x87] sm:$0xff] }
  0x41   : > { %2073 = vmatpush.msra.mxu0 %v1898_v61  ;;  %3008 = vmatpush.msra.mxu1 %v1898_v61  ;;  %v1921_v58 = vld [vmem:[#allocation3 + $0xe8] sm:$0xff]  ;;  %v1920_v61 = vld [vmem:[#allocation3 + $0xe0] sm:$0xff]  ;;  %vm3624_vm10 = vcmp.ne.s32.totalorder %v660_v16, 0  ;;  %v1934_v37 = vld [vmem:[#allocation3 + $0x150] sm:$0xff]  ;;  %v474_v16 = vadd.s32 144, %v3472_v33 }
  0x42   : > { %3021 = vmatpush.msra.mxu2 %v1894_v10  ;;  %3022 = vmatpush.msra.mxu3 %v1894_v10 }
  0x43   : > { %3113 = vrot.lane.b32.xlu0 %v3112_v44, %s3271_s14  ;;  %2074 = vmatpush.msra.mxu0 %v1897_v0  ;;  %v1938_v44 = vld [vmem:[#allocation3 + $0x170] sm:$0xff] }
  0x44   : > { %3118 = vrot.lane.b32.xlu1 %v3117_v46, %s3271_s14  ;;  %3011 = vmatpush.msra.mxu1 %v1897_v0  ;;  %v1922_v46 = vld [vmem:[#allocation3 + $0xf0] sm:$0xff]  ;;  %v555_v0 = vand.u32 15, %v465_v56  ;;  %v1961_v56 = vld [vmem:[#allocation3 + $0x228] sm:$0xff] }
  0x45   : > { %3108 = vrot.lane.b32.xlu2 %v3107_v47, %s3271_s14  ;;  %2075 = vmatpush.msra.mxu0 %v1896_v2  ;;  %v1937_v47 = vld [vmem:[#allocation3 + $0x168] sm:$0xff] }
  0x46   : > { %3014 = vmatpush.msra.mxu1 %v1896_v2  ;;  %3024 = vmatpush.msra.mxu2 %v1893_v32  ;;  %v1951_v2 = vld [vmem:[#allocation3 + $0x1d8] sm:$0xff]  ;;  %vm3599_vm8 = vcmp.ne.s32.totalorder %v555_v0, 15 }
  0x47   : > { %2076 = vmatpush.msra.mxu0 %v1895_v6  ;;  %3025 = vmatpush.msra.mxu3 %v1893_v32  ;;  %v4896_v12 = vsel %vm3599_vm8, 4294967295, %v4895_v12  ;;  %v1271_v17 = vsel %vm3599_vm8, %v3596_v1, 0.0 }
  0x48   : > { %3017 = vmatpush.msra.mxu1 %v1895_v6  ;;  %3027 = vmatpush.msra.mxu2 %v1892_v34  ;;  %v468_v6 = vadd.s32 96, %v3472_v33  ;;  %4897 = vst [vmem:[#allocation7_spill] sm:$0xff] %v4896_v12 }
  0x49   : > { %2077 = vmatpush.msra.mxu0 %v1894_v10  ;;  %3028 = vmatpush.msra.mxu3 %v1892_v34 }
  0x4a   : > { %3020 = vmatpush.msra.mxu1 %v1894_v10  ;;  %2290 = vmatpush.msrb.mxu2 %v1939_v36  ;;  %v604_v10 = vand.u32 15, %v472_v55  ;;  %v1919_v36 = vld [vmem:[#allocation3 + $0xd8] sm:$0xff]  ;;  %v1949_v55 = vld [vmem:[#allocation3 + $0x1c8] sm:$0xff] }
  0x4b   : > { %3128 = vrot.lane.b32.xlu0 %v3127_v59, %s3271_s14  ;;  %2078 = vmatpush.msra.mxu0 %v1893_v32  ;;  %v1936_v59 = vld [vmem:[#allocation3 + $0x160] sm:$0xff] }
  0x4c   : > { %3133 = vrot.lane.b32.xlu1 %v3132_v62, %s3271_s14  ;;  %3023 = vmatpush.msra.mxu1 %v1893_v32  ;;  %v1935_v62 = vld [vmem:[#allocation3 + $0x158] sm:$0xff]  ;;  %vm3616_vm9 = vcmp.ne.s32.totalorder %v604_v10, 0 }
  0x4d   : > { %3123 = vrot.lane.b32.xlu2 %v3122_v63, %s3271_s14  ;;  %2079 = vmatpush.msra.mxu0 %v1892_v34  ;;  %v3592_v63 = vld [vmem:[#allocation2 + $0x3f] sm:$0xff]  ;;  %v4899_v26 = vsel %vm3616_vm9, 4294967295, %v4898_v26  ;;  %v936_v32 = vld [vmem:[#allocation2 + $0x7] sm:$0xff] }
  0x4e   : > { %3026 = vmatpush.msra.mxu1 %v1892_v34  ;;  %2403 = vmatpush.msrb.mxu3 %v1955_v42  ;;  %v541_v42 = vand.u32 15, %v463_v20 }
  0x4f   : > { %2291 = vmatpush.msrb.mxu2 %v1938_v44  ;;  %2524 = vmatpush.msrb.mxu0 %v1963_v53  ;;  %v1918_v44 = vld [vmem:[#allocation3 + $0xd0] sm:$0xff] }
  0x50   : > { %2177 = vmatpush.msrb.mxu1 %v1923_v43  ;;  %2404 = vmatpush.msrb.mxu3 %v1954_v45  ;;  %v466_v43 = vadd.s32 80, %v3472_v33  ;;  %v1933_v45 = vld [vmem:[#allocation3 + $0x148] sm:$0xff]  ;;  %vm3637_vm11 = vcmp.ne.s32.totalorder %v541_v42, 15 }
  0x51   : > { %2292 = vmatpush.msrb.mxu2 %v1937_v47  ;;  %2525 = vmatpush.msrb.mxu0 %v1962_v5  ;;  %v3641_v53 = vld [vmem:[#allocation2 + $0x5f] sm:$0xff]  ;;  %v1032_v5 = vsel %vm3478_vm1, %v936_v32, 0.0 }
  0x52   : > { %2178 = vmatpush.msrb.mxu1 %v1922_v46  ;;  %2405 = vmatpush.msrb.mxu3 %v1953_v52  ;;  %v3630_v46 = vld [vmem:[#allocation2 + $0x51] sm:$0xff]  ;;  %v4226_v52 = vld [vmem:[%s4803_s4] ss:$0 sm:$0xff] }
  0x53   : > { %1526 = vrot.lane.b32.xlu0 %v3501_v9, %s3271_s14  ;;  %2293 = vmatpush.msrb.mxu2 %v1936_v59  ;;  %v1048_v59 = vsel %vm3616_vm9, %v3620_v27, 0.0  ;;  %v1917_v42 = vld [vmem:[#allocation3 + $0xc8] sm:$0xff] }
  0x54   : > { %1656 = vrot.lane.b32.xlu1 %v3503_v11, %s3271_s14  ;;  %2179 = vmatpush.msrb.mxu1 %v1921_v58 }
  0x55   : > { %1654 = vrot.lane.b32.xlu2 %v1263_v13, %s3271_s14  ;;  %2406 = vmatpush.msrb.mxu3 %v1952_v60  ;;  %v3603_v13 = vld [vmem:[#allocation2 + $0x57] sm:$0xff] }
  0x56   : > { %2180 = vmatpush.msrb.mxu1 %v1920_v61  ;;  %2294 = vmatpush.msrb.mxu2 %v1935_v62  ;;  %v1269_v61 = vsel %vm3637_vm11, %v3630_v46, 0.0 }
  0x57   : > { %2407 = vmatpush.msrb.mxu3 %v1951_v2  ;;  %2526 = vmatpush.msrb.mxu0 %v1961_v56 }
  0x58   : > { %2181 = vmatpush.msrb.mxu1 %v1919_v36  ;;  %2295 = vmatpush.msrb.mxu2 %v1934_v37  ;;  %v3679_v37 = vld [vmem:[#allocation2 + $0xcf] sm:$0xff]  ;;  %v1925_v36 = vld [vmem:[#allocation3 + $0x108] sm:$0xff] }
  0x59   : > { %4909 = vst [vmem:[#allocation9_spill] sm:$0xff] %v3679_v37 }
  0x5a   : > { %2182 = vmatpush.msrb.mxu1 %v1918_v44  ;;  %2296 = vmatpush.msrb.mxu2 %v1933_v45  ;;  %v1948_v44 = vld [vmem:[#allocation3 + $0x1c0] sm:$0xff]  ;;  %v467_v45 = vadd.s32 88, %v3472_v33 }
  0x5b   : > { %1658 = vrot.lane.b32.xlu0 %v1265_v18, %s3271_s14 }
  0x5c   : > { %1530 = vrot.lane.b32.xlu1 %v3524_v19, %s3271_s14  ;;  %2183 = vmatpush.msrb.mxu1 %v1917_v42 }
  0x5d   : > { %1528 = vrot.lane.b32.xlu2 %v1228_v30, %s3271_s14  ;;  %v3622_v30 = vld [vmem:[#allocation2 + $0xc7] sm:$0xff] }
  0x5e   : > { %v1056_v60 = vsel %vm3624_vm10, %v3622_v30, 0.0 }
  0x63   : > { %1532 = vrot.lane.b32.xlu0 %v1230_v25, %s3271_s14  ;;  %v576_v25 = vand.u32 15, %v468_v6  ;;  %v548_v6 = vand.u32 15, %v464_v35  ;;  %v482_v35 = vadd.s32 208, %v3472_v33 }
  0x64   : > { %1662 = vrot.lane.b32.xlu1 %v1267_v4, %s3271_s14  ;;  %v1302_v4 = vsel %vm3565_vm7, %v3603_v13, 0.0 }
  0x65   : > { %1660 = vrot.lane.b32.xlu2 %v3571_v40, %s3271_s14  ;;  %vm3643_vm12 = vcmp.ne.s32.totalorder %v576_v25, 0  ;;  %vm3675_vm13 = vcmp.ne.s32.totalorder %v548_v6, 0  ;;  %v1931_v6 = vld [vmem:[#allocation3 + $0x138] sm:$0xff]  ;;  %v674_v42 = vand.u32 15, %v482_v35 }
  0x66   : > { %v1308_v20 = vsel %vm3643_vm12, %v3620_v27, 0.0 }
  0x6b   : > { %1664 = vrot.lane.b32.xlu0 %v3559_v31, %s3271_s14 }
  0x6c   : > { %1536 = vrot.lane.b32.xlu1 %v1232_v41, %s3271_s14  ;;  %v1950_v41 = vld [vmem:[#allocation3 + $0x1d0] sm:$0xff] }
  0x6d   : > { %1534 = vrot.lane.b32.xlu2 %v3592_v63, %s3271_s14  ;;  %2408 = vmatpush.msrb.mxu3 %v1950_v41  ;;  %v937_v41 = vld [vmem:[#allocation2 + $0xf] sm:$0xff] }
  0x6f   : > { %2409 = vmatpush.msrb.mxu3 %v1949_v55 }
  0x71   : > { %2410 = vmatpush.msrb.mxu3 %v1948_v44 }
  0x73   : > { %1538 = vrot.lane.b32.xlu0 %v3579_v48, %s3271_s14 }
  0x74   : > { %1668 = vrot.lane.b32.xlu1 %v3583_v51, %s3271_s14 }
  0x75   : > { %1666 = vrot.lane.b32.xlu2 %v1269_v61, %s3271_s14 }
  0x7b   : > { %1670 = vrot.lane.b32.xlu0 %v1271_v17, %s3271_s14  ;;  %v562_v17 = vand.u32 15, %v466_v43  ;;  %v1932_v43 = vld [vmem:[#allocation3 + $0x140] sm:$0xff] }
  0x7c   : > { %1542 = vrot.lane.b32.xlu1 %v3641_v53, %s3271_s14  ;;  %2297 = vmatpush.msrb.mxu2 %v1932_v43  ;;  %v1300_v43 = vsel %vm3529_vm4, %v3569_v39, 0.0 }
  0x7d   : > { %vm3686_vm14 = vcmp.ne.s32.totalorder %v562_v17, 0 }
  0x7e   : > { %2298 = vmatpush.msrb.mxu2 %v1931_v6 }
  0x87   : > { %v3587_v54 = vpop.permute.xlu2 %3073 }
  0x88   : > { %4894 = vst [vmem:[#allocation6_spill] sm:$0xff] %v3587_v54 }
  0x8f   : > { %v3608_v18 = vpop.permute.xlu2 %3078 }
  0x90   : > { %v4807_v3 = vunpack.i.l.bf16 %v3608_v18 }
  0x92   : > { %v3635_v47 = vsel %vm4846_vm0, %v1302_v4, %v4807_v3  ;;  %v4915_v3 = vmov 0 }
  0x95   : > { %v3647_v58 = vpop.permute.xlu0 %3053 }
  0x96   : > { %4906 = vst [vmem:[#allocation8_spill] sm:$0xff] %v3647_v58  ;;  %v4806_v62 = vunpack.i.h.bf16 %v3647_v58  ;;  %v3055_v0 = vunpack.i.l.bf16 %v3647_v58  ;;  %v3064_v2 = vpop.permute.xlu1 %3063  ;;  %v1959_v58 = vld [vmem:[#allocation3 + $0x218] sm:$0xff] }
  0x97   : > { %v3065_v10 = vunpack.i.l.bf16 %v3064_v2  ;;  %v3066_v56 = vunpack.i.h.bf16 %v3064_v2  ;;  %v3695_v2 = vld [vmem:[#allocation2 + $0x71] sm:$0xff] }
  0x98   : > { %v1780_v25 = vsel %vm4846_vm0, %v1048_v59, %v3055_v0  ;;  %v1788_v4 = vsel %vm4846_vm0, %v1056_v60, %v4806_v62  ;;  %v3683_v55 = vsel %vm4846_vm0, %v1308_v20, %v3055_v0  ;;  %v3075_v59 = vunpack.i.l.bf16 %v3587_v54  ;;  %4913 = vst [vmem:[#allocation11_spill] sm:$0xff] %v3695_v2 }
  0x99   : > { %2128 = vmatmul.f32.vlgmr.msra.gmra.mxu2 %v1780_v25  ;;  %2152 = vmatmul.f32.vlgmr.msra.gmra.mxu3 %v1788_v4  ;;  %v1764_v32 = vsel %vm4846_vm0, %v1032_v5, %v3065_v10  ;;  %4910 = vst [vmem:[#allocation10_spill] sm:$0xff] %v3683_v55  ;;  %v618_v60 = vand.u32 15, %v474_v16  ;;  %v1916_v5 = vld [vmem:[#allocation3 + $0xc0] sm:$0xff]  ;;  %v3690_v10 = vld [vmem:[#allocation2 + $0x67] sm:$0xff]  ;;  %v569_v20 = vand.u32 15, %v467_v45  ;;  %v1040_v4 = vsel %vm3675_vm13, %v3569_v39, 0.0 }
  0x9a   : > { %2080 = vmatmul.f32.vlgmr.msra.gmra.mxu0 %v1764_v32  ;;  %v1236_v0 = vsel %vm3686_vm14, %v3690_v10, 0.0  ;;  %v1947_v25 = vld [vmem:[#allocation3 + $0x1b8] sm:$0xff]  ;;  %v1960_v16 = vld [vmem:[#allocation3 + $0x220] sm:$0xff]  ;;  %2184 = vmatpush.msrb.mxu1 %v1916_v5  ;;  %v3714_v35 = vsel %vm4846_vm0, %v3679_v37, %v3066_v56  ;;  %v1765_v5 = vsel %vm4846_vm0, %v937_v41, %v3075_v59  ;;  %v4922_v59 = vmov 0  ;;  %v1929_v56 = vld [vmem:[#allocation3 + $0x128] sm:$0xff] }
  0x9b   : > { %v3700_v32 = vld [vmem:[#allocation2 + $0x8f] sm:$0xff]  ;;  %1544 = vrot.lane.b32.xlu0 %v1236_v0, %s3271_s14  ;;  %vm3708_vm15 = vcmp.ne.s32.totalorder %v569_v20, 15  ;;  %2411 = vmatpush.msrb.mxu3 %v1947_v25  ;;  %4918 = vst [vmem:[#allocation14_spill] sm:$0xff] %v3714_v35  ;;  %vm3717_vm8 = vcmp.ne.s32.totalorder %v618_v60, 0  ;;  %v3729_v25 = vld [vmem:[#allocation2 + $0x97] sm:$0xff] }
  0x9c   : > { %v4916_v3 = vsel %vm3708_vm15, 4294967295, %v4915_v3  ;;  %v1273_v39 = vsel %vm3708_vm15, %v3695_v2, 0.0  ;;  %2527 = vmatpush.msrb.mxu0 %v1960_v16  ;;  %vm3739_vm15 = vcmp.ne.s32.totalorder %v674_v42, 0  ;;  %v3743_v60 = vld [vmem:[#allocation2 + $0xd7] sm:$0xff] }
  0x9d   : > { %v3059_v17 = vpop.permute.xlu0 %3058  ;;  %4917 = vst [vmem:[#allocation13_spill] sm:$0xff] %v4916_v3  ;;  %1674 = vrot.lane.b32.xlu1 %v1273_v39, %s3271_s14  ;;  %v4923_v59 = vsel %vm3739_vm15, 4294967295, %v4922_v59  ;;  %v1050_v39 = vsel %vm3717_vm8, %v3729_v25, 0.0  ;;  %v3755_v16 = vld [vmem:[#allocation2 + $0x79] sm:$0xff] }
  0x9e   : > { %v3061_v44 = vunpack.i.h.bf16 %v3059_v17  ;;  %v3060_v45 = vunpack.i.l.bf16 %v3059_v17  ;;  %v3705_v62 = vpop.permute.xlu1 %3068  ;;  %4924 = vst [vmem:[#allocation16_spill] sm:$0xff] %v4923_v59  ;;  %2528 = vmatpush.msrb.mxu0 %v1959_v58  ;;  %v1913_v58 = vld [vmem:[#allocation3 + $0xa8] sm:$0xff] }
  0x9f   : > { %4914 = vst [vmem:[#allocation12_spill] sm:$0xff] %v3705_v62  ;;  %v3070_v17 = vunpack.i.l.bf16 %v3705_v62 }
  0xa0   : > { %v1772_v0 = vsel %vm4846_vm0, %v1040_v4, %v3060_v45  ;;  %v3727_v20 = vsel %vm4846_vm0, %v3700_v32, %v3061_v44  ;;  %v3733_v41 = vsel %vm4846_vm0, %v1300_v43, %v3060_v45  ;;  %v1915_v4 = vld [vmem:[#allocation3 + $0xb8] sm:$0xff]  ;;  %v1930_v43 = vld [vmem:[#allocation3 + $0x130] sm:$0xff]  ;;  %v1234_v45 = vsel %vm3675_vm13, %v3603_v13, 0.0  ;;  %4925 = vst [vmem:[#allocation17_spill] sm:$0xff] %v3755_v16 }
  0xa1   : > { %4921 = vst [vmem:[#allocation15_spill] sm:$0xff] %v3727_v20  ;;  %2104 = vmatmul.f32.vlgmr.msra.gmra.mxu1 %v1772_v0  ;;  %2131 = vmatmul.f32.gmra.mxu2 %v3727_v20  ;;  %v1946_v44 = vld [vmem:[#allocation3 + $0x1b0] sm:$0xff]  ;;  %v1034_v20 = vsel %vm3550_vm6, %v3482_v50, 0.0 }
  0xa2   : > { %2155 = vmatmul.f32.gmra.mxu3 %v3714_v35  ;;  %2083 = vmatmul.f32.gmra.mxu0 %v1765_v5  ;;  %v1914_v0 = vld [vmem:[#allocation3 + $0xb0] sm:$0xff]  ;;  %v1058_v5 = vsel %vm3739_vm15, %v3743_v60, 0.0  ;;  %v1945_v35 = vld [vmem:[#allocation3 + $0x1a8] sm:$0xff] }
  0xa3   : > { %2185 = vmatpush.msrb.mxu1 %v1915_v4  ;;  %2299 = vmatpush.msrb.mxu2 %v1930_v43  ;;  %v3766_v4 = vsel %vm4846_vm0, %v3579_v48, %v3070_v17  ;;  %v4926_v43 = vunpack.i.h.bf16 %v3705_v62  ;;  %v3780_v48 = vld [vmem:[#allocation2 + $0x9f] sm:$0xff]  ;;  %v484_v17 = vadd.s32 224, %v3472_v33  ;;  %v3793_v62 = vld [vmem:[#allocation2 + $0x69] sm:$0xff] }
  0xa4   : > { %2412 = vmatpush.msrb.mxu3 %v1946_v44  ;;  %1540 = vrot.lane.b32.xlu2 %v1234_v45, %s3271_s14  ;;  %v4928_v45 = vunpack.i.h.bf16 %v3587_v54  ;;  %v1927_v54 = vld [vmem:[#allocation3 + $0x118] sm:$0xff]  ;;  %4930 = vst [vmem:[#allocation20_spill] sm:$0xff] %v3793_v62 }
  0xa5   : > { %v3084_v42 = vpop.permute.xlu0 %3083  ;;  %2186 = vmatpush.msrb.mxu1 %v1914_v0  ;;  %2300 = vmatpush.msrb.mxu2 %v1929_v56  ;;  %v1782_v55 = vsel %vm4846_vm0, %v1050_v39, %v4926_v43  ;;  %v3081_v39 = vunpack.i.h.bf16 %v3608_v18  ;;  %v3784_v0 = vld [vmem:[#allocation2 + $0xdf] sm:$0xff]  ;;  %v1928_v43 = vld [vmem:[#allocation3 + $0x120] sm:$0xff]  ;;  %v688_v12 = vand.u32 15, %v484_v17 }
  0xa6   : > { %v3085_v44 = vunpack.i.l.bf16 %v3084_v42  ;;  %v3771_v3 = vpop.permute.xlu1 %3088  ;;  %1676 = vrot.lane.b32.xlu0 %v3755_v16, %s3271_s14  ;;  %2413 = vmatpush.msrb.mxu3 %v1945_v35  ;;  %v1790_v50 = vsel %vm4846_vm0, %v1058_v5, %v4928_v45  ;;  %v3786_v35 = vpop.permute.xlu2 %3093  ;;  %v476_v5 = vadd.s32 160, %v3472_v33  ;;  %v1943_v16 = vld [vmem:[#allocation3 + $0x198] sm:$0xff] }
  0xa7   : > { %4927 = vst [vmem:[#allocation18_spill] sm:$0xff] %v3771_v3  ;;  %v3095_v45 = vunpack.i.l.bf16 %v3786_v35  ;;  %2187 = vmatpush.msrb.mxu1 %v1913_v58  ;;  %2301 = vmatpush.msrb.mxu2 %v1928_v43  ;;  %v4931_v58 = vunpack.i.l.bf16 %v3608_v18  ;;  %vm3836_vm15 = vcmp.ne.s32.totalorder %v688_v12, 0  ;;  %v3853_v12 = vld [vmem:[%s4800_s1] ss:$0 sm:$0xff]  ;;  %v4945_v59 = vunpack.i.h.bf16 %v3771_v3 }
  0xa8   : > { %v1766_v56 = vsel %vm4846_vm0, %v1034_v20, %v3085_v44  ;;  %4929 = vst [vmem:[#allocation19_spill] sm:$0xff] %v3786_v35  ;;  %v1944_v20 = vld [vmem:[#allocation3 + $0x1a0] sm:$0xff]  ;;  %v3086_v44 = vunpack.i.h.bf16 %v3084_v42  ;;  %v1958_v42 = vld [vmem:[#allocation3 + $0x210] sm:$0xff] }
  0xa9   : > { %2107 = vmatmul.f32.gmra.mxu1 %v3766_v4  ;;  %2134 = vmatmul.f32.gmra.mxu2 %v1782_v55  ;;  %v1042_v55 = vsel %vm3686_vm14, %v3603_v13, 0.0  ;;  %v1767_v18 = vsel %vm4846_vm0, %v3501_v9, %v3095_v45  ;;  %v4936_v9 = vmov 0  ;;  %v311_v45 = vld [vmem:[%s3330_s9 + $0xf8] sm:$0xff]  ;;  %4942 = vst [vmem:[#allocation26_spill] sm:$0xff] %v3853_v12 }
  0xaa   : > { %2158 = vmatmul.f32.gmra.mxu3 %v1790_v50  ;;  %2086 = vmatmul.f32.gmra.mxu0 %v1766_v56  ;;  %v1912_v50 = vld [vmem:[#allocation3 + $0xa0] sm:$0xff]  ;;  %v1774_v43 = vsel %vm4846_vm0, %v1042_v55, %v4931_v58  ;;  %v3821_v55 = vld [vmem:[#allocation2 + $0xa7] sm:$0xff]  ;;  %v4937_v9 = vsel %vm3836_vm15, 4294967295, %v4936_v9  ;;  %v347_v61 = vmul.f32 %v3853_v12, %v311_v45 }
  0xab   : > { %2414 = vmatpush.msrb.mxu3 %v1944_v20  ;;  %v3797_v56 = vld [vmem:[#allocation2 + $0x77] sm:$0xff]  ;;  %2188 = vmatpush.msrb.mxu1 %v1912_v50  ;;  %v3809_v20 = vsel %vm4846_vm0, %v3780_v48, %v3081_v39  ;;  %v4934_v39 = vsel %vm3675_vm13, %v3690_v10, 0.0  ;;  %4938 = vst [vmem:[#allocation24_spill] sm:$0xff] %v4937_v9  ;;  %v3090_v50 = vunpack.i.l.bf16 %v3771_v3  ;;  %v1926_v58 = vld [vmem:[#allocation3 + $0x110] sm:$0xff] }
  0xac   : > { %1672 = vrot.lane.b32.xlu2 %v3793_v62, %s3271_s14  ;;  %2302 = vmatpush.msrb.mxu2 %v1927_v54  ;;  %v1238_v13 = vsel %vm3643_vm12, %v3797_v56, 0.0  ;;  %4932 = vst [vmem:[#allocation21_spill] sm:$0xff] %v3809_v20  ;;  %v632_v62 = vand.u32 15, %v476_v5  ;;  %v3817_v54 = vsel %vm4846_vm0, %v3784_v0, %v3086_v44  ;;  %v3840_v44 = vld [vmem:[#allocation2 + $0xe7] sm:$0xff]  ;;  %v1957_v9 = vld [vmem:[#allocation3 + $0x208] sm:$0xff] }
  0xad   : > { %v3799_v2 = vpop.permute.xlu0 %3098  ;;  %1548 = vrot.lane.b32.xlu1 %v1238_v13, %s3271_s14  ;;  %2415 = vmatpush.msrb.mxu3 %v1943_v16  ;;  %4933 = vst [vmem:[#allocation22_spill] sm:$0xff] %v3817_v54  ;;  %v1306_v16 = vsel %vm3686_vm14, %v3797_v56, 0.0  ;;  %v1911_v13 = vld [vmem:[#allocation3 + $0x98] sm:$0xff]  ;;  %v1060_v45 = vsel %vm3836_vm15, %v3840_v44, 0.0  ;;  %v3881_v12 = vsel %vm4846_vm0, %v3641_v53, %v3090_v50 }
  0xae   : > { %v3811_v37 = vpop.permute.xlu1 %3103  ;;  %v4830_v17 = vunpack.i.l.bf16 %v3799_v2  ;;  %2529 = vmatpush.msrb.mxu0 %v1958_v42  ;;  %4939 = vst [vmem:[#allocation25_spill] sm:$0xff] %v3840_v44  ;;  %vm3846_vm13 = vcmp.ne.s32.totalorder %v632_v62, 0  ;;  %2189 = vmatpush.msrb.mxu1 %v1911_v13  ;;  %v3896_v50 = vld [vmem:[#allocation2 + $0x6f] sm:$0xff]  ;;  %v4953_v57 = vunpack.i.l.bf16 %v3799_v2 }
  0xaf   : > { %v1052_v62 = vsel %vm3846_vm13, %v3821_v55, 0.0  ;;  %2303 = vmatpush.msrb.mxu2 %v1926_v58  ;;  %v3877_v58 = vld [vmem:[#allocation2 + $0x89] sm:$0xff]  ;;  %v4947_v44 = vunpack.i.l.bf16 %v3811_v37 }
  0xb0   : > { %v3830_v5 = vsel %vm4846_vm0, %v4934_v39, %v4830_v17  ;;  %v1036_v39 = vsel %vm3529_vm4, %v3554_v29, 0.0  ;;  %4944 = vst [vmem:[#allocation28_spill] sm:$0xff] %v3877_v58  ;;  %v1941_v17 = vld [vmem:[#allocation3 + $0x188] sm:$0xff]  ;;  %2530 = vmatpush.msrb.mxu0 %v1957_v9 }
  0xb1   : > { %4935 = vst [vmem:[#allocation23_spill] sm:$0xff] %v3830_v5  ;;  %2110 = vmatmul.f32.gmra.mxu1 %v1774_v43  ;;  %2137 = vmatmul.f32.gmra.mxu2 %v3809_v20  ;;  %v1942_v43 = vld [vmem:[#allocation3 + $0x190] sm:$0xff]  ;;  %v1924_v5 = vld [vmem:[#allocation3 + $0x100] sm:$0xff]  ;;  %v1768_v53 = vsel %vm4846_vm0, %v1036_v39, %v4947_v44  ;;  %v486_v44 = vadd.s32 240, %v3472_v33  ;;  %v1909_v39 = vld [vmem:[#allocation3 + $0x88] sm:$0xff] }
  0xb2   : > { %2161 = vmatmul.f32.gmra.mxu3 %v3817_v54  ;;  %2089 = vmatmul.f32.gmra.mxu0 %v1767_v18  ;;  %v1910_v18 = vld [vmem:[#allocation3 + $0x90] sm:$0xff] }
  0xb3   : > { %v3861_v54 = vld [vmem:[#allocation2 + $0x7f] sm:$0xff]  ;;  %2416 = vmatpush.msrb.mxu3 %v1942_v43  ;;  %2190 = vmatpush.msrb.mxu1 %v1910_v18  ;;  %v4946_v18 = vunpack.i.h.bf16 %v3786_v35  ;;  %v4950_v35 = vmov 0 }
  0xb4   : > { %v3872_v20 = vld [vmem:[%s4801_s2] ss:$0 sm:$0xff]  ;;  %1550 = vrot.lane.b32.xlu0 %v3861_v54, %s3271_s14  ;;  %2304 = vmatpush.msrb.mxu2 %v1925_v36 }
  0xb5   : > { %4943 = vst [vmem:[#allocation27_spill] sm:$0xff] %v3872_v20  ;;  %v383_v13 = vadd.f32 %v3872_v20, %v347_v61  ;;  %v1784_v61 = vsel %vm4846_vm0, %v1052_v62, %v4945_v59  ;;  %1680 = vrot.lane.b32.xlu1 %v3877_v58, %s3271_s14  ;;  %2417 = vmatpush.msrb.mxu3 %v1941_v17  ;;  %v3899_v59 = vpop.permute.xlu2 %3108  ;;  %v471_v17 = vadd.s32 120, %v3472_v33  ;;  %v3913_v9 = vpop.permute.xlu0 %3113  ;;  %v478_v62 = vadd.s32 176, %v3472_v33 }
  0xb6   : > { %v3886_v43 = vpop.permute.xlu1 %3118  ;;  %v1792_v36 = vsel %vm4846_vm0, %v1060_v45, %v4946_v18  ;;  %2305 = vmatpush.msrb.mxu2 %v1924_v5  ;;  %1546 = vrot.lane.b32.xlu2 %v3896_v50, %s3271_s14  ;;  %v1908_v45 = vld [vmem:[#allocation3 + $0x80] sm:$0xff]  ;;  %v3106_v18 = vunpack.i.h.bf16 %v3811_v37  ;;  %v4968_v38 = vunpack.i.h.bf16 %v3913_v9 }
  0xb7   : > { %v415_v20 = vmax.f32 %v383_v13, 0.0  ;;  %v4841_v3 = vunpack.i.l.bf16 %v3886_v43  ;;  %2418 = vmatpush.msrb.mxu3 %v1940_v21  ;;  %v597_v13 = vand.u32 15, %v471_v17  ;;  %v3916_v21 = vld [vmem:[#allocation2 + $0x91] sm:$0xff]  ;;  %2191 = vmatpush.msrb.mxu1 %v1909_v39  ;;  %v702_v17 = vand.u32 15, %v486_v44 }
  0xb8   : > { %4948 = vst [vmem:[#allocation29_spill] sm:$0xff] %v3916_v21 }
  0xb9   : > { %454 = vst.msk [vmem:[#allocation2 + $0x110] sm:$0xff] %vm4846_vm0, %v415_v20  ;;  %2113 = vmatmul.f32.gmra.mxu1 %v3881_v12  ;;  %2140 = vmatmul.f32.gmra.mxu2 %v1784_v61  ;;  %v3910_v5 = vsel %vm4846_vm0, %v1306_v16, %v4841_v3  ;;  %v3101_v20 = vunpack.i.h.bf16 %v3799_v2  ;;  %v1956_v61 = vld [vmem:[#allocation3 + $0x200] sm:$0xff]  ;;  %v1044_v16 = vsel %vm3643_vm12, %v3690_v10, 0.0  ;;  %vm3927_vm4 = vcmp.ne.s32.totalorder %v597_v13, 15 }
  0xba   : > { %2164 = vmatmul.f32.gmra.mxu3 %v1792_v36  ;;  %2092 = vmatmul.f32.gmra.mxu0 %v1768_v53  ;;  %v3922_v3 = vld [vmem:[#allocation2 + $0xaf] sm:$0xff]  ;;  %v3115_v36 = vunpack.i.l.bf16 %v3913_v9  ;;  %v4951_v35 = vsel %vm3927_vm4, 4294967295, %v4950_v35  ;;  %v1277_v58 = vsel %vm3927_vm4, %v3916_v21, 0.0  ;;  %v1776_v10 = vsel %vm4846_vm0, %v1044_v16, %v4953_v57  ;;  %v3952_v2 = vld [vmem:[#allocation2 + $0xb7] sm:$0xff] }
  0xbb   : > { %2531 = vmatpush.msrb.mxu0 %v1956_v61  ;;  %v3925_v53 = vld [vmem:[#allocation2 + $0xef] sm:$0xff]  ;;  %4952 = vst [vmem:[#allocation31_spill] sm:$0xff] %v4951_v35  ;;  %2192 = vmatpush.msrb.mxu1 %v1908_v45  ;;  %v3939_v39 = vsel %vm4846_vm0, %v3922_v3, %v3101_v20  ;;  %v646_v61 = vand.u32 15, %v478_v62  ;;  %v469_v13 = vadd.s32 104, %v3472_v33  ;;  %vm3956_vm12 = vcmp.ne.s32.totalorder %v702_v17, 0  ;;  %v3973_v17 = vld [vmem:[#allocation2 + $0x81] sm:$0xff] }
  0xbc   : > { %4949 = vst [vmem:[#allocation30_spill] sm:$0xff] %v3925_v53  ;;  %1682 = vrot.lane.b32.xlu0 %v1277_v58, %s3271_s14  ;;  %v3946_v44 = vsel %vm4846_vm0, %v3925_v53, %v3106_v18  ;;  %v3950_v45 = vsel %vm4846_vm0, %v3524_v19, %v3115_v36  ;;  %v4956_v58 = vmov 0  ;;  %v470_v20 = vadd.s32 112, %v3472_v33 }
  0xbd   : > { %4954 = vst [vmem:[#allocation32_spill] sm:$0xff] %v3939_v39  ;;  %1554 = vrot.lane.b32.xlu1 %v3700_v32, %s3271_s14  ;;  %v4957_v58 = vsel %vm3956_vm12, 4294967295, %v4956_v58  ;;  %v3960_v32 = vld [vmem:[#allocation2 + $0xf7] sm:$0xff]  ;;  %v3110_v62 = vunpack.i.l.bf16 %v3899_v59  ;;  %vm3966_vm14 = vcmp.ne.s32.totalorder %v646_v61, 0  ;;  %v3970_v16 = vpop.permute.xlu2 %3123  ;;  %v583_v36 = vand.u32 15, %v469_v13 }
  0xbe   : > { %4955 = vst [vmem:[#allocation33_spill] sm:$0xff] %v3946_v44  ;;  %v1062_v61 = vsel %vm3956_vm12, %v3960_v32, 0.0  ;;  %v4962_v13 = vmov 0  ;;  %vm4965_vm4 = vcmask 523264   ;;  %v4966_v19 = vunpack.i.h.bf16 %v3899_v59 }
  0xbf   : > { %4958 = vst [vmem:[#allocation34_spill] sm:$0xff] %v4957_v58  ;;  %vm3986_vm0 = vcmp.ne.s32.totalorder %v583_v36, 15  ;;  %vm4967_vm15 = vmmov %vm4965_vm4  ;;  %v590_v21 = vand.u32 15, %v470_v20  ;;  %v4970_v58 = vunpack.i.l.bf16 %v3970_v16  ;;  %v473_v53 = vadd.s32 136, %v3472_v33 }
  0xc0   : > { %4961 = vst [vmem:[#allocation35_spill] sm:$0xff] %v3973_v17  ;;  %v4963_v13 = vsel %vm3986_vm0, 4294967295, %v4962_v13  ;;  %v1275_v57 = vsel %vm3986_vm0, %v3973_v17, 0.0  ;;  %vm4971_vm12 = vmmov %vm4965_vm4  ;;  %v3134_v17 = vpop.permute.xlu1 %3133  ;;  %v4988_v7 = vunpack.i.l.bf16 %v3970_v16 }
  0xc1   : > { %2116 = vmatmul.f32.gmra.mxu1 %v1776_v10  ;;  %2143 = vmatmul.f32.gmra.mxu2 %v3939_v39  ;;  %v1054_v10 = vsel %vm3966_vm14, %v3952_v2, 0.0  ;;  %4964 = vst [vmem:[#allocation36_spill] sm:$0xff] %v4963_v13  ;;  %v3995_v39 = vsel %vm4965_vm4, %v3896_v50, %v3110_v62  ;;  %v3121_v50 = vunpack.i.h.bf16 %v3886_v43  ;;  %v611_v62 = vand.u32 15, %v473_v53 }
  0xc2   : > { %2167 = vmatmul.f32.gmra.mxu3 %v3946_v44  ;;  %2095 = vmatmul.f32.gmra.mxu0 %v3950_v45  ;;  %v1038_v44 = vsel %vm3565_vm7, %v3533_v22, 0.0  ;;  %v1786_v35 = vsel %vm4967_vm15, %v1054_v10, %v4966_v19  ;;  %vm4969_vm7 = vmmov %vm4965_vm4  ;;  %vm4010_vm15 = vcmp.ne.s32.totalorder %v590_v21, 0  ;;  %v1242_v19 = vsel %vm3616_vm9, %v3729_v25, 0.0  ;;  %v4026_v10 = vld [vmem:[#allocation2 + $0xff] sm:$0xff] }
  0xc3   : > { %1678 = vrot.lane.b32.xlu2 %v1275_v57, %s3271_s14  ;;  %v1794_v36 = vsel %vm4969_vm7, %v1062_v61, %v4968_v38  ;;  %v1770_v13 = vsel %vm4971_vm12, %v1038_v44, %v4970_v58  ;;  %v4017_v44 = vld [vmem:[#allocation2 + $0xa1] sm:$0xff]  ;;  %v3126_v58 = vunpack.i.h.bf16 %v3970_v16  ;;  %v3135_v21 = vunpack.i.l.bf16 %v3134_v17  ;;  %vm4977_vm12 = vmmov %vm4969_vm7  ;;  %v3185_v16 = vld [vmem:[#allocation2 + $0x19] sm:$0xff] }
  0xc4   : > { %v4023_v57 = vld [vmem:[#allocation2 + $0xbf] sm:$0xff]  ;;  %1556 = vrot.lane.b32.xlu0 %v1242_v19, %s3271_s14  ;;  %vm4028_vm4 = vcmp.ne.s32.totalorder %v611_v62, 15  ;;  %vm4978_vm9 = vmmov %vm4969_vm7  ;;  %v3129_v19 = vpop.permute.xlu0 %3128  ;;  %v3136_v49 = vunpack.i.h.bf16 %v3134_v17 }
  0xc5   : > { %v1279_v53 = vsel %vm4028_vm4, %v4017_v44, 0.0  ;;  %vm4979_vm0 = vmmov %vm4969_vm7  ;;  %v4093_v17 = vld [vmem:[#allocation2 + $0xb9] sm:$0xff] }
  0xc6   : > { %1686 = vrot.lane.b32.xlu1 %v1279_v53, %s3271_s14  ;;  %v4049_v62 = vsel %vm4979_vm0, %v3592_v63, %v3135_v21  ;;  %v3182_v21 = vld [vmem:[#allocation2 + $0x18] sm:$0xff] }
  0xc9   : > { %2119 = vmatmul.f32.gmra.mxu1 %v3995_v39  ;;  %2146 = vmatmul.f32.gmra.mxu2 %v1786_v35  ;;  %v1046_v35 = vsel %vm4010_vm15, %v3797_v56, 0.0  ;;  %v4040_v56 = vsel %vm4969_vm7, %v4023_v57, %v3121_v50  ;;  %v1240_v50 = vsel %vm4010_vm15, %v3620_v27, 0.0  ;;  %v4981_v27 = vunpack.i.l.bf16 %v3811_v37  ;;  %vm4983_vm7 = vmmov %vm4979_vm0  ;;  %v3183_v37 = vld [vmem:[#allocation2 + $0x20] sm:$0xff] }
  0xca   : > { %2170 = vmatmul.f32.gmra.mxu3 %v1794_v36  ;;  %2098 = vmatmul.f32.gmra.mxu0 %v1770_v13  ;;  %v4976_v13 = vunpack.i.l.bf16 %v3886_v43  ;;  %v4045_v36 = vsel %vm4978_vm9, %v4026_v10, %v3126_v58  ;;  %v3131_v43 = vunpack.i.h.bf16 %v3129_v19  ;;  %v4057_v58 = vld [vmem:[#allocation2 + $0xa9] sm:$0xff]  ;;  %vm4980_vm9 = vmmov %vm4979_vm0 }
  0xcb   : > { %1552 = vrot.lane.b32.xlu2 %v1240_v50, %s3271_s14 }
  0xcc   : > { %v1778_v38 = vsel %vm4977_vm12, %v1046_v35, %v4976_v13  ;;  %v3130_v35 = vunpack.i.l.bf16 %v3129_v19  ;;  %1688 = vrot.lane.b32.xlu0 %v4057_v58, %s3271_s14  ;;  %v1828_v53 = vsel %vm4980_vm9, %v3182_v21, %v3131_v43  ;;  %v1296_v13 = vsel %vm3478_vm1, %v3554_v29, 0.0  ;;  %vm4982_vm12 = vmmov %vm4979_vm0  ;;  %v1655_v43 = vpop.permute.xlu2 %1654  ;;  %v1096_v29 = vld [vmem:[#allocation2 + $0x9] sm:$0xff]  ;;  %v1097_v21 = vld [vmem:[#allocation2 + $0x11] sm:$0xff] }
  0xcd   : > { %v1244_v19 = vsel %vm3717_vm8, %v3821_v55, 0.0  ;;  %vm4984_vm1 = vmmov %vm4979_vm0  ;;  %v1796_v50 = vsel %vm4979_vm0, %v1096_v29, %v3136_v49  ;;  %v4112_v29 = vld [vmem:[#allocation2 + $0xc1] sm:$0xff] }
  0xce   : > { %v4064_v63 = vsel %vm4979_vm0, %v3861_v54, %v3130_v35  ;;  %v4076_v54 = vld [vmem:[#allocation2 + $0x99] sm:$0xff]  ;;  %1560 = vrot.lane.b32.xlu1 %v1244_v19, %s3271_s14  ;;  %v1333_v35 = vsel %vm3495_vm2, %v3516_v15, 0.0  ;;  %vm4985_vm9 = vmmov %vm4979_vm0  ;;  %v477_v19 = vadd.s32 168, %v3472_v33 }
  0xd1   : > { %2122 = vmatmul.f32.gmra.mxu1 %v1778_v38  ;;  %2149 = vmatmul.f32.gmra.mxu2 %v4040_v56  ;;  %v1860_v38 = vsel %vm4982_vm12, %v1296_v13, %v4981_v27  ;;  %v1193_v13 = vsel %vm3495_vm2, %v1097_v21, 0.0  ;;  %vm4986_vm12 = vmmov %vm4979_vm0  ;;  %v3184_v27 = vld [vmem:[#allocation2 + $0x28] sm:$0xff]  ;;  %v475_v21 = vadd.s32 152, %v3472_v33 }
  0xd2   : > { %2173 = vmatmul.f32.gmra.mxu3 %v4045_v36  ;;  %2101 = vmatmul.f32.gmra.mxu0 %v4049_v62  ;;  %vm4989_vm2 = vmmov %vm4979_vm0 }
  0xd3   : > { %1684 = vrot.lane.b32.xlu2 %v4076_v54, %s3271_s14 }
  0xd4   : > { %1562 = vrot.lane.b32.xlu0 %v3922_v3, %s3271_s14  ;;  %v1657_v3 = vpop.permute.xlu1 %1656  ;;  %v1529_v49 = vpop.permute.xlu2 %1528 }
  0xd6   : > { %1692 = vrot.lane.b32.xlu1 %v4093_v17, %s3271_s14 }
  0xd9   : > { %2125 = vmatmul.f32.gmra.mxu1 %v4064_v63  ;;  %2306 = vmatmul.f32.vlgmr.msrb.gmra.mxu2 %v1828_v53  ;;  %v1527_v53 = vpop.permute.xlu0 %1526 }
  0xda   : > { %2419 = vmatmul.f32.vlgmr.msrb.gmra.mxu3 %v1860_v38  ;;  %2945 = vmatmul.msk.f32.vlgmr.msrb.gmra.mxu0 %vm4983_vm7, %v3503_v11  ;;  %v1829_v11 = vsel %vm4984_vm1, %v3183_v37, %v1655_v43  ;;  %v1797_v15 = vsel %vm4986_vm12, %v1193_v13, %v1527_v53  ;;  %vm4987_vm7 = vmmov %vm4979_vm0  ;;  %v4132_v13 = vld [vmem:[#allocation2 + $0xb1] sm:$0xff] }
  0xdb   : > { %1558 = vrot.lane.b32.xlu2 %v3780_v48, %s3271_s14  ;;  %v1830_v38 = vsel %vm4987_vm7, %v3184_v27, %v1657_v3  ;;  %vm4990_vm1 = vmmov %vm4979_vm0  ;;  %v639_v48 = vand.u32 15, %v477_v19  ;;  %v625_v3 = vand.u32 15, %v475_v21  ;;  %v1195_v27 = vsel %vm3512_vm3, %v3499_v8, 0.0 }
  0xdc   : > { %v1531_v53 = vpop.permute.xlu1 %1530  ;;  %vm4994_vm12 = vmmov %vm4979_vm0 }
  0xdd   : > { %vm4137_vm7 = vcmp.ne.s32.totalorder %v625_v3, 15  ;;  %v4177_v3 = vld [vmem:[#allocation2 + $0xd9] sm:$0xff] }
  0xde   : > { %1566 = vrot.lane.b32.xlu1 %v4023_v57, %s3271_s14  ;;  %v1335_v57 = vsel %vm3512_vm3, %v3539_v24, 0.0  ;;  %v1281_v24 = vsel %vm4137_vm7, %v4132_v13, 0.0  ;;  %vm4999_vm3 = vmmov %vm4979_vm0 }
  0xe1   : > { %2193 = vmatmul.f32.vlgmr.msrb.gmra.mxu1 %v1796_v50  ;;  %2309 = vmatmul.f32.gmra.mxu2 %v1829_v11  ;;  %v1659_v37 = vpop.permute.xlu0 %1658  ;;  %v1798_v11 = vsel %vm4979_vm0, %v3185_v16, %v1529_v49 }
  0xe2   : > { %2422 = vmatmul.f32.gmra.mxu3 %v3950_v45  ;;  %2946 = vmatmul.msk.f32.gmra.mxu0 %vm4985_vm9, %v1333_v35  ;;  %v1298_v45 = vsel %vm3550_vm6, %v3533_v22, 0.0  ;;  %vm4116_vm6 = vcmp.ne.s32.totalorder %v639_v48, 15  ;;  %v3186_v35 = vld [vmem:[#allocation2 + $0x30] sm:$0xff]  ;;  %vm4993_vm9 = vmmov %vm4979_vm0 }
  0xe3   : > { %v1862_v43 = vsel %vm4989_vm2, %v1298_v45, %v4988_v7  ;;  %v1283_v28 = vsel %vm4116_vm6, %v4112_v29, 0.0  ;;  %v1831_v50 = vsel %vm4993_vm9, %v3186_v35, %v1659_v37  ;;  %vm4997_vm2 = vmmov %vm4979_vm0  ;;  %v3187_v45 = vld [vmem:[#allocation2 + $0x38] sm:$0xff]  ;;  %1690 = vrot.lane.b32.xlu2 %v1281_v24, %s3271_s14  ;;  %v479_v7 = vadd.s32 184, %v3472_v33 }
  0xe4   : > { %1694 = vrot.lane.b32.xlu0 %v1283_v28, %s3271_s14  ;;  %v4155_v48 = vld [vmem:[#allocation2 + $0xd1] sm:$0xff]  ;;  %v1248_v37 = vsel %vm3966_vm14, %v3622_v30, 0.0  ;;  %v1337_v35 = vsel %vm3535_vm5, %v3630_v46, 0.0 }
  0xe5   : > { %v653_v14 = vand.u32 15, %v479_v7  ;;  %v3192_v7 = vld [vmem:[#allocation2 + $0x50] sm:$0xff] }
  0xe9   : > { %2196 = vmatmul.f32.gmra.mxu1 %v1797_v15  ;;  %2312 = vmatmul.f32.gmra.mxu2 %v1830_v38  ;;  %v1661_v15 = vpop.permute.xlu2 %1660  ;;  %v1533_v8 = vpop.permute.xlu0 %1532 }
  0xea   : > { %2425 = vmatmul.f32.gmra.mxu3 %v1862_v43  ;;  %2947 = vmatmul.msk.f32.gmra.mxu0 %vm4990_vm1, %v3571_v40  ;;  %vm4998_vm1 = vmmov %vm4979_vm0  ;;  %v1663_v43 = vpop.permute.xlu1 %1662  ;;  %vm4151_vm0 = vcmp.ne.s32.totalorder %v653_v14, 15  ;;  %v5010_v14 = vld [vmem:[#allocation16_spill] sm:$0xff] }
  0xeb   : > { %v1832_v19 = vsel %vm4998_vm1, %v3187_v45, %v1661_v15  ;;  %v1285_v28 = vsel %vm4151_vm0, %v4155_v48, 0.0  ;;  %vm5002_vm9 = vmmov %vm4998_vm1  ;;  %v4191_v45 = vld [vmem:[#allocation2 + $0xc9] sm:$0xff] }
  0xec   : > { %1568 = vrot.lane.b32.xlu0 %v1248_v37, %s3271_s14  ;;  %1698 = vrot.lane.b32.xlu1 %v1285_v28, %s3271_s14  ;;  %v3193_v28 = vld [vmem:[#allocation2 + $0x41] sm:$0xff] }
  0xf1   : > { %2199 = vmatmul.f32.gmra.mxu1 %v1798_v11  ;;  %2315 = vmatmul.f32.gmra.mxu2 %v1831_v50  ;;  %v1535_v30 = vpop.permute.xlu2 %1534  ;;  %v1665_v50 = vpop.permute.xlu0 %1664 }
  0xf2   : > { %2428 = vmatmul.f32.gmra.mxu3 %v4049_v62  ;;  %2948 = vmatmul.msk.f32.gmra.mxu0 %vm4994_vm12, %v1335_v57  ;;  %v1799_v62 = vsel %vm4997_vm2, %v1195_v27, %v1531_v53  ;;  %vm5003_vm12 = vmmov %vm4998_vm1  ;;  %v3190_v57 = vld [vmem:[#allocation2 + $0x31] sm:$0xff]  ;;  %v1246_v53 = vsel %vm3846_vm13, %v3952_v2, 0.0  ;;  %v3191_v27 = vld [vmem:[#allocation2 + $0x48] sm:$0xff]  ;;  %v1537_v23 = vpop.permute.xlu1 %1536 }
  0xf3   : > { %vm5004_vm2 = vmmov %vm4998_vm1  ;;  %v1197_v21 = vsel %vm3535_vm5, %v3190_v57, 0.0  ;;  %1564 = vrot.lane.b32.xlu2 %v1246_v53, %s3271_s14  ;;  %v5016_v57 = vld [vmem:[#allocation27_spill] sm:$0xff] }
  0xf4   : > { %v1801_v15 = vsel %vm4998_vm1, %v1197_v21, %v1535_v30  ;;  %1700 = vrot.lane.b32.xlu0 %v4177_v3, %s3271_s14  ;;  %vm5006_vm5 = vmmov %vm4998_vm1 }
  0xf9   : > { %2202 = vmatmul.f32.gmra.mxu1 %v1799_v62  ;;  %2318 = vmatmul.f32.gmra.mxu2 %v1832_v19  ;;  %v1667_v62 = vpop.permute.xlu2 %1666 }
  0xfa   : > { %2431 = vmatmul.f32.gmra.mxu3 %v3733_v41  ;;  %2949 = vmatmul.msk.f32.gmra.mxu0 %vm4999_vm3, %v3559_v31  ;;  %v3188_v41 = vld [vmem:[#allocation2 + $0x29] sm:$0xff]  ;;  %v3189_v31 = vld [vmem:[#allocation2 + $0x40] sm:$0xff]  ;;  %vm5005_vm3 = vmmov %vm4998_vm1 }
  0xfb   : > { %v1800_v16 = vsel %vm5002_vm9, %v3188_v41, %v1533_v8  ;;  %v1833_v11 = vsel %vm5003_vm12, %v3189_v31, %v1663_v43  ;;  %v1834_v24 = vsel %vm5005_vm3, %v3191_v27, %v1665_v50  ;;  %vm5007_vm9 = vmmov %vm4998_vm1  ;;  %1696 = vrot.lane.b32.xlu2 %v4191_v45, %s3271_s14  ;;  %v310_v41 = vld [vmem:[%s3330_s9 + $0xf0] sm:$0xff]  ;;  %v5017_v27 = vld [vmem:[#allocation23_spill] sm:$0xff] }
  0xfc   : > { %v1802_v19 = vsel %vm5007_vm9, %v3571_v40, %v1537_v23  ;;  %vm5008_vm12 = vmmov %vm4998_vm1  ;;  %1574 = vrot.lane.b32.xlu0 %v3784_v0, %s3271_s14  ;;  %v5009_v40 = vld [vmem:[#allocation25_spill] sm:$0xff]  ;;  %v1669_v0 = vpop.permute.xlu1 %1668 }
  0xfd   : > { %v1835_v8 = vsel %vm5008_vm12, %v3192_v7, %v1667_v62  ;;  %vm5013_vm3 = vmmov %vm4998_vm1 }
  0xfe   : > { %vm5020_vm9 = vmmov %vm4998_vm1 }
  0xff   : > { %vm5023_vm12 = vmmov %vm4998_vm1 }
 0x101   : > { %2205 = vmatmul.f32.gmra.mxu1 %v1800_v16  ;;  %2321 = vmatmul.f32.gmra.mxu2 %v1833_v11  ;;  %v5012_v16 = vld [vmem:[#allocation26_spill] sm:$0xff]  ;;  %v1541_v53 = vpop.permute.xlu2 %1540 }
 0x102   : > { %2434 = vmatmul.f32.gmra.mxu3 %v3766_v4  ;;  %2950 = vmatmul.msk.f32.gmra.mxu0 %vm5004_vm2, %v1337_v35  ;;  %v1250_v4 = vsel %vm3624_vm10, %v3743_v60, 0.0  ;;  %v4203_v60 = vld [vmem:[#allocation2 + $0xe9] sm:$0xff]  ;;  %vm5011_vm2 = vnez %v5010_v14  ;;  %v346_v31 = vmul.f32 %v5012_v16, %v310_v41  ;;  %v3194_v35 = vld [vmem:[#allocation2 + $0x58] sm:$0xff] }
 0x103   : > { %1572 = vrot.lane.b32.xlu1 %v1250_v4, %s3271_s14  ;;  %v1252_v43 = vsel %vm5011_vm2, %v5009_v40, 0.0 }
 0x104   : > { %v3137_v37 = vpack.i.bf16 %v1252_v43, %v4203_v60  ;;  %v382_v21 = vadd.f32 %v5016_v57, %v346_v31  ;;  %v3196_v43 = vld [vmem:[#allocation2 + $0x60] sm:$0xff]  ;;  %v1543_v31 = vpop.permute.xlu1 %1542 }
 0x109   : > { %2208 = vmatmul.f32.gmra.mxu1 %v1801_v15  ;;  %2324 = vmatmul.f32.gmra.mxu2 %v1834_v24  ;;  %v414_v15 = vmax.f32 %v382_v21, 0.0  ;;  %v5018_v24 = vld [vmem:[#allocation20_spill] sm:$0xff] }
 0x10a   : > { %2437 = vmatmul.f32.gmra.mxu3 %v3635_v47  ;;  %2951 = vmatmul.msk.f32.gmra.mxu0 %vm5006_vm5, %v3583_v51  ;;  %v1339_v51 = vsel %vm3637_vm11, %v3596_v1, 0.0  ;;  %v1539_v47 = vpop.permute.xlu0 %1538  ;;  %v1199_v1 = vsel %vm3637_vm11, %v3193_v28, 0.0  ;;  %vm5014_vm5 = vmmov %vm4998_vm1  ;;  %v5024_v28 = vld [vmem:[#allocation11_spill] sm:$0xff] }
 0x10b   : > { %3138 = vrot.lane.b32.xlu1 %v3137_v37, %s3271_s14  ;;  %v1803_v11 = vsel %vm5013_vm3, %v1199_v1, %v1539_v47  ;;  %v1836_v30 = vsel %vm5014_vm5, %v3194_v35, %v1669_v0  ;;  %vm5019_vm11 = vmmov %vm4998_vm1  ;;  %453 = vst.msk [vmem:[#allocation2 + $0x108] sm:$0xff] %vm5020_vm9, %v414_v15  ;;  %v3195_v47 = vld [vmem:[#allocation2 + $0x49] sm:$0xff]  ;;  %v5025_v1 = vld [vmem:[#allocation7_spill] sm:$0xff] }
 0x10c   : > { %v1804_v40 = vsel %vm5023_vm12, %v3195_v47, %v1541_v53  ;;  %vm5026_vm3 = vnez %v5025_v1  ;;  %vm5027_vm5 = vmmov %vm4998_vm1  ;;  %v4251_v35 = vld [vmem:[#allocation2 + $0xf9] sm:$0xff] }
 0x10d   : > { %v1341_v41 = vsel %vm5026_vm3, %v5024_v28, 0.0  ;;  %v1201_v57 = vsel %vm5026_vm3, %v3630_v46, 0.0  ;;  %v4274_v46 = vld [vmem:[#allocation2 + $0xe1] sm:$0xff]  ;;  %vm5035_vm12 = vmmov %vm4998_vm1 }
 0x111   : > { %2211 = vmatmul.f32.gmra.mxu1 %v1802_v19  ;;  %2327 = vmatmul.f32.gmra.mxu2 %v1835_v8  ;;  %v483_v19 = vadd.s32 216, %v3472_v33 }
 0x112   : > { %2440 = vmatmul.f32.gmra.mxu3 %v3881_v12  ;;  %2952 = vmatmul.msk.f32.gmra.mxu0 %vm4998_vm1, %v1339_v51  ;;  %v5015_v12 = vld [vmem:[#allocation9_spill] sm:$0xff]  ;;  %v1671_v23 = vpop.permute.xlu0 %1670 }
 0x113   : > { %1570 = vrot.lane.b32.xlu2 %v5015_v12, %s3271_s14  ;;  %v1837_v37 = vsel %vm4998_vm1, %v3196_v43, %v1671_v23  ;;  %v681_v16 = vand.u32 15, %v483_v19  ;;  %v1673_v12 = vpop.permute.xlu2 %1672  ;;  %v485_v19 = vadd.s32 232, %v3472_v33  ;;  %v1805_v43 = vsel %vm5035_vm12, %v1201_v57, %v1543_v31  ;;  %v5039_v57 = vld [vmem:[#allocation17_spill] sm:$0xff] }
 0x114   : > { %v5036_v31 = vmov 0 }
 0x117   : > { %v4220_v50 = vpop.f32.mrf.mxu0 }
 0x119   : > { %2214 = vmatmul.f32.gmra.mxu1 %v1803_v11  ;;  %2330 = vmatmul.f32.gmra.mxu2 %v1836_v30  ;;  %v481_v11 = vadd.s32 200, %v3472_v33  ;;  %v4253_v30 = vld [vmem:[#allocation2 + $0x108] sm:$0xff] }
 0x11a   : > { %2443 = vmatmul.f32.gmra.mxu3 %v5017_v27  ;;  %2953 = vmatmul.msk.f32.gmra.mxu0 %vm5019_vm11, %v5018_v24  ;;  %5028 = vst [vmem:[#allocation26_spill] sm:$0xff] %v4253_v30  ;;  %v3147_v21 = vpack.i.bf16 %v4253_v30, %v4251_v35  ;;  %vm4260_vm11 = vcmp.ne.s32.totalorder %v681_v16, 15  ;;  %v3199_v30 = vld [vmem:[#allocation2 + $0x70] sm:$0xff] }
 0x11b   : > { %v667_v53 = vand.u32 15, %v481_v11  ;;  %v695_v11 = vand.u32 15, %v485_v19 }
 0x11c   : > { %v2129_v4 = vpop.f32.mrf.mxu2  ;;  %v2153_v62 = vpop.f32.mrf.mxu3  ;;  %3148 = vrot.lane.b32.xlu0 %v3147_v21, %s3271_s14 }
 0x11d   : > { %v4234_v7 = vadd.f32 %v4226_v52, %v2129_v4  ;;  %v4237_v8 = vadd.f32 %v4226_v52, %v2153_v62  ;;  %vm4270_vm9 = vcmp.ne.s32.totalorder %v667_v53, 15  ;;  %v1545_v53 = vpop.permute.xlu0 %1544  ;;  %vm4293_vm3 = vcmp.ne.s32.totalorder %v695_v11, 15 }
 0x11e   : > { %v4239_v51 = vpop.f32.mrf.mxu1  ;;  %v5037_v31 = vsel %vm4293_vm3, 4294967295, %v5036_v31 }
 0x11f   : > { %5021 = vst [vmem:[#allocation25_spill] sm:$0xff] %v4234_v7  ;;  %v4243_v0 = vpop.f32.mrf.mxu0 }
 0x120   : > { %5022 = vst [vmem:[#allocation16_spill] sm:$0xff] %v4237_v8 }
 0x121   : > { %2217 = vmatmul.f32.gmra.mxu1 %v1804_v40  ;;  %2333 = vmatmul.f32.gmra.mxu2 %v1837_v37  ;;  %v3197_v37 = vld [vmem:[#allocation2 + $0x68] sm:$0xff]  ;;  %5038 = vst [vmem:[#allocation23_spill] sm:$0xff] %v5037_v31 }
 0x122   : > { %2446 = vmatmul.f32.gmra.mxu3 %v3995_v39  ;;  %2954 = vmatmul.msk.f32.gmra.mxu0 %vm5027_vm5, %v1341_v41  ;;  %v4264_v39 = vld [vmem:[#allocation2 + $0xf1] sm:$0xff]  ;;  %v1838_v1 = vsel %vm4998_vm1, %v3197_v37, %v1673_v12  ;;  %v1287_v41 = vsel %vm4270_vm9, %v4274_v46, 0.0  ;;  %v4297_v12 = vld [vmem:[#allocation2 + $0x101] sm:$0xff]  ;;  %vm5040_vm5 = vmmov %vm4998_vm1 }
 0x123   : > { %1702 = vrot.lane.b32.xlu2 %v1287_v41, %s3271_s14  ;;  %v1289_v21 = vsel %vm4260_vm11, %v4264_v39, 0.0  ;;  %v1291_v19 = vsel %vm4293_vm3, %v4297_v12, 0.0 }
 0x124   : > { %v2132_v15 = vpop.f32.mrf.mxu2 }
 0x125   : > { %v4267_v23 = vadd.f32 %v4226_v52, %v2132_v15  ;;  %v2156_v4 = vpop.f32.mrf.mxu3  ;;  %v5041_v15 = vld [vmem:[#allocation24_spill] sm:$0xff] }
 0x126   : > { %v4278_v47 = vadd.f32 %v4226_v52, %v2156_v4  ;;  %v4280_v40 = vpop.f32.mrf.mxu1  ;;  %vm5042_vm12 = vnez %v5041_v15 }
 0x127   : > { %5031 = vst [vmem:[#allocation9_spill] sm:$0xff] %v4267_v23  ;;  %v4287_v16 = vpop.f32.mrf.mxu0  ;;  %v1254_v4 = vsel %vm5042_vm12, %v3960_v32, 0.0  ;;  %v3198_v32 = vld [vmem:[#allocation2 + $0x59] sm:$0xff]  ;;  %vm5051_vm12 = vmmov %vm4998_vm1 }
 0x128   : > { %5034 = vst [vmem:[#allocation27_spill] sm:$0xff] %v4278_v47  ;;  %v3152_v41 = vpack.i.bf16 %v1291_v19, %v1254_v4  ;;  %v1806_v7 = vsel %vm4998_vm1, %v3198_v32, %v1545_v53  ;;  %v5047_v4 = vld [vmem:[#allocation35_spill] sm:$0xff]  ;;  %v5048_v19 = vld [vmem:[#allocation13_spill] sm:$0xff]  ;;  %v1677_v32 = vpop.permute.xlu0 %1676 }
 0x129   : > { %2220 = vmatmul.f32.gmra.mxu1 %v1805_v43  ;;  %2336 = vmatmul.f32.gmra.mxu2 %v1838_v1  ;;  %v5043_v43 = vld [vmem:[#allocation30_spill] sm:$0xff]  ;;  %v1675_v1 = vpop.permute.xlu1 %1674  ;;  %vm5049_vm3 = vnez %v5048_v19  ;;  %v3201_v19 = vld [vmem:[#allocation2 + $0x78] sm:$0xff] }
 0x12a   : > { %2449 = vmatmul.f32.gmra.mxu3 %v3910_v5  ;;  %2955 = vmatmul.msk.f32.gmra.mxu0 %vm5040_vm5, %v5039_v57  ;;  %v3142_v37 = vpack.i.bf16 %v5043_v43, %v1289_v21  ;;  %vm5046_vm5 = vmmov %vm4998_vm1  ;;  %v4330_v53 = vld [vmem:[#allocation2 + $0x109] sm:$0xff] }
 0x12b   : > { %3153 = vrot.lane.b32.xlu1 %v3152_v41, %s3271_s14  ;;  %v1839_v21 = vsel %vm5046_vm5, %v3199_v30, %v1675_v1  ;;  %v4326_v41 = vld [vmem:[#allocation2 + $0x110] sm:$0xff]  ;;  %5052 = vst [vmem:[#allocation17_spill] sm:$0xff] %v4330_v53  ;;  %v1328_v30 = vld [vmem:[#allocation2 + $0x118] sm:$0xff] }
 0x12c   : > { %v2135_v11 = vpop.f32.mrf.mxu2  ;;  %3143 = vrot.lane.b32.xlu2 %v3142_v37, %s3271_s14  ;;  %5050 = vst [vmem:[#allocation7_spill] sm:$0xff] %v4326_v41  ;;  %v3157_v1 = vpack.i.bf16 %v4026_v10, %v4326_v41 }
 0x12d   : > { %v4310_v47 = vadd.f32 %v4226_v52, %v2135_v11  ;;  %v2159_v5 = vpop.f32.mrf.mxu3  ;;  %v1343_v11 = vsel %vm5049_vm3, %v5047_v4, 0.0 }
 0x12e   : > { %v4314_v8 = vadd.f32 %v4226_v52, %v2159_v5  ;;  %v4316_v23 = vpop.f32.mrf.mxu1  ;;  %v1547_v5 = vpop.permute.xlu2 %1546 }
 0x12f   : > { %5044 = vst [vmem:[#allocation20_spill] sm:$0xff] %v4310_v47  ;;  %v4320_v43 = vpop.f32.mrf.mxu0  ;;  %v3162_v47 = vpack.i.bf16 %v1328_v30, %v4330_v53 }
 0x130   : > { %5045 = vst [vmem:[#allocation11_spill] sm:$0xff] %v4314_v8  ;;  %v3200_v8 = vld [vmem:[#allocation2 + $0x61] sm:$0xff] }
 0x131   : > { %2223 = vmatmul.f32.gmra.mxu1 %v1806_v7  ;;  %2339 = vmatmul.f32.gmra.mxu2 %v1839_v21  ;;  %v1203_v37 = vsel %vm5049_vm3, %v3200_v8, 0.0  ;;  %vm5057_vm3 = vmmov %vm4998_vm1 }
 0x132   : > { %2452 = vmatmul.f32.gmra.mxu3 %v4064_v63  ;;  %2956 = vmatmul.msk.f32.gmra.mxu0 %vm5051_vm12, %v1343_v11  ;;  %v487_v11 = vadd.s32 248, %v3472_v33  ;;  %vm5056_vm12 = vmmov %vm4998_vm1  ;;  %v1840_v8 = vsel %vm5057_vm3, %v3201_v19, %v1677_v32  ;;  %v5058_v33 = vmov 0  ;;  %v5065_v32 = vld [vmem:[#allocation34_spill] sm:$0xff] }
 0x133   : > { %3163 = vrot.lane.b32.xlu0 %v3162_v47, %s3271_s14  ;;  %v1807_v41 = vsel %vm5056_vm12, %v1203_v37, %v1547_v5  ;;  %v1549_v47 = vpop.permute.xlu1 %1548  ;;  %v5062_v5 = vld [vmem:[#allocation10_spill] sm:$0xff]  ;;  %v5063_v37 = vld [vmem:[#allocation28_spill] sm:$0xff]  ;;  %vm5064_vm5 = vmmov %vm5057_vm3  ;;  %vm5066_vm12 = vnez %v5065_v32 }
 0x134   : > { %v2138_v7 = vpop.f32.mrf.mxu2  ;;  %v709_v53 = vand.u32 15, %v487_v11  ;;  %3158 = vrot.lane.b32.xlu2 %v3157_v1, %s3271_s14  ;;  %v1808_v32 = vsel %vm5057_vm3, %v5018_v24, %v1549_v47 }
 0x135   : > { %v4338_v21 = vadd.f32 %v4226_v52, %v2138_v7  ;;  %v2162_v63 = vpop.f32.mrf.mxu3  ;;  %v4356_v7 = vld [vmem:[#allocation2 + $0x107] sm:$0xff] }
 0x136   : > { %v4343_v31 = vadd.f32 %v4226_v52, %v2162_v63  ;;  %v4345_v10 = vpop.f32.mrf.mxu1  ;;  %vm4352_vm1 = vcmp.ne.s32.totalorder %v709_v53, 15  ;;  %v4358_v63 = vld [vmem:[#allocation2 + $0x111] sm:$0xff]  ;;  %v1256_v1 = vsel %vm5066_vm12, %v4356_v7, 0.0  ;;  %v1679_v53 = vpop.permute.xlu2 %1678  ;;  %vm5074_vm12 = vmmov %vm5057_vm3 }
 0x137   : > { %5053 = vst [vmem:[#allocation24_spill] sm:$0xff] %v4338_v21  ;;  %v4349_v30 = vpop.f32.mrf.mxu0  ;;  %v5059_v33 = vsel %vm4352_vm1, 4294967295, %v5058_v33 }
 0x138   : > { %5054 = vst [vmem:[#allocation30_spill] sm:$0xff] %v4343_v31 }
 0x139   : > { %5055 = vst [vmem:[#allocation35_spill] sm:$0xff] %v4345_v10  ;;  %2226 = vmatmul.f32.gmra.mxu1 %v1807_v41  ;;  %2342 = vmatmul.f32.gmra.mxu2 %v1840_v8  ;;  %v1293_v41 = vsel %vm4352_vm1, %v4358_v63, 0.0  ;;  %v3202_v10 = vld [vmem:[#allocation2 + $0x80] sm:$0xff] }
 0x13a   : > { %5060 = vst [vmem:[#allocation13_spill] sm:$0xff] %v5059_v33  ;;  %2455 = vmatmul.f32.gmra.mxu3 %v5062_v5  ;;  %2957 = vmatmul.msk.f32.gmra.mxu0 %vm5064_vm5, %v5063_v37  ;;  %v3167_v11 = vpack.i.bf16 %v1293_v41, %v1256_v1  ;;  %vm5069_vm5 = vmmov %vm5057_vm3  ;;  %v5070_v1 = vld [vmem:[#allocation29_spill] sm:$0xff]  ;;  %v5071_v41 = vld [vmem:[#allocation36_spill] sm:$0xff] }
 0x13b   : > { %5061 = vst [vmem:[#allocation37_spill] sm:$0xff] %v4358_v63  ;;  %v1841_v33 = vsel %vm5069_vm5, %v3202_v10, %v1679_v53  ;;  %vm5072_vm1 = vnez %v5071_v41  ;;  %vm5078_vm5 = vmmov %vm5057_vm3  ;;  %v1310_v41 = vsel %vm4010_vm15, %v3729_v25, 0.0 }
 0x13c   : > { %v2141_v19 = vpop.f32.mrf.mxu2  ;;  %3168 = vrot.lane.b32.xlu1 %v3167_v11, %s3271_s14  ;;  %v1551_v11 = vpop.permute.xlu0 %1550  ;;  %v1205_v24 = vsel %vm5072_vm1, %v5024_v28, 0.0 }
 0x13d   : > { %v4370_v8 = vadd.f32 %v4226_v52, %v2141_v19  ;;  %v2165_v31 = vpop.f32.mrf.mxu3  ;;  %v1345_v19 = vsel %vm5072_vm1, %v5070_v1, 0.0  ;;  %vm5081_vm1 = vmmov %vm5057_vm3 }
 0x13e   : > { %v4374_v5 = vadd.f32 %v4226_v52, %v2165_v31  ;;  %v4376_v21 = vpop.f32.mrf.mxu1  ;;  %v1681_v31 = vpop.permute.xlu1 %1680  ;;  %vm5086_vm15 = vmmov %vm5081_vm1 }
 0x13f   : > { %5067 = vst [vmem:[#allocation10_spill] sm:$0xff] %v4370_v8  ;;  %v4381_v63 = vpop.f32.mrf.mxu0  ;;  %v5073_v8 = vld [vmem:[#allocation15_spill] sm:$0xff] }
 0x140   : > { %5068 = vst [vmem:[#allocation28_spill] sm:$0xff] %v4374_v5 }
 0x141   : > { %2229 = vmatmul.f32.gmra.mxu1 %v1808_v32  ;;  %2345 = vmatmul.f32.gmra.mxu2 %v1841_v33  ;;  %v1809_v33 = vsel %vm5057_vm3, %v1205_v24, %v1551_v11  ;;  %vm5087_vm3 = vmmov %vm5081_vm1 }
 0x142   : > { %2458 = vmatmul.f32.gmra.mxu3 %v5073_v8  ;;  %2958 = vmatmul.msk.f32.gmra.mxu0 %vm5074_vm12, %v1345_v19  ;;  %v3203_v8 = vld [vmem:[#allocation2 + $0x88] sm:$0xff]  ;;  %vm5082_vm12 = vmmov %vm5081_vm1 }
 0x143   : > { %v1842_v19 = vsel %vm5078_vm5, %v3203_v8, %v1681_v31 }
 0x144   : > { %v2144_v47 = vpop.f32.mrf.mxu2  ;;  %v1683_v11 = vpop.permute.xlu0 %1682 }
 0x145   : > { %v4392_v10 = vadd.f32 %v4226_v52, %v2144_v47  ;;  %v2168_v53 = vpop.f32.mrf.mxu3  ;;  %v5079_v47 = vld [vmem:[#allocation12_spill] sm:$0xff] }
 0x146   : > { %v4395_v5 = vadd.f32 %v4226_v52, %v2168_v53  ;;  %v4397_v32 = vpop.f32.mrf.mxu1 }
 0x147   : > { %5075 = vst [vmem:[#allocation29_spill] sm:$0xff] %v4392_v10  ;;  %v4404_v28 = vpop.f32.mrf.mxu0  ;;  %v5080_v10 = vunpack.i.h.bf16 %v5079_v47  ;;  %v5088_v47 = vld [vmem:[#allocation31_spill] sm:$0xff] }
 0x148   : > { %5076 = vst [vmem:[#allocation36_spill] sm:$0xff] %v4395_v5  ;;  %v1553_v5 = vpop.permute.xlu2 %1552  ;;  %vm5089_vm5 = vnez %v5088_v47 }
 0x149   : > { %5077 = vst [vmem:[#allocation15_spill] sm:$0xff] %v4397_v32  ;;  %2232 = vmatmul.f32.gmra.mxu1 %v1809_v33  ;;  %2348 = vmatmul.f32.gmra.mxu2 %v1842_v19  ;;  %v1874_v53 = vsel %vm5081_vm1, %v1310_v41, %v5080_v10  ;;  %v1810_v8 = vsel %vm5086_vm15, %v5039_v57, %v1553_v5  ;;  %v3204_v10 = vld [vmem:[#allocation2 + $0x90] sm:$0xff]  ;;  %v1207_v57 = vsel %vm5089_vm5, %v5047_v4, 0.0  ;;  %vm5095_vm15 = vmmov %vm5081_vm1 }
 0x14a   : > { %2461 = vmatmul.f32.gmra.mxu3 %v1874_v53  ;;  %2959 = vmatmul.msk.f32.gmra.mxu0 %vm5082_vm12, %v4076_v54  ;;  %v1843_v19 = vsel %vm5087_vm3, %v3204_v10, %v1683_v11  ;;  %v1347_v53 = vsel %vm5089_vm5, %v4017_v44, 0.0  ;;  %vm5094_vm12 = vmmov %vm5081_vm1  ;;  %vm5096_vm3 = vnez %v4899_v26 }
 0x14b   : > { %v1312_v47 = vsel %vm5096_vm3, %v3821_v55, 0.0  ;;  %vm5099_vm5 = vmmov %vm5081_vm1  ;;  %v2082_v55 = vadd.f32 %v4226_v52, %v4220_v50  ;;  %v5102_v50 = vld [vmem:[#allocation32_spill] sm:$0xff] }
 0x14c   : > { %v2147_v24 = vpop.f32.mrf.mxu2  ;;  %vm5103_vm3 = vmmov %vm5081_vm1 }
 0x14d   : > { %v4412_v31 = vadd.f32 %v4226_v52, %v2147_v24  ;;  %v2171_v20 = vpop.f32.mrf.mxu3  ;;  %v1555_v24 = vpop.permute.xlu1 %1554 }
 0x14e   : > { %v4415_v25 = vadd.f32 %v4226_v52, %v2171_v20  ;;  %v4417_v33 = vpop.f32.mrf.mxu1 }
 0x14f   : > { %5083 = vst [vmem:[#allocation12_spill] sm:$0xff] %v4412_v31  ;;  %v4422_v41 = vpop.f32.mrf.mxu0  ;;  %v5090_v31 = vld [vmem:[#allocation21_spill] sm:$0xff] }
 0x150   : > { %5084 = vst [vmem:[#allocation38_spill] sm:$0xff] %v4415_v25  ;;  %v1685_v20 = vpop.permute.xlu2 %1684 }
 0x151   : > { %5085 = vst [vmem:[#allocation39_spill] sm:$0xff] %v4417_v33  ;;  %2235 = vmatmul.f32.gmra.mxu1 %v1810_v8  ;;  %2351 = vmatmul.f32.gmra.mxu2 %v1843_v19  ;;  %v1811_v19 = vsel %vm5094_vm12, %v1207_v57, %v1555_v24  ;;  %v4445_v33 = vld [vmem:[#allocation2 + $0x10f] sm:$0xff]  ;;  %vm5100_vm12 = vmmov %vm5081_vm1 }
 0x152   : > { %2464 = vmatmul.f32.gmra.mxu3 %v5090_v31  ;;  %2960 = vmatmul.msk.f32.gmra.mxu0 %vm5081_vm1, %v1347_v53  ;;  %v3205_v31 = vld [vmem:[#allocation2 + $0x98] sm:$0xff] }
 0x153   : > { %v1844_v53 = vsel %vm5095_vm15, %v3205_v31, %v1685_v20  ;;  %v3206_v31 = vld [vmem:[#allocation2 + $0xa0] sm:$0xff]  ;;  %vm5101_vm15 = vmmov %vm5081_vm1 }
 0x154   : > { %v2150_v5 = vpop.f32.mrf.mxu2 }
 0x155   : > { %v4433_v11 = vadd.f32 %v4226_v52, %v2150_v5  ;;  %v2174_v10 = vpop.f32.mrf.mxu3  ;;  %v1329_v5 = vld [vmem:[#allocation2 + $0x120] sm:$0xff]  ;;  %v1687_v20 = vpop.permute.xlu1 %1686 }
 0x156   : > { %v4436_v25 = vadd.f32 %v4226_v52, %v2174_v10  ;;  %v4438_v8 = vpop.f32.mrf.mxu1  ;;  %v3172_v24 = vpack.i.bf16 %v4445_v33, %v1329_v5  ;;  %v1349_v5 = vsel %vm4028_vm4, %v4132_v13, 0.0 }
 0x157   : > { %5091 = vst [vmem:[#allocation31_spill] sm:$0xff] %v4433_v11  ;;  %v2533_v4 = vpop.f32.mrf.mxu0  ;;  %v5097_v11 = vld [vmem:[#allocation18_spill] sm:$0xff] }
 0x158   : > { %5092 = vst [vmem:[#allocation21_spill] sm:$0xff] %v4436_v25  ;;  %v5098_v10 = vunpack.i.h.bf16 %v5097_v11  ;;  %3173 = vrot.lane.b32.xlu2 %v3172_v24, %s3271_s14  ;;  %v1559_v24 = vpop.permute.xlu2 %1558 }
 0x159   : > { %5093 = vst [vmem:[#allocation40_spill] sm:$0xff] %v4438_v8  ;;  %2238 = vmatmul.f32.gmra.mxu1 %v1811_v19  ;;  %2354 = vmatmul.f32.gmra.mxu2 %v1844_v53  ;;  %v1557_v8 = vpop.permute.xlu0 %1556  ;;  %v1845_v53 = vsel %vm5101_vm15, %v3206_v31, %v1687_v20  ;;  %v3207_v31 = vld [vmem:[#allocation2 + $0xa8] sm:$0xff]  ;;  %vm5108_vm15 = vmmov %vm5081_vm1 }
 0x15a   : > { %v1876_v25 = vsel %vm5099_vm5, %v1312_v47, %v5098_v10  ;;  %2961 = vmatmul.msk.f32.gmra.mxu0 %vm5081_vm1, %v4057_v58  ;;  %v1812_v11 = vsel %vm5100_vm12, %v5063_v37, %v1557_v8  ;;  %v1209_v8 = vsel %vm4028_vm4, %v5070_v1, 0.0  ;;  %vm5104_vm5 = vmmov %vm5081_vm1  ;;  %v1314_v1 = vsel %vm3717_vm8, %v3952_v2, 0.0 }
 0x15b   : > { %2467 = vmatmul.f32.gmra.mxu3 %v1876_v25  ;;  %vm5105_vm4 = vmmov %vm5081_vm1 }
 0x15c   : > { %v2307_v26 = vpop.f32.mrf.mxu2  ;;  %vm5107_vm12 = vmmov %vm5081_vm1 }
 0x15d   : > { %v2420_v57 = vpop.f32.mrf.mxu3  ;;  %vm5109_vm8 = vmmov %vm5081_vm1 }
 0x15e   : > { %v2194_v19 = vpop.f32.mrf.mxu1 }
 0x15f   : > { %v2195_v25 = vadd.f32 %v2194_v19, %v2082_v55  ;;  %v2536_v47 = vpop.f32.mrf.mxu0 }
 0x160   : > { %v1691_v6 = vpop.permute.xlu2 %1690 }
 0x161   : > { %v2308_v10 = vadd.f32 %v2307_v26, %v2195_v25  ;;  %2241 = vmatmul.f32.gmra.mxu1 %v1812_v11  ;;  %2357 = vmatmul.f32.gmra.mxu2 %v1845_v53  ;;  %v1689_v37 = vpop.permute.xlu0 %1688  ;;  %v2085_v26 = vadd.f32 %v4226_v52, %v4243_v0  ;;  %v5106_v0 = vunpack.i.h.bf16 %v3899_v59 }
 0x162   : > { %2962 = vmatmul.msk.f32.gmra.mxu0 %vm5103_vm3, %v1349_v5  ;;  %v1846_v61 = vsel %vm5081_vm1, %v3207_v31, %v1689_v37  ;;  %vm5110_vm3 = vmmov %vm5081_vm1 }
 0x163   : > { %2470 = vmatmul.f32.gmra.mxu3 %v5102_v50  ;;  %v2421_v32 = vadd.f32 %v2420_v57, %v2308_v10  ;;  %v1813_v57 = vsel %vm5104_vm5, %v1209_v8, %v1559_v24  ;;  %v2088_v24 = vadd.f32 %v4226_v52, %v4287_v16  ;;  %vm5111_vm5 = vmmov %vm5081_vm1 }
 0x164   : > { %v2310_v20 = vpop.f32.mrf.mxu2 }
 0x165   : > { %v2423_v55 = vpop.f32.mrf.mxu3  ;;  %v2534_v19 = vadd.f32 %v2533_v4, %v2421_v32  ;;  %v1878_v32 = vsel %vm5107_vm12, %v1314_v1, %v5106_v0  ;;  %v1561_v4 = vpop.permute.xlu1 %1560  ;;  %vm5113_vm12 = vmmov %vm5081_vm1 }
 0x166   : > { %v2197_v11 = vpop.f32.mrf.mxu1  ;;  %v1814_v59 = vsel %vm5109_vm8, %v4076_v54, %v1561_v4  ;;  %vm5115_vm8 = vmmov %vm5081_vm1 }
 0x167   : > { %2629 = vst.msk [vmem:[%s4472_s24] sm:$0xff] %vm5105_vm4, %v2534_v19  ;;  %v2198_v53 = vadd.f32 %v2197_v11, %v2085_v26  ;;  %v2539_v25 = vpop.f32.mrf.mxu0  ;;  %v2730_v50 = vmul.f32 %v2534_v19, %v2534_v19  ;;  %v3208_v26 = vld [vmem:[#allocation2 + $0xb0] sm:$0xff]  ;;  %vm5112_vm4 = vmmov %vm5081_vm1 }
 0x168   : > { %v1847_v11 = vsel %vm5110_vm3, %v3208_v26, %v1691_v6  ;;  %vm5116_vm3 = vmmov %vm5081_vm1  ;;  %v3210_v26 = vld [vmem:[#allocation2 + $0xc7] sm:$0xff]  ;;  %v1565_v42 = vpop.permute.xlu2 %1564 }
 0x169   : > { %v2311_v5 = vadd.f32 %v2310_v20, %v2198_v53  ;;  %2244 = vmatmul.f32.gmra.mxu1 %v1813_v57  ;;  %2360 = vmatmul.f32.gmra.mxu2 %v1846_v61  ;;  %v1351_v57 = vsel %vm4137_vm7, %v4112_v29, 0.0  ;;  %v2762_v53 = vsel %vm5113_vm12, %v2730_v50, 0.0  ;;  %v1563_v0 = vpop.permute.xlu0 %1562  ;;  %vm5122_vm12 = vmmov %vm5081_vm1 }
 0x16a   : > { %2963 = vmatmul.msk.f32.gmra.mxu0 %vm5108_vm15, %v4093_v17  ;;  %vm5114_vm15 = vmmov %vm5081_vm1 }
 0x16b   : > { %2473 = vmatmul.f32.gmra.mxu3 %v1878_v32  ;;  %v2424_v10 = vadd.f32 %v2423_v55, %v2311_v5  ;;  %v2661_v55 = vsel %vm5111_vm5, %v2534_v19, 0.0  ;;  %vm5117_vm5 = vmmov %vm5081_vm1 }
 0x16c   : > { %v2313_v2 = vpop.f32.mrf.mxu2 }
 0x16d   : > { %v2426_v37 = vpop.f32.mrf.mxu3  ;;  %v2537_v8 = vadd.f32 %v2536_v47, %v2424_v10  ;;  %v1693_v4 = vpop.permute.xlu1 %1692  ;;  %v1211_v10 = vsel %vm4137_vm7, %v4017_v44, 0.0  ;;  %vm5119_vm7 = vmmov %vm5081_vm1 }
 0x16e   : > { %v2200_v20 = vpop.f32.mrf.mxu1 }
 0x16f   : > { %2630 = vst.msk [vmem:[%s4472_s24 + $0x8] sm:$0xff] %vm5081_vm1, %v2537_v8  ;;  %v2662_v16 = vsel %vm5112_vm4, %v2537_v8, 0.0  ;;  %v2731_v31 = vmul.f32 %v2537_v8, %v2537_v8  ;;  %v2201_v61 = vadd.f32 %v2200_v20, %v2088_v24  ;;  %v2542_v47 = vpop.f32.mrf.mxu0  ;;  %v2091_v24 = vadd.f32 %v4226_v52, %v4320_v43  ;;  %vm5118_vm4 = vmmov %vm5081_vm1 }
 0x170   : > { %v2663_v1 = vadd.f32 %v2662_v16, %v2661_v55  ;;  %v1815_v20 = vsel %vm5116_vm3, %v1211_v10, %v1563_v0  ;;  %v5120_v16 = vld [vmem:[#allocation8_spill] sm:$0xff]  ;;  %vm5126_vm3 = vmmov %vm5081_vm1 }
 0x171   : > { %v2763_v54 = vsel %vm5114_vm15, %v2731_v31, 0.0  ;;  %v2314_v5 = vadd.f32 %v2313_v2, %v2201_v61  ;;  %2247 = vmatmul.f32.gmra.mxu1 %v1814_v59  ;;  %2363 = vmatmul.f32.gmra.mxu2 %v1847_v11  ;;  %v3209_v59 = vld [vmem:[#allocation2 + $0xb8] sm:$0xff]  ;;  %v5121_v31 = vunpack.i.h.bf16 %v5120_v16  ;;  %vm5124_vm15 = vmmov %vm5081_vm1 }
 0x172   : > { %v2764_v32 = vadd.f32 %v2763_v54, %v2762_v53  ;;  %2964 = vmatmul.msk.f32.gmra.mxu0 %vm5115_vm8, %v1351_v57  ;;  %vm5125_vm8 = vmmov %vm5081_vm1 }
 0x173   : > { %2476 = vmatmul.f32.gmra.mxu3 %v4040_v56  ;;  %v2427_v19 = vadd.f32 %v2426_v37, %v2314_v5  ;;  %v1848_v56 = vsel %vm5117_vm5, %v3209_v59, %v1693_v4  ;;  %v1316_v37 = vsel %vm3846_vm13, %v3210_v26, 0.0  ;;  %vm5123_vm13 = vmmov %vm5081_vm1  ;;  %v1695_v5 = vpop.permute.xlu0 %1694 }
 0x174   : > { %v2316_v6 = vpop.f32.mrf.mxu2  ;;  %v1880_v61 = vsel %vm5122_vm12, %v1316_v37, %v5121_v31  ;;  %vm5127_vm5 = vmmov %vm5081_vm1  ;;  %v5128_v37 = vld [vmem:[#allocation14_spill] sm:$0xff] }
 0x175   : > { %v2429_v2 = vpop.f32.mrf.mxu3  ;;  %v2540_v50 = vadd.f32 %v2539_v25, %v2427_v19  ;;  %vm5131_vm12 = vmmov %vm5081_vm1 }
 0x176   : > { %v2203_v8 = vpop.f32.mrf.mxu1 }
 0x177   : > { %2631 = vst.msk [vmem:[%s4472_s24 + $0x10] sm:$0xff] %vm5081_vm1, %v2540_v50  ;;  %v2664_v44 = vsel %vm5118_vm4, %v2540_v50, 0.0  ;;  %v2732_v38 = vmul.f32 %v2540_v50, %v2540_v50  ;;  %v2204_v11 = vadd.f32 %v2203_v8, %v2091_v24  ;;  %v2545_v57 = vpop.f32.mrf.mxu0  ;;  %v3211_v24 = vld [vmem:[#allocation2 + $0xc0] sm:$0xff]  ;;  %vm5129_vm4 = vmmov %vm5081_vm1 }
 0x178   : > { %v2665_v43 = vadd.f32 %v2664_v44, %v2663_v1  ;;  %v2094_v1 = vadd.f32 %v4226_v52, %v4349_v30  ;;  %v1849_v50 = vsel %vm5125_vm8, %v3211_v24, %v1695_v5  ;;  %v1353_v30 = vsel %vm4116_vm6, %v4155_v48, 0.0  ;;  %vm5137_vm8 = vmmov %vm5081_vm1 }
 0x179   : > { %v2765_v25 = vsel %vm5119_vm7, %v2732_v38, 0.0  ;;  %v2317_v55 = vadd.f32 %v2316_v6, %v2204_v11  ;;  %2250 = vmatmul.f32.gmra.mxu1 %v1815_v20  ;;  %2366 = vmatmul.f32.gmra.mxu2 %v1848_v56  ;;  %v1816_v6 = vsel %vm5124_vm15, %v4057_v58, %v1565_v42  ;;  %v1567_v58 = vpop.permute.xlu1 %1566  ;;  %v1697_v38 = vpop.permute.xlu2 %1696  ;;  %v1213_v11 = vsel %vm4116_vm6, %v4132_v13, 0.0  ;;  %vm5130_vm7 = vmmov %vm5081_vm1  ;;  %v3212_v42 = vld [vmem:[#allocation2 + $0xc8] sm:$0xff] }
 0x17a   : > { %v2766_v53 = vadd.f32 %v2765_v25, %v2764_v32  ;;  %2965 = vmatmul.msk.f32.gmra.mxu0 %vm5123_vm13, %v4191_v45  ;;  %vm5132_vm13 = vmmov %vm5081_vm1 }
 0x17b   : > { %2479 = vmatmul.f32.gmra.mxu3 %v1880_v61  ;;  %v2430_v54 = vadd.f32 %v2429_v2, %v2317_v55  ;;  %v1817_v61 = vsel %vm5130_vm7, %v1213_v11, %v1567_v58  ;;  %vm5133_vm15 = vmmov %vm5081_vm1  ;;  %v1569_v18 = vpop.permute.xlu0 %1568  ;;  %v3214_v58 = vld [vmem:[#allocation2 + $0xd0] sm:$0xff] }
 0x17c   : > { %v2319_v0 = vpop.f32.mrf.mxu2  ;;  %vm5134_vm6 = vmmov %vm5081_vm1 }
 0x17d   : > { %v2432_v19 = vpop.f32.mrf.mxu3  ;;  %v2543_v4 = vadd.f32 %v2542_v47, %v2430_v54  ;;  %v3213_v54 = vld [vmem:[#allocation2 + $0xd7] sm:$0xff]  ;;  %vm5142_vm7 = vmmov %vm5081_vm1 }
 0x17e   : > { %v2206_v10 = vpop.f32.mrf.mxu1  ;;  %v1318_v5 = vsel %vm3966_vm14, %v3213_v54, 0.0  ;;  %vm5138_vm14 = vmmov %vm5081_vm1  ;;  %v2103_v54 = vadd.f32 %v4226_v52, %v4422_v41 }
 0x17f   : > { %2632 = vst.msk [vmem:[%s4472_s24 + $0x18] sm:$0xff] %vm5126_vm3, %v2543_v4  ;;  %v2666_v32 = vsel %vm5127_vm5, %v2543_v4, 0.0  ;;  %v2733_v8 = vmul.f32 %v2543_v4, %v2543_v4  ;;  %v2207_v2 = vadd.f32 %v2206_v10, %v2094_v1  ;;  %v2548_v20 = vpop.f32.mrf.mxu0  ;;  %v5135_v4 = vld [vmem:[#allocation6_spill] sm:$0xff]  ;;  %vm5139_vm3 = vmmov %vm5081_vm1 }
 0x180   : > { %v2667_v59 = vadd.f32 %v2666_v32, %v2665_v43  ;;  %v2097_v43 = vadd.f32 %v4226_v52, %v4381_v63  ;;  %v5136_v10 = vunpack.i.h.bf16 %v5135_v4  ;;  %vm5140_vm5 = vmmov %vm5081_vm1  ;;  %v3216_v4 = vld [vmem:[#allocation2 + $0xe7] sm:$0xff] }
 0x181   : > { %v2767_v47 = vsel %vm5081_vm1, %v2733_v8, 0.0  ;;  %v2320_v56 = vadd.f32 %v2319_v0, %v2207_v2  ;;  %2253 = vmatmul.f32.gmra.mxu1 %v1816_v6  ;;  %2369 = vmatmul.f32.gmra.mxu2 %v1849_v50  ;;  %v1699_v32 = vpop.permute.xlu1 %1698  ;;  %v2100_v2 = vadd.f32 %v4226_v52, %v4404_v28  ;;  %v1355_v28 = vsel %vm4151_vm0, %v4274_v46, 0.0 }
 0x182   : > { %v2768_v26 = vadd.f32 %v2767_v47, %v2766_v53  ;;  %2966 = vmatmul.msk.f32.gmra.mxu0 %vm5129_vm4, %v1353_v30  ;;  %v1850_v53 = vsel %vm5131_vm12, %v3212_v42, %v1697_v38  ;;  %v1882_v6 = vsel %vm5137_vm8, %v1318_v5, %v5136_v10  ;;  %vm5141_vm4 = vmmov %vm5081_vm1  ;;  %v1215_v42 = vsel %vm4151_vm0, %v4112_v29, 0.0 }
 0x183   : > { %2482 = vmatmul.f32.gmra.mxu3 %v5128_v37  ;;  %v2433_v44 = vadd.f32 %v2432_v19, %v2320_v56  ;;  %v1818_v56 = vsel %vm5139_vm3, %v4093_v17, %v1569_v18  ;;  %v1851_v37 = vsel %vm5140_vm5, %v3214_v58, %v1699_v32  ;;  %v1571_v17 = vpop.permute.xlu2 %1570  ;;  %vm5144_vm12 = vmmov %vm5081_vm1  ;;  %v1320_v10 = vsel %vm3624_vm10, %v3216_v4, 0.0 }
 0x184   : > { %v2322_v25 = vpop.f32.mrf.mxu2  ;;  %vm5148_vm0 = vmmov %vm5081_vm1 }
 0x185   : > { %v2435_v55 = vpop.f32.mrf.mxu3  ;;  %v2546_v16 = vadd.f32 %v2545_v57, %v2433_v44  ;;  %vm5149_vm8 = vmmov %vm5148_vm0 }
 0x186   : > { %v2209_v31 = vpop.f32.mrf.mxu1  ;;  %vm5153_vm10 = vmmov %vm5148_vm0 }
 0x187   : > { %2633 = vst.msk [vmem:[%s4472_s24 + $0x20] sm:$0xff] %vm5132_vm13, %v2546_v16  ;;  %v2668_v22 = vsel %vm5133_vm15, %v2546_v16, 0.0  ;;  %v2734_v13 = vmul.f32 %v2546_v16, %v2546_v16  ;;  %v2210_v0 = vadd.f32 %v2209_v31, %v2097_v43  ;;  %v2551_v1 = vpop.f32.mrf.mxu0  ;;  %v5143_v16 = vld [vmem:[#allocation22_spill] sm:$0xff]  ;;  %vm5145_vm13 = vmmov %vm5081_vm1 }
 0x188   : > { %v2669_v63 = vadd.f32 %v2668_v22, %v2667_v59  ;;  %vm5146_vm15 = vmmov %vm5081_vm1 }
 0x189   : > { %v2769_v57 = vsel %vm5134_vm6, %v2734_v13, 0.0  ;;  %v2323_v19 = vadd.f32 %v2322_v25, %v2210_v0  ;;  %2256 = vmatmul.f32.gmra.mxu1 %v1817_v61  ;;  %2372 = vmatmul.f32.gmra.mxu2 %v1850_v53  ;;  %v1701_v61 = vpop.permute.xlu0 %1700  ;;  %v1573_v13 = vpop.permute.xlu1 %1572  ;;  %vm5147_vm6 = vmmov %vm5081_vm1 }
 0x18a   : > { %v2770_v24 = vadd.f32 %v2769_v57, %v2768_v26  ;;  %2967 = vmatmul.msk.f32.gmra.mxu0 %vm5138_vm14, %v4177_v3  ;;  %v3215_v57 = vld [vmem:[#allocation2 + $0xd8] sm:$0xff]  ;;  %vm5152_vm14 = vmmov %vm5148_vm0 }
 0x18b   : > { %2485 = vmatmul.f32.gmra.mxu3 %v1882_v6  ;;  %v2436_v50 = vadd.f32 %v2435_v55, %v2323_v19  ;;  %v1852_v19 = vsel %vm5146_vm15, %v3215_v57, %v1701_v61  ;;  %vm5154_vm3 = vmmov %vm5148_vm0 }
 0x18c   : > { %v2325_v8 = vpop.f32.mrf.mxu2  ;;  %vm5155_vm5 = vmmov %vm5148_vm0 }
 0x18d   : > { %v2438_v30 = vpop.f32.mrf.mxu3  ;;  %v2549_v59 = vadd.f32 %v2548_v20, %v2436_v50  ;;  %v5150_v50 = vld [vmem:[#allocation19_spill] sm:$0xff]  ;;  %vm5162_vm15 = vmmov %vm5148_vm0 }
 0x18e   : > { %v2212_v47 = vpop.f32.mrf.mxu1  ;;  %v5151_v32 = vunpack.i.h.bf16 %v5150_v50 }
 0x18f   : > { %2634 = vst.msk [vmem:[%s4472_s24 + $0x28] sm:$0xff] %vm5081_vm1, %v2549_v59  ;;  %v2670_v26 = vsel %vm5141_vm4, %v2549_v59, 0.0  ;;  %v2735_v44 = vmul.f32 %v2549_v59, %v2549_v59  ;;  %v2213_v38 = vadd.f32 %v2212_v47, %v2100_v2  ;;  %v2554_v11 = vpop.f32.mrf.mxu0  ;;  %v2106_v47 = vadd.f32 %v4226_v52, %v4239_v51  ;;  %vm5156_vm1 = vmmov %vm5148_vm0 }
 0x190   : > { %v2671_v25 = vadd.f32 %v2670_v26, %v2669_v63  ;;  %v1819_v63 = vsel %vm5145_vm13, %v1215_v42, %v1571_v17  ;;  %v1820_v26 = vsel %vm5154_vm3, %v4191_v45, %v1573_v13  ;;  %vm5157_vm4 = vmmov %vm5148_vm0  ;;  %v1357_v51 = vsel %vm4270_vm9, %v4264_v39, 0.0 }
 0x191   : > { %v2771_v20 = vsel %vm5142_vm7, %v2735_v44, 0.0  ;;  %v2326_v43 = vadd.f32 %v2325_v8, %v2213_v38  ;;  %2259 = vmatmul.f32.gmra.mxu1 %v1818_v56  ;;  %2375 = vmatmul.f32.gmra.mxu2 %v1851_v37  ;;  %v1884_v8 = vsel %vm5152_vm14, %v1320_v10, %v5151_v32  ;;  %v3217_v44 = vld [vmem:[#allocation2 + $0xe0] sm:$0xff]  ;;  %vm5158_vm7 = vmmov %vm5148_vm0  ;;  %v3219_v10 = vld [vmem:[#allocation2 + $0xf7] sm:$0xff] }
 0x192   : > { %v2772_v55 = vadd.f32 %v2771_v20, %v2770_v24  ;;  %2968 = vmatmul.msk.f32.gmra.mxu0 %vm5144_vm12, %v1355_v28  ;;  %vm5160_vm12 = vmmov %vm5148_vm0 }
 0x193   : > { %2488 = vmatmul.f32.gmra.mxu3 %v5143_v16  ;;  %v2439_v31 = vadd.f32 %v2438_v30, %v2326_v43  ;;  %v1703_v30 = vpop.permute.xlu2 %1702  ;;  %v3139_v43 = vpop.permute.xlu1 %3138  ;;  %vm5161_vm13 = vmmov %vm5148_vm0 }
 0x194   : > { %v2328_v53 = vpop.f32.mrf.mxu2  ;;  %v1853_v38 = vsel %vm5155_vm5, %v3217_v44, %v1703_v30  ;;  %v3140_v61 = vunpack.i.l.bf16 %v3139_v43  ;;  %v2112_v30 = vadd.f32 %v4226_v52, %v4316_v23  ;;  %vm5168_vm14 = vmmov %vm5148_vm0 }
 0x195   : > { %v2441_v5 = vpop.f32.mrf.mxu3  ;;  %v2552_v22 = vadd.f32 %v2551_v1, %v2439_v31  ;;  %v5159_v31 = vld [vmem:[#allocation33_spill] sm:$0xff]  ;;  %vm5170_vm3 = vmmov %vm5148_vm0 }
 0x196   : > { %v2215_v0 = vpop.f32.mrf.mxu1  ;;  %vm5171_vm5 = vmmov %vm5148_vm0 }
 0x197   : > { %2635 = vst.msk [vmem:[%s4472_s24 + $0x30] sm:$0xff] %vm5147_vm6, %v2552_v22  ;;  %v2672_v29 = vsel %vm5148_vm0, %v2552_v22, 0.0  ;;  %v2736_v49 = vmul.f32 %v2552_v22, %v2552_v22  ;;  %v2216_v6 = vadd.f32 %v2215_v0, %v2103_v54  ;;  %v2557_v41 = vpop.f32.mrf.mxu0  ;;  %v1217_v54 = vsel %vm4270_vm9, %v4155_v48, 0.0  ;;  %vm5163_vm6 = vmmov %vm5148_vm0 }
 0x198   : > { %v2673_v18 = vadd.f32 %v2672_v29, %v2671_v25  ;;  %v2109_v22 = vadd.f32 %v4226_v52, %v4280_v40  ;;  %v1322_v29 = vsel %vm5011_vm2, %v3219_v10, 0.0  ;;  %vm5164_vm9 = vmmov %vm5148_vm0 }
 0x199   : > { %v2773_v1 = vsel %vm5149_vm8, %v2736_v49, 0.0  ;;  %v2329_v24 = vadd.f32 %v2328_v53, %v2216_v6  ;;  %2262 = vmatmul.f32.gmra.mxu1 %v1819_v63  ;;  %2378 = vmatmul.f32.gmra.mxu2 %v1852_v19  ;;  %v1575_v53 = vpop.permute.xlu0 %1574  ;;  %v3218_v19 = vld [vmem:[#allocation2 + $0xe8] sm:$0xff]  ;;  %vm5166_vm8 = vmmov %vm5148_vm0 }
 0x19a   : > { %v2774_v34 = vadd.f32 %v2773_v1, %v2772_v55  ;;  %2969 = vmatmul.msk.f32.gmra.mxu0 %vm5153_vm10, %v4203_v60  ;;  %v1821_v57 = vsel %vm5161_vm13, %v1217_v54, %v1575_v53  ;;  %v1854_v4 = vsel %vm5162_vm15, %v3218_v19, %v3140_v61  ;;  %vm5167_vm2 = vmmov %vm5148_vm0 }
 0x19b   : > { %2491 = vmatmul.f32.gmra.mxu3 %v1884_v8  ;;  %v2442_v2 = vadd.f32 %v2441_v5, %v2329_v24  ;;  %v3144_v6 = vpop.permute.xlu2 %3143  ;;  %v5165_v24 = vunpack.i.h.bf16 %v3913_v9  ;;  %vm5169_vm10 = vmmov %vm5148_vm0 }
 0x19c   : > { %v2331_v59 = vpop.f32.mrf.mxu2  ;;  %v3145_v32 = vunpack.i.l.bf16 %v3144_v6  ;;  %vm5177_vm13 = vmmov %vm5148_vm0 }
 0x19d   : > { %v2444_v56 = vpop.f32.mrf.mxu3  ;;  %v2555_v58 = vadd.f32 %v2554_v11, %v2442_v2  ;;  %v1886_v14 = vsel %vm5166_vm8, %v1322_v29, %v5165_v24  ;;  %vm5178_vm15 = vmmov %vm5148_vm0 }
 0x19e   : > { %v2218_v37 = vpop.f32.mrf.mxu1  ;;  %vm5183_vm8 = vmmov %vm5148_vm0 }
 0x19f   : > { %2636 = vst.msk [vmem:[%s4472_s24 + $0x38] sm:$0xff] %vm5156_vm1, %v2555_v58  ;;  %v2674_v28 = vsel %vm5157_vm4, %v2555_v58, 0.0  ;;  %v2737_v25 = vmul.f32 %v2555_v58, %v2555_v58  ;;  %v2219_v20 = vadd.f32 %v2218_v37, %v2106_v47  ;;  %v2560_v17 = vpop.f32.mrf.mxu0  ;;  %v3220_v58 = vld [vmem:[#allocation2 + $0xf0] sm:$0xff]  ;;  %vm5172_vm1 = vmmov %vm5148_vm0 }
 0x1a0   : > { %v2675_v11 = vadd.f32 %v2674_v28, %v2673_v18  ;;  %v1855_v9 = vsel %vm5168_vm14, %v3220_v58, %v3145_v32  ;;  %v1359_v28 = vsel %vm4260_vm11, %v4297_v12, 0.0  ;;  %vm5173_vm4 = vmmov %vm5148_vm0  ;;  %v3222_v32 = vld [vmem:[#allocation2 + $0x100] sm:$0xff]  ;;  %v5189_v58 = vld [vmem:[#allocation23_spill] sm:$0xff] }
 0x1a1   : > { %v2775_v55 = vsel %vm5158_vm7, %v2737_v25, 0.0  ;;  %v2332_v16 = vadd.f32 %v2331_v59, %v2219_v20  ;;  %2265 = vmatmul.f32.gmra.mxu1 %v1820_v26  ;;  %2381 = vmatmul.f32.gmra.mxu2 %v1853_v38  ;;  %v3149_v38 = vpop.permute.xlu0 %3148  ;;  %vm5174_vm7 = vnez %v5041_v15  ;;  %vm5185_vm14 = vmmov %vm5148_vm0 }
 0x1a2   : > { %v2776_v45 = vadd.f32 %v2775_v55, %v2774_v34  ;;  %2970 = vmatmul.msk.f32.gmra.mxu0 %vm5160_vm12, %v1357_v51  ;;  %v3141_v34 = vunpack.i.h.bf16 %v3139_v43  ;;  %v3150_v51 = vunpack.i.l.bf16 %v3149_v38  ;;  %v3151_v55 = vunpack.i.h.bf16 %v3149_v38  ;;  %vm5176_vm12 = vmmov %vm5148_vm0 }
 0x1a3   : > { %2494 = vmatmul.f32.gmra.mxu3 %v5159_v31  ;;  %v2445_v42 = vadd.f32 %v2444_v56, %v2332_v16  ;;  %v3146_v16 = vunpack.i.h.bf16 %v3144_v6  ;;  %v5175_v31 = vld [vmem:[#allocation35_spill] sm:$0xff]  ;;  %v5181_v6 = vld [vmem:[#allocation17_spill] sm:$0xff] }
 0x1a4   : > { %v2334_v5 = vpop.f32.mrf.mxu2  ;;  %v1822_v23 = vsel %vm5171_vm5, %v4177_v3, %v3141_v34  ;;  %v1324_v3 = vsel %vm5174_vm7, %v4356_v7, 0.0  ;;  %v2115_v61 = vadd.f32 %v4226_v52, %v5175_v31  ;;  %vm5190_vm5 = vnez %v5189_v58 }
 0x1a5   : > { %v2447_v13 = vpop.f32.mrf.mxu3  ;;  %v2558_v0 = vadd.f32 %v2557_v41, %v2445_v42 }
 0x1a6   : > { %v2221_v63 = vpop.f32.mrf.mxu1 }
 0x1a7   : > { %2637 = vst.msk [vmem:[%s4472_s24 + $0x40] sm:$0xff] %vm5163_vm6, %v2558_v0  ;;  %v2676_v48 = vsel %vm5148_vm0, %v2558_v0, 0.0  ;;  %v2738_v62 = vmul.f32 %v2558_v0, %v2558_v0  ;;  %v2222_v49 = vadd.f32 %v2221_v63, %v2109_v22  ;;  %v2563_v40 = vpop.f32.mrf.mxu0  ;;  %vm5179_vm6 = vmmov %vm5148_vm0 }
 0x1a8   : > { %v2677_v18 = vadd.f32 %v2676_v48, %v2675_v11  ;;  %v1888_v63 = vsel %vm5179_vm6, %v1324_v3, %v3151_v55  ;;  %v5196_v3 = vld [vmem:[#allocation26_spill] sm:$0xff]  ;;  %vm5200_vm6 = vmmov %vm5148_vm0 }
 0x1a9   : > { %v2777_v41 = vsel %vm5164_vm9, %v2738_v62, 0.0  ;;  %v2335_v1 = vadd.f32 %v2334_v5, %v2222_v49  ;;  %2268 = vmatmul.f32.gmra.mxu1 %v1821_v57  ;;  %2384 = vmatmul.f32.gmra.mxu2 %v1854_v4  ;;  %v3221_v5 = vld [vmem:[#allocation2 + $0xf8] sm:$0xff]  ;;  %v4645_v57 = vpop.permute.xlu2 %3158  ;;  %vm5182_vm9 = vmmov %vm5148_vm0 }
 0x1aa   : > { %v2778_v50 = vadd.f32 %v2777_v41, %v2776_v45  ;;  %2971 = vmatmul.msk.f32.gmra.mxu0 %vm5167_vm2, %v4251_v35  ;;  %v1856_v22 = vsel %vm5176_vm12, %v3221_v5, %v3150_v51  ;;  %v3160_v49 = vunpack.i.l.bf16 %v4645_v57  ;;  %v2118_v41 = vadd.f32 %v4226_v52, %v4376_v21  ;;  %vm5184_vm2 = vmmov %vm5148_vm0 }
 0x1ab   : > { %2497 = vmatmul.f32.gmra.mxu3 %v1886_v14  ;;  %v2448_v8 = vadd.f32 %v2447_v13, %v2335_v1  ;;  %v3154_v13 = vpop.permute.xlu1 %3153  ;;  %vm5197_vm12 = vmmov %vm5148_vm0 }
 0x1ac   : > { %v2337_v2 = vpop.f32.mrf.mxu2  ;;  %v3156_v48 = vunpack.i.h.bf16 %v3154_v13  ;;  %v3155_v62 = vunpack.i.l.bf16 %v3154_v13  ;;  %v1889_v34 = vsel %vm5185_vm14, %v4445_v33, %v3160_v49  ;;  %vm5207_vm14 = vmmov %vm5148_vm0 }
 0x1ad   : > { %v2450_v59 = vpop.f32.mrf.mxu3  ;;  %v2561_v47 = vadd.f32 %v2560_v17, %v2448_v8 }
 0x1ae   : > { %v2224_v56 = vpop.f32.mrf.mxu1  ;;  %v1857_v8 = vsel %vm5184_vm2, %v3222_v32, %v3156_v48  ;;  %v5203_v48 = vld [vmem:[#allocation39_spill] sm:$0xff]  ;;  %vm5206_vm2 = vmmov %vm5148_vm0 }
 0x1af   : > { %2638 = vst.msk [vmem:[%s4472_s24 + $0x48] sm:$0xff] %vm5169_vm10, %v2561_v47  ;;  %v2678_v37 = vsel %vm5170_vm3, %v2561_v47, 0.0  ;;  %v2739_v26 = vmul.f32 %v2561_v47, %v2561_v47  ;;  %v2225_v44 = vadd.f32 %v2224_v56, %v2112_v30  ;;  %v2566_v35 = vpop.f32.mrf.mxu0  ;;  %vm5186_vm10 = vmmov %vm5148_vm0  ;;  %v3164_v47 = vpop.permute.xlu0 %3163  ;;  %v5188_v56 = vld [vmem:[#allocation37_spill] sm:$0xff] }
 0x1b0   : > { %v2679_v25 = vadd.f32 %v2678_v37, %v2677_v18  ;;  %vm5187_vm3 = vmmov %vm5148_vm0  ;;  %v3165_v38 = vunpack.i.l.bf16 %v3164_v47 }
 0x1b1   : > { %v2779_v20 = vsel %vm5172_vm1, %v2739_v26, 0.0  ;;  %v2338_v43 = vadd.f32 %v2337_v2, %v2225_v44  ;;  %2271 = vmatmul.f32.gmra.mxu1 %v1822_v23  ;;  %2387 = vmatmul.f32.gmra.mxu2 %v1855_v9  ;;  %v1361_v9 = vsel %vm5190_vm5, %v5188_v56, 0.0  ;;  %vm5191_vm1 = vmmov %vm5148_vm0  ;;  %v1294_v44 = vld [vmem:[#allocation2 + $0x117] sm:$0xff] }
 0x1b2   : > { %v2780_v17 = vadd.f32 %v2779_v20, %v2778_v50  ;;  %2972 = vmatmul.msk.f32.gmra.mxu0 %vm5173_vm4, %v1359_v28  ;;  %v1824_v50 = vsel %vm5183_vm8, %v4203_v60, %v3155_v62  ;;  %vm5192_vm4 = vmmov %vm5148_vm0  ;;  %v3166_v28 = vunpack.i.h.bf16 %v3164_v47  ;;  %v5193_v20 = vld [vmem:[#allocation34_spill] sm:$0xff]  ;;  %v1858_v31 = vsel %vm5197_vm12, %v5196_v3, %v3165_v38 }
 0x1b3   : > { %2500 = vmatmul.f32.gmra.mxu3 %v4045_v36  ;;  %v2451_v11 = vadd.f32 %v2450_v59, %v2338_v43  ;;  %v1219_v36 = vsel %vm4260_vm11, %v4274_v46, 0.0  ;;  %vm5180_vm11 = vmmov %vm5148_vm0  ;;  %vm5194_vm7 = vnez %v5193_v20 }
 0x1b4   : > { %v2340_v45 = vpop.f32.mrf.mxu2  ;;  %v1823_v27 = vsel %vm5148_vm0, %v1219_v36, %v3146_v16  ;;  %v1326_v43 = vsel %vm5194_vm7, %v1294_v44, 0.0  ;;  %v1221_v16 = vsel %vm5190_vm5, %v4264_v39, 0.0  ;;  %vm5204_vm8 = vmmov %vm5148_vm0 }
 0x1b5   : > { %v2453_v42 = vpop.f32.mrf.mxu3  ;;  %v2564_v53 = vadd.f32 %v2563_v40, %v2451_v11  ;;  %vm5215_vm7 = vmmov %vm5148_vm0 }
 0x1b6   : > { %v2227_v54 = vpop.f32.mrf.mxu1  ;;  %vm5216_vm12 = vmmov %vm5148_vm0 }
 0x1b7   : > { %2639 = vst.msk [vmem:[%s4472_s24 + $0x50] sm:$0xff] %vm5177_vm13, %v2564_v53  ;;  %v2680_v0 = vsel %vm5178_vm15, %v2564_v53, 0.0  ;;  %v2740_v15 = vmul.f32 %v2564_v53, %v2564_v53  ;;  %v2228_v7 = vadd.f32 %v2227_v54, %v2115_v61  ;;  %v2569_v19 = vpop.f32.mrf.mxu0  ;;  %v3169_v61 = vpop.permute.xlu1 %3168  ;;  %vm5198_vm13 = vmmov %vm5148_vm0  ;;  %v1890_v54 = vsel %vm5200_vm6, %v1326_v43, %v3166_v28 }
 0x1b8   : > { %v2681_v4 = vadd.f32 %v2680_v0, %v2679_v25  ;;  %v3161_v25 = vunpack.i.h.bf16 %v4645_v57  ;;  %vm5199_vm15 = vmmov %vm5148_vm0  ;;  %v3170_v57 = vunpack.i.l.bf16 %v3169_v61 }
 0x1b9   : > { %v2781_v46 = vsel %vm5180_vm11, %v2740_v15, 0.0  ;;  %v2341_v10 = vadd.f32 %v2340_v45, %v2228_v7  ;;  %2274 = vmatmul.f32.gmra.mxu1 %v1823_v27  ;;  %2390 = vmatmul.f32.gmra.mxu2 %v1856_v22  ;;  %v1330_v22 = vld [vmem:[#allocation2 + $0x119] sm:$0xff]  ;;  %vm5201_vm11 = vmmov %vm5148_vm0 }
 0x1ba   : > { %v2782_v29 = vadd.f32 %v2781_v46, %v2780_v17  ;;  %2973 = vmatmul.msk.f32.gmra.mxu0 %vm5182_vm9, %v5181_v6  ;;  %v5195_v17 = vld [vmem:[#allocation15_spill] sm:$0xff]  ;;  %v1825_v0 = vsel %vm5148_vm0, %v1221_v16, %v3161_v25  ;;  %vm5202_vm9 = vmmov %vm5148_vm0 }
 0x1bb   : > { %2503 = vmatmul.f32.gmra.mxu3 %v1888_v63  ;;  %v2454_v40 = vadd.f32 %v2453_v42, %v2341_v10  ;;  %v2121_v51 = vadd.f32 %v4226_v52, %v5195_v17  ;;  %v3174_v52 = vpop.permute.xlu2 %3173  ;;  %v3171_v63 = vunpack.i.h.bf16 %v3169_v61  ;;  %v1295_v27 = vld [vmem:[#allocation2 + $0x11f] sm:$0xff]  ;;  %vm5219_vm6 = vmmov %vm5148_vm0 }
 0x1bc   : > { %v2343_v18 = vpop.f32.mrf.mxu2  ;;  %v1331_v10 = vld [vmem:[#allocation2 + $0x121] sm:$0xff] }
 0x1bd   : > { %v2456_v1 = vpop.f32.mrf.mxu3  ;;  %v2567_v24 = vadd.f32 %v2566_v35, %v2454_v40 }
 0x1be   : > { %v2230_v14 = vpop.f32.mrf.mxu1 }
 0x1bf   : > { %2640 = vst.msk [vmem:[%s4472_s24 + $0x58] sm:$0xff] %vm5186_vm10, %v2567_v24  ;;  %v2682_v2 = vsel %vm5187_vm3, %v2567_v24, 0.0  ;;  %v2741_v30 = vmul.f32 %v2567_v24, %v2567_v24  ;;  %v2231_v59 = vadd.f32 %v2230_v14, %v2118_v41  ;;  %v2572_v21 = vpop.f32.mrf.mxu0  ;;  %vm5208_vm10 = vmmov %vm5148_vm0 }
 0x1c0   : > { %v2683_v37 = vadd.f32 %v2682_v2, %v2681_v4  ;;  %vm5209_vm3 = vmmov %vm5148_vm0  ;;  %v5210_v2 = vld [vmem:[#allocation13_spill] sm:$0xff] }
 0x1c1   : > { %v2783_v60 = vsel %vm5191_vm1, %v2741_v30, 0.0  ;;  %v2344_v26 = vadd.f32 %v2343_v18, %v2231_v59  ;;  %2277 = vmatmul.f32.gmra.mxu1 %v1824_v50  ;;  %2393 = vmatmul.f32.gmra.mxu2 %v1857_v8  ;;  %v3224_v18 = vld [vmem:[#allocation2 + $0xf9] sm:$0xff]  ;;  %vm5211_vm5 = vnez %v5210_v2  ;;  %vm5212_vm1 = vmmov %vm5148_vm0 }
 0x1c2   : > { %v2784_v33 = vadd.f32 %v2783_v60, %v2782_v29  ;;  %2974 = vmatmul.msk.f32.gmra.mxu0 %vm5192_vm4, %v1361_v9  ;;  %v3223_v29 = vld [vmem:[%s4803_s4] ss:$0 sm:$0xff]  ;;  %v1826_v41 = vsel %vm5204_vm8, %v3224_v18, %v3170_v57  ;;  %v1363_v30 = vsel %vm5211_vm5, %v1331_v10, 0.0  ;;  %vm5213_vm4 = vmmov %vm5148_vm0  ;;  %v3176_v9 = vunpack.i.h.bf16 %v3174_v52 }
 0x1c3   : > { %2506 = vmatmul.f32.gmra.mxu3 %v1889_v34  ;;  %v2457_v35 = vadd.f32 %v2456_v1, %v2344_v26  ;;  %v2124_v62 = vadd.f32 %v3223_v29, %v5203_v48  ;;  %v5205_v1 = vld [vmem:[#allocation7_spill] sm:$0xff]  ;;  %v5214_v60 = vld [vmem:[#allocation40_spill] sm:$0xff]  ;;  %v1223_v38 = vsel %vm5211_vm5, %v4297_v12, 0.0  ;;  %vm5223_vm8 = vmmov %vm5148_vm0 }
 0x1c4   : > { %v2346_v23 = vpop.f32.mrf.mxu2  ;;  %v1859_v24 = vsel %vm5206_vm2, %v5205_v1, %v3171_v63  ;;  %v2127_v26 = vadd.f32 %v3223_v29, %v5214_v60  ;;  %vm5225_vm2 = vmmov %vm5148_vm0  ;;  %v5232_v60 = vld [vmem:[#allocation24_spill] sm:$0xff] }
 0x1c5   : > { %v2459_v11 = vpop.f32.mrf.mxu3  ;;  %v2570_v55 = vadd.f32 %v2569_v19, %v2457_v35  ;;  %v3175_v19 = vunpack.i.l.bf16 %v3174_v52  ;;  %vm5230_vm5 = vmmov %vm5148_vm0 }
 0x1c6   : > { %v2233_v45 = vpop.f32.mrf.mxu1 }
 0x1c7   : > { %2641 = vst.msk [vmem:[%s4472_s24 + $0x60] sm:$0xff] %vm5198_vm13, %v2570_v55  ;;  %v2684_v42 = vsel %vm5199_vm15, %v2570_v55, 0.0  ;;  %v2742_v53 = vmul.f32 %v2570_v55, %v2570_v55  ;;  %v2234_v36 = vadd.f32 %v2233_v45, %v2121_v51  ;;  %v2575_v5 = vpop.f32.mrf.mxu0  ;;  %v1891_v14 = vsel %vm5207_vm14, %v1295_v27, %v3175_v19  ;;  %vm5217_vm13 = vmmov %vm5148_vm0 }
 0x1c8   : > { %v2685_v13 = vadd.f32 %v2684_v42, %v2683_v37  ;;  %v1827_v17 = vsel %vm5217_vm13, %v1223_v38, %v3176_v9  ;;  %vm5218_vm15 = vmmov %vm5148_vm0 }
 0x1c9   : > { %v2785_v39 = vsel %vm5201_vm11, %v2742_v53, 0.0  ;;  %v2347_v15 = vadd.f32 %v2346_v23, %v2234_v36  ;;  %2280 = vmatmul.f32.gmra.mxu1 %v1825_v0  ;;  %2396 = vmatmul.f32.gmra.mxu2 %v1858_v31  ;;  %v5220_v53 = vld [vmem:[#allocation25_spill] sm:$0xff]  ;;  %vm5221_vm11 = vmmov %vm5148_vm0 }
 0x1ca   : > { %v2786_v7 = vadd.f32 %v2785_v39, %v2784_v33  ;;  %2975 = vmatmul.msk.f32.gmra.mxu0 %vm5202_vm9, %v1330_v22  ;;  %vm5222_vm9 = vmmov %vm5148_vm0 }
 0x1cb   : > { %2509 = vmatmul.f32.gmra.mxu3 %v1890_v54  ;;  %v2460_v4 = vadd.f32 %v2459_v11, %v2347_v15  ;;  %vm5226_vm14 = vmmov %vm5148_vm0 }
 0x1cc   : > { %v2349_v46 = vpop.f32.mrf.mxu2  ;;  %vm5237_vm13 = vmmov %vm5148_vm0 }
 0x1cd   : > { %v2462_v49 = vpop.f32.mrf.mxu3  ;;  %v2573_v6 = vadd.f32 %v2572_v21, %v2460_v4  ;;  %v5224_v4 = vld [vmem:[#allocation9_spill] sm:$0xff] }
 0x1ce   : > { %v2236_v40 = vpop.f32.mrf.mxu1 }
 0x1cf   : > { %2642 = vst.msk [vmem:[%s4472_s24 + $0x68] sm:$0xff] %vm5208_vm10, %v2573_v6  ;;  %v2686_v50 = vsel %vm5209_vm3, %v2573_v6, 0.0  ;;  %v2743_v32 = vmul.f32 %v2573_v6, %v2573_v6  ;;  %v2237_v8 = vadd.f32 %v2236_v40, %v2124_v62  ;;  %v2578_v34 = vpop.f32.mrf.mxu0  ;;  %vm5227_vm10 = vmmov %vm5148_vm0 }
 0x1d0   : > { %v2687_v59 = vadd.f32 %v2686_v50, %v2685_v13  ;;  %vm5229_vm3 = vmmov %vm5148_vm0 }
 0x1d1   : > { %v2787_v47 = vsel %vm5212_vm1, %v2743_v32, 0.0  ;;  %v2350_v21 = vadd.f32 %v2349_v46, %v2237_v8  ;;  %2283 = vmatmul.f32.gmra.mxu1 %v1826_v41  ;;  %2399 = vmatmul.f32.gmra.mxu2 %v1859_v24  ;;  %vm5231_vm1 = vmmov %vm5148_vm0 }
 0x1d2   : > { %v2788_v56 = vadd.f32 %v2787_v47, %v2786_v7  ;;  %2976 = vmatmul.msk.f32.gmra.mxu0 %vm5213_vm4, %v1363_v30  ;;  %vm5233_vm4 = vmmov %vm5148_vm0 }
 0x1d3   : > { %2512 = vmatmul.f32.gmra.mxu3 %v1891_v14  ;;  %v2463_v58 = vadd.f32 %v2462_v49, %v2350_v21  ;;  %v5228_v14 = vld [vmem:[#allocation20_spill] sm:$0xff] }
 0x1d4   : > { %v2352_v37 = vpop.f32.mrf.mxu2 }
 0x1d5   : > { %v2465_v44 = vpop.f32.mrf.mxu3  ;;  %v2576_v33 = vadd.f32 %v2575_v5, %v2463_v58 }
 0x1d6   : > { %v2239_v35 = vpop.f32.mrf.mxu1 }
 0x1d7   : > { %2643 = vst.msk [vmem:[%s4472_s24 + $0x70] sm:$0xff] %vm5215_vm7, %v2576_v33  ;;  %v2688_v28 = vsel %vm5216_vm12, %v2576_v33, 0.0  ;;  %v2744_v25 = vmul.f32 %v2576_v33, %v2576_v33  ;;  %v2240_v23 = vadd.f32 %v2239_v35, %v2127_v26  ;;  %v2581_v20 = vpop.f32.mrf.mxu0  ;;  %vm5234_vm7 = vmmov %vm5148_vm0 }
 0x1d8   : > { %v2689_v43 = vadd.f32 %v2688_v28, %v2687_v59  ;;  %vm5235_vm12 = vmmov %vm5148_vm0 }
 0x1d9   : > { %v2789_v51 = vsel %vm5218_vm15, %v2744_v25, 0.0  ;;  %v2353_v11 = vadd.f32 %v2352_v37, %v2240_v23  ;;  %2286 = vmatmul.f32.gmra.mxu1 %v1827_v17  ;;  %vm5238_vm15 = vmmov %vm5148_vm0 }
 0x1da   : > { %v2790_v55 = vadd.f32 %v2789_v51, %v2788_v56 }
 0x1db   : > { %v2466_v16 = vadd.f32 %v2465_v44, %v2353_v11 }
 0x1dc   : > { %v2355_v45 = vpop.f32.mrf.mxu2 }
 0x1dd   : > { %v2579_v3 = vadd.f32 %v2578_v34, %v2466_v16 }
 0x1de   : > { %v2468_v12 = vpop.f32.mrf.mxu3  ;;  %v2242_v31 = vpop.f32.mrf.mxu1 }
 0x1df   : > { %2644 = vst.msk [vmem:[%s4472_s24 + $0x78] sm:$0xff] %vm5219_vm6, %v2579_v3  ;;  %v2690_v61 = vsel %vm5148_vm0, %v2579_v3, 0.0  ;;  %v2745_v42 = vmul.f32 %v2579_v3, %v2579_v3  ;;  %v2243_v36 = vadd.f32 %v2242_v31, %v5220_v53  ;;  %v2584_v54 = vpop.f32.mrf.mxu0  ;;  %vm5239_vm6 = vmmov %vm5148_vm0 }
 0x1e0   : > { %v2691_v52 = vadd.f32 %v2690_v61, %v2689_v43 }
 0x1e1   : > { %v2791_v5 = vsel %vm5221_vm11, %v2745_v42, 0.0  ;;  %v2356_v22 = vadd.f32 %v2355_v45, %v2243_v36  ;;  %vm5241_vm11 = vmmov %vm5148_vm0 }
 0x1e2   : > { %v2792_v13 = vadd.f32 %v2791_v5, %v2790_v55  ;;  %v5236_v55 = vld [vmem:[#allocation10_spill] sm:$0xff] }
 0x1e3   : > { %v2469_v0 = vadd.f32 %v2468_v12, %v2356_v22 }
 0x1e4   : > { %v2358_v39 = vpop.f32.mrf.mxu2 }
 0x1e5   : > { %v2582_v7 = vadd.f32 %v2581_v20, %v2469_v0 }
 0x1e6   : > { %v2471_v15 = vpop.f32.mrf.mxu3  ;;  %v2245_v63 = vpop.f32.mrf.mxu1 }
 0x1e7   : > { %2645 = vst.msk [vmem:[%s4472_s24 + $0x80] sm:$0xff] %vm5222_vm9, %v2582_v7  ;;  %v2692_v57 = vsel %vm5223_vm8, %v2582_v7, 0.0  ;;  %v2746_v19 = vmul.f32 %v2582_v7, %v2582_v7  ;;  %v2246_v27 = vadd.f32 %v2245_v63, %v5224_v4  ;;  %v2587_v46 = vpop.f32.mrf.mxu0  ;;  %vm5242_vm9 = vmmov %vm5148_vm0 }
 0x1e8   : > { %v2693_v10 = vadd.f32 %v2692_v57, %v2691_v52  ;;  %vm5244_vm8 = vmmov %vm5148_vm0 }
 0x1e9   : > { %v2793_v29 = vsel %vm5225_vm2, %v2746_v19, 0.0  ;;  %v2359_v48 = vadd.f32 %v2358_v39, %v2246_v27  ;;  %vm5245_vm2 = vmmov %vm5148_vm0 }
 0x1ea   : > { %v2794_v62 = vadd.f32 %v2793_v29, %v2792_v13  ;;  %v5240_v13 = vld [vmem:[#allocation29_spill] sm:$0xff] }
 0x1eb   : > { %v2472_v49 = vadd.f32 %v2471_v15, %v2359_v48 }
 0x1ec   : > { %v2361_v6 = vpop.f32.mrf.mxu2 }
 0x1ed   : > { %v2585_v18 = vadd.f32 %v2584_v54, %v2472_v49 }
 0x1ee   : > { %v2474_v40 = vpop.f32.mrf.mxu3  ;;  %v2248_v41 = vpop.f32.mrf.mxu1 }
 0x1ef   : > { %2646 = vst.msk [vmem:[%s4472_s24 + $0x88] sm:$0xff] %vm5226_vm14, %v2585_v18  ;;  %v2694_v1 = vsel %vm5227_vm10, %v2585_v18, 0.0  ;;  %v2747_v24 = vmul.f32 %v2585_v18, %v2585_v18  ;;  %v2249_v50 = vadd.f32 %v2248_v41, %v5228_v14  ;;  %v2590_v32 = vpop.f32.mrf.mxu0  ;;  %vm5246_vm14 = vmmov %vm5148_vm0 }
 0x1f0   : > { %v2695_v8 = vadd.f32 %v2694_v1, %v2693_v10  ;;  %vm5248_vm10 = vmmov %vm5148_vm0 }
 0x1f1   : > { %v2795_v34 = vsel %vm5229_vm3, %v2747_v24, 0.0  ;;  %v2362_v2 = vadd.f32 %v2361_v6, %v2249_v50  ;;  %vm5249_vm3 = vmmov %vm5148_vm0 }
 0x1f2   : > { %v2796_v30 = vadd.f32 %v2795_v34, %v2794_v62  ;;  %v5243_v62 = vld [vmem:[#allocation12_spill] sm:$0xff] }
 0x1f3   : > { %v2475_v59 = vadd.f32 %v2474_v40, %v2362_v2 }
 0x1f4   : > { %v2364_v47 = vpop.f32.mrf.mxu2 }
 0x1f5   : > { %v2588_v56 = vadd.f32 %v2587_v46, %v2475_v59 }
 0x1f6   : > { %v2477_v21 = vpop.f32.mrf.mxu3  ;;  %v2251_v58 = vpop.f32.mrf.mxu1 }
 0x1f7   : > { %2647 = vst.msk [vmem:[%s4472_s24 + $0x90] sm:$0xff] %vm5230_vm5, %v2588_v56  ;;  %v2696_v9 = vsel %vm5231_vm1, %v2588_v56, 0.0  ;;  %v2748_v37 = vmul.f32 %v2588_v56, %v2588_v56  ;;  %v2252_v26 = vadd.f32 %v2251_v58, %v5232_v60  ;;  %v2593_v44 = vpop.f32.mrf.mxu0  ;;  %vm5250_vm5 = vmmov %vm5148_vm0 }
 0x1f8   : > { %v2697_v33 = vadd.f32 %v2696_v9, %v2695_v8  ;;  %vm5252_vm1 = vmmov %vm5148_vm0 }
 0x1f9   : > { %v2797_v38 = vsel %vm5233_vm4, %v2748_v37, 0.0  ;;  %v2365_v35 = vadd.f32 %v2364_v47, %v2252_v26  ;;  %vm5253_vm4 = vmmov %vm5148_vm0 }
 0x1fa   : > { %v2798_v28 = vadd.f32 %v2797_v38, %v2796_v30  ;;  %v5247_v30 = vld [vmem:[#allocation31_spill] sm:$0xff] }
 0x1fb   : > { %v2478_v25 = vadd.f32 %v2477_v21, %v2365_v35 }
 0x1fc   : > { %v2367_v23 = vpop.f32.mrf.mxu2 }
 0x1fd   : > { %v2591_v43 = vadd.f32 %v2590_v32, %v2478_v25 }
 0x1fe   : > { %v2480_v20 = vpop.f32.mrf.mxu3  ;;  %v2254_v17 = vpop.f32.mrf.mxu1 }
 0x1ff   : > { %2648 = vst.msk [vmem:[%s4472_s24 + $0x98] sm:$0xff] %vm5234_vm7, %v2591_v43  ;;  %v2698_v51 = vsel %vm5235_vm12, %v2591_v43, 0.0  ;;  %v2749_v11 = vmul.f32 %v2591_v43, %v2591_v43  ;;  %v2255_v16 = vadd.f32 %v2254_v17, %v5236_v55  ;;  %v2596_v45 = vpop.f32.mrf.mxu0  ;;  %vm5254_vm7 = vmmov %vm5148_vm0 }
 0x200   : > { %v2699_v12 = vadd.f32 %v2698_v51, %v2697_v33  ;;  %vm5256_vm12 = vmmov %vm5148_vm0 }
 0x201   : > { %v2799_v3 = vsel %vm5237_vm13, %v2749_v11, 0.0  ;;  %v2368_v31 = vadd.f32 %v2367_v23, %v2255_v16  ;;  %vm5257_vm13 = vmmov %vm5148_vm0 }
 0x202   : > { %v2800_v61 = vadd.f32 %v2799_v3, %v2798_v28  ;;  %v5251_v28 = vld [vmem:[#allocation16_spill] sm:$0xff] }
 0x203   : > { %v2481_v42 = vadd.f32 %v2480_v20, %v2368_v31 }
 0x204   : > { %v2370_v53 = vpop.f32.mrf.mxu2 }
 0x205   : > { %v2594_v54 = vadd.f32 %v2593_v44, %v2481_v42 }
 0x206   : > { %v2483_v36 = vpop.f32.mrf.mxu3  ;;  %v2257_v52 = vpop.f32.mrf.mxu1 }
 0x207   : > { %2649 = vst.msk [vmem:[%s4472_s24 + $0xa0] sm:$0xff] %vm5238_vm15, %v2594_v54  ;;  %v2700_v5 = vsel %vm5239_vm6, %v2594_v54, 0.0  ;;  %v2750_v22 = vmul.f32 %v2594_v54, %v2594_v54  ;;  %v2258_v0 = vadd.f32 %v2257_v52, %v5240_v13  ;;  %v2599_v39 = vpop.f32.mrf.mxu0  ;;  %vm5258_vm15 = vmmov %vm5148_vm0 }
 0x208   : > { %v2701_v15 = vadd.f32 %v2700_v5, %v2699_v12  ;;  %vm5260_vm6 = vmmov %vm5148_vm0 }
 0x209   : > { %v2801_v7 = vsel %vm5148_vm0, %v2750_v22, 0.0  ;;  %v2371_v63 = vadd.f32 %v2370_v53, %v2258_v0 }
 0x20a   : > { %v2802_v57 = vadd.f32 %v2801_v7, %v2800_v61  ;;  %v5255_v61 = vld [vmem:[#allocation27_spill] sm:$0xff] }
 0x20b   : > { %v2484_v19 = vadd.f32 %v2483_v36, %v2371_v63 }
 0x20c   : > { %v2373_v4 = vpop.f32.mrf.mxu2 }
 0x20d   : > { %v2597_v46 = vadd.f32 %v2596_v45, %v2484_v19 }
 0x20e   : > { %v2486_v27 = vpop.f32.mrf.mxu3  ;;  %v2260_v10 = vpop.f32.mrf.mxu1 }
 0x20f   : > { %2650 = vst.msk [vmem:[%s4472_s24 + $0xa8] sm:$0xff] %vm5241_vm11, %v2597_v46  ;;  %v2702_v29 = vsel %vm5242_vm9, %v2597_v46, 0.0  ;;  %v2751_v48 = vmul.f32 %v2597_v46, %v2597_v46  ;;  %v2261_v49 = vadd.f32 %v2260_v10, %v5243_v62  ;;  %v2602_v6 = vpop.f32.mrf.mxu0  ;;  %vm5261_vm11 = vmmov %vm5148_vm0 }
 0x210   : > { %v2703_v40 = vadd.f32 %v2702_v29, %v2701_v15  ;;  %vm5263_vm9 = vmmov %vm5148_vm0 }
 0x211   : > { %v2803_v18 = vsel %vm5244_vm8, %v2751_v48, 0.0  ;;  %v2374_v41 = vadd.f32 %v2373_v4, %v2261_v49  ;;  %vm5264_vm8 = vmmov %vm5148_vm0 }
 0x212   : > { %v2804_v1 = vadd.f32 %v2803_v18, %v2802_v57  ;;  %v5259_v57 = vld [vmem:[#allocation11_spill] sm:$0xff] }
 0x213   : > { %v2487_v24 = vadd.f32 %v2486_v27, %v2374_v41 }
 0x214   : > { %v2376_v14 = vpop.f32.mrf.mxu2 }
 0x215   : > { %v2600_v32 = vadd.f32 %v2599_v39, %v2487_v24 }
 0x216   : > { %v2489_v50 = vpop.f32.mrf.mxu3  ;;  %v2263_v8 = vpop.f32.mrf.mxu1 }
 0x217   : > { %2651 = vst.msk [vmem:[%s4472_s24 + $0xb0] sm:$0xff] %vm5245_vm2, %v2600_v32  ;;  %v2704_v34 = vsel %vm5246_vm14, %v2600_v32, 0.0  ;;  %v2752_v2 = vmul.f32 %v2600_v32, %v2600_v32  ;;  %v2264_v59 = vadd.f32 %v2263_v8, %v5247_v30  ;;  %v2605_v47 = vpop.f32.mrf.mxu0  ;;  %vm5265_vm2 = vmmov %vm5148_vm0 }
 0x218   : > { %v2705_v21 = vadd.f32 %v2704_v34, %v2703_v40  ;;  %vm5267_vm14 = vmmov %vm5148_vm0 }
 0x219   : > { %v2805_v56 = vsel %vm5248_vm10, %v2752_v2, 0.0  ;;  %v2377_v58 = vadd.f32 %v2376_v14, %v2264_v59  ;;  %vm5268_vm10 = vmmov %vm5148_vm0 }
 0x21a   : > { %v2806_v9 = vadd.f32 %v2805_v56, %v2804_v1  ;;  %v5262_v1 = vld [vmem:[#allocation30_spill] sm:$0xff] }
 0x21b   : > { %v2490_v37 = vadd.f32 %v2489_v50, %v2377_v58 }
 0x21c   : > { %v2379_v60 = vpop.f32.mrf.mxu2 }
 0x21d   : > { %v2603_v44 = vadd.f32 %v2602_v6, %v2490_v37 }
 0x21e   : > { %v2492_v26 = vpop.f32.mrf.mxu3  ;;  %v2266_v33 = vpop.f32.mrf.mxu1 }
 0x21f   : > { %2652 = vst.msk [vmem:[%s4472_s24 + $0xb8] sm:$0xff] %vm5249_vm3, %v2603_v44  ;;  %v2706_v38 = vsel %vm5250_vm5, %v2603_v44, 0.0  ;;  %v2753_v35 = vmul.f32 %v2603_v44, %v2603_v44  ;;  %v2267_v25 = vadd.f32 %v2266_v33, %v5251_v28  ;;  %v2608_v23 = vpop.f32.mrf.mxu0  ;;  %vm5269_vm3 = vmmov %vm5148_vm0 }
 0x220   : > { %v2707_v20 = vadd.f32 %v2706_v38, %v2705_v21  ;;  %vm5271_vm5 = vmmov %vm5148_vm0 }
 0x221   : > { %v2807_v43 = vsel %vm5252_vm1, %v2753_v35, 0.0  ;;  %v2380_v17 = vadd.f32 %v2379_v60, %v2267_v25  ;;  %vm5272_vm1 = vmmov %vm5148_vm0 }
 0x222   : > { %v2808_v51 = vadd.f32 %v2807_v43, %v2806_v9  ;;  %v5266_v9 = vld [vmem:[#allocation28_spill] sm:$0xff] }
 0x223   : > { %v2493_v11 = vadd.f32 %v2492_v26, %v2380_v17 }
 0x224   : > { %v2382_v55 = vpop.f32.mrf.mxu2 }
 0x225   : > { %v2606_v45 = vadd.f32 %v2605_v47, %v2493_v11 }
 0x226   : > { %v2495_v16 = vpop.f32.mrf.mxu3  ;;  %v2269_v12 = vpop.f32.mrf.mxu1 }
 0x227   : > { %2653 = vst.msk [vmem:[%s4472_s24 + $0xc0] sm:$0xff] %vm5253_vm4, %v2606_v45  ;;  %v2708_v3 = vsel %vm5254_vm7, %v2606_v45, 0.0  ;;  %v2754_v31 = vmul.f32 %v2606_v45, %v2606_v45  ;;  %v2270_v42 = vadd.f32 %v2269_v12, %v5255_v61  ;;  %v2611_v53 = vpop.f32.mrf.mxu0  ;;  %vm5273_vm4 = vmmov %vm5148_vm0 }
 0x228   : > { %v2709_v36 = vadd.f32 %v2708_v3, %v2707_v20  ;;  %vm5275_vm7 = vmmov %vm5148_vm0 }
 0x229   : > { %v2809_v54 = vsel %vm5256_vm12, %v2754_v31, 0.0  ;;  %v2383_v52 = vadd.f32 %v2382_v55, %v2270_v42  ;;  %vm5276_vm12 = vmmov %vm5148_vm0 }
 0x22a   : > { %v2810_v5 = vadd.f32 %v2809_v54, %v2808_v51  ;;  %v5270_v51 = vld [vmem:[#allocation36_spill] sm:$0xff]  ;;  %v5274_v54 = vld [vmem:[#allocation38_spill] sm:$0xff] }
 0x22b   : > { %v2496_v22 = vadd.f32 %v2495_v16, %v2383_v52 }
 0x22c   : > { %v2385_v13 = vpop.f32.mrf.mxu2 }
 0x22d   : > { %v2609_v39 = vadd.f32 %v2608_v23, %v2496_v22 }
 0x22e   : > { %v2498_v0 = vpop.f32.mrf.mxu3  ;;  %v2272_v15 = vpop.f32.mrf.mxu1 }
 0x22f   : > { %2654 = vst.msk [vmem:[%s4472_s24 + $0xc8] sm:$0xff] %vm5257_vm13, %v2609_v39  ;;  %v2710_v7 = vsel %vm5258_vm15, %v2609_v39, 0.0  ;;  %v2755_v63 = vmul.f32 %v2609_v39, %v2609_v39  ;;  %v2273_v19 = vadd.f32 %v2272_v15, %v5259_v57  ;;  %v2614_v10 = vpop.f32.mrf.mxu0  ;;  %vm5277_vm13 = vmmov %vm5148_vm0 }
 0x230   : > { %v2711_v4 = vadd.f32 %v2710_v7, %v2709_v36  ;;  %vm5279_vm15 = vmmov %vm5148_vm0 }
 0x231   : > { %v2811_v27 = vsel %vm5260_vm6, %v2755_v63, 0.0  ;;  %v2386_v46 = vadd.f32 %v2385_v13, %v2273_v19  ;;  %vm5280_vm6 = vmmov %vm5148_vm0 }
 0x232   : > { %v2812_v29 = vadd.f32 %v2811_v27, %v2810_v5  ;;  %v5278_v27 = vld [vmem:[#allocation21_spill] sm:$0xff] }
 0x233   : > { %v2499_v48 = vadd.f32 %v2498_v0, %v2386_v46 }
 0x234   : > { %v2388_v62 = vpop.f32.mrf.mxu2 }
 0x235   : > { %v2612_v6 = vadd.f32 %v2611_v53, %v2499_v48 }
 0x236   : > { %v2501_v49 = vpop.f32.mrf.mxu3  ;;  %v2275_v40 = vpop.f32.mrf.mxu1 }
 0x237   : > { %2655 = vst.msk [vmem:[%s4472_s24 + $0xd0] sm:$0xff] %vm5148_vm0, %v2612_v6  ;;  %v2712_v18 = vsel %vm5261_vm11, %v2612_v6, 0.0  ;;  %v2756_v41 = vmul.f32 %v2612_v6, %v2612_v6  ;;  %v2276_v24 = vadd.f32 %v2275_v40, %v5262_v1  ;;  %v2617_v2 = vpop.f32.mrf.mxu0  ;;  %vm5281_vm11 = vmmov %vm5148_vm0 }
 0x238   : > { %v2713_v14 = vadd.f32 %v2712_v18, %v2711_v4 }
 0x239   : > { %v2813_v50 = vsel %vm5263_vm9, %v2756_v41, 0.0  ;;  %v2389_v32 = vadd.f32 %v2388_v62, %v2276_v24  ;;  %vm2831_vm9 = vcmask 1040384  }
 0x23a   : > { %v2814_v8 = vadd.f32 %v2813_v50, %v2812_v29 }
 0x23b   : > { %v2502_v34 = vadd.f32 %v2501_v49, %v2389_v32 }
 0x23c   : > { %v2391_v30 = vpop.f32.mrf.mxu2 }
 0x23d   : > { %v2615_v59 = vadd.f32 %v2614_v10, %v2502_v34 }
 0x23e   : > { %v2504_v47 = vpop.f32.mrf.mxu3  ;;  %v2278_v21 = vpop.f32.mrf.mxu1 }
 0x23f   : > { %2656 = vst.msk [vmem:[%s4472_s24 + $0xd8] sm:$0xff] %vm5264_vm8, %v2615_v59  ;;  %v2714_v56 = vsel %vm5265_vm2, %v2615_v59, 0.0  ;;  %v2757_v58 = vmul.f32 %v2615_v59, %v2615_v59  ;;  %v2279_v37 = vadd.f32 %v2278_v21, %v5266_v9  ;;  %v2620_v25 = vpop.f32.mrf.mxu0  ;;  %vm2833_vm8 = vcmask 517120  }
 0x240   : > { %v2715_v60 = vadd.f32 %v2714_v56, %v2713_v14 }
 0x241   : > { %v2815_v26 = vsel %vm5267_vm14, %v2757_v58, 0.0  ;;  %v2392_v44 = vadd.f32 %v2391_v30, %v2279_v37 }
 0x242   : > { %v2816_v33 = vadd.f32 %v2815_v26, %v2814_v8 }
 0x243   : > { %v2505_v38 = vadd.f32 %v2504_v47, %v2392_v44 }
 0x244   : > { %v2394_v35 = vpop.f32.mrf.mxu2 }
 0x245   : > { %v2618_v28 = vadd.f32 %v2617_v2, %v2505_v38 }
 0x246   : > { %v2281_v23 = vpop.f32.mrf.mxu1  ;;  %v2507_v20 = vpop.f32.mrf.mxu3 }
 0x247   : > { %2657 = vst.msk [vmem:[%s4472_s24 + $0xe0] sm:$0xff] %vm5268_vm10, %v2618_v28  ;;  %v2716_v43 = vsel %vm5269_vm3, %v2618_v28, 0.0  ;;  %v2758_v17 = vmul.f32 %v2618_v28, %v2618_v28  ;;  %v2282_v11 = vadd.f32 %v2281_v23, %v5270_v51  ;;  %v2623_v13 = vpop.f32.mrf.mxu0 }
 0x248   : > { %v2717_v55 = vadd.f32 %v2716_v43, %v2715_v60 }
 0x249   : > { %v2817_v16 = vsel %vm5271_vm5, %v2758_v17, 0.0  ;;  %v2395_v45 = vadd.f32 %v2394_v35, %v2282_v11 }
 0x24a   : > { %v2818_v12 = vadd.f32 %v2817_v16, %v2816_v33 }
 0x24b   : > { %v2508_v3 = vadd.f32 %v2507_v20, %v2395_v45 }
 0x24c   : > { %v2397_v61 = vpop.f32.mrf.mxu2 }
 0x24d   : > { %v2621_v31 = vadd.f32 %v2620_v25, %v2508_v3 }
 0x24e   : > { %v2284_v42 = vpop.f32.mrf.mxu1  ;;  %v2510_v22 = vpop.f32.mrf.mxu3 }
 0x24f   : > { %2658 = vst.msk [vmem:[%s4472_s24 + $0xe8] sm:$0xff] %vm5272_vm1, %v2621_v31  ;;  %v2718_v53 = vsel %vm5273_vm4, %v2621_v31, 0.0  ;;  %v2759_v36 = vmul.f32 %v2621_v31, %v2621_v31  ;;  %v2285_v52 = vadd.f32 %v2284_v42, %v5274_v54  ;;  %v2626_v40 = vpop.f32.mrf.mxu0 }
 0x250   : > { %v2719_v5 = vadd.f32 %v2718_v53, %v2717_v55 }
 0x251   : > { %v2819_v0 = vsel %vm5275_vm7, %v2759_v36, 0.0  ;;  %v2398_v39 = vadd.f32 %v2397_v61, %v2285_v52 }
 0x252   : > { %v2820_v15 = vadd.f32 %v2819_v0, %v2818_v12 }
 0x253   : > { %v2511_v7 = vadd.f32 %v2510_v22, %v2398_v39 }
 0x254   : > { %v2400_v10 = vpop.f32.mrf.mxu2 }
 0x255   : > { %v2624_v63 = vadd.f32 %v2623_v13, %v2511_v7 }
 0x256   : > { %v2287_v57 = vpop.f32.mrf.mxu1  ;;  %v2513_v48 = vpop.f32.mrf.mxu3 }
 0x257   : > { %2659 = vst.msk [vmem:[%s4472_s24 + $0xf0] sm:$0xff] %vm5276_vm12, %v2624_v63  ;;  %v2720_v19 = vsel %vm5277_vm13, %v2624_v63, 0.0  ;;  %v2760_v4 = vmul.f32 %v2624_v63, %v2624_v63  ;;  %v2288_v46 = vadd.f32 %v2287_v57, %v5278_v27 }
 0x258   : > { %v2721_v29 = vadd.f32 %v2720_v19, %v2719_v5 }
 0x259   : > { %v2821_v62 = vsel %vm5279_vm15, %v2760_v4, 0.0  ;;  %v2401_v49 = vadd.f32 %v2400_v10, %v2288_v46 }
 0x25a   : > { %v2822_v6 = vadd.f32 %v2821_v62, %v2820_v15 }
 0x25b   : > { %v2514_v18 = vadd.f32 %v2513_v48, %v2401_v49 }
 0x25d   : > { %v2627_v41 = vadd.f32 %v2626_v40, %v2514_v18 }
 0x25f   : > { %2660 = vst.msk [vmem:[%s4472_s24 + $0xf8] sm:$0xff] %vm5280_vm6, %v2627_v41  ;;  %v2722_v1 = vsel %vm5148_vm0, %v2627_v41, 0.0  ;;  %v2761_v24 = vmul.f32 %v2627_v41, %v2627_v41 }
 0x260   : > { %v2723_v14 = vadd.f32 %v2722_v1, %v2721_v29 }
 0x261   : > { %v2823_v50 = vsel %vm5281_vm11, %v2761_v24, 0.0 }
 0x262   : > { %v2724_v32 = vrot.slane %v2723_v14, 4  ;;  %v2824_v8 = vadd.f32 %v2823_v50, %v2822_v6 }
 0x264   : > { %v2725_v34 = vadd.f32 %v2724_v32, %v2723_v14  ;;  %v2825_v2 = vrot.slane %v2824_v8, 4 }
 0x266   : > { %v2726_v30 = vrot.slane %v2725_v34, 2  ;;  %v2826_v59 = vadd.f32 %v2825_v2, %v2824_v8 }
 0x268   : > { %v2727_v47 = vadd.f32 %v2726_v30, %v2725_v34  ;;  %v2827_v21 = vrot.slane %v2826_v59, 2 }
 0x26a   : > { %v2728_v56 = vrot.slane %v2727_v47, 1  ;;  %v2828_v58 = vadd.f32 %v2827_v21, %v2826_v59 }
 0x26c   : > { %v2829_v9 = vrot.slane %v2828_v58, 1  ;;  %v2729_v37 = vadd.f32 %v2728_v56, %v2727_v47 }
 0x26e   : > { %v2830_v60 = vadd.f32 %v2829_v9, %v2828_v58 }
 0x270   : > { %v2832_v26 = vsel %vm2831_vm9, %v2729_v37, %v2830_v60 }
 0x271   : > { %2834 = vst.msk [vmem:[%s279_s7] sm:$0x3] %vm2833_vm8, %v2832_v26 }
 0x272 PF: > { %s18_s21 = sadd.s32 1, %s3265_s21  }
 0x273   : > { %p15_p7 = scmp.ge.s32.totalorder %s18_s21, 4  }
 0x275   :  { %17 = sbr.rel (!%p15_p7) target bundleno = 1 (0x1), region = 87 }
 0x27a   :  { %2870 = vsyncpa [#allocation4], 1 }
 0x27b   :  { %2872 = vsyncpa [#allocation4 + $0x1], 1 }

</bundles_post_ra>
